<compile_context>
chip_gen: v7x
topology: tpu7x:2x2x1
jax: 0.10.0
libtpu: 0.0.40
codegen_flags: <defaults>
</compile_context>

<pallas_src>
import functools

import jax
import jax.numpy as jnp
import numpy as np
from jax.experimental import pallas as pl
from jax.experimental.pallas import tpu as pltpu


def _round_up(a: int, b: int) -> int:
    return ((a + b - 1) // b) * b


def _freq_bands(n_freqs: int, log_space: bool) -> tuple:
    if log_space:
        bands = 2.0 ** np.linspace(0.0, n_freqs - 1, n_freqs)
    else:
        bands = np.linspace(2.0 ** 0.0, 2.0 ** (n_freqs - 1), n_freqs)
    return tuple(float(f) for f in bands)


def _pos_enc_kernel(x_ref, o_ref, *, freqs):
    """x_ref: [tm, C] lane-dense tile.  o_ref: [n_bands, tm, C] band-major slab.

    Each band is written with a full, unmasked lane-dense store (no concat).
    """
    x = x_ref[...].astype(jnp.float32)
    o_ref[0] = x.astype(o_ref.dtype)                       # identity band
    # TODO(synk): on v7x (where the fast HBM lets the single EUP slot co-bind)
    # a sin/cos angle-addition recurrence for log_space=True would replace the
    # 2*n_freqs EUP ops/element with VALU muls; kept exact per-band sin/cos
    # here so all generations match the reference bit-for-bit.
    for k, f in enumerate(freqs):
        xf = x * f
        o_ref[1 + 2 * k] = jnp.sin(xf).astype(o_ref.dtype)
        o_ref[2 + 2 * k] = jnp.cos(xf).astype(o_ref.dtype)


@functools.partial(
    jax.jit,
    static_argnames=("n_freqs", "log_space", "out_dtype", "lane_width",
                     "vmem_budget_bytes", "band_major"),
)
def positional_encoder(x, *, n_freqs: int, log_space: bool = False,
                       out_dtype=None, lane_width: int = 512,
                       vmem_budget_bytes: int = 16 << 20,
                       band_major: bool = False):
    """Pallas equivalent of PositionalEncoder.forward.

    x: [N, d_input]  ->  [N, d_input * (1 + 2 * n_freqs)]  (band_major=False)
                     or  [1 + 2*n_freqs, N, d_input]       (band_major=True)
    """
    N, d_input = x.shape
    n_bands = 1 + 2 * n_freqs
    d_output = d_input * n_bands
    freqs = _freq_bands(n_freqs, log_space)
    out_dtype = x.dtype if out_dtype is None else out_dtype

    # Lane-dense 2D slab layout for the kernel.
    C = _round_up(max(lane_width, 128), 128)
    L = N * d_input
    rows_needed = max(1, pl.cdiv(L, C))

    # Tile rows from a VMEM budget: double-buffered footprint per grid step is
    #   2 * tm * C * (in_item + n_bands * out_item)
    in_item = jnp.dtype(x.dtype).itemsize
    out_item = jnp.dtype(out_dtype).itemsize
    per_row_bytes = 2 * C * (in_item + n_bands * out_item)
    tm_cap = max(8, min(256, (vmem_budget_bytes // per_row_bytes) // 8 * 8))
    # Keep >= ~4 grid steps when the input is large enough (megacore + overlap).
    tm_target = max(8, _round_up(pl.cdiv(rows_needed, 4), 8))
    tm = min(tm_cap, tm_target)
    R = _round_up(rows_needed, tm)
    grid = R // tm

    x_flat = x.reshape(-1)
    pad = R * C - L
    if pad:  # skipped entirely when the flat input already tiles evenly
        x_flat = jnp.pad(x_flat, (0, pad))
    x2d = x_flat.reshape(R, C)

    kernel = functools.partial(_pos_enc_kernel, freqs=freqs)

    slab = pl.pallas_call(
        kernel,
        out_shape=jax.ShapeDtypeStruct((n_bands, R, C), out_dtype),
        grid_spec=pl.GridSpec(
            grid=(grid,),
            in_specs=[pl.BlockSpec((tm, C), lambda i: (i, 0))],
            out_specs=pl.BlockSpec((n_bands, tm, C), lambda i: (0, i, 0)),
        ),
        compiler_params=pltpu.CompilerParams(
            dimension_semantics=("parallel",),
            vmem_limit_bytes=32 << 20,
        ),
        cost_estimate=pl.CostEstimate(
            flops=2 * n_freqs * R * C,
            transcendentals=2 * n_freqs * R * C,
            bytes_accessed=R * C * in_item + n_bands * R * C * out_item,
        ),
    )(x2d)

    # Undo padding.  band_major=True returns the slab layout (no transpose) so
    # a consumer can fold the band permutation into its first matmul weights.
    bands = slab.reshape(n_bands, R * C)[:, :L].reshape(n_bands, N, d_input)
    if band_major:
        return bands
    # Torch ordering: out[n, k*d_input + d] = band_k(x[n, d]).  Done under jit
    # so the slice/transpose/reshape fuse into a single copy.
    return jnp.transpose(bands, (1, 0, 2)).reshape(N, d_output)


def positional_encoder_ref(x, *, n_freqs: int, log_space: bool = False):
    """Pure-JAX reference mirroring the PyTorch forward exactly."""
    freqs = _freq_bands(n_freqs, log_space)
    parts = [x]
    for f in freqs:
        parts.append(jnp.sin(x * f))
        parts.append(jnp.cos(x * f))
    return jnp.concatenate(parts, axis=-1)


if __name__ == "__main__":
    key = jax.random.PRNGKey(0)
    N, d_input, n_freqs = 1024, 3, 10          # typical NeRF point encoding
    x = jax.random.uniform(key, (N, d_input), dtype=jnp.float32,
                           minval=-1.0, maxval=1.0)

    # Linear-spaced bands.
    out = jax.block_until_ready(
        positional_encoder(x, n_freqs=n_freqs, log_space=False))
    ref = positional_encoder_ref(x, n_freqs=n_freqs, log_space=False)
    assert out.shape == (N, d_input * (1 + 2 * n_freqs))
    np.testing.assert_allclose(np.asarray(out), np.asarray(ref),
                               rtol=1e-4, atol=1e-4)

    # Log-spaced bands.
    out_log = jax.block_until_ready(
        positional_encoder(x, n_freqs=n_freqs, log_space=True))
    ref_log = positional_encoder_ref(x, n_freqs=n_freqs, log_space=True)
    np.testing.assert_allclose(np.asarray(out_log), np.asarray(ref_log),
                               rtol=1e-4, atol=1e-4)

    # Ragged N (exercises the padding path).
    x_odd = jax.random.uniform(jax.random.PRNGKey(1), (999, d_input),
                               dtype=jnp.float32, minval=-1.0, maxval=1.0)
    out_odd = jax.block_until_ready(
        positional_encoder(x_odd, n_freqs=n_freqs, log_space=False))
    ref_odd = positional_encoder_ref(x_odd, n_freqs=n_freqs, log_space=False)
    np.testing.assert_allclose(np.asarray(out_odd), np.asarray(ref_odd),
                               rtol=1e-4, atol=1e-4)

    # Band-major output (transpose-free path for fused consumers).
    out_bm = jax.block_until_ready(
        positional_encoder(x, n_freqs=n_freqs, log_space=False,
                           band_major=True))
    ref_bm = np.asarray(ref).reshape(N, 1 + 2 * n_freqs, d_input)
    ref_bm = np.transpose(ref_bm, (1, 0, 2))
    np.testing.assert_allclose(np.asarray(out_bm), ref_bm,
                               rtol=1e-4, atol=1e-4)

    # bf16 output option (halves HBM writeback on the dominant output stream).
    out_bf16 = jax.block_until_ready(
        positional_encoder(x, n_freqs=n_freqs, log_space=False,
                           out_dtype=jnp.bfloat16))
    np.testing.assert_allclose(np.asarray(out_bf16, dtype=np.float32),
                               np.asarray(ref), rtol=2e-2, atol=2e-2)

    print("KERNEL_OK")
</pallas_src>

<mosaic_0001>
module attributes {stable_mosaic.version = 11 : i64} {
  func.func @_pos_enc_kernel(%arg0: i32, %arg1: memref<8x512xf32, #tpu.memory_space<vmem>>, %arg2: memref<21x8x512xf32, #tpu.memory_space<vmem>>) attributes {dimension_semantics = [#tpu.dimension_semantics<parallel>], iteration_bounds = array<i64: 1>, scalar_prefetch = 0 : i64, scratch_operands = 0 : i64, tpu.core_type = #tpu.core_type<tc>, window_params = [{transform_indices = @transform_0, window_bounds = array<i64: 8, 512>}, {transform_indices = @transform_1, window_bounds = array<i64: 21, 8, 512>}]} {
    %c0 = arith.constant 0 : index
    %c0_0 = arith.constant 0 : index
    %0 = vector.load %arg1[%c0, %c0_0] : memref<8x512xf32, #tpu.memory_space<vmem>>, vector<8x512xf32>
    %c0_1 = arith.constant 0 : index
    %c0_2 = arith.constant 0 : index
    %c0_3 = arith.constant 0 : index
    %1 = vector.load %arg2[%c0_1, %c0_2, %c0_3] : memref<21x8x512xf32, #tpu.memory_space<vmem>>, vector<1x8x512xf32>
    %2 = vector.shape_cast %1 : vector<1x8x512xf32> to vector<8x512xf32>
    %3 = vector.shape_cast %0 : vector<8x512xf32> to vector<1x8x512xf32>
    tpu.vector_store %arg2[%c0_1, %c0_2, %c0_3], %3 {strides = array<i32>} : memref<21x8x512xf32, #tpu.memory_space<vmem>>, vector<1x8x512xf32>,
    %cst = arith.constant 1.000000e+00 : f32
    %4 = vector.broadcast %cst : f32 to vector<8x512xf32>
    %5 = arith.mulf %0, %4 : vector<8x512xf32>
    %6 = math.sin %5 : vector<8x512xf32>
    %c1 = arith.constant 1 : index
    %c0_4 = arith.constant 0 : index
    %c0_5 = arith.constant 0 : index
    %7 = vector.load %arg2[%c1, %c0_4, %c0_5] : memref<21x8x512xf32, #tpu.memory_space<vmem>>, vector<1x8x512xf32>
    %8 = vector.shape_cast %7 : vector<1x8x512xf32> to vector<8x512xf32>
    %9 = vector.shape_cast %6 : vector<8x512xf32> to vector<1x8x512xf32>
    tpu.vector_store %arg2[%c1, %c0_4, %c0_5], %9 {strides = array<i32>} : memref<21x8x512xf32, #tpu.memory_space<vmem>>, vector<1x8x512xf32>,
    %10 = math.cos %5 : vector<8x512xf32>
    %c2 = arith.constant 2 : index
    %c0_6 = arith.constant 0 : index
    %c0_7 = arith.constant 0 : index
    %11 = vector.load %arg2[%c2, %c0_6, %c0_7] : memref<21x8x512xf32, #tpu.memory_space<vmem>>, vector<1x8x512xf32>
    %12 = vector.shape_cast %11 : vector<1x8x512xf32> to vector<8x512xf32>
    %13 = vector.shape_cast %10 : vector<8x512xf32> to vector<1x8x512xf32>
    tpu.vector_store %arg2[%c2, %c0_6, %c0_7], %13 {strides = array<i32>} : memref<21x8x512xf32, #tpu.memory_space<vmem>>, vector<1x8x512xf32>,
    %cst_8 = arith.constant 57.7777786 : f32
    %14 = vector.broadcast %cst_8 : f32 to vector<8x512xf32>
    %15 = arith.mulf %0, %14 : vector<8x512xf32>
    %16 = math.sin %15 : vector<8x512xf32>
    %c3 = arith.constant 3 : index
    %c0_9 = arith.constant 0 : index
    %c0_10 = arith.constant 0 : index
    %17 = vector.load %arg2[%c3, %c0_9, %c0_10] : memref<21x8x512xf32, #tpu.memory_space<vmem>>, vector<1x8x512xf32>
    %18 = vector.shape_cast %17 : vector<1x8x512xf32> to vector<8x512xf32>
    %19 = vector.shape_cast %16 : vector<8x512xf32> to vector<1x8x512xf32>
    tpu.vector_store %arg2[%c3, %c0_9, %c0_10], %19 {strides = array<i32>} : memref<21x8x512xf32, #tpu.memory_space<vmem>>, vector<1x8x512xf32>,
    %20 = math.cos %15 : vector<8x512xf32>
    %c4 = arith.constant 4 : index
    %c0_11 = arith.constant 0 : index
    %c0_12 = arith.constant 0 : index
    %21 = vector.load %arg2[%c4, %c0_11, %c0_12] : memref<21x8x512xf32, #tpu.memory_space<vmem>>, vector<1x8x512xf32>
    %22 = vector.shape_cast %21 : vector<1x8x512xf32> to vector<8x512xf32>
    %23 = vector.shape_cast %20 : vector<8x512xf32> to vector<1x8x512xf32>
    tpu.vector_store %arg2[%c4, %c0_11, %c0_12], %23 {strides = array<i32>} : memref<21x8x512xf32, #tpu.memory_space<vmem>>, vector<1x8x512xf32>,
    %cst_13 = arith.constant 114.555557 : f32
    %24 = vector.broadcast %cst_13 : f32 to vector<8x512xf32>
    %25 = arith.mulf %0, %24 : vector<8x512xf32>
    %26 = math.sin %25 : vector<8x512xf32>
    %c5 = arith.constant 5 : index
    %c0_14 = arith.constant 0 : index
    %c0_15 = arith.constant 0 : index
    %27 = vector.load %arg2[%c5, %c0_14, %c0_15] : memref<21x8x512xf32, #tpu.memory_space<vmem>>, vector<1x8x512xf32>
    %28 = vector.shape_cast %27 : vector<1x8x512xf32> to vector<8x512xf32>
    %29 = vector.shape_cast %26 : vector<8x512xf32> to vector<1x8x512xf32>
    tpu.vector_store %arg2[%c5, %c0_14, %c0_15], %29 {strides = array<i32>} : memref<21x8x512xf32, #tpu.memory_space<vmem>>, vector<1x8x512xf32>,
    %30 = math.cos %25 : vector<8x512xf32>
    %c6 = arith.constant 6 : index
    %c0_16 = arith.constant 0 : index
    %c0_17 = arith.constant 0 : index
    %31 = vector.load %arg2[%c6, %c0_16, %c0_17] : memref<21x8x512xf32, #tpu.memory_space<vmem>>, vector<1x8x512xf32>
    %32 = vector.shape_cast %31 : vector<1x8x512xf32> to vector<8x512xf32>
    %33 = vector.shape_cast %30 : vector<8x512xf32> to vector<1x8x512xf32>
    tpu.vector_store %arg2[%c6, %c0_16, %c0_17], %33 {strides = array<i32>} : memref<21x8x512xf32, #tpu.memory_space<vmem>>, vector<1x8x512xf32>,
    %cst_18 = arith.constant 171.333328 : f32
    %34 = vector.broadcast %cst_18 : f32 to vector<8x512xf32>
    %35 = arith.mulf %0, %34 : vector<8x512xf32>
    %36 = math.sin %35 : vector<8x512xf32>
    %c7 = arith.constant 7 : index
    %c0_19 = arith.constant 0 : index
    %c0_20 = arith.constant 0 : index
    %37 = vector.load %arg2[%c7, %c0_19, %c0_20] : memref<21x8x512xf32, #tpu.memory_space<vmem>>, vector<1x8x512xf32>
    %38 = vector.shape_cast %37 : vector<1x8x512xf32> to vector<8x512xf32>
    %39 = vector.shape_cast %36 : vector<8x512xf32> to vector<1x8x512xf32>
    tpu.vector_store %arg2[%c7, %c0_19, %c0_20], %39 {strides = array<i32>} : memref<21x8x512xf32, #tpu.memory_space<vmem>>, vector<1x8x512xf32>,
    %40 = math.cos %35 : vector<8x512xf32>
    %c8 = arith.constant 8 : index
    %c0_21 = arith.constant 0 : index
    %c0_22 = arith.constant 0 : index
    %41 = vector.load %arg2[%c8, %c0_21, %c0_22] : memref<21x8x512xf32, #tpu.memory_space<vmem>>, vector<1x8x512xf32>
    %42 = vector.shape_cast %41 : vector<1x8x512xf32> to vector<8x512xf32>
    %43 = vector.shape_cast %40 : vector<8x512xf32> to vector<1x8x512xf32>
    tpu.vector_store %arg2[%c8, %c0_21, %c0_22], %43 {strides = array<i32>} : memref<21x8x512xf32, #tpu.memory_space<vmem>>, vector<1x8x512xf32>,
    %cst_23 = arith.constant 228.111115 : f32
    %44 = vector.broadcast %cst_23 : f32 to vector<8x512xf32>
    %45 = arith.mulf %0, %44 : vector<8x512xf32>
    %46 = math.sin %45 : vector<8x512xf32>
    %c9 = arith.constant 9 : index
    %c0_24 = arith.constant 0 : index
    %c0_25 = arith.constant 0 : index
    %47 = vector.load %arg2[%c9, %c0_24, %c0_25] : memref<21x8x512xf32, #tpu.memory_space<vmem>>, vector<1x8x512xf32>
    %48 = vector.shape_cast %47 : vector<1x8x512xf32> to vector<8x512xf32>
    %49 = vector.shape_cast %46 : vector<8x512xf32> to vector<1x8x512xf32>
    tpu.vector_store %arg2[%c9, %c0_24, %c0_25], %49 {strides = array<i32>} : memref<21x8x512xf32, #tpu.memory_space<vmem>>, vector<1x8x512xf32>,
    %50 = math.cos %45 : vector<8x512xf32>
    %c10 = arith.constant 10 : index
    %c0_26 = arith.constant 0 : index
    %c0_27 = arith.constant 0 : index
    %51 = vector.load %arg2[%c10, %c0_26, %c0_27] : memref<21x8x512xf32, #tpu.memory_space<vmem>>, vector<1x8x512xf32>
    %52 = vector.shape_cast %51 : vector<1x8x512xf32> to vector<8x512xf32>
    %53 = vector.shape_cast %50 : vector<8x512xf32> to vector<1x8x512xf32>
    tpu.vector_store %arg2[%c10, %c0_26, %c0_27], %53 {strides = array<i32>} : memref<21x8x512xf32, #tpu.memory_space<vmem>>, vector<1x8x512xf32>,
    %cst_28 = arith.constant 284.888885 : f32
    %54 = vector.broadcast %cst_28 : f32 to vector<8x512xf32>
    %55 = arith.mulf %0, %54 : vector<8x512xf32>
    %56 = math.sin %55 : vector<8x512xf32>
    %c11 = arith.constant 11 : index
    %c0_29 = arith.constant 0 : index
    %c0_30 = arith.constant 0 : index
    %57 = vector.load %arg2[%c11, %c0_29, %c0_30] : memref<21x8x512xf32, #tpu.memory_space<vmem>>, vector<1x8x512xf32>
    %58 = vector.shape_cast %57 : vector<1x8x512xf32> to vector<8x512xf32>
    %59 = vector.shape_cast %56 : vector<8x512xf32> to vector<1x8x512xf32>
    tpu.vector_store %arg2[%c11, %c0_29, %c0_30], %59 {strides = array<i32>} : memref<21x8x512xf32, #tpu.memory_space<vmem>>, vector<1x8x512xf32>,
    %60 = math.cos %55 : vector<8x512xf32>
    %c12 = arith.constant 12 : index
    %c0_31 = arith.constant 0 : index
    %c0_32 = arith.constant 0 : index
    %61 = vector.load %arg2[%c12, %c0_31, %c0_32] : memref<21x8x512xf32, #tpu.memory_space<vmem>>, vector<1x8x512xf32>
    %62 = vector.shape_cast %61 : vector<1x8x512xf32> to vector<8x512xf32>
    %63 = vector.shape_cast %60 : vector<8x512xf32> to vector<1x8x512xf32>
    tpu.vector_store %arg2[%c12, %c0_31, %c0_32], %63 {strides = array<i32>} : memref<21x8x512xf32, #tpu.memory_space<vmem>>, vector<1x8x512xf32>,
    %cst_33 = arith.constant 341.666656 : f32
    %64 = vector.broadcast %cst_33 : f32 to vector<8x512xf32>
    %65 = arith.mulf %0, %64 : vector<8x512xf32>
    %66 = math.sin %65 : vector<8x512xf32>
    %c13 = arith.constant 13 : index
    %c0_34 = arith.constant 0 : index
    %c0_35 = arith.constant 0 : index
    %67 = vector.load %arg2[%c13, %c0_34, %c0_35] : memref<21x8x512xf32, #tpu.memory_space<vmem>>, vector<1x8x512xf32>
    %68 = vector.shape_cast %67 : vector<1x8x512xf32> to vector<8x512xf32>
    %69 = vector.shape_cast %66 : vector<8x512xf32> to vector<1x8x512xf32>
    tpu.vector_store %arg2[%c13, %c0_34, %c0_35], %69 {strides = array<i32>} : memref<21x8x512xf32, #tpu.memory_space<vmem>>, vector<1x8x512xf32>,
    %70 = math.cos %65 : vector<8x512xf32>
    %c14 = arith.constant 14 : index
    %c0_36 = arith.constant 0 : index
    %c0_37 = arith.constant 0 : index
    %71 = vector.load %arg2[%c14, %c0_36, %c0_37] : memref<21x8x512xf32, #tpu.memory_space<vmem>>, vector<1x8x512xf32>
    %72 = vector.shape_cast %71 : vector<1x8x512xf32> to vector<8x512xf32>
    %73 = vector.shape_cast %70 : vector<8x512xf32> to vector<1x8x512xf32>
    tpu.vector_store %arg2[%c14, %c0_36, %c0_37], %73 {strides = array<i32>} : memref<21x8x512xf32, #tpu.memory_space<vmem>>, vector<1x8x512xf32>,
    %cst_38 = arith.constant 398.444458 : f32
    %74 = vector.broadcast %cst_38 : f32 to vector<8x512xf32>
    %75 = arith.mulf %0, %74 : vector<8x512xf32>
    %76 = math.sin %75 : vector<8x512xf32>
    %c15 = arith.constant 15 : index
    %c0_39 = arith.constant 0 : index
    %c0_40 = arith.constant 0 : index
    %77 = vector.load %arg2[%c15, %c0_39, %c0_40] : memref<21x8x512xf32, #tpu.memory_space<vmem>>, vector<1x8x512xf32>
    %78 = vector.shape_cast %77 : vector<1x8x512xf32> to vector<8x512xf32>
    %79 = vector.shape_cast %76 : vector<8x512xf32> to vector<1x8x512xf32>
    tpu.vector_store %arg2[%c15, %c0_39, %c0_40], %79 {strides = array<i32>} : memref<21x8x512xf32, #tpu.memory_space<vmem>>, vector<1x8x512xf32>,
    %80 = math.cos %75 : vector<8x512xf32>
    %c16 = arith.constant 16 : index
    %c0_41 = arith.constant 0 : index
    %c0_42 = arith.constant 0 : index
    %81 = vector.load %arg2[%c16, %c0_41, %c0_42] : memref<21x8x512xf32, #tpu.memory_space<vmem>>, vector<1x8x512xf32>
    %82 = vector.shape_cast %81 : vector<1x8x512xf32> to vector<8x512xf32>
    %83 = vector.shape_cast %80 : vector<8x512xf32> to vector<1x8x512xf32>
    tpu.vector_store %arg2[%c16, %c0_41, %c0_42], %83 {strides = array<i32>} : memref<21x8x512xf32, #tpu.memory_space<vmem>>, vector<1x8x512xf32>,
    %cst_43 = arith.constant 455.222229 : f32
    %84 = vector.broadcast %cst_43 : f32 to vector<8x512xf32>
    %85 = arith.mulf %0, %84 : vector<8x512xf32>
    %86 = math.sin %85 : vector<8x512xf32>
    %c17 = arith.constant 17 : index
    %c0_44 = arith.constant 0 : index
    %c0_45 = arith.constant 0 : index
    %87 = vector.load %arg2[%c17, %c0_44, %c0_45] : memref<21x8x512xf32, #tpu.memory_space<vmem>>, vector<1x8x512xf32>
    %88 = vector.shape_cast %87 : vector<1x8x512xf32> to vector<8x512xf32>
    %89 = vector.shape_cast %86 : vector<8x512xf32> to vector<1x8x512xf32>
    tpu.vector_store %arg2[%c17, %c0_44, %c0_45], %89 {strides = array<i32>} : memref<21x8x512xf32, #tpu.memory_space<vmem>>, vector<1x8x512xf32>,
    %90 = math.cos %85 : vector<8x512xf32>
    %c18 = arith.constant 18 : index
    %c0_46 = arith.constant 0 : index
    %c0_47 = arith.constant 0 : index
    %91 = vector.load %arg2[%c18, %c0_46, %c0_47] : memref<21x8x512xf32, #tpu.memory_space<vmem>>, vector<1x8x512xf32>
    %92 = vector.shape_cast %91 : vector<1x8x512xf32> to vector<8x512xf32>
    %93 = vector.shape_cast %90 : vector<8x512xf32> to vector<1x8x512xf32>
    tpu.vector_store %arg2[%c18, %c0_46, %c0_47], %93 {strides = array<i32>} : memref<21x8x512xf32, #tpu.memory_space<vmem>>, vector<1x8x512xf32>,
    %cst_48 = arith.constant 5.120000e+02 : f32
    %94 = vector.broadcast %cst_48 : f32 to vector<8x512xf32>
    %95 = arith.mulf %0, %94 : vector<8x512xf32>
    %96 = math.sin %95 : vector<8x512xf32>
    %c19 = arith.constant 19 : index
    %c0_49 = arith.constant 0 : index
    %c0_50 = arith.constant 0 : index
    %97 = vector.load %arg2[%c19, %c0_49, %c0_50] : memref<21x8x512xf32, #tpu.memory_space<vmem>>, vector<1x8x512xf32>
    %98 = vector.shape_cast %97 : vector<1x8x512xf32> to vector<8x512xf32>
    %99 = vector.shape_cast %96 : vector<8x512xf32> to vector<1x8x512xf32>
    tpu.vector_store %arg2[%c19, %c0_49, %c0_50], %99 {strides = array<i32>} : memref<21x8x512xf32, #tpu.memory_space<vmem>>, vector<1x8x512xf32>,
    %100 = math.cos %95 : vector<8x512xf32>
    %c20 = arith.constant 20 : index
    %c0_51 = arith.constant 0 : index
    %c0_52 = arith.constant 0 : index
    %101 = vector.load %arg2[%c20, %c0_51, %c0_52] : memref<21x8x512xf32, #tpu.memory_space<vmem>>, vector<1x8x512xf32>
    %102 = vector.shape_cast %101 : vector<1x8x512xf32> to vector<8x512xf32>
    %103 = vector.shape_cast %100 : vector<8x512xf32> to vector<1x8x512xf32>
    tpu.vector_store %arg2[%c20, %c0_51, %c0_52], %103 {strides = array<i32>} : memref<21x8x512xf32, #tpu.memory_space<vmem>>, vector<1x8x512xf32>,
    return
  }
  func.func @transform_0(%arg0: i32) -> (i32, i32) {
    %c0_i32 = arith.constant 0 : i32
    %c0_i32_0 = arith.constant 0 : i32
    return %arg0, %c0_i32 : i32, i32
  }
  func.func @transform_1(%arg0: i32) -> (i32, i32, i32) {
    %c0_i32 = arith.constant 0 : i32
    %c0_i32_0 = arith.constant 0 : i32
    %c0_i32_1 = arith.constant 0 : i32
    return %c0_i32, %arg0, %c0_i32_0 : i32, i32, i32
  }
}

</mosaic_0001>

<bundles_post_ra>
// kernel: positional_encoder.1
= control target key start
LH: loop header
LB: loop body
LE: loop exit
PB: predicated region body
PF: predicated region fallthrough
CT: control target
= control target key end

     0   :  { %v9181_v28 = vmov 683565275   ;;  %v9182_v30 = vmov 2475754826   ;;  %v9183_v32 = vmov 2131351028   ;;  %s13756_s0 = inlined_call_operand.vmem [shape: f32[8,512], index: 0, kind: input, shape index: {}]   ;;  %s13757_s1 = inlined_call_operand.vmem [shape: f32[21,8,512], index: 1, kind: output, shape index: {}]  }
   0x1   :  { %v9200_v0 = vld [vmem:[%s13756_s0] sm:$0xff]  ;;  %v9205_v1 = vld [vmem:[%s13756_s0 + $0x8] sm:$0xff]  ;;  %v9210_v2 = vld [vmem:[%s13756_s0 + $0x10] sm:$0xff]  ;;  %v9184_v34 = vmov 2102212464  }
   0x2   :  { %12 = vst [vmem:[%s13757_s1] sm:$0xff] %v9200_v0  ;;  %13 = vst [vmem:[%s13757_s1 + $0x8] sm:$0xff] %v9205_v1  ;;  %v9227_v3 = vld [vmem:[%s13756_s0 + $0x18] sm:$0xff]  ;;  %v16_v4 = vand.u32 2147483647, %v9200_v0  ;;  %v19_v5 = vand.u32 2139095040, %v9200_v0  ;;  %v123_v9 = vand.u32 2139095040, %v9205_v1 }
   0x3   :  { %14 = vst [vmem:[%s13757_s1 + $0x10] sm:$0xff] %v9210_v2  ;;  %15 = vst [vmem:[%s13757_s1 + $0x18] sm:$0xff] %v9227_v3  ;;  %v120_v6 = vand.u32 2147483647, %v9205_v1  ;;  %v227_v12 = vand.u32 2139095040, %v9210_v2  ;;  %vm18_vm13 = vcmp.lt.s32.totalorder %v9200_v0, 0 }
   0x4   :  { %v20_v7 = vshrl.u32 %v19_v5, 23  ;;  %v23_v8 = vand.u32 8388607, %v16_v4  ;;  %v124_v13 = vshrl.u32 %v123_v9, 23  ;;  %v224_v23 = vand.u32 2147483647, %v9210_v2 }
   0x5   :  { %v127_v10 = vand.u32 8388607, %v120_v6  ;;  %v228_v18 = vshrl.u32 %v227_v12, 23  ;;  %v9185_v36 = vmov 920167782  }
   0x6   :  { %v8436_v11 = vadd.s32 4294967169, %v20_v7  ;;  %v24_v15 = vor.u32 8388608, %v23_v8  ;;  %v8440_v16 = vadd.s32 4294967169, %v124_v13  ;;  %v9186_v43 = vmov 1326507024  }
   0x7   :  { %v128_v17 = vor.u32 8388608, %v127_v10  ;;  %v9247_v26 = vadd.s32 4294967169, %v228_v18  ;;  %vm9347_vm14 = vcmp.le.f32.partialorder %v16_v4, 0.7853982 }
   0x8   :  { %v26_v14 = vadd.s32 1, %v8436_v11  ;;  %v130_v20 = vadd.s32 1, %v8440_v16  ;;  %v9243_v24 = vshll.u32 %v24_v15, 8 }
   0x9   :  { %v9245_v25 = vshll.u32 %v128_v17, 8 }
   0xa   :  { %vm27_vm0 = vcmp.gt.s32.totalorder %v26_v14, 0  ;;  %vm131_vm1 = vcmp.gt.s32.totalorder %v130_v20, 0 }
   0xb   :  { %v28_v19 = vsel %vm27_vm0, %v26_v14, 0  ;;  %v132_v48 = vsel %vm131_vm1, %v130_v20, 0 }
   0xc   :  { %v29_v21 = vshrl.u32 %v28_v19, 5  ;;  %v30_v22 = vand.u32 31, %v28_v19  ;;  %v133_v51 = vshrl.u32 %v132_v48, 5  ;;  %v134_v52 = vand.u32 31, %v132_v48 }
   0xe   :  { %v31_v27 = vsub.s32 32, %v30_v22  ;;  %v33_v29 = vshll.u32 %v9181_v28, %v30_v22  ;;  %v36_v31 = vshll.u32 %v9182_v30, %v30_v22  ;;  %v39_v33 = vshll.u32 %v9183_v32, %v30_v22 }
   0xf   :  { %v42_v35 = vshll.u32 %v9184_v34, %v30_v22  ;;  %v45_v37 = vshll.u32 %v9185_v36, %v30_v22  ;;  %vm48_vm2 = vcmp.lt.s32.totalorder %v29_v21, 1  ;;  %vm49_vm3 = vcmp.lt.s32.totalorder %v29_v21, 2 }
  0x10   :  { %v32_v38 = vshrl.u32 %v9181_v28, %v31_v27  ;;  %v34_v39 = vshrl.u32 %v9182_v30, %v31_v27  ;;  %v37_v40 = vshrl.u32 %v9183_v32, %v31_v27  ;;  %v40_v41 = vshrl.u32 %v9184_v34, %v31_v27 }
  0x11   :  { %v43_v42 = vshrl.u32 %v9185_v36, %v31_v27  ;;  %v46_v44 = vshrl.u32 %v9186_v43, %v31_v27  ;;  %vm50_vm4 = vcmp.lt.s32.totalorder %v29_v21, 3  ;;  %vm51_vm5 = vcmp.lt.s32.totalorder %v29_v21, 4 }
  0x12   :  { %v35_v45 = vor.u32 %v34_v39, %v33_v29  ;;  %v38_v46 = vor.u32 %v37_v40, %v36_v31  ;;  %v41_v47 = vor.u32 %v40_v41, %v39_v33  ;;  %v135_v60 = vsub.s32 32, %v134_v52 }
  0x13   :  { %v44_v49 = vor.u32 %v43_v42, %v42_v35  ;;  %v47_v50 = vor.u32 %v46_v44, %v45_v37  ;;  %v137_v5 = vshll.u32 %v9181_v28, %v134_v52  ;;  %v140_v16 = vshll.u32 %v9182_v30, %v134_v52 }
  0x14   :  { %v52_v53 = vsel %vm48_vm2, %v32_v38, %v35_v45  ;;  %v53_v54 = vsel %vm51_vm5, %v41_v47, 2102212464  ;;  %v56_v55 = vsel %vm48_vm2, %v35_v45, %v38_v46  ;;  %v60_v56 = vsel %vm48_vm2, %v38_v46, %v41_v47 }
  0x15   :  { %v54_v57 = vsel %vm50_vm4, %v38_v46, %v53_v54  ;;  %v57_v58 = vsel %vm51_vm5, %v44_v49, 920167782  ;;  %v61_v59 = vsel %vm51_vm5, %v47_v50, 1326507024  ;;  %v136_v10 = vshrl.u32 %v9181_v28, %v135_v60 }
  0x16   :  { %v55_v61 = vsel %vm49_vm3, %v52_v53, %v54_v57  ;;  %v58_v62 = vsel %vm50_vm4, %v41_v47, %v57_v58  ;;  %v62_v63 = vsel %vm50_vm4, %v44_v49, %v61_v59  ;;  %v138_v15 = vshrl.u32 %v9182_v30, %v135_v60 }
  0x17   :  { %v59_v7 = vsel %vm49_vm3, %v56_v55, %v58_v62  ;;  %v63_v8 = vsel %vm49_vm3, %v60_v56, %v62_v63  ;;  %v71_v9 = vmul.u32 %v9243_v24, %v55_v61  ;;  %v141_v17 = vshrl.u32 %v9183_v32, %v135_v60 }
  0x18   :  { %v9274_v11 = vmul.u32.u64.low %v9243_v24, %v63_v8  ;;  %v9275_v12 = vmul.u32.u64.high %v9243_v24, %v63_v8, %v9274_v11  ;;  %v9278_v13 = vmul.u32.u64.low %v9243_v24, %v59_v7  ;;  %v9279_v14 = vmul.u32.u64.high %v9243_v24, %v59_v7, %v9278_v13 }
  0x19   :  { %v143_v18 = vshll.u32 %v9183_v32, %v134_v52  ;;  %v144_v19 = vshrl.u32 %v9184_v34, %v135_v60  ;;  %v146_v20 = vshll.u32 %v9184_v34, %v134_v52  ;;  %v147_v21 = vshrl.u32 %v9185_v36, %v135_v60 }
  0x1a   :  { %v149_v22 = vshll.u32 %v9185_v36, %v134_v52  ;;  %v139_v27 = vor.u32 %v138_v15, %v137_v5  ;;  %v142_v24 = vor.u32 %v141_v17, %v140_v16  ;;  %v150_v29 = vshrl.u32 %v9186_v43, %v135_v60 }
  0x1b   :  { %vm152_vm6 = vcmp.lt.s32.totalorder %v133_v51, 1  ;;  %vm73_vm7 = vc.u32 %v9275_v12, %v9278_v13  ;;  %v74_v31 = vadd.s32 1, %v9279_v14  ;;  %v145_v33 = vor.u32 %v144_v19, %v143_v18 }
  0x1c   :  { %v234_v35 = vadd.s32 1, %v9247_v26  ;;  %v148_v37 = vor.u32 %v147_v21, %v146_v20  ;;  %v151_v38 = vor.u32 %v150_v29, %v149_v22  ;;  %vm153_vm8 = vcmp.lt.s32.totalorder %v133_v51, 2 }
  0x1d   :  { %vm154_vm9 = vcmp.lt.s32.totalorder %v133_v51, 3  ;;  %v75_v39 = vsel %vm73_vm7, %v74_v31, %v9279_v14  ;;  %vm155_vm10 = vcmp.lt.s32.totalorder %v133_v51, 4  ;;  %v156_v40 = vsel %vm152_vm6, %v136_v10, %v139_v27 }
  0x1e   :  { %v160_v41 = vsel %vm152_vm6, %v139_v27, %v142_v24  ;;  %v76_v42 = vadd.s32 %v75_v39, %v71_v9  ;;  %v157_v44 = vsel %vm155_vm10, %v145_v33, 2102212464  ;;  %v161_v45 = vsel %vm155_vm10, %v148_v37, 920167782 }
  0x1f   :  { %v164_v46 = vsel %vm152_vm6, %v142_v24, %v145_v33  ;;  %v158_v47 = vsel %vm154_vm9, %v142_v24, %v157_v44  ;;  %v162_v48 = vsel %vm154_vm9, %v145_v33, %v161_v45  ;;  %v165_v49 = vsel %vm155_vm10, %v151_v38, 1326507024 }
  0x20   :  { %vm235_vm11 = vcmp.gt.s32.totalorder %v234_v35, 0  ;;  %v77_v26 = vadd.s32 536870912, %v76_v42  ;;  %v163_v50 = vsel %vm153_vm8, %v160_v41, %v162_v48  ;;  %v166_v52 = vsel %vm154_vm9, %v148_v37, %v165_v49 }
  0x21   :  { %v231_v53 = vand.u32 8388607, %v224_v23  ;;  %v159_v54 = vsel %vm153_vm8, %v156_v40, %v158_v47  ;;  %v167_v55 = vsel %vm153_vm8, %v164_v46, %v166_v52  ;;  %v236_v61 = vsel %vm235_vm11, %v234_v35, 0 }
  0x22   :  { %v9305_v56 = vmul.u32.u64.low %v9245_v25, %v163_v50  ;;  %v9306_v57 = vmul.u32.u64.high %v9245_v25, %v163_v50, %v9305_v56  ;;  %v78_v58 = vshrl.u32 %v77_v26, 30  ;;  %v238_v62 = vand.u32 31, %v236_v61 }
  0x23   :  { %v9310_v59 = vmul.u32.u64.low %v9245_v25, %v167_v55  ;;  %v9311_v60 = vmul.u32.u64.high %v9245_v25, %v167_v55, %v9310_v59  ;;  %v328_v63 = vand.u32 2147483647, %v9227_v3  ;;  %v331_v5 = vand.u32 2139095040, %v9227_v3 }
  0x24   :  { %v79_v7 = vshll.u32 %v78_v58, 30  ;;  %v175_v51 = vmul.u32 %v9245_v25, %v159_v54  ;;  %v232_v8 = vor.u32 8388608, %v231_v53  ;;  %v178_v9 = vadd.s32 1, %v9306_v57 }
  0x25   :  { %vm177_vm12 = vc.u32 %v9311_v60, %v9305_v56  ;;  %v239_v11 = vsub.s32 32, %v238_v62  ;;  %v332_v15 = vshrl.u32 %v331_v5, 23  ;;  %v335_v16 = vand.u32 8388607, %v328_v63 }
  0x26   :  { %v9317_v10 = vsub.s32 %v76_v42, %v79_v7  ;;  %v179_v14 = vsel %vm177_vm12, %v178_v9, %v9306_v57  ;;  %v9326_v18 = vshrl.u32 %v236_v61, 5  ;;  %v9328_v19 = vshll.u32 %v232_v8, 8 }
  0x27   :  { %v180_v25 = vadd.s32 %v179_v14, %v175_v51  ;;  %v102_v20 = vsub.s32 4, %v78_v58  ;;  %v241_v21 = vshll.u32 %v9181_v28, %v238_v62  ;;  %v244_v22 = vshll.u32 %v9182_v30, %v238_v62 }
  0x28   :  { %v82_v17 = vsub.s32 0, %v9317_v10  ;;  %v250_v27 = vshll.u32 %v9184_v34, %v238_v62  ;;  %v242_v31 = vshrl.u32 %v9182_v30, %v239_v11  ;;  %v245_v33 = vshrl.u32 %v9183_v32, %v239_v11 }
  0x29   :  { %v181_v29 = vadd.s32 536870912, %v180_v25  ;;  %v247_v35 = vshll.u32 %v9183_v32, %v238_v62  ;;  %v248_v37 = vshrl.u32 %v9184_v34, %v239_v11  ;;  %v251_v38 = vshrl.u32 %v9185_v36, %v239_v11 }
  0x2a   :  { %v8437_v24 = vmin.u32 %v82_v17, %v9317_v10  ;;  %v336_v39 = vor.u32 8388608, %v335_v16  ;;  %v72_v40 = vadd.s32 %v9278_v13, %v9275_v12  ;;  %v253_v42 = vshll.u32 %v9185_v36, %v238_v62 }
  0x2b   :  { %v254_v44 = vshrl.u32 %v9186_v43, %v239_v11  ;;  %v103_v45 = vsel %vm18_vm13, %v102_v20, %v78_v58  ;;  %v182_v46 = vshrl.u32 %v181_v29, 30  ;;  %v252_v47 = vor.u32 %v251_v38, %v250_v27 }
  0x2c   :  { %v84_v41 = vclz %v8437_v24  ;;  %v8448_v48 = vadd.s32 4294967169, %v332_v15  ;;  %v243_v50 = vor.u32 %v242_v31, %v241_v21  ;;  %v246_v12 = vor.u32 %v245_v33, %v244_v22 }
  0x2d   :  { %vm259_vm15 = vcmp.lt.s32.totalorder %v9326_v18, 4  ;;  %v183_v13 = vshll.u32 %v182_v46, 30  ;;  %v240_v52 = vshrl.u32 %v9181_v28, %v239_v11  ;;  %v249_v53 = vor.u32 %v248_v37, %v247_v35 }
  0x2e   :  { %v8438_v26 = vadd.s32 4294967294, %v84_v41  ;;  %vm256_vm0 = vcmp.lt.s32.totalorder %v9326_v18, 1  ;;  %v255_v54 = vor.u32 %v254_v44, %v253_v42  ;;  %vm258_vm2 = vcmp.lt.s32.totalorder %v9326_v18, 3 }
  0x2f   :  { %v265_v4 = vsel %vm259_vm15, %v252_v47, 920167782  ;;  %v9357_v57 = vsub.s32 %v180_v25, %v183_v13  ;;  %vm257_vm3 = vcmp.lt.s32.totalorder %v9326_v18, 2  ;;  %v261_v58 = vsel %vm259_vm15, %v249_v53, 2102212464 }
  0x30   :  { %vm8439_vm1 = vcmp.lt.s32.totalorder %v8438_v26, 0  ;;  %vm122_vm4 = vcmp.lt.s32.totalorder %v9205_v1, 0  ;;  %v264_v5 = vsel %vm256_vm0, %v243_v50, %v246_v12  ;;  %v260_v51 = vsel %vm256_vm0, %v240_v52, %v243_v50 }
  0x31   :  { %v87_v55 = vsel %vm8439_vm1, 0, %v8438_v26  ;;  %v186_v7 = vsub.s32 0, %v9357_v57  ;;  %v266_v8 = vsel %vm258_vm2, %v249_v53, %v265_v4  ;;  %v268_v9 = vsel %vm256_vm0, %v246_v12, %v249_v53 }
  0x32   :  { %v88_v59 = vsub.s32 32, %v87_v55  ;;  %v89_v61 = vshll.u32 %v9317_v10, %v87_v55  ;;  %v92_v62 = vsub.s32 4294967266, %v87_v55  ;;  %v262_v10 = vsel %vm258_vm2, %v246_v12, %v261_v58 }
  0x33   :  { %v269_v15 = vsel %vm259_vm15, %v255_v54, 1326507024  ;;  %vm9379_vm5 = vcmp.le.f32.partialorder %v120_v6, 0.7853982  ;;  %v8441_v17 = vmin.u32 %v186_v7, %v9357_v57  ;;  %v267_v25 = vsel %vm257_vm3, %v264_v5, %v266_v8 }
  0x34   :  { %v90_v11 = vshrl.u32 %v72_v40, %v88_v59  ;;  %v93_v14 = vadd.s32 127, %v92_v62  ;;  %v270_v20 = vsel %vm258_vm2, %v252_v47, %v269_v15  ;;  %v9388_v21 = vshll.u32 %v336_v39, 8 }
  0x35   :  { %v271_v24 = vsel %vm257_vm3, %v268_v9, %v270_v20  ;;  %v338_v29 = vadd.s32 1, %v8448_v48  ;;  %v9394_v6 = vsel %vm9347_vm14, 0, %v103_v45  ;;  %v188_v31 = vclz %v8441_v17 }
  0x36   :  { %v91_v22 = vor.u32 %v90_v11, %v89_v61  ;;  %v94_v27 = vshll.u32 %v93_v14, 23  ;;  %v206_v33 = vsub.s32 4, %v182_v46  ;;  %v263_v35 = vsel %vm257_vm3, %v260_v51, %v262_v10 }
  0x37   :  { %v9399_v39 = vmul.u32.u64.low %v9328_v19, %v271_v24  ;;  %v9400_v40 = vmul.u32.u64.high %v9328_v19, %v271_v24, %v9399_v39  ;;  %v8442_v41 = vadd.s32 4294967294, %v188_v31  ;;  %vm339_vm6 = vcmp.gt.s32.totalorder %v338_v29, 0 }
  0x38   :  { %v95_v37 = vor.u32 4788187, %v94_v27  ;;  %v98_v38 = vcvt.s32.f32 %v91_v22  ;;  %v9403_v42 = vmul.u32.u64.low %v9328_v19, %v267_v25  ;;  %v9404_v44 = vmul.u32.u64.high %v9328_v19, %v267_v25, %v9403_v42 }
  0x39   :  { %v109_v47 = vadd.s32 3, %v9394_v6  ;;  %v340_v48 = vsel %vm339_vm6, %v338_v29, 0  ;;  %v9409_v18 = vmul.f32 57.77778, %v9200_v0  ;;  %v176_v26 = vadd.s32 %v9305_v56, %v9311_v60 }
  0x3a   :  { %v96_v45 = vand.u32 2147483647, %v95_v37  ;;  %vm8443_vm7 = vcmp.lt.s32.totalorder %v8442_v41, 0  ;;  %v207_v50 = vsel %vm122_vm4, %v206_v33, %v182_v46  ;;  %v342_v12 = vand.u32 31, %v340_v48 }
  0x3b   :  { %v191_v52 = vsel %vm8443_vm7, 0, %v8442_v41  ;;  %v279_v53 = vmul.u32 %v9328_v19, %v263_v35  ;;  %vm281_vm8 = vc.u32 %v9400_v40, %v9403_v42  ;;  %v282_v58 = vadd.s32 1, %v9404_v44 }
  0x3c   :  { %v99_v13 = vmul.f32 %v98_v38, %v96_v45  ;;  %v192_v54 = vsub.s32 32, %v191_v52  ;;  %v193_v4 = vshll.u32 %v9357_v57, %v191_v52  ;;  %v196_v55 = vsub.s32 4294967266, %v191_v52 }
  0x3d   :  { %v9420_v56 = vand.u32 3, %v109_v47  ;;  %v9424_v60 = vsel %vm9379_vm5, 0, %v207_v50  ;;  %v343_v46 = vsub.s32 32, %v342_v12  ;;  %v283_v19 = vsel %vm281_vm8, %v282_v58, %v9404_v44 }
  0x3e   :  { %v100_v59 = vxor.u32 2147483648, %v99_v13  ;;  %v194_v61 = vshrl.u32 %v176_v26, %v192_v54  ;;  %v197_v62 = vadd.s32 127, %v196_v55  ;;  %v9427_v5 = vshrl.u32 %v340_v48, 5 }
  0x3f   :  { %v284_v7 = vadd.s32 %v283_v19, %v279_v53  ;;  %v345_v51 = vshll.u32 %v9181_v28, %v342_v12  ;;  %v348_v8 = vshll.u32 %v9182_v30, %v342_v12  ;;  %v351_v10 = vshll.u32 %v9183_v32, %v342_v12 }
  0x40   :  { %v101_v57 = vsel %vm18_vm13, %v100_v59, %v99_v13  ;;  %v195_v11 = vor.u32 %v194_v61, %v193_v4  ;;  %v198_v14 = vshll.u32 %v197_v62, 23  ;;  %v346_v17 = vshrl.u32 %v9182_v30, %v343_v46 }
  0x41   :  { %v104_v9 = vsel %vm9347_vm14, %v9200_v0, %v101_v57  ;;  %v285_v15 = vadd.s32 536870912, %v284_v7  ;;  %v349_v25 = vshrl.u32 %v9183_v32, %v343_v46  ;;  %v352_v27 = vshrl.u32 %v9184_v34, %v343_v46 }
  0x42   :  { %9002 = vcosq.f32 %v104_v9  ;;  %v199_v20 = vor.u32 4788187, %v198_v14  ;;  %v202_v22 = vcvt.s32.f32 %v195_v11  ;;  %v213_v24 = vadd.s32 3, %v9424_v60 }
  0x43   :  { %9004 = vsinq.f32 %v104_v9  ;;  %v9441_v29 = vshrl.u32 %v285_v15, 30  ;;  %v354_v49 = vshll.u32 %v9184_v34, %v342_v12  ;;  %v355_v31 = vshrl.u32 %v9185_v36, %v343_v46 }
  0x44   :  { %vm112_vm9 = vcmp.eq.s32.totalorder %v9420_v56, 0  ;;  %v200_v33 = vand.u32 2147483647, %v199_v20  ;;  %v344_v35 = vshrl.u32 %v9181_v28, %v343_v46  ;;  %v357_v37 = vshll.u32 %v9185_v36, %v342_v12 }
  0x45   :  { %v358_v38 = vshrl.u32 %v9186_v43, %v343_v46  ;;  %vm111_vm10 = vcmp.lt.s32.totalorder %v9420_v56, 2  ;;  %v287_v39 = vshll.u32 %v9441_v29, 30  ;;  %v347_v41 = vor.u32 %v346_v17, %v345_v51 }
  0x46   :  { %v350_v44 = vor.u32 %v349_v25, %v348_v8  ;;  %v356_v45 = vor.u32 %v355_v31, %v354_v49  ;;  %vm108_vm11 = vweird.f32 %v9200_v0  ;;  %v203_v47 = vmul.f32 %v202_v22, %v200_v33 }
  0x47   :  { %v353_v48 = vor.u32 %v352_v27, %v351_v10  ;;  %v359_v26 = vor.u32 %v358_v38, %v357_v37  ;;  %vm363_vm12 = vcmp.lt.s32.totalorder %v9427_v5, 4  ;;  %vm115_vm13 = vcmp.eq.s32.totalorder %v9420_v56, 2 }
  0x48   :  { %v9454_v50 = vsub.s32 %v284_v7, %v287_v39  ;;  %vm360_vm14 = vcmp.lt.s32.totalorder %v9427_v5, 1  ;;  %vm362_vm15 = vcmp.lt.s32.totalorder %v9427_v5, 3  ;;  %v204_v12 = vxor.u32 2147483648, %v203_v47 }
  0x49   :  { %v9458_v13 = vand.u32 3, %v213_v24  ;;  %v365_v52 = vsel %vm363_vm12, %v353_v48, 2102212464  ;;  %v530_v53 = vand.u32 3, %v9394_v6  ;;  %vm361_vm0 = vcmp.lt.s32.totalorder %v9427_v5, 2 }
  0x4a   :  { %v290_v54 = vsub.s32 0, %v9454_v50  ;;  %v364_v4 = vsel %vm360_vm14, %v344_v35, %v347_v41  ;;  %v369_v55 = vsel %vm363_vm12, %v356_v45, 920167782  ;;  %v205_v58 = vsel %vm122_vm4, %v204_v12, %v203_v47 }
  0x4b   :  { %v368_v59 = vsel %vm360_vm14, %v347_v41, %v350_v44  ;;  %v370_v46 = vsel %vm362_vm15, %v353_v48, %v369_v55  ;;  %v373_v6 = vsel %vm363_vm12, %v359_v26, 1326507024  ;;  %v208_v62 = vsel %vm9379_vm5, %v9205_v1, %v205_v58 }
  0x4c   :  { %v9003_v61 = vpop.eup %9002  ;;  %v8445_v19 = vmin.u32 %v290_v54, %v9454_v50  ;;  %v366_v57 = vsel %vm362_vm15, %v350_v44, %v365_v52  ;;  %v372_v7 = vsel %vm360_vm14, %v350_v44, %v353_v48  ;;  %9006 = vcosq.f32 %v208_v62 }
  0x4d   :  { %v9005_v51 = vpop.eup %9004  ;;  %v116_v8 = vxor.u32 2147483648, %v9003_v61  ;;  %vm226_vm1 = vcmp.lt.s32.totalorder %v9210_v2, 0  ;;  %v280_v9 = vadd.s32 %v9403_v42, %v9400_v40  ;;  %v374_v16 = vsel %vm362_vm15, %v356_v45, %v373_v6 }
  0x4e   :  { %v113_v11 = vxor.u32 2147483648, %v9005_v51  ;;  %9008 = vsinq.f32 %v208_v62  ;;  %v292_v14 = vclz %v8445_v19  ;;  %v371_v10 = vsel %vm361_vm0, %v368_v59, %v370_v46 }
  0x4f   :  { %v117_v15 = vsel %vm115_vm13, %v116_v8, %v9005_v51  ;;  %v310_v17 = vsub.s32 4, %v9441_v29  ;;  %v367_v25 = vsel %vm361_vm0, %v364_v4, %v366_v57  ;;  %v375_v40 = vsel %vm361_vm0, %v372_v7, %v374_v16 }
  0x50   :  { %v114_v42 = vsel %vm112_vm9, %v9003_v61, %v113_v11  ;;  %vm9503_vm2 = vcmp.le.f32.partialorder %v224_v23, 0.7853982  ;;  %v8446_v22 = vadd.s32 4294967294, %v292_v14  ;;  %vm215_vm3 = vcmp.lt.s32.totalorder %v9458_v13, 2 }
  0x51   :  { %v9508_v27 = vmul.u32.u64.low %v9388_v21, %v375_v40  ;;  %v9509_v24 = vmul.u32.u64.high %v9388_v21, %v375_v40, %v9508_v27  ;;  %v118_v49 = vsel %vm111_vm10, %v114_v42, %v117_v15  ;;  %vm531_vm4 = vcmp.lt.s32.totalorder %v530_v53, 2 }
  0x52   :  { %v9515_v5 = vmul.u32.u64.low %v9388_v21, %v371_v10  ;;  %v9516_v31 = vmul.u32.u64.high %v9388_v21, %v371_v10, %v9515_v5  ;;  %v119_v23 = vsel %vm108_vm11, nan, %v118_v49  ;;  %vm212_vm5 = vweird.f32 %v9205_v1 }
  0x53   :  { %vm8447_vm6 = vcmp.lt.s32.totalorder %v8446_v22, 0  ;;  %vm532_vm7 = vcmp.eq.s32.totalorder %v530_v53, 0  ;;  %vm535_vm8 = vcmp.eq.s32.totalorder %v530_v53, 2  ;;  %8452 = vst [vmem:[%s13757_s1 + $0x20] sm:$0xff] %v119_v23  ;;  %v633_v37 = vand.u32 3, %v9424_v60 }
  0x54   :  { %v295_v56 = vsel %vm8447_vm6, 0, %v8446_v22  ;;  %v534_v33 = vsel %vm532_vm7, %v9003_v61, %v113_v11  ;;  %v537_v35 = vsel %vm535_vm8, %v116_v8, %v9005_v51  ;;  %v383_v44 = vmul.u32 %v9388_v21, %v367_v25 }
  0x55   :  { %v296_v38 = vsub.s32 32, %v295_v56  ;;  %v297_v39 = vshll.u32 %v9454_v50, %v295_v56  ;;  %v300_v41 = vsub.s32 4294967266, %v295_v56  ;;  %vm216_vm9 = vcmp.eq.s32.totalorder %v9458_v13, 0 }
  0x56   :  { %vm385_vm10 = vc.u32 %v9509_v24, %v9515_v5  ;;  %v386_v45 = vadd.s32 1, %v9516_v31  ;;  %v538_v47 = vsel %vm531_vm4, %v534_v33, %v537_v35  ;;  %v311_v60 = vsel %vm226_vm1, %v310_v17, %v9441_v29  ;;  %v9007_v12 = vpop.eup %9006 }
  0x57   :  { %v298_v48 = vshrl.u32 %v280_v9, %v296_v38  ;;  %v301_v26 = vadd.s32 127, %v300_v41  ;;  %v539_v50 = vsel %vm108_vm11, nan, %v538_v47  ;;  %vm219_vm12 = vcmp.eq.s32.totalorder %v9458_v13, 2 }
  0x58   :  { %v387_v21 = vsel %vm385_vm10, %v386_v45, %v9516_v31  ;;  %8472 = vst [vmem:[%s13757_s1 + $0x40] sm:$0xff] %v539_v50  ;;  %vm635_vm13 = vcmp.eq.s32.totalorder %v633_v37, 0  ;;  %vm638_vm14 = vcmp.eq.s32.totalorder %v633_v37, 2  ;;  %v9009_v52 = vpop.eup %9008  ;;  %v220_v53 = vxor.u32 2147483648, %v9007_v12 }
  0x59   :  { %v299_v54 = vor.u32 %v298_v48, %v297_v39  ;;  %v302_v4 = vshll.u32 %v301_v26, 23  ;;  %v388_v55 = vadd.s32 %v387_v21, %v383_v44  ;;  %v217_v29 = vxor.u32 2147483648, %v9009_v52 }
  0x5a   :  { %v313_v0 = vsel %vm9503_vm2, 0, %v311_v60  ;;  %vm634_vm11 = vcmp.lt.s32.totalorder %v633_v37, 2  ;;  %v858_v58 = vand.u32 2147483647, %v9409_v18  ;;  %v221_v59 = vsel %vm219_vm12, %v220_v53, %v9009_v52 }
  0x5b   :  { %v303_v46 = vor.u32 4788187, %v302_v4  ;;  %v306_v6 = vcvt.s32.f32 %v299_v54  ;;  %v389_v61 = vadd.s32 536870912, %v388_v55  ;;  %v218_v62 = vsel %vm216_vm9, %v9007_v12, %v217_v29 }
  0x5c   :  { %v637_v19 = vsel %vm635_vm13, %v9007_v12, %v217_v29  ;;  %v640_v57 = vsel %vm638_vm14, %v220_v53, %v9009_v52  ;;  %v861_v7 = vand.u32 2139095040, %v9409_v18  ;;  %v222_v51 = vsel %vm215_vm3, %v218_v62, %v221_v59 }
  0x5d   :  { %v304_v8 = vand.u32 2147483647, %v303_v46  ;;  %v390_v9 = vshrl.u32 %v389_v61, 30  ;;  %v641_v16 = vsel %vm634_vm11, %v637_v19, %v640_v57  ;;  %v223_v11 = vsel %vm212_vm5, nan, %v222_v51 }
  0x5e   :  { %v642_v14 = vsel %vm212_vm5, nan, %v641_v16  ;;  %v862_v10 = vshrl.u32 %v861_v7, 23  ;;  %v9558_v15 = vmul.f32 57.77778, %v9205_v1  ;;  %8453 = vst [vmem:[%s13757_s1 + $0x28] sm:$0xff] %v223_v11  ;;  %v317_v13 = vadd.s32 3, %v313_v0 }
  0x5f   :  { %v307_v17 = vmul.f32 %v306_v6, %v304_v8  ;;  %v391_v25 = vshll.u32 %v390_v9, 30  ;;  %v414_v40 = vsub.s32 4, %v390_v9  ;;  %8473 = vst [vmem:[%s13757_s1 + $0x48] sm:$0xff] %v642_v14  ;;  %v865_v1 = vand.u32 8388607, %v858_v58 }
  0x60   :  { %v8476_v42 = vadd.s32 4294967169, %v862_v10  ;;  %vm330_vm15 = vcmp.lt.s32.totalorder %v9227_v3, 0  ;;  %v965_v31 = vand.u32 2139095040, %v9558_v15  ;;  %v9574_v56 = vand.u32 3, %v317_v13 }
  0x61   :  { %v308_v22 = vxor.u32 2147483648, %v307_v17  ;;  %v9566_v27 = vsub.s32 %v388_v55, %v391_v25  ;;  %v415_v35 = vsel %vm330_vm15, %v414_v40, %v390_v9  ;;  %v9582_v38 = vand.u32 3, %v313_v0 }
  0x62   :  { %v868_v49 = vadd.s32 1, %v8476_v42  ;;  %vm9586_vm3 = vcmp.le.f32.partialorder %v328_v63, 0.7853982  ;;  %v866_v44 = vor.u32 8388608, %v865_v1  ;;  %v966_v47 = vshrl.u32 %v965_v31, 23 }
  0x63   :  { %v309_v23 = vsel %vm226_vm1, %v308_v22, %v307_v17  ;;  %v394_v33 = vsub.s32 0, %v9566_v27  ;;  %v9593_v45 = vsel %vm9586_vm3, 0, %v415_v35  ;;  %vm323_vm1 = vcmp.eq.s32.totalorder %v9574_v56, 2 }
  0x64   :  { %v312_v37 = vsel %vm9503_vm2, %v9210_v2, %v309_v23  ;;  %vm869_vm0 = vcmp.gt.s32.totalorder %v868_v49, 0  ;;  %v384_v48 = vadd.s32 %v9515_v5, %v9509_v24  ;;  %vm320_vm2 = vcmp.eq.s32.totalorder %v9574_v56, 0 }
  0x65   :  { %9010 = vcosq.f32 %v312_v37  ;;  %v8449_v41 = vmin.u32 %v394_v33, %v9566_v27  ;;  %v870_v20 = vsel %vm869_vm0, %v868_v49, 0  ;;  %vm738_vm4 = vcmp.eq.s32.totalorder %v9582_v38, 0 }
  0x66   :  { %9012 = vsinq.f32 %v312_v37  ;;  %vm741_vm5 = vcmp.eq.s32.totalorder %v9582_v38, 2  ;;  %v9601_v63 = vshrl.u32 %v870_v20, 5  ;;  %v872_v60 = vand.u32 31, %v870_v20 }
  0x67   :  { %v396_v26 = vclz %v8449_v41  ;;  %vm319_vm6 = vcmp.lt.s32.totalorder %v9574_v56, 2  ;;  %v9605_v12 = vadd.s32 3, %v9593_v45  ;;  %vm737_vm7 = vcmp.lt.s32.totalorder %v9582_v38, 2 }
  0x68   :  { %v9608_v21 = vshll.u32 %v866_v44, 8  ;;  %v962_v24 = vand.u32 2147483647, %v9558_v15  ;;  %vm316_vm8 = vweird.f32 %v9210_v2  ;;  %v873_v5 = vsub.s32 32, %v872_v60 }
  0x69   :  { %v8450_v50 = vadd.s32 4294967294, %v396_v26  ;;  %v875_v52 = vshll.u32 %v9181_v28, %v872_v60  ;;  %v878_v53 = vshll.u32 %v9182_v30, %v872_v60  ;;  %v8480_v54 = vadd.s32 4294967169, %v966_v47 }
  0x6a   :  { %v881_v4 = vshll.u32 %v9183_v32, %v872_v60  ;;  %v884_v55 = vshll.u32 %v9184_v34, %v872_v60  ;;  %v887_v29 = vshll.u32 %v9185_v36, %v872_v60  ;;  %v876_v59 = vshrl.u32 %v9182_v30, %v873_v5 }
  0x6b   :  { %vm8451_vm9 = vcmp.lt.s32.totalorder %v8450_v50, 0  ;;  %v879_v46 = vshrl.u32 %v9183_v32, %v873_v5  ;;  %vm890_vm10 = vcmp.lt.s32.totalorder %v9601_v63, 1  ;;  %v882_v19 = vshrl.u32 %v9184_v34, %v873_v5 }
  0x6c   :  { %v399_v0 = vsel %vm8451_vm9, 0, %v8450_v50  ;;  %v874_v57 = vshrl.u32 %v9181_v28, %v873_v5  ;;  %v877_v7 = vor.u32 %v876_v59, %v875_v52  ;;  %v885_v51 = vshrl.u32 %v9185_v36, %v873_v5 }
  0x6d   :  { %v400_v6 = vsub.s32 32, %v399_v0  ;;  %v401_v61 = vshll.u32 %v9566_v27, %v399_v0  ;;  %v404_v62 = vsub.s32 4294967266, %v399_v0  ;;  %v888_v8 = vshrl.u32 %v9186_v43, %v873_v5 }
  0x6e   :  { %v880_v14 = vor.u32 %v879_v46, %v878_v53  ;;  %v883_v10 = vor.u32 %v882_v19, %v881_v4  ;;  %v886_v25 = vor.u32 %v885_v51, %v884_v55  ;;  %vm891_vm12 = vcmp.lt.s32.totalorder %v9601_v63, 2 }
  0x6f   :  { %v9011_v9 = vpop.eup %9010  ;;  %v402_v16 = vshrl.u32 %v384_v48, %v400_v6  ;;  %v405_v11 = vadd.s32 127, %v404_v62  ;;  %v889_v40 = vor.u32 %v888_v8, %v887_v29  ;;  %vm893_vm13 = vcmp.lt.s32.totalorder %v9601_v63, 4 }
  0x70   :  { %v9013_v17 = vpop.eup %9012  ;;  %v324_v13 = vxor.u32 2147483648, %v9011_v9  ;;  %vm892_vm14 = vcmp.lt.s32.totalorder %v9601_v63, 3  ;;  %v895_v31 = vsel %vm893_vm13, %v883_v10, 2102212464  ;;  %v894_v20 = vsel %vm890_vm10, %v874_v57, %v877_v7 }
  0x71   :  { %v321_v42 = vxor.u32 2147483648, %v9013_v17  ;;  %v403_v22 = vor.u32 %v402_v16, %v401_v61  ;;  %v406_v27 = vshll.u32 %v405_v11, 23  ;;  %v896_v47 = vsel %vm892_vm14, %v880_v14, %v895_v31 }
  0x72   :  { %v325_v1 = vsel %vm323_vm1, %v324_v13, %v9013_v17  ;;  %v743_v49 = vsel %vm741_vm5, %v324_v13, %v9013_v17  ;;  %v898_v56 = vsel %vm890_vm10, %v877_v7, %v880_v14  ;;  %v899_v38 = vsel %vm893_vm13, %v886_v25, 920167782 }
  0x73   :  { %v322_v23 = vsel %vm320_vm2, %v9011_v9, %v321_v42  ;;  %v407_v33 = vor.u32 4788187, %v406_v27  ;;  %v410_v35 = vcvt.s32.f32 %v403_v22  ;;  %v740_v37 = vsel %vm738_vm4, %v9011_v9, %v321_v42 }
  0x74   :  { %v326_v41 = vsel %vm319_vm6, %v322_v23, %v325_v1  ;;  %v744_v44 = vsel %vm737_vm7, %v740_v37, %v743_v49  ;;  %v902_v50 = vsel %vm890_vm10, %v880_v14, %v883_v10  ;;  %v903_v5 = vsel %vm893_vm13, %v889_v40, 1326507024 }
  0x75   :  { %v327_v48 = vsel %vm316_vm8, nan, %v326_v41  ;;  %v408_v26 = vand.u32 2147483647, %v407_v33  ;;  %v745_v60 = vsel %vm316_vm8, nan, %v744_v44  ;;  %v969_v52 = vand.u32 8388607, %v962_v24 }
  0x76   :  { %8454 = vst [vmem:[%s13757_s1 + $0x30] sm:$0xff] %v327_v48  ;;  %8474 = vst [vmem:[%s13757_s1 + $0x50] sm:$0xff] %v745_v60  ;;  %v900_v4 = vsel %vm892_vm14, %v883_v10, %v899_v38  ;;  %v904_v55 = vsel %vm892_vm14, %v886_v25, %v903_v5  ;;  %v972_v29 = vadd.s32 1, %v8480_v54  ;;  %v897_v0 = vsel %vm891_vm12, %v894_v20, %v896_v47 }
  0x77   :  { %v411_v53 = vmul.f32 %v410_v35, %v408_v26  ;;  %v901_v59 = vsel %vm891_vm12, %v898_v56, %v900_v4  ;;  %v905_v46 = vsel %vm891_vm12, %v902_v50, %v904_v55  ;;  %v9677_v6 = vmul.f32 57.77778, %v9210_v2 }
  0x78   :  { %v9680_v62 = vmul.u32.u64.low %v9608_v21, %v905_v46  ;;  %v9681_v19 = vmul.u32.u64.high %v9608_v21, %v905_v46, %v9680_v62  ;;  %vm973_vm11 = vcmp.gt.s32.totalorder %v972_v29, 0  ;;  %v9691_v63 = vand.u32 3, %v9605_v12 }
  0x79   :  { %v412_v61 = vxor.u32 2147483648, %v411_v53  ;;  %v9684_v54 = vmul.u32.u64.low %v9608_v21, %v901_v59  ;;  %v9685_v57 = vmul.u32.u64.high %v9608_v21, %v901_v59, %v9684_v54  ;;  %v974_v7 = vsel %vm973_vm11, %v972_v29, 0 }
  0x7a   :  { %v9694_v2 = vand.u32 3, %v9593_v45  ;;  %v976_v8 = vand.u32 31, %v974_v7  ;;  %v913_v16 = vmul.u32 %v9608_v21, %v897_v0  ;;  %v970_v11 = vor.u32 8388608, %v969_v52 }
  0x7b   :  { %v413_v51 = vsel %vm330_vm15, %v412_v61, %v411_v53  ;;  %v9700_v14 = vshrl.u32 %v974_v7, 5  ;;  %vm915_vm15 = vc.u32 %v9681_v19, %v9684_v54  ;;  %v1069_v12 = vand.u32 2139095040, %v9677_v6 }
  0x7c   :  { %v416_v9 = vsel %vm9586_vm3, %v9227_v3, %v413_v51  ;;  %v977_v10 = vsub.s32 32, %v976_v8  ;;  %v916_v45 = vadd.s32 1, %v9685_v57  ;;  %v979_v17 = vshll.u32 %v9181_v28, %v976_v8 }
  0x7d   :  { %9014 = vcosq.f32 %v416_v9  ;;  %v982_v39 = vshll.u32 %v9182_v30, %v976_v8  ;;  %vm844_vm0 = vcmp.eq.s32.totalorder %v9694_v2, 2  ;;  %v985_v40 = vshll.u32 %v9183_v32, %v976_v8 }
  0x7e   :  { %9016 = vsinq.f32 %v416_v9  ;;  %v978_v21 = vshrl.u32 %v9181_v28, %v977_v10  ;;  %v980_v13 = vshrl.u32 %v9182_v30, %v977_v10  ;;  %v983_v25 = vshrl.u32 %v9183_v32, %v977_v10 }
  0x7f   :  { %vm841_vm3 = vcmp.eq.s32.totalorder %v9694_v2, 0  ;;  %v917_v42 = vsel %vm915_vm15, %v916_v45, %v9685_v57  ;;  %v986_v22 = vshrl.u32 %v9184_v34, %v977_v10  ;;  %v988_v27 = vshll.u32 %v9184_v34, %v976_v8 }
  0x80   :  { %v989_v1 = vshrl.u32 %v9185_v36, %v977_v10  ;;  %vm423_vm1 = vcmp.lt.s32.totalorder %v9691_v63, 2  ;;  %vm840_vm2 = vcmp.lt.s32.totalorder %v9694_v2, 2  ;;  %v918_v49 = vadd.s32 %v917_v42, %v913_v16 }
  0x81   :  { %v981_v31 = vor.u32 %v980_v13, %v979_v17  ;;  %v984_v23 = vor.u32 %v983_v25, %v982_v39  ;;  %v991_v33 = vshll.u32 %v9185_v36, %v976_v8  ;;  %vm420_vm4 = vweird.f32 %v9227_v3 }
  0x82   :  { %v987_v35 = vor.u32 %v986_v22, %v985_v40  ;;  %v990_v37 = vor.u32 %v989_v1, %v988_v27  ;;  %v992_v41 = vshrl.u32 %v9186_v43, %v977_v10  ;;  %vm994_vm5 = vcmp.lt.s32.totalorder %v9700_v14, 1 }
  0x83   :  { %v919_v44 = vadd.s32 536870912, %v918_v49  ;;  %vm996_vm6 = vcmp.lt.s32.totalorder %v9700_v14, 3  ;;  %vm997_vm7 = vcmp.lt.s32.totalorder %v9700_v14, 4  ;;  %v1010_v20 = vshll.u32 %v970_v11, 8 }
  0x84   :  { %v993_v47 = vor.u32 %v992_v41, %v991_v33  ;;  %vm995_vm8 = vcmp.lt.s32.totalorder %v9700_v14, 2  ;;  %v999_v48 = vsel %vm997_vm7, %v987_v35, 2102212464  ;;  %v1002_v26 = vsel %vm994_vm5, %v981_v31, %v984_v23 }
  0x85   :  { %vm427_vm9 = vcmp.eq.s32.totalorder %v9691_v63, 2  ;;  %v920_v60 = vshrl.u32 %v919_v44, 30  ;;  %v998_v56 = vsel %vm994_vm5, %v978_v21, %v981_v31  ;;  %v1003_v38 = vsel %vm997_vm7, %v990_v37, 920167782 }
  0x86   :  { %v1004_v50 = vsel %vm996_vm6, %v987_v35, %v1003_v38  ;;  %v1006_v5 = vsel %vm994_vm5, %v984_v23, %v987_v35  ;;  %v1007_v52 = vsel %vm997_vm7, %v993_v47, 1326507024  ;;  %v1070_v53 = vshrl.u32 %v1069_v12, 23 }
  0x87   :  { %v9015_v4 = vpop.eup %9014  ;;  %v921_v55 = vshll.u32 %v920_v60, 30  ;;  %v1000_v29 = vsel %vm996_vm6, %v984_v23, %v999_v48  ;;  %v1005_v0 = vsel %vm995_vm8, %v1002_v26, %v1004_v50  ;;  %v1008_v59 = vsel %vm996_vm6, %v990_v37, %v1007_v52 }
  0x88   :  { %v9017_v46 = vpop.eup %9016  ;;  %vm424_vm10 = vcmp.eq.s32.totalorder %v9691_v63, 0  ;;  %v428_v61 = vxor.u32 2147483648, %v9015_v4  ;;  %v9737_v62 = vmul.u32.u64.low %v1010_v20, %v1005_v0  ;;  %v9738_v57 = vmul.u32.u64.high %v1010_v20, %v1005_v0, %v9737_v62 }
  0x89   :  { %v425_v7 = vxor.u32 2147483648, %v9017_v46  ;;  %v922_v51 = vsub.s32 %v918_v49, %v921_v55  ;;  %v1009_v8 = vsel %vm995_vm8, %v1006_v5, %v1008_v59  ;;  %v1066_v9 = vand.u32 2147483647, %v9677_v6 }
  0x8a   :  { %v429_v16 = vsel %vm427_vm9, %v428_v61, %v9017_v46  ;;  %v846_v11 = vsel %vm844_vm0, %v428_v61, %v9017_v46  ;;  %v1001_v10 = vsel %vm995_vm8, %v998_v56, %v1000_v29  ;;  %v8484_v12 = vadd.s32 4294967169, %v1070_v53 }
  0x8b   :  { %v426_v45 = vsel %vm424_vm10, %v9015_v4, %v425_v7  ;;  %v843_v17 = vsel %vm841_vm3, %v9015_v4, %v425_v7  ;;  %v924_v39 = vsub.s32 0, %v922_v51  ;;  %v944_v21 = vsub.s32 4, %v920_v60 }
  0x8c   :  { %v430_v13 = vsel %vm423_vm1, %v426_v45, %v429_v16  ;;  %v847_v25 = vsel %vm840_vm2, %v843_v17, %v846_v11  ;;  %v9756_v40 = vmul.u32.u64.low %v1010_v20, %v1009_v8  ;;  %v9757_v42 = vmul.u32.u64.high %v1010_v20, %v1009_v8, %v9756_v40 }
  0x8d   :  { %v431_v14 = vsel %vm420_vm4, nan, %v430_v13  ;;  %v848_v22 = vsel %vm420_vm4, nan, %v847_v25  ;;  %v8477_v27 = vmin.u32 %v924_v39, %v922_v51  ;;  %vm860_vm12 = vcmp.lt.s32.totalorder %v9409_v18, 0 }
  0x8e   :  { %8455 = vst [vmem:[%s13757_s1 + $0x38] sm:$0xff] %v431_v14  ;;  %8475 = vst [vmem:[%s13757_s1 + $0x58] sm:$0xff] %v848_v22  ;;  %v1017_v63 = vmul.u32 %v1010_v20, %v1001_v10  ;;  %v1020_v2 = vadd.s32 1, %v9738_v57  ;;  %v1076_v1 = vadd.s32 1, %v8484_v12  ;;  %v945_v3 = vsel %vm860_vm12, %v944_v21, %v920_v60 }
  0x8f   :  { %v926_v49 = vclz %v8477_v27  ;;  %vm1019_vm13 = vc.u32 %v9757_v42, %v9737_v62  ;;  %v1073_v31 = vand.u32 8388607, %v1066_v9  ;;  %vm9779_vm11 = vcmp.le.f32.partialorder %v858_v58, 0.7853982  ;;  %v9793_v58 = vld [vmem:[%s13757_s1 + $0x18] sm:$0xff] }
  0x90   :  { %vm1077_vm14 = vcmp.gt.s32.totalorder %v1076_v1, 0  ;;  %v1021_v35 = vsel %vm1019_vm13, %v1020_v2, %v9738_v57  ;;  %v9786_v41 = vsel %vm9779_vm11, 0, %v945_v3  ;;  %v914_v47 = vadd.s32 %v9684_v54, %v9681_v19 }
  0x91   :  { %v8478_v33 = vadd.s32 4294967294, %v926_v49  ;;  %v1078_v37 = vsel %vm1077_vm14, %v1076_v1, 0  ;;  %v1022_v44 = vadd.s32 %v1021_v35, %v1017_v63  ;;  %v9796_v48 = vmul.f32 57.77778, %v9793_v58 }
  0x92   :  { %v1080_v20 = vand.u32 31, %v1078_v37  ;;  %v1074_v56 = vor.u32 8388608, %v1073_v31  ;;  %v9799_v53 = vadd.s32 3, %v9786_v41  ;;  %v1079_v57 = vshrl.u32 %v1078_v37, 5 }
  0x93   :  { %vm8479_vm15 = vcmp.lt.s32.totalorder %v8478_v33, 0  ;;  %v1023_v60 = vadd.s32 536870912, %v1022_v44  ;;  %v1170_v55 = vand.u32 2147483647, %v9796_v48  ;;  %vm964_vm0 = vcmp.lt.s32.totalorder %v9558_v15, 0 }
  0x94   :  { %v929_v26 = vsel %vm8479_vm15, 0, %v8478_v33  ;;  %v1081_v38 = vsub.s32 32, %v1080_v20  ;;  %v1083_v54 = vshll.u32 %v9181_v28, %v1080_v20  ;;  %v1086_v59 = vshll.u32 %v9182_v30, %v1080_v20 }
  0x95   :  { %v930_v50 = vsub.s32 32, %v929_v26  ;;  %v931_v5 = vshll.u32 %v922_v51, %v929_v26  ;;  %v934_v52 = vsub.s32 4294967266, %v929_v26  ;;  %v1024_v19 = vshrl.u32 %v1023_v60, 30 }
  0x96   :  { %v1084_v4 = vshrl.u32 %v9182_v30, %v1081_v38  ;;  %v1087_v46 = vshrl.u32 %v9183_v32, %v1081_v38  ;;  %v1089_v7 = vshll.u32 %v9183_v32, %v1080_v20  ;;  %v9807_v51 = vshll.u32 %v1074_v56, 8 }
  0x97   :  { %v932_v29 = vshrl.u32 %v914_v47, %v930_v50  ;;  %v935_v0 = vadd.s32 127, %v934_v52  ;;  %v1025_v61 = vshll.u32 %v1024_v19, 30  ;;  %v1090_v11 = vshrl.u32 %v9184_v34, %v1081_v38 }
  0x98   :  { %v1092_v10 = vshll.u32 %v9184_v34, %v1080_v20  ;;  %v1085_v45 = vor.u32 %v1084_v4, %v1083_v54  ;;  %v1093_v17 = vshrl.u32 %v9185_v36, %v1081_v38  ;;  %v1095_v39 = vshll.u32 %v9185_v36, %v1080_v20 }
  0x99   :  { %v933_v8 = vor.u32 %v932_v29, %v931_v5  ;;  %v936_v16 = vshll.u32 %v935_v0, 23  ;;  %v9812_v12 = vsub.s32 %v1022_v44, %v1025_v61  ;;  %v1088_v25 = vor.u32 %v1087_v46, %v1086_v59 }
  0x9a   :  { %v1096_v40 = vshrl.u32 %v9186_v43, %v1081_v38  ;;  %v1082_v22 = vshrl.u32 %v9181_v28, %v1081_v38  ;;  %v1094_v27 = vor.u32 %v1093_v17, %v1092_v10  ;;  %vm1098_vm3 = vcmp.lt.s32.totalorder %v1079_v57, 1 }
  0x9b   :  { %v937_v21 = vor.u32 4788187, %v936_v16  ;;  %v940_v13 = vcvt.s32.f32 %v933_v8  ;;  %v1028_v14 = vsub.s32 0, %v9812_v12  ;;  %v1048_v2 = vsub.s32 4, %v1024_v19 }
  0x9c   :  { %v1091_v1 = vor.u32 %v1090_v11, %v1089_v7  ;;  %v1097_v49 = vor.u32 %v1096_v40, %v1095_v39  ;;  %vm1099_vm1 = vcmp.lt.s32.totalorder %v1079_v57, 2  ;;  %vm1100_vm2 = vcmp.lt.s32.totalorder %v1079_v57, 3 }
  0x9d   :  { %v938_v63 = vand.u32 2147483647, %v937_v21  ;;  %v8481_v3 = vmin.u32 %v1028_v14, %v9812_v12  ;;  %vm1101_vm4 = vcmp.lt.s32.totalorder %v1079_v57, 4  ;;  %v1106_v35 = vsel %vm1098_vm3, %v1085_v45, %v1088_v25 }
  0x9e   :  { %v1103_v33 = vsel %vm1101_vm4, %v1091_v1, 2102212464  ;;  %v1107_v37 = vsel %vm1101_vm4, %v1094_v27, 920167782  ;;  %v1018_v44 = vadd.s32 %v9737_v62, %v9757_v42  ;;  %v1102_v47 = vsel %vm1098_vm3, %v1082_v22, %v1085_v45 }
  0x9f   :  { %v941_v31 = vmul.f32 %v940_v13, %v938_v63  ;;  %v1030_v20 = vclz %v8481_v3  ;;  %v1173_v26 = vand.u32 2139095040, %v9796_v48  ;;  %v1104_v56 = vsel %vm1100_vm2, %v1088_v25, %v1103_v33  ;;  %v9870_v33 = vld [vmem:[%s13757_s1] sm:$0xff] }
  0xa0   :  { %v1108_v38 = vsel %vm1100_vm2, %v1091_v1, %v1107_v37  ;;  %v1110_v50 = vsel %vm1098_vm3, %v1088_v25, %v1091_v1  ;;  %v1049_v52 = vsel %vm964_vm0, %v1048_v2, %v1024_v19  ;;  %v1111_v62 = vsel %vm1101_vm4, %v1097_v49, 1326507024 }
  0xa1   :  { %v942_v60 = vxor.u32 2147483648, %v941_v31  ;;  %v8482_v5 = vadd.s32 4294967294, %v1030_v20  ;;  %v1109_v54 = vsel %vm1099_vm1, %v1106_v35, %v1108_v38  ;;  %v1112_v4 = vsel %vm1100_vm2, %v1094_v27, %v1111_v62 }
  0xa2   :  { %v9838_v29 = vmul.u32.u64.low %v9807_v51, %v1109_v54  ;;  %v9839_v0 = vmul.u32.u64.high %v9807_v51, %v1109_v54, %v9838_v29  ;;  %v1105_v19 = vsel %vm1099_vm1, %v1102_v47, %v1104_v56  ;;  %v1113_v46 = vsel %vm1099_vm1, %v1110_v50, %v1112_v4 }
  0xa3   :  { %v943_v42 = vsel %vm860_vm12, %v942_v60, %v941_v31  ;;  %vm8483_vm5 = vcmp.lt.s32.totalorder %v8482_v5, 0  ;;  %v9847_v7 = vmul.u32.u64.low %v9807_v51, %v1113_v46  ;;  %v9848_v8 = vmul.u32.u64.high %v9807_v51, %v1113_v46, %v9847_v7 }
  0xa4   :  { %v946_v59 = vsel %vm9779_vm11, %v9409_v18, %v943_v42  ;;  %v1033_v61 = vsel %vm8483_vm5, 0, %v8482_v5  ;;  %vm9853_vm6 = vcmp.le.f32.partialorder %v962_v24, 0.7853982  ;;  %v1121_v57 = vmul.u32 %v9807_v51, %v1105_v19 }
  0xa5   :  { %9018 = vcosq.f32 %v946_v59  ;;  %v1034_v16 = vsub.s32 32, %v1033_v61  ;;  %v1035_v11 = vshll.u32 %v9812_v12, %v1033_v61  ;;  %v1038_v10 = vsub.s32 4294967266, %v1033_v61 }
  0xa6   :  { %9020 = vsinq.f32 %v946_v59  ;;  %v1124_v45 = vadd.s32 1, %v9839_v0  ;;  %v1174_v17 = vshrl.u32 %v1173_v26, 23  ;;  %v1051_v13 = vsel %vm9853_vm6, 0, %v1049_v52 }
  0xa7   :  { %v1036_v39 = vshrl.u32 %v1018_v44, %v1034_v16  ;;  %v1039_v21 = vadd.s32 127, %v1038_v10  ;;  %v952_v25 = vand.u32 3, %v9799_v53  ;;  %vm1123_vm7 = vc.u32 %v9848_v8, %v9838_v29 }
  0xa8   :  { %v8488_v12 = vadd.s32 4294967169, %v1174_v17  ;;  %v1125_v14 = vsel %vm1123_vm7, %v1124_v45, %v9839_v0  ;;  %v1177_v51 = vand.u32 8388607, %v1170_v55  ;;  %v1055_v22 = vadd.s32 3, %v1051_v13 }
  0xa9   :  { %v1037_v40 = vor.u32 %v1036_v39, %v1035_v11  ;;  %v1040_v24 = vshll.u32 %v1039_v21, 23  ;;  %v1126_v27 = vadd.s32 %v1125_v14, %v1121_v57  ;;  %vm950_vm8 = vweird.f32 %v9409_v18 }
  0xaa   :  { %v1180_v63 = vadd.s32 1, %v8488_v12  ;;  %vm953_vm9 = vcmp.lt.s32.totalorder %v952_v25, 2  ;;  %vm954_vm10 = vcmp.eq.s32.totalorder %v952_v25, 0  ;;  %v1178_v3 = vor.u32 8388608, %v1177_v51 }
  0xab   :  { %v1041_v2 = vor.u32 4788187, %v1040_v24  ;;  %v1044_v1 = vcvt.s32.f32 %v1037_v40  ;;  %v1127_v53 = vadd.s32 536870912, %v1126_v27  ;;  %v9873_v35 = vmul.f32 114.55556, %v9870_v33 }
  0xac   :  { %vm1181_vm12 = vcmp.gt.s32.totalorder %v1180_v63, 0  ;;  %vm957_vm13 = vcmp.eq.s32.totalorder %v952_v25, 2  ;;  %v9877_v44 = vand.u32 3, %v1055_v22  ;;  %vm13758_vm14 = vcmp.lt.s32.totalorder %v9677_v6, 0 }
  0xad   :  { %v1042_v49 = vand.u32 2147483647, %v1041_v2  ;;  %v1182_v31 = vsel %vm1181_vm12, %v1180_v63, 0  ;;  %v1128_v20 = vshrl.u32 %v1127_v53, 30  ;;  %v9884_v38 = vand.u32 3, %v9786_v41 }
  0xae   :  { %v1184_v47 = vand.u32 31, %v1182_v31  ;;  %v9886_v50 = vand.u32 3, %v1051_v13  ;;  %v9890_v52 = vadd.s32 %v9838_v29, %v9848_v8  ;;  %v9895_v0 = vshll.u32 %v1178_v3, 8 }
  0xaf   :  { %v9875_v37 = vpop.eup %9018  ;;  %v1045_v56 = vmul.f32 %v1044_v1, %v1042_v49  ;;  %v1129_v54 = vshll.u32 %v1128_v20, 30  ;;  %v1703_v59 = vand.u32 2139095040, %v9873_v35  ;;  %v9904_v29 = vshrl.u32 %v1182_v31, 5 }
  0xb0   :  { %v9879_v26 = vpop.eup %9020  ;;  %v958_v60 = vxor.u32 2147483648, %v9875_v37  ;;  %v1185_v62 = vsub.s32 32, %v1184_v47  ;;  %v1187_v46 = vshll.u32 %v9181_v28, %v1184_v47  ;;  %v1190_v16 = vshll.u32 %v9182_v30, %v1184_v47 }
  0xb1   :  { %v955_v5 = vxor.u32 2147483648, %v9879_v26  ;;  %v1046_v4 = vxor.u32 2147483648, %v1045_v56  ;;  %v9902_v19 = vsub.s32 %v1126_v27, %v1129_v54  ;;  %v1152_v45 = vsub.s32 4, %v1128_v20 }
  0xb2   :  { %v959_v42 = vsel %vm957_vm13, %v958_v60, %v9879_v26  ;;  %v1188_v8 = vshrl.u32 %v9182_v30, %v1185_v62  ;;  %v1186_v17 = vshrl.u32 %v9181_v28, %v1185_v62  ;;  %v1191_v39 = vshrl.u32 %v9183_v32, %v1185_v62 }
  0xb3   :  { %v956_v41 = vsel %vm954_vm10, %v9875_v37, %v955_v5  ;;  %v1047_v7 = vsel %vm964_vm0, %v1046_v4, %v1045_v56  ;;  %v1132_v57 = vsub.s32 0, %v9902_v19  ;;  %v1193_v21 = vshll.u32 %v9183_v32, %v1184_v47 }
  0xb4   :  { %v960_v61 = vsel %vm953_vm9, %v956_v41, %v959_v42  ;;  %v1050_v10 = vsel %vm9853_vm6, %v9558_v15, %v1047_v7  ;;  %v1189_v25 = vor.u32 %v1188_v8, %v1187_v46  ;;  %v1194_v23 = vshrl.u32 %v9184_v34, %v1185_v62 }
  0xb5   :  { %v961_v11 = vsel %vm950_vm8, nan, %v960_v61  ;;  %9022 = vcosq.f32 %v1050_v10  ;;  %v8485_v13 = vmin.u32 %v1132_v57, %v9902_v19  ;;  %vm1374_vm11 = vcmp.eq.s32.totalorder %v9884_v38, 0 }
  0xb6   :  { %8492 = vst [vmem:[%s13757_s1 + $0x60] sm:$0xff] %v961_v11  ;;  %9024 = vsinq.f32 %v1050_v10  ;;  %vm1061_vm15 = vcmp.eq.s32.totalorder %v9877_v44, 2  ;;  %v1192_v12 = vor.u32 %v1191_v39, %v1190_v16  ;;  %v1196_v40 = vshll.u32 %v9184_v34, %v1184_v47 }
  0xb7   :  { %v1197_v24 = vshrl.u32 %v9185_v36, %v1185_v62  ;;  %v1199_v14 = vshll.u32 %v9185_v36, %v1184_v47  ;;  %vm1377_vm0 = vcmp.eq.s32.totalorder %v9884_v38, 2  ;;  %vm1058_vm3 = vcmp.eq.s32.totalorder %v9877_v44, 0  ;;  %v10050_v47 = vld [vmem:[%s13757_s1 + $0x8] sm:$0xff] }
  0xb8   :  { %v1134_v51 = vclz %v8485_v13  ;;  %v1153_v22 = vsel %vm13758_vm14, %v1152_v45, %v1128_v20  ;;  %vm1373_vm1 = vcmp.lt.s32.totalorder %v9884_v38, 2  ;;  %vm1477_vm2 = vcmp.eq.s32.totalorder %v9886_v50, 0 }
  0xb9   :  { %v9937_v27 = vshrl.u32 %v1703_v59, 23  ;;  %vm1057_vm4 = vcmp.lt.s32.totalorder %v9877_v44, 2  ;;  %v1195_v63 = vor.u32 %v1194_v23, %v1193_v21  ;;  %v1198_v2 = vor.u32 %v1197_v24, %v1196_v40 }
  0xba   :  { %v1200_v1 = vshrl.u32 %v9186_v43, %v1185_v62  ;;  %vm1202_vm5 = vcmp.lt.s32.totalorder %v9904_v29, 1  ;;  %v8486_v53 = vadd.s32 4294967294, %v1134_v51  ;;  %vm1203_vm7 = vcmp.lt.s32.totalorder %v9904_v29, 2 }
  0xbb   :  { %vm1204_vm9 = vcmp.lt.s32.totalorder %v9904_v29, 3  ;;  %vm1205_vm10 = vcmp.lt.s32.totalorder %v9904_v29, 4  ;;  %vm1480_vm12 = vcmp.eq.s32.totalorder %v9886_v50, 2  ;;  %v1206_v3 = vsel %vm1202_vm5, %v1186_v17, %v1189_v25 }
  0xbc   :  { %v1201_v49 = vor.u32 %v1200_v1, %v1199_v14  ;;  %v1207_v31 = vsel %vm1205_vm10, %v1195_v63, 2102212464  ;;  %v1210_v20 = vsel %vm1202_vm5, %v1189_v25, %v1192_v12  ;;  %vm1476_vm13 = vcmp.lt.s32.totalorder %v9886_v50, 2 }
  0xbd   :  { %vm9954_vm14 = vcmp.le.f32.partialorder %v1066_v9, 0.7853982  ;;  %vm8487_vm6 = vcmp.lt.s32.totalorder %v8486_v53, 0  ;;  %v1208_v56 = vsel %vm1204_vm9, %v1192_v12, %v1207_v31  ;;  %v1211_v54 = vsel %vm1205_vm10, %v1198_v2, 920167782 }
  0xbe   :  { %v1214_v62 = vsel %vm1202_vm5, %v1192_v12, %v1195_v63  ;;  %v1137_v42 = vsel %vm8487_vm6, 0, %v8486_v53  ;;  %v1209_v4 = vsel %vm1203_vm7, %v1206_v3, %v1208_v56  ;;  %v1212_v59 = vsel %vm1204_vm9, %v1195_v63, %v1211_v54 }
  0xbf   :  { %v1215_v41 = vsel %vm1205_vm10, %v1201_v49, 1326507024  ;;  %v1138_v9 = vsub.s32 32, %v1137_v42  ;;  %v1139_v46 = vshll.u32 %v9902_v19, %v1137_v42  ;;  %v1142_v61 = vsub.s32 4294967266, %v1137_v42  ;;  %v9023_v8 = vpop.eup %9022 }
  0xc0   :  { %v1213_v7 = vsel %vm1203_vm7, %v1210_v20, %v1212_v59  ;;  %v1216_v16 = vsel %vm1204_vm9, %v1198_v2, %v1215_v41  ;;  %v1225_v57 = vmul.u32 %v9895_v0, %v1209_v4  ;;  %v9025_v45 = vpop.eup %9024  ;;  %v1062_v17 = vxor.u32 2147483648, %v9023_v8 }
  0xc1   :  { %v9972_v11 = vmul.u32.u64.low %v9895_v0, %v1213_v7  ;;  %v9973_v10 = vmul.u32.u64.high %v9895_v0, %v1213_v7, %v9972_v11  ;;  %v1140_v39 = vshrl.u32 %v9890_v52, %v1138_v9  ;;  %v1143_v21 = vadd.s32 127, %v1142_v61 }
  0xc2   :  { %v1217_v19 = vsel %vm1203_vm7, %v1214_v62, %v1216_v16  ;;  %v1059_v13 = vxor.u32 2147483648, %v9025_v45  ;;  %v1376_v12 = vsel %vm1374_vm11, %v9875_v37, %v955_v5  ;;  %v1063_v40 = vsel %vm1061_vm15, %v1062_v17, %v9025_v45 }
  0xc3   :  { %v9980_v25 = vmul.u32.u64.low %v9895_v0, %v1217_v19  ;;  %v9981_v23 = vmul.u32.u64.high %v9895_v0, %v1217_v19, %v9980_v25  ;;  %v1141_v24 = vor.u32 %v1140_v39, %v1139_v46  ;;  %v1144_v52 = vshll.u32 %v1143_v21, 23 }
  0xc4   :  { %v1379_v29 = vsel %vm1377_vm0, %v958_v60, %v9879_v26  ;;  %v1060_v0 = vsel %vm1058_vm3, %v9023_v8, %v1059_v13  ;;  %v1228_v14 = vadd.s32 1, %v9973_v10  ;;  %v1479_v5 = vsel %vm1477_vm2, %v9023_v8, %v1059_v13 }
  0xc5   :  { %v1380_v51 = vsel %vm1373_vm1, %v1376_v12, %v1379_v29  ;;  %v1064_v63 = vsel %vm1057_vm4, %v1060_v0, %v1063_v40  ;;  %v1145_v2 = vor.u32 4788187, %v1144_v52  ;;  %v1148_v1 = vcvt.s32.f32 %v1141_v24  ;;  %v10076_v24 = vld [vmem:[%s13757_s1 + $0x10] sm:$0xff] }
  0xc6   :  { %v1381_v37 = vsel %vm950_vm8, nan, %v1380_v51  ;;  %vm13773_vm11 = vweird.f32 %v9558_v15  ;;  %v1155_v60 = vsel %vm9954_vm14, 0, %v1153_v22  ;;  %vm1227_vm15 = vc.u32 %v9981_v23, %v9972_v11 }
  0xc7   :  { %v1065_v26 = vsel %vm13773_vm11, nan, %v1064_v63  ;;  %8512 = vst [vmem:[%s13757_s1 + $0x80] sm:$0xff] %v1381_v37  ;;  %v1482_v44 = vsel %vm1480_vm12, %v1062_v17, %v9025_v45  ;;  %v1146_v18 = vand.u32 2147483647, %v1145_v2  ;;  %v1229_v38 = vsel %vm1227_vm15, %v1228_v14, %v9973_v10  ;;  %vm13774_vm8 = vmmov %vm13773_vm11 }
  0xc8   :  { %8493 = vst [vmem:[%s13757_s1 + $0x68] sm:$0xff] %v1065_v26  ;;  %v1483_v53 = vsel %vm1476_vm13, %v1479_v5, %v1482_v44  ;;  %v1230_v22 = vadd.s32 %v1229_v38, %v1225_v57  ;;  %v1700_v3 = vand.u32 2147483647, %v9873_v35  ;;  %v8516_v31 = vadd.s32 4294967169, %v9937_v27 }
  0xc9   :  { %v1484_v49 = vsel %vm13774_vm8, nan, %v1483_v53  ;;  %v1149_v20 = vmul.f32 %v1148_v1, %v1146_v18  ;;  %v1159_v56 = vadd.s32 3, %v1155_v60  ;;  %vm13775_vm3 = vcmp.lt.s32.totalorder %v9677_v6, 0 }
  0xca   :  { %8513 = vst [vmem:[%s13757_s1 + $0x88] sm:$0xff] %v1484_v49  ;;  %v1231_v54 = vadd.s32 536870912, %v1230_v22  ;;  %v1710_v62 = vadd.s32 1, %v8516_v31  ;;  %v1707_v50 = vand.u32 8388607, %v1700_v3  ;;  %v10038_v46 = vand.u32 3, %v1155_v60 }
  0xcb   :  { %v1150_v42 = vxor.u32 2147483648, %v1149_v20  ;;  %v10033_v59 = vand.u32 3, %v1159_v56  ;;  %vm1172_vm1 = vcmp.lt.s32.totalorder %v9796_v48, 0  ;;  %v10045_v16 = vadd.s32 %v9972_v11, %v9981_v23 }
  0xcc   :  { %v1232_v4 = vshrl.u32 %v1231_v54, 30  ;;  %vm1711_vm0 = vcmp.gt.s32.totalorder %v1710_v62, 0  ;;  %v1708_v8 = vor.u32 8388608, %v1707_v50  ;;  %v10053_v45 = vmul.f32 114.55556, %v10050_v47 }
  0xcd   :  { %v1151_v15 = vsel %vm13775_vm3, %v1150_v42, %v1149_v20  ;;  %v1712_v27 = vsel %vm1711_vm0, %v1710_v62, 0  ;;  %vm1165_vm2 = vcmp.eq.s32.totalorder %v10033_v59, 2  ;;  %vm1580_vm4 = vcmp.eq.s32.totalorder %v10038_v46, 0 }
  0xce   :  { %v1154_v41 = vsel %vm9954_vm14, %v9677_v6, %v1151_v15  ;;  %v1233_v9 = vshll.u32 %v1232_v4, 30  ;;  %v1714_v61 = vand.u32 31, %v1712_v27  ;;  %v1256_v10 = vsub.s32 4, %v1232_v4 }
  0xcf   :  { %9026 = vcosq.f32 %v1154_v41  ;;  %vm1162_vm14 = vcmp.eq.s32.totalorder %v10033_v59, 0  ;;  %vm1161_vm5 = vcmp.lt.s32.totalorder %v10033_v59, 2  ;;  %vm1579_vm6 = vcmp.lt.s32.totalorder %v10038_v46, 2 }
  0xd0   :  { %9028 = vsinq.f32 %v1154_v41  ;;  %v10041_v7 = vsub.s32 %v1230_v22, %v1233_v9  ;;  %v1715_v57 = vsub.s32 32, %v1714_v61  ;;  %v1717_v39 = vshll.u32 %v9181_v28, %v1714_v61 }
  0xd1   :  { %v1720_v11 = vshll.u32 %v9182_v30, %v1714_v61  ;;  %v1723_v21 = vshll.u32 %v9183_v32, %v1714_v61  ;;  %vm1583_vm7 = vcmp.eq.s32.totalorder %v10038_v46, 2  ;;  %vm1158_vm9 = vweird.f32 %v9677_v6 }
  0xd2   :  { %v1236_v17 = vsub.s32 0, %v10041_v7  ;;  %v1718_v19 = vshrl.u32 %v9182_v30, %v1715_v57  ;;  %v1721_v13 = vshrl.u32 %v9183_v32, %v1715_v57  ;;  %v1724_v25 = vshrl.u32 %v9184_v34, %v1715_v57 }
  0xd3   :  { %v10069_v12 = vshrl.u32 %v1712_v27, 5  ;;  %v10071_v40 = vshll.u32 %v1708_v8, 8  ;;  %v10079_v52 = vmul.f32 114.55556, %v10076_v24  ;;  %v1257_v29 = vsel %vm1172_vm1, %v1256_v10, %v1232_v4 }
  0xd4   :  { %v8489_v23 = vmin.u32 %v1236_v17, %v10041_v7  ;;  %v1716_v0 = vshrl.u32 %v9181_v28, %v1715_v57  ;;  %v1804_v14 = vand.u32 2147483647, %v10053_v45  ;;  %v1807_v51 = vand.u32 2139095040, %v10053_v45 }
  0xd5   :  { %v1719_v63 = vor.u32 %v1718_v19, %v1717_v39  ;;  %v1722_v2 = vor.u32 %v1721_v13, %v1720_v11  ;;  %v1725_v1 = vor.u32 %v1724_v25, %v1723_v21  ;;  %vm10088_vm10 = vcmp.le.f32.partialorder %v1170_v55, 0.7853982 }
  0xd6   :  { %v1238_v5 = vclz %v8489_v23  ;;  %v1726_v26 = vshll.u32 %v9184_v34, %v1714_v61  ;;  %v1727_v60 = vshrl.u32 %v9185_v36, %v1715_v57  ;;  %v1729_v44 = vshll.u32 %v9185_v36, %v1714_v61 }
  0xd7   :  { %v1730_v18 = vshrl.u32 %v9186_v43, %v1715_v57  ;;  %vm1732_vm12 = vcmp.lt.s32.totalorder %v10069_v12, 1  ;;  %vm1733_vm13 = vcmp.lt.s32.totalorder %v10069_v12, 2  ;;  %vm1735_vm11 = vcmp.lt.s32.totalorder %v10069_v12, 4 }
  0xd8   :  { %v8490_v38 = vadd.s32 4294967294, %v1238_v5  ;;  %v1728_v55 = vor.u32 %v1727_v60, %v1726_v26  ;;  %vm1734_vm15 = vcmp.lt.s32.totalorder %v10069_v12, 3  ;;  %v1737_v49 = vsel %vm1735_vm11, %v1725_v1, 2102212464 }
  0xd9   :  { %v9027_v53 = vpop.eup %9026  ;;  %v1731_v22 = vor.u32 %v1730_v18, %v1729_v44  ;;  %v1736_v56 = vsel %vm1732_vm12, %v1716_v0, %v1719_v63  ;;  %v1738_v54 = vsel %vm1734_vm15, %v1722_v2, %v1737_v49  ;;  %v1740_v4 = vsel %vm1732_vm12, %v1719_v63, %v1722_v2 }
  0xda   :  { %v9029_v31 = vpop.eup %9028  ;;  %v1166_v20 = vxor.u32 2147483648, %v9027_v53  ;;  %vm8491_vm8 = vcmp.lt.s32.totalorder %v8490_v38, 0  ;;  %v1741_v50 = vsel %vm1735_vm11, %v1728_v55, 920167782  ;;  %v1744_v25 = vsel %vm1732_vm12, %v1722_v2, %v1725_v1 }
  0xdb   :  { %v1163_v62 = vxor.u32 2147483648, %v9029_v31  ;;  %v1241_v42 = vsel %vm8491_vm8, 0, %v8490_v38  ;;  %v1742_v57 = vsel %vm1734_vm15, %v1725_v1, %v1741_v50  ;;  %v1259_v46 = vsel %vm10088_vm10, 0, %v1257_v29 }
  0xdc   :  { %v1167_v15 = vsel %vm1165_vm2, %v1166_v20, %v9029_v31  ;;  %v1242_v27 = vsub.s32 32, %v1241_v42  ;;  %v1243_v41 = vshll.u32 %v10041_v7, %v1241_v42  ;;  %v1246_v9 = vsub.s32 4294967266, %v1241_v42 }
  0xdd   :  { %v1164_v61 = vsel %vm1162_vm14, %v9027_v53, %v1163_v62  ;;  %v1582_v8 = vsel %vm1580_vm4, %v9027_v53, %v1163_v62  ;;  %v1585_v10 = vsel %vm1583_vm7, %v1166_v20, %v9029_v31  ;;  %v1743_v13 = vsel %vm1733_vm13, %v1740_v4, %v1742_v57 }
  0xde   :  { %v1168_v17 = vsel %vm1161_vm5, %v1164_v61, %v1167_v15  ;;  %v1244_v39 = vshrl.u32 %v10045_v16, %v1242_v27  ;;  %v1247_v11 = vadd.s32 127, %v1246_v9  ;;  %v1586_v7 = vsel %vm1579_vm6, %v1582_v8, %v1585_v10 }
  0xdf   :  { %v1169_v21 = vsel %vm1158_vm9, nan, %v1168_v17  ;;  %v1587_v19 = vsel %vm1158_vm9, nan, %v1586_v7  ;;  %v1745_v6 = vsel %vm1735_vm11, %v1731_v22, 1326507024  ;;  %v1808_v63 = vshrl.u32 %v1807_v51, 23 }
  0xe0   :  { %8494 = vst [vmem:[%s13757_s1 + $0x70] sm:$0xff] %v1169_v21  ;;  %v1245_v59 = vor.u32 %v1244_v39, %v1243_v41  ;;  %v1248_v16 = vshll.u32 %v1247_v11, 23  ;;  %8514 = vst [vmem:[%s13757_s1 + $0x90] sm:$0xff] %v1587_v19  ;;  %v1746_v23 = vsel %vm1734_vm15, %v1728_v55, %v1745_v6  ;;  %v1739_v29 = vsel %vm1733_vm13, %v1736_v56, %v1738_v54 }
  0xe1   :  { %v10147_v0 = vmul.u32.u64.low %v10071_v40, %v1743_v13  ;;  %v10148_v5 = vmul.u32.u64.high %v10071_v40, %v1743_v13, %v10147_v0  ;;  %v1747_v26 = vsel %vm1733_vm13, %v1744_v25, %v1746_v23  ;;  %v8520_v18 = vadd.s32 4294967169, %v1808_v63 }
  0xe2   :  { %v1249_v2 = vor.u32 4788187, %v1248_v16  ;;  %v1252_v1 = vcvt.s32.f32 %v1245_v59  ;;  %v10156_v60 = vmul.u32.u64.low %v10071_v40, %v1747_v26  ;;  %v10157_v44 = vmul.u32.u64.high %v10071_v40, %v1747_v26, %v10156_v60 }
  0xe3   :  { %v1263_v53 = vadd.s32 3, %v1259_v46  ;;  %v1755_v55 = vmul.u32 %v10071_v40, %v1739_v29  ;;  %v1758_v22 = vadd.s32 1, %v10148_v5  ;;  %v1814_v51 = vadd.s32 1, %v8520_v18 }
  0xe4   :  { %v1250_v38 = vand.u32 2147483647, %v1249_v2  ;;  %v1811_v31 = vand.u32 8388607, %v1804_v14  ;;  %v1908_v20 = vand.u32 2147483647, %v10079_v52  ;;  %vm1757_vm0 = vc.u32 %v10157_v44, %v10147_v0 }
  0xe5   :  { %v1911_v12 = vand.u32 2139095040, %v10079_v52  ;;  %vm1815_vm3 = vcmp.gt.s32.totalorder %v1814_v51, 0  ;;  %v1759_v54 = vsel %vm1757_vm0, %v1758_v22, %v10148_v5  ;;  %v10169_v40 = vmul.f32 114.55556, %v9793_v58 }
  0xe6   :  { %v1253_v49 = vmul.f32 %v1252_v1, %v1250_v38  ;;  %v1816_v62 = vsel %vm1815_vm3, %v1814_v51, 0  ;;  %v10171_v42 = vand.u32 3, %v1263_v53  ;;  %v10173_v4 = vand.u32 3, %v1259_v46 }
  0xe7   :  { %v1760_v50 = vadd.s32 %v1759_v54, %v1755_v55  ;;  %v1818_v15 = vand.u32 31, %v1816_v62  ;;  %v1812_v41 = vor.u32 8388608, %v1811_v31  ;;  %v1912_v9 = vshrl.u32 %v1911_v12, 23 }
  0xe8   :  { %v1254_v56 = vxor.u32 2147483648, %v1253_v49  ;;  %v1915_v61 = vand.u32 8388607, %v1908_v20  ;;  %v10182_v10 = vshrl.u32 %v1816_v62, 5  ;;  %vm1702_vm2 = vcmp.lt.s32.totalorder %v9873_v35, 0 }
  0xe9   :  { %v1761_v58 = vadd.s32 536870912, %v1760_v50  ;;  %v1819_v57 = vsub.s32 32, %v1818_v15  ;;  %v1821_v17 = vshll.u32 %v9181_v28, %v1818_v15  ;;  %v1824_v39 = vshll.u32 %v9182_v30, %v1818_v15 }
  0xea   :  { %v1255_v27 = vsel %vm1172_vm1, %v1254_v56, %v1253_v49  ;;  %v1830_v11 = vshll.u32 %v9184_v34, %v1818_v15  ;;  %v1827_v19 = vshll.u32 %v9183_v32, %v1818_v15  ;;  %vm1686_vm1 = vcmp.eq.s32.totalorder %v10173_v4, 2 }
  0xeb   :  { %v1258_v8 = vsel %vm10088_vm10, %v9796_v48, %v1255_v27  ;;  %v1762_v7 = vshrl.u32 %v1761_v58, 30  ;;  %v1822_v21 = vshrl.u32 %v9182_v30, %v1819_v57  ;;  %v1825_v37 = vshrl.u32 %v9183_v32, %v1819_v57 }
  0xec   :  { %9030 = vcosq.f32 %v1258_v8  ;;  %v1828_v13 = vshrl.u32 %v9184_v34, %v1819_v57  ;;  %v1831_v25 = vshrl.u32 %v9185_v36, %v1819_v57  ;;  %v1833_v59 = vshll.u32 %v9185_v36, %v1818_v15 }
  0xed   :  { %9032 = vsinq.f32 %v1258_v8  ;;  %vm1266_vm14 = vcmp.eq.s32.totalorder %v10171_v42, 0  ;;  %vm1269_vm4 = vcmp.eq.s32.totalorder %v10171_v42, 2  ;;  %vm1683_vm5 = vcmp.eq.s32.totalorder %v10173_v4, 0 }
  0xee   :  { %v1763_v16 = vshll.u32 %v1762_v7, 30  ;;  %v1834_v46 = vshrl.u32 %v9186_v43, %v1819_v57  ;;  %v10199_v6 = vshll.u32 %v1812_v41, 8  ;;  %vm1265_vm6 = vcmp.lt.s32.totalorder %v10171_v42, 2 }
  0xef   :  { %vm1682_vm7 = vcmp.lt.s32.totalorder %v10173_v4, 2  ;;  %v1820_v23 = vshrl.u32 %v9181_v28, %v1819_v57  ;;  %v1823_v5 = vor.u32 %v1822_v21, %v1821_v17  ;;  %v1832_v63 = vor.u32 %v1831_v25, %v1830_v11 }
  0xf0   :  { %v1916_v2 = vor.u32 8388608, %v1915_v61  ;;  %vm1262_vm9 = vweird.f32 %v9796_v48  ;;  %v10205_v1 = vsub.s32 %v1760_v50, %v1763_v16  ;;  %v1826_v29 = vor.u32 %v1825_v37, %v1824_v39 }
  0xf1   :  { %v1829_v26 = vor.u32 %v1828_v13, %v1827_v19  ;;  %v1835_v60 = vor.u32 %v1834_v46, %v1833_v59  ;;  %vm1836_vm10 = vcmp.lt.s32.totalorder %v10182_v10, 1  ;;  %vm1838_vm12 = vcmp.lt.s32.totalorder %v10182_v10, 3 }
  0xf2   :  { %vm1839_vm13 = vcmp.lt.s32.totalorder %v10182_v10, 4  ;;  %v8524_v18 = vadd.s32 4294967169, %v1912_v9  ;;  %v1766_v38 = vsub.s32 0, %v10205_v1  ;;  %v1786_v53 = vsub.s32 4, %v1762_v7 }
  0xf3   :  { %vm1837_vm11 = vcmp.lt.s32.totalorder %v10182_v10, 2  ;;  %v1841_v55 = vsel %vm1839_vm13, %v1829_v26, 2102212464  ;;  %v1840_v22 = vsel %vm1836_vm10, %v1820_v23, %v1823_v5  ;;  %v1845_v49 = vsel %vm1839_vm13, %v1832_v63, 920167782 }
  0xf4   :  { %v1842_v51 = vsel %vm1838_vm12, %v1826_v29, %v1841_v55  ;;  %v1849_v31 = vsel %vm1839_vm13, %v1835_v60, 1326507024  ;;  %v8517_v12 = vmin.u32 %v1766_v38, %v10205_v1  ;;  %v1844_v56 = vsel %vm1836_vm10, %v1823_v5, %v1826_v29 }
  0xf5   :  { %v1846_v54 = vsel %vm1838_vm12, %v1829_v26, %v1845_v49  ;;  %v1848_v62 = vsel %vm1836_vm10, %v1826_v29, %v1829_v26  ;;  %v1756_v15 = vadd.s32 %v10147_v0, %v10157_v44  ;;  %v1850_v27 = vsel %vm1838_vm12, %v1832_v63, %v1849_v31 }
  0xf6   :  { %v9031_v50 = vpop.eup %9030  ;;  %v1918_v41 = vadd.s32 1, %v8524_v18  ;;  %v10221_v9 = vshll.u32 %v1916_v2, 8  ;;  %v1768_v58 = vclz %v8517_v12  ;;  %v10225_v57 = vsel %vm1702_vm2, %v1786_v53, %v1762_v7 }
  0xf7   :  { %v9033_v61 = vpop.eup %9032  ;;  %v1270_v8 = vxor.u32 2147483648, %v9031_v50  ;;  %v1843_v17 = vsel %vm1837_vm11, %v1840_v22, %v1842_v51  ;;  %v1847_v0 = vsel %vm1837_vm11, %v1844_v56, %v1846_v54  ;;  %v1851_v44 = vsel %vm1837_vm11, %v1848_v62, %v1850_v27 }
  0xf8   :  { %v1267_v39 = vxor.u32 2147483648, %v9033_v61  ;;  %vm1919_vm15 = vcmp.gt.s32.totalorder %v1918_v41, 0  ;;  %v8518_v19 = vadd.s32 4294967294, %v1768_v58  ;;  %v1859_v26 = vmul.u32 %v10199_v6, %v1843_v17 }
  0xf9   :  { %v1271_v11 = vsel %vm1269_vm4, %v1270_v8, %v9033_v61  ;;  %v1688_v21 = vsel %vm1686_vm1, %v1270_v8, %v9033_v61  ;;  %v1920_v7 = vsel %vm1919_vm15, %v1918_v41, 0  ;;  %vm10273_vm0 = vcmp.le.f32.partialorder %v1700_v3, 0.7853982 }
  0xfa   :  { %v1268_v37 = vsel %vm1266_vm14, %v9031_v50, %v1267_v39  ;;  %v1685_v13 = vsel %vm1683_vm5, %v9031_v50, %v1267_v39  ;;  %v10242_v25 = vmul.u32.u64.low %v10199_v6, %v1851_v44  ;;  %v10243_v59 = vmul.u32.u64.high %v10199_v6, %v1851_v44, %v10242_v25 }
  0xfb   :  { %v1272_v10 = vsel %vm1265_vm6, %v1268_v37, %v1271_v11  ;;  %v1689_v16 = vsel %vm1682_vm7, %v1685_v13, %v1688_v21  ;;  %vm8519_vm8 = vcmp.lt.s32.totalorder %v8518_v19, 0  ;;  %v10249_v46 = vshrl.u32 %v1920_v7, 5 }
  0xfc   :  { %v1273_v23 = vsel %vm1262_vm9, nan, %v1272_v10  ;;  %v1690_v5 = vsel %vm1262_vm9, nan, %v1689_v16  ;;  %v1771_v63 = vsel %vm8519_vm8, 0, %v8518_v19  ;;  %v1922_v2 = vand.u32 31, %v1920_v7 }
  0xfd   :  { %8495 = vst [vmem:[%s13757_s1 + $0x78] sm:$0xff] %v1273_v23  ;;  %8515 = vst [vmem:[%s13757_s1 + $0x98] sm:$0xff] %v1690_v5  ;;  %v1772_v42 = vsub.s32 32, %v1771_v63  ;;  %v1773_v4 = vshll.u32 %v10205_v1, %v1771_v63  ;;  %v1776_v29 = vsub.s32 4294967266, %v1771_v63  ;;  %vm1940_vm1 = vcmp.lt.s32.totalorder %v10249_v46, 1 }
  0xfe   :  { %v10264_v60 = vmul.u32.u64.low %v10199_v6, %v1847_v0  ;;  %v10265_v48 = vmul.u32.u64.high %v10199_v6, %v1847_v0, %v10264_v60  ;;  %v1923_v18 = vsub.s32 32, %v1922_v2  ;;  %v1925_v38 = vshll.u32 %v9181_v28, %v1922_v2 }
  0xff   :  { %v1774_v53 = vshrl.u32 %v1756_v15, %v1772_v42  ;;  %v1777_v55 = vadd.s32 127, %v1776_v29  ;;  %v1928_v22 = vshll.u32 %v9182_v30, %v1922_v2  ;;  %v1931_v51 = vshll.u32 %v9183_v32, %v1922_v2 }
 0x100   :  { %vm1861_vm3 = vc.u32 %v10243_v59, %v10264_v60  ;;  %v1924_v6 = vshrl.u32 %v9181_v28, %v1923_v18  ;;  %v1926_v49 = vshrl.u32 %v9182_v30, %v1923_v18  ;;  %v1929_v56 = vshrl.u32 %v9183_v32, %v1923_v18 }
 0x101   :  { %v1775_v31 = vor.u32 %v1774_v53, %v1773_v4  ;;  %v1778_v12 = vshll.u32 %v1777_v55, 23  ;;  %v1932_v54 = vshrl.u32 %v9184_v34, %v1923_v18  ;;  %v1862_v3 = vadd.s32 1, %v10265_v48 }
 0x102   :  { %v1927_v62 = vor.u32 %v1926_v49, %v1925_v38  ;;  %v1934_v50 = vshll.u32 %v9184_v34, %v1922_v2  ;;  %v1935_v15 = vshrl.u32 %v9185_v36, %v1923_v18  ;;  %v1930_v61 = vor.u32 %v1929_v56, %v1928_v22 }
 0x103   :  { %v1779_v27 = vor.u32 4788187, %v1778_v12  ;;  %v1782_v41 = vcvt.s32.f32 %v1775_v31  ;;  %v1933_v8 = vor.u32 %v1932_v54, %v1931_v51  ;;  %v1863_v58 = vsel %vm1861_vm3, %v1862_v3, %v10265_v48 }
 0x104   :  { %v1936_v17 = vor.u32 %v1935_v15, %v1934_v50  ;;  %v1937_v39 = vshll.u32 %v9185_v36, %v1922_v2  ;;  %v1938_v0 = vshrl.u32 %v9186_v43, %v1923_v18  ;;  %v1864_v11 = vadd.s32 %v1863_v58, %v1859_v26 }
 0x105   :  { %v1780_v44 = vand.u32 2147483647, %v1779_v27  ;;  %vm1941_vm14 = vcmp.lt.s32.totalorder %v10249_v46, 2  ;;  %vm1942_vm4 = vcmp.lt.s32.totalorder %v10249_v46, 3  ;;  %vm1943_vm5 = vcmp.lt.s32.totalorder %v10249_v46, 4 }
 0x106   :  { %v1939_v21 = vor.u32 %v1938_v0, %v1937_v39  ;;  %v1944_v19 = vsel %vm1940_vm1, %v1924_v6, %v1927_v62  ;;  %v1948_v7 = vsel %vm1940_vm1, %v1927_v62, %v1930_v61  ;;  %v1865_v13 = vadd.s32 536870912, %v1864_v11 }
 0x107   :  { %v1783_v37 = vmul.f32 %v1782_v41, %v1780_v44  ;;  %v1945_v25 = vsel %vm1943_vm5, %v1933_v8, 2102212464  ;;  %v1949_v10 = vsel %vm1943_vm5, %v1936_v17, 920167782  ;;  %v1952_v5 = vsel %vm1940_vm1, %v1930_v61, %v1933_v8 }
 0x108   :  { %v1946_v16 = vsel %vm1942_vm4, %v1930_v61, %v1945_v25  ;;  %v1950_v23 = vsel %vm1942_vm4, %v1933_v8, %v1949_v10  ;;  %v1953_v63 = vsel %vm1943_vm5, %v1939_v21, 1326507024  ;;  %v10309_v42 = vsel %vm10273_vm0, 0, %v10225_v57 }
 0x109   :  { %v1784_v2 = vxor.u32 2147483648, %v1783_v37  ;;  %v1866_v4 = vshrl.u32 %v1865_v13, 30  ;;  %v1951_v29 = vsel %vm1941_vm14, %v1948_v7, %v1950_v23  ;;  %v1954_v26 = vsel %vm1942_vm4, %v1936_v17, %v1953_v63 }
 0x10a   :  { %v10316_v48 = vmul.u32.u64.low %v10221_v9, %v1951_v29  ;;  %v10317_v18 = vmul.u32.u64.high %v10221_v9, %v1951_v29, %v10316_v48  ;;  %v1947_v55 = vsel %vm1941_vm14, %v1944_v19, %v1946_v16  ;;  %v1955_v57 = vsel %vm1941_vm14, %v1952_v5, %v1954_v26 }
 0x10b   :  { %v1785_v38 = vsel %vm1702_vm2, %v1784_v2, %v1783_v37  ;;  %v1867_v53 = vshll.u32 %v1866_v4, 30  ;;  %v1793_v51 = vadd.s32 3, %v10309_v42  ;;  %v1890_v12 = vsub.s32 4, %v1866_v4 }
 0x10c   :  { %v1788_v22 = vsel %vm10273_vm0, %v9873_v35, %v1785_v38  ;;  %v10330_v6 = vmul.u32.u64.low %v10221_v9, %v1955_v57  ;;  %v10331_v49 = vmul.u32.u64.high %v10221_v9, %v1955_v57, %v10330_v6  ;;  %v2015_v56 = vand.u32 2139095040, %v10169_v40 }
 0x10d   :  { %9034 = vcosq.f32 %v1788_v22  ;;  %v10333_v31 = vsub.s32 %v1864_v11, %v1867_v53  ;;  %v1963_v46 = vmul.u32 %v10221_v9, %v1947_v55  ;;  %v1966_v54 = vadd.s32 1, %v10317_v18 }
 0x10e   :  { %9036 = vsinq.f32 %v1788_v22  ;;  %v2016_v3 = vshrl.u32 %v2015_v56, 23  ;;  %v1794_v62 = vand.u32 3, %v1793_v51  ;;  %vm1806_vm2 = vcmp.lt.s32.totalorder %v10053_v45, 0 }
 0x10f   :  { %v1870_v1 = vsub.s32 0, %v10333_v31  ;;  %vm1965_vm6 = vc.u32 %v10331_v49, %v10316_v48  ;;  %v1891_v15 = vsel %vm1806_vm2, %v1890_v12, %v1866_v4  ;;  %v2012_v9 = vand.u32 2147483647, %v10169_v40 }
 0x110   :  { %v1967_v27 = vsel %vm1965_vm6, %v1966_v54, %v10317_v18  ;;  %v8528_v41 = vadd.s32 4294967169, %v2016_v3  ;;  %vm1792_vm7 = vweird.f32 %v9873_v35  ;;  %vm10349_vm9 = vcmp.le.f32.partialorder %v1804_v14, 0.7853982 }
 0x111   :  { %v8521_v50 = vmin.u32 %v1870_v1, %v10333_v31  ;;  %v1968_v61 = vadd.s32 %v1967_v27, %v1963_v46  ;;  %v10354_v17 = vmul.f32 171.33333, %v9870_v33  ;;  %v1893_v39 = vsel %vm10349_vm9, 0, %v1891_v15 }
 0x112   :  { %vm1910_vm10 = vcmp.lt.s32.totalorder %v10079_v52, 0  ;;  %v2022_v44 = vadd.s32 1, %v8528_v41  ;;  %vm1795_vm12 = vcmp.lt.s32.totalorder %v1794_v62, 2  ;;  %vm1796_vm13 = vcmp.eq.s32.totalorder %v1794_v62, 0 }
 0x113   :  { %v1872_v58 = vclz %v8521_v50  ;;  %v1969_v0 = vadd.s32 536870912, %v1968_v61  ;;  %vm1799_vm11 = vcmp.eq.s32.totalorder %v1794_v62, 2  ;;  %v1860_v14 = vadd.s32 %v10264_v60, %v10243_v59 }
 0x114   :  { %v2019_v19 = vand.u32 8388607, %v2012_v9  ;;  %vm2023_vm15 = vcmp.gt.s32.totalorder %v2022_v44, 0  ;;  %v1897_v7 = vadd.s32 3, %v1893_v39  ;;  %vm10367_vm0 = vcmp.le.f32.partialorder %v1908_v20, 0.7853982 }
 0x115   :  { %v8522_v11 = vadd.s32 4294967294, %v1872_v58  ;;  %v1970_v21 = vshrl.u32 %v1969_v0, 30  ;;  %v10372_v13 = vadd.s32 %v10316_v48, %v10331_v49  ;;  %v2024_v25 = vsel %vm2023_vm15, %v2022_v44, 0 }
 0x116   :  { %v2020_v26 = vor.u32 8388608, %v2019_v19  ;;  %v10386_v48 = vand.u32 3, %v10309_v42  ;;  %v10392_v55 = vand.u32 3, %v1897_v7  ;;  %v2026_v6 = vand.u32 31, %v2024_v25 }
 0x117   :  { %v10363_v33 = vpop.eup %9034  ;;  %vm8523_vm8 = vcmp.lt.s32.totalorder %v8522_v11, 0  ;;  %v1971_v16 = vshll.u32 %v1970_v21, 30  ;;  %v1994_v23 = vsub.s32 4, %v1970_v21  ;;  %v10400_v12 = vshrl.u32 %v2024_v25, 5 }
 0x118   :  { %v10374_v59 = vpop.eup %9036  ;;  %v1800_v60 = vxor.u32 2147483648, %v10363_v33  ;;  %v1875_v10 = vsel %vm8523_vm8, 0, %v8522_v11  ;;  %v2027_v46 = vsub.s32 32, %v2026_v6  ;;  %v10406_v54 = vshll.u32 %v2020_v26, 8 }
 0x119   :  { %v1797_v5 = vxor.u32 2147483648, %v10374_v59  ;;  %v1876_v63 = vsub.s32 32, %v1875_v10  ;;  %v1877_v2 = vshll.u32 %v10333_v31, %v1875_v10  ;;  %v1880_v20 = vsub.s32 4294967266, %v1875_v10 }
 0x11a   :  { %v1801_v4 = vsel %vm1799_vm11, %v1800_v60, %v10374_v59  ;;  %v10383_v29 = vsub.s32 %v1968_v61, %v1971_v16  ;;  %v1995_v51 = vsel %vm1910_vm10, %v1994_v23, %v1970_v21  ;;  %v10408_v1 = vand.u32 3, %v1893_v39 }
 0x11b   :  { %v1798_v18 = vsel %vm1796_vm13, %v10363_v33, %v1797_v5  ;;  %v1878_v38 = vshrl.u32 %v1860_v14, %v1876_v63  ;;  %v1881_v53 = vadd.s32 127, %v1880_v20  ;;  %v2029_v50 = vshll.u32 %v9181_v28, %v2026_v6 }
 0x11c   :  { %v1802_v57 = vsel %vm1795_vm12, %v1798_v18, %v1801_v4  ;;  %v1974_v22 = vsub.s32 0, %v10383_v29  ;;  %v2545_v15 = vand.u32 2139095040, %v10354_v17  ;;  %v10414_v41 = vsel %vm10367_vm0, 0, %v1995_v51 }
 0x11d   :  { %v1803_v42 = vsel %vm1792_vm7, nan, %v1802_v57  ;;  %v1879_v49 = vor.u32 %v1878_v38, %v1877_v2  ;;  %v1882_v31 = vshll.u32 %v1881_v53, 23  ;;  %v2032_v61 = vshll.u32 %v9182_v30, %v2026_v6 }
 0x11e   :  { %8532 = vst [vmem:[%s13757_s1 + $0xa0] sm:$0xff] %v1803_v42  ;;  %v8525_v56 = vmin.u32 %v1974_v22, %v10383_v29  ;;  %v2035_v58 = vshll.u32 %v9183_v32, %v2026_v6  ;;  %vm2216_vm3 = vcmp.eq.s32.totalorder %v10386_v48, 0  ;;  %v2030_v39 = vshrl.u32 %v9182_v30, %v2027_v46 }
 0x11f   :  { %v1883_v3 = vor.u32 4788187, %v1882_v31  ;;  %v1886_v62 = vcvt.s32.f32 %v1879_v49  ;;  %v2033_v44 = vshrl.u32 %v9183_v32, %v2027_v46  ;;  %vm2044_vm1 = vcmp.lt.s32.totalorder %v10400_v12, 1 }
 0x120   :  { %v1976_v27 = vclz %v8525_v56  ;;  %v2036_v14 = vshrl.u32 %v9184_v34, %v2027_v46  ;;  %v2038_v21 = vshll.u32 %v9184_v34, %v2026_v6  ;;  %v2039_v19 = vshrl.u32 %v9185_v36, %v2027_v46 }
 0x121   :  { %v1884_v0 = vand.u32 2147483647, %v1883_v3  ;;  %vm2219_vm14 = vcmp.eq.s32.totalorder %v10386_v48, 2  ;;  %v2028_v25 = vshrl.u32 %v9181_v28, %v2027_v46  ;;  %v2031_v10 = vor.u32 %v2030_v39, %v2029_v50 }
 0x122   :  { %v8526_v11 = vadd.s32 4294967294, %v1976_v27  ;;  %v2041_v16 = vshll.u32 %v9185_v36, %v2026_v6  ;;  %vm2215_vm4 = vcmp.lt.s32.totalorder %v10386_v48, 2  ;;  %v2034_v23 = vor.u32 %v2033_v44, %v2032_v61 }
 0x123   :  { %v1887_v7 = vmul.f32 %v1886_v62, %v1884_v0  ;;  %v2037_v63 = vor.u32 %v2036_v14, %v2035_v58  ;;  %v2042_v2 = vshrl.u32 %v9186_v43, %v2027_v46  ;;  %v2040_v26 = vor.u32 %v2039_v19, %v2038_v21 }
 0x124   :  { %vm8527_vm5 = vcmp.lt.s32.totalorder %v8526_v11, 0  ;;  %vm2045_vm6 = vcmp.lt.s32.totalorder %v10400_v12, 2  ;;  %vm2046_vm12 = vcmp.lt.s32.totalorder %v10400_v12, 3  ;;  %vm2047_vm13 = vcmp.lt.s32.totalorder %v10400_v12, 4 }
 0x125   :  { %v1888_v20 = vxor.u32 2147483648, %v1887_v7  ;;  %v1979_v4 = vsel %vm8527_vm5, 0, %v8526_v11  ;;  %v2043_v22 = vor.u32 %v2042_v2, %v2041_v16  ;;  %v2048_v51 = vsel %vm2044_vm1, %v2028_v25, %v2031_v10 }
 0x126   :  { %v1980_v18 = vsub.s32 32, %v1979_v4  ;;  %v1981_v38 = vshll.u32 %v10383_v29, %v1979_v4  ;;  %v1984_v53 = vsub.s32 4294967266, %v1979_v4  ;;  %v2049_v29 = vsel %vm2047_vm13, %v2037_v63, 2102212464 }
 0x127   :  { %v1889_v57 = vsel %vm1806_vm2, %v1888_v20, %v1887_v7  ;;  %v2050_v31 = vsel %vm2046_vm12, %v2034_v23, %v2049_v29  ;;  %v2052_v56 = vsel %vm2044_vm1, %v2031_v10, %v2034_v23  ;;  %v2053_v46 = vsel %vm2047_vm13, %v2040_v26, 920167782 }
 0x128   :  { %v1892_v6 = vsel %vm10349_vm9, %v10053_v45, %v1889_v57  ;;  %v1982_v42 = vshrl.u32 %v10372_v13, %v1980_v18  ;;  %v1985_v49 = vadd.s32 127, %v1984_v53  ;;  %v2056_v13 = vsel %vm2044_vm1, %v2034_v23, %v2037_v63 }
 0x129   :  { %9038 = vcosq.f32 %v1892_v6  ;;  %v2051_v62 = vsel %vm2045_vm6, %v2048_v51, %v2050_v31  ;;  %v2054_v50 = vsel %vm2046_vm12, %v2037_v63, %v2053_v46  ;;  %v2057_v27 = vsel %vm2047_vm13, %v2043_v22, 1326507024 }
 0x12a   :  { %9040 = vsinq.f32 %v1892_v6  ;;  %v1983_v3 = vor.u32 %v1982_v42, %v1981_v38  ;;  %v1986_v8 = vshll.u32 %v1985_v49, 23  ;;  %v2218_v61 = vsel %vm2216_vm3, %v10363_v33, %v1797_v5 }
 0x12b   :  { %v2055_v39 = vsel %vm2045_vm6, %v2052_v56, %v2054_v50  ;;  %v2058_v44 = vsel %vm2046_vm12, %v2040_v26, %v2057_v27  ;;  %v2221_v5 = vsel %vm2219_vm14, %v1800_v60, %v10374_v59  ;;  %v2001_v10 = vadd.s32 3, %v10414_v41 }
 0x12c   :  { %v1987_v58 = vor.u32 4788187, %v1986_v8  ;;  %v1990_v0 = vcvt.s32.f32 %v1983_v3  ;;  %v2059_v11 = vsel %vm2045_vm6, %v2056_v13, %v2058_v44  ;;  %v2222_v12 = vsel %vm2215_vm4, %v2218_v61, %v2221_v5 }
 0x12d   :  { %v10470_v14 = vmul.u32.u64.low %v10406_v54, %v2055_v39  ;;  %v10471_v21 = vmul.u32.u64.high %v10406_v54, %v2055_v39, %v10470_v14  ;;  %v10480_v7 = vmul.u32.u64.low %v10406_v54, %v2059_v11  ;;  %v10481_v25 = vmul.u32.u64.high %v10406_v54, %v2059_v11, %v10480_v7 }
 0x12e   :  { %v1988_v19 = vand.u32 2147483647, %v1987_v58  ;;  %v2223_v16 = vsel %vm1792_vm7, nan, %v2222_v12  ;;  %v2546_v23 = vshrl.u32 %v2545_v15, 23  ;;  %vm1896_vm2 = vweird.f32 %v10053_v45 }
 0x12f   :  { %vm1899_vm9 = vcmp.lt.s32.totalorder %v10392_v55, 2  ;;  %v2067_v59 = vmul.u32 %v10406_v54, %v2051_v62  ;;  %8552 = vst [vmem:[%s13757_s1 + $0xc0] sm:$0xff] %v2223_v16  ;;  %vm1900_vm11 = vcmp.eq.s32.totalorder %v10392_v55, 0  ;;  %vm1903_vm15 = vcmp.eq.s32.totalorder %v10392_v55, 2 }
 0x130   :  { %v1991_v33 = vmul.f32 %v1990_v0, %v1988_v19  ;;  %v2070_v35 = vadd.s32 1, %v10471_v21  ;;  %v2542_v60 = vand.u32 2147483647, %v10354_v17  ;;  %vm2069_vm7 = vc.u32 %v10481_v25, %v10470_v14 }
 0x131   :  { %vm2318_vm8 = vcmp.lt.s32.totalorder %v10408_v1, 2  ;;  %v8556_v15 = vadd.s32 4294967169, %v2546_v23  ;;  %v10503_v63 = vand.u32 3, %v2001_v10  ;;  %vm2319_vm3 = vcmp.eq.s32.totalorder %v10408_v1, 0 }
 0x132   :  { %v1992_v48 = vxor.u32 2147483648, %v1991_v33  ;;  %v2071_v2 = vsel %vm2069_vm7, %v2070_v35, %v10471_v21  ;;  %vm2322_vm1 = vcmp.eq.s32.totalorder %v10408_v1, 2  ;;  %v10514_v22 = vand.u32 3, %v10414_v41 }
 0x133   :  { %v9039_v54 = vpop.eup %9038  ;;  %v2072_v18 = vadd.s32 %v2071_v2, %v2067_v59  ;;  %v2552_v38 = vadd.s32 1, %v8556_v15  ;;  %v2549_v51 = vand.u32 8388607, %v2542_v60  ;;  %vm2003_vm14 = vcmp.lt.s32.totalorder %v10503_v63, 2 }
 0x134   :  { %v9041_v20 = vpop.eup %9040  ;;  %v1904_v4 = vxor.u32 2147483648, %v9039_v54  ;;  %v1993_v26 = vsel %vm1910_vm10, %v1992_v48, %v1991_v33  ;;  %vm2004_vm4 = vcmp.eq.s32.totalorder %v10503_v63, 0  ;;  %vm2007_vm5 = vcmp.eq.s32.totalorder %v10503_v63, 2 }
 0x135   :  { %v1901_v53 = vxor.u32 2147483648, %v9041_v20  ;;  %v1996_v57 = vsel %vm10367_vm0, %v10079_v52, %v1993_v26  ;;  %v2073_v42 = vadd.s32 536870912, %v2072_v18  ;;  %vm2553_vm10 = vcmp.gt.s32.totalorder %v2552_v38, 0 }
 0x136   :  { %v1905_v6 = vsel %vm1903_vm15, %v1904_v4, %v9041_v20  ;;  %9042 = vcosq.f32 %v1996_v57  ;;  %v2324_v49 = vsel %vm2322_vm1, %v1904_v4, %v9041_v20  ;;  %vm2014_vm0 = vcmp.lt.s32.totalorder %v10169_v40, 0 }
 0x137   :  { %v1902_v29 = vsel %vm1900_vm11, %v9039_v54, %v1901_v53  ;;  %9044 = vsinq.f32 %v1996_v57  ;;  %v2321_v37 = vsel %vm2319_vm3, %v9039_v54, %v1901_v53  ;;  %v2074_v31 = vshrl.u32 %v2073_v42, 30 }
 0x138   :  { %v1906_v41 = vsel %vm1899_vm9, %v1902_v29, %v1905_v6  ;;  %v2325_v56 = vsel %vm2318_vm8, %v2321_v37, %v2324_v49  ;;  %v2554_v46 = vsel %vm2553_vm10, %v2552_v38, 0  ;;  %v2550_v13 = vor.u32 8388608, %v2549_v51 }
 0x139   :  { %v1907_v3 = vsel %vm1896_vm2, nan, %v1906_v41  ;;  %v2326_v8 = vsel %vm1896_vm2, nan, %v2325_v56  ;;  %v2556_v62 = vand.u32 31, %v2554_v46  ;;  %v2075_v55 = vshll.u32 %v2074_v31, 30 }
 0x13a   :  { %8533 = vst [vmem:[%s13757_s1 + $0xa8] sm:$0xff] %v1907_v3  ;;  %8553 = vst [vmem:[%s13757_s1 + $0xc8] sm:$0xff] %v2326_v8  ;;  %vm2000_vm6 = vweird.f32 %v10079_v52  ;;  %vm2421_vm12 = vcmp.lt.s32.totalorder %v10514_v22, 2  ;;  %v10545_v1 = vmul.f32 171.33333, %v10050_v47  ;;  %v2068_v27 = vadd.s32 %v10470_v14, %v10481_v25 }
 0x13b   :  { %v2557_v45 = vsub.s32 32, %v2556_v62  ;;  %v10548_v50 = vmul.f32 171.33333, %v10076_v24  ;;  %v10552_v61 = vsub.s32 %v2072_v18, %v2075_v55  ;;  %vm2422_vm13 = vcmp.eq.s32.totalorder %v10514_v22, 0 }
 0x13c   :  { %vm2425_vm2 = vcmp.eq.s32.totalorder %v10514_v22, 2  ;;  %v2098_v58 = vsub.s32 4, %v2074_v31  ;;  %v2559_v0 = vshll.u32 %v9181_v28, %v2556_v62  ;;  %v10557_v39 = vshll.u32 %v2550_v13, 8 }
 0x13d   :  { %v2646_v47 = vand.u32 2147483647, %v10545_v1  ;;  %v2078_v44 = vsub.s32 0, %v10552_v61  ;;  %v2560_v24 = vshrl.u32 %v9182_v30, %v2557_v45  ;;  %v2562_v11 = vshll.u32 %v9182_v30, %v2556_v62 }
 0x13e   :  { %v2563_v14 = vshrl.u32 %v9183_v32, %v2557_v45  ;;  %v2565_v21 = vshll.u32 %v9183_v32, %v2556_v62  ;;  %v2566_v5 = vshrl.u32 %v9184_v34, %v2557_v45  ;;  %v2568_v19 = vshll.u32 %v9184_v34, %v2556_v62 }
 0x13f   :  { %v2569_v7 = vshrl.u32 %v9185_v36, %v2557_v45  ;;  %v8529_v12 = vmin.u32 %v2078_v44, %v10552_v61  ;;  %v2555_v10 = vshrl.u32 %v2554_v46, 5  ;;  %v2571_v16 = vshll.u32 %v9185_v36, %v2556_v62 }
 0x140   :  { %v9043_v25 = vpop.eup %9042  ;;  %v2572_v23 = vshrl.u32 %v9186_v43, %v2557_v45  ;;  %v2099_v35 = vsel %vm2014_vm0, %v2098_v58, %v2074_v31  ;;  %v2558_v48 = vshrl.u32 %v9181_v28, %v2557_v45  ;;  %v2649_v15 = vand.u32 2139095040, %v10545_v1 }
 0x141   :  { %v9045_v33 = vpop.eup %9044  ;;  %v2008_v59 = vxor.u32 2147483648, %v9043_v25  ;;  %vm10577_vm9 = vcmp.le.f32.partialorder %v2012_v9, 0.7853982  ;;  %v2080_v20 = vclz %v8529_v12  ;;  %v2561_v4 = vor.u32 %v2560_v24, %v2559_v0 }
 0x142   :  { %v2005_v54 = vxor.u32 2147483648, %v9045_v33  ;;  %v2564_v26 = vor.u32 %v2563_v14, %v2562_v11  ;;  %v2567_v53 = vor.u32 %v2566_v5, %v2565_v21  ;;  %v2570_v57 = vor.u32 %v2569_v7, %v2568_v19 }
 0x143   :  { %v2009_v18 = vsel %vm2007_vm5, %v2008_v59, %v9045_v33  ;;  %v2427_v38 = vsel %vm2425_vm2, %v2008_v59, %v9045_v33  ;;  %v8530_v6 = vadd.s32 4294967294, %v2080_v20  ;;  %v2573_v42 = vor.u32 %v2572_v23, %v2571_v16 }
 0x144   :  { %v2006_v51 = vsel %vm2004_vm4, %v9043_v25, %v2005_v54  ;;  %v2424_v9 = vsel %vm2422_vm13, %v9043_v25, %v2005_v54  ;;  %vm2574_vm11 = vcmp.lt.s32.totalorder %v2555_v10, 1  ;;  %vm2575_vm15 = vcmp.lt.s32.totalorder %v2555_v10, 2 }
 0x145   :  { %v2010_v49 = vsel %vm2003_vm14, %v2006_v51, %v2009_v18  ;;  %v2428_v29 = vsel %vm2421_vm12, %v2424_v9, %v2427_v38  ;;  %vm8531_vm7 = vcmp.lt.s32.totalorder %v8530_v6, 0  ;;  %vm2577_vm8 = vcmp.lt.s32.totalorder %v2555_v10, 4 }
 0x146   :  { %v2011_v37 = vsel %vm2000_vm6, nan, %v2010_v49  ;;  %v2429_v41 = vsel %vm2000_vm6, nan, %v2428_v29  ;;  %v2083_v31 = vsel %vm8531_vm7, 0, %v8530_v6  ;;  %vm2576_vm3 = vcmp.lt.s32.totalorder %v2555_v10, 3 }
 0x147   :  { %8534 = vst [vmem:[%s13757_s1 + $0xb0] sm:$0xff] %v2011_v37  ;;  %8554 = vst [vmem:[%s13757_s1 + $0xd0] sm:$0xff] %v2429_v41  ;;  %v2578_v63 = vsel %vm2574_vm11, %v2558_v48, %v2561_v4  ;;  %v2579_v22 = vsel %vm2577_vm8, %v2567_v53, 2102212464  ;;  %v2084_v56 = vsub.s32 32, %v2083_v31  ;;  %v2085_v46 = vshll.u32 %v10552_v61, %v2083_v31 }
 0x148   :  { %v2088_v3 = vsub.s32 4294967266, %v2083_v31  ;;  %v2582_v52 = vsel %vm2574_vm11, %v2561_v4, %v2564_v26  ;;  %v2580_v8 = vsel %vm2576_vm3, %v2564_v26, %v2579_v22  ;;  %v2583_v13 = vsel %vm2577_vm8, %v2570_v57, 920167782 }
 0x149   :  { %v2586_v62 = vsel %vm2574_vm11, %v2564_v26, %v2567_v53  ;;  %v2587_v55 = vsel %vm2577_vm8, %v2573_v42, 1326507024  ;;  %v2086_v45 = vshrl.u32 %v2068_v27, %v2084_v56  ;;  %v2584_v0 = vsel %vm2576_vm3, %v2567_v53, %v2583_v13 }
 0x14a   :  { %v2089_v58 = vadd.s32 127, %v2088_v3  ;;  %v2588_v44 = vsel %vm2576_vm3, %v2570_v57, %v2587_v55  ;;  %v2101_v24 = vsel %vm10577_vm9, 0, %v2099_v35  ;;  %v2585_v11 = vsel %vm2575_vm15, %v2582_v52, %v2584_v0 }
 0x14b   :  { %v2589_v14 = vsel %vm2575_vm15, %v2586_v62, %v2588_v44  ;;  %v2650_v61 = vshrl.u32 %v2649_v15, 23  ;;  %v2087_v21 = vor.u32 %v2086_v45, %v2085_v46  ;;  %v2581_v25 = vsel %vm2575_vm15, %v2578_v63, %v2580_v8 }
 0x14c   :  { %v2090_v5 = vshll.u32 %v2089_v58, 23  ;;  %v10612_v19 = vmul.u32.u64.low %v10557_v39, %v2589_v14  ;;  %v10613_v7 = vmul.u32.u64.high %v10557_v39, %v2589_v14, %v10612_v19  ;;  %v2105_v59 = vadd.s32 3, %v2101_v24 }
 0x14d   :  { %v10617_v27 = vmul.u32.u64.low %v10557_v39, %v2585_v11  ;;  %v10618_v12 = vmul.u32.u64.high %v10557_v39, %v2585_v11, %v10617_v27  ;;  %v8560_v16 = vadd.s32 4294967169, %v2650_v61  ;;  %v2094_v33 = vcvt.s32.f32 %v2087_v21 }
 0x14e   :  { %v2091_v23 = vor.u32 4788187, %v2090_v5  ;;  %v2653_v35 = vand.u32 8388607, %v2646_v47  ;;  %v2597_v54 = vmul.u32 %v10557_v39, %v2581_v25  ;;  %v2753_v10 = vand.u32 2139095040, %v10548_v50 }
 0x14f   :  { %v2656_v48 = vadd.s32 1, %v8560_v16  ;;  %vm2599_vm1 = vc.u32 %v10613_v7, %v10617_v27  ;;  %v2600_v20 = vadd.s32 1, %v10618_v12  ;;  %v10628_v18 = vand.u32 3, %v2105_v59 }
 0x150   :  { %v2092_v15 = vand.u32 2147483647, %v2091_v23  ;;  %v10630_v38 = vand.u32 3, %v2101_v24  ;;  %v2654_v39 = vor.u32 8388608, %v2653_v35  ;;  %v2754_v9 = vshrl.u32 %v2753_v10, 23 }
 0x151   :  { %vm2657_vm10 = vcmp.gt.s32.totalorder %v2656_v48, 0  ;;  %v2601_v53 = vsel %vm2599_vm1, %v2600_v20, %v10618_v12  ;;  %v2750_v24 = vand.u32 2147483647, %v10548_v50  ;;  %vm2104_vm2 = vweird.f32 %v10169_v40 }
 0x152   :  { %v2095_v4 = vmul.f32 %v2094_v33, %v2092_v15  ;;  %v2658_v26 = vsel %vm2657_vm10, %v2656_v48, 0  ;;  %v2602_v6 = vadd.s32 %v2601_v53, %v2597_v54  ;;  %vm2525_vm14 = vcmp.eq.s32.totalorder %v10630_v38, 0 }
 0x153   :  { %v2660_v57 = vand.u32 31, %v2658_v26  ;;  %v10633_v42 = vshrl.u32 %v2658_v26, 5  ;;  %v10658_v14 = vshll.u32 %v2654_v39, 8  ;;  %vm2524_vm6 = vcmp.lt.s32.totalorder %v10630_v38, 2 }
 0x154   :  { %v2096_v51 = vxor.u32 2147483648, %v2095_v4  ;;  %v2603_v31 = vadd.s32 536870912, %v2602_v6  ;;  %v8564_v12 = vadd.s32 4294967169, %v2754_v9  ;;  %v10675_v33 = vand.u32 8388607, %v2750_v24 }
 0x155   :  { %v2661_v49 = vsub.s32 32, %v2660_v57  ;;  %v2663_v29 = vshll.u32 %v9181_v28, %v2660_v57  ;;  %v2666_v37 = vshll.u32 %v9182_v30, %v2660_v57  ;;  %v2669_v63 = vshll.u32 %v9183_v32, %v2660_v57 }
 0x156   :  { %v2097_v41 = vsel %vm2014_vm0, %v2096_v51, %v2095_v4  ;;  %v2672_v22 = vshll.u32 %v9184_v34, %v2660_v57  ;;  %v2675_v52 = vshll.u32 %v9185_v36, %v2660_v57  ;;  %v10647_v8 = vshrl.u32 %v2603_v31, 30 }
 0x157   :  { %v2100_v56 = vsel %vm10577_vm9, %v10169_v40, %v2097_v41  ;;  %v2664_v46 = vshrl.u32 %v9182_v30, %v2661_v49  ;;  %v2667_v3 = vshrl.u32 %v9183_v32, %v2661_v49  ;;  %v2670_v13 = vshrl.u32 %v9184_v34, %v2661_v49 }
 0x158   :  { %9046 = vcosq.f32 %v2100_v56  ;;  %v2673_v62 = vshrl.u32 %v9185_v36, %v2661_v49  ;;  %v2676_v58 = vshrl.u32 %v9186_v43, %v2661_v49  ;;  %vm2528_vm0 = vcmp.eq.s32.totalorder %v10630_v38, 2 }
 0x159   :  { %9048 = vsinq.f32 %v2100_v56  ;;  %v2665_v55 = vor.u32 %v2664_v46, %v2663_v29  ;;  %v2668_v45 = vor.u32 %v2667_v3, %v2666_v37  ;;  %v2605_v2 = vshll.u32 %v10647_v8, 30 }
 0x15a   :  { %v2671_v0 = vor.u32 %v2670_v13, %v2669_v63  ;;  %v2674_v44 = vor.u32 %v2673_v62, %v2672_v22  ;;  %v2677_v11 = vor.u32 %v2676_v58, %v2675_v52  ;;  %vm2678_vm4 = vcmp.lt.s32.totalorder %v10633_v42, 1 }
 0x15b   :  { %vm2680_vm5 = vcmp.lt.s32.totalorder %v10633_v42, 3  ;;  %v10661_v61 = vsub.s32 %v2602_v6, %v2605_v2  ;;  %v2662_v21 = vshrl.u32 %v9181_v28, %v2661_v49  ;;  %vm2679_vm12 = vcmp.lt.s32.totalorder %v10633_v42, 2 }
 0x15c   :  { %vm2681_vm13 = vcmp.lt.s32.totalorder %v10633_v42, 4  ;;  %v2686_v19 = vsel %vm2678_vm4, %v2665_v55, %v2668_v45  ;;  %vm2107_vm9 = vcmp.lt.s32.totalorder %v10628_v18, 2  ;;  %vm2108_vm11 = vcmp.eq.s32.totalorder %v10628_v18, 0 }
 0x15d   :  { %v2683_v5 = vsel %vm2681_vm13, %v2671_v0, 2102212464  ;;  %v2687_v25 = vsel %vm2681_vm13, %v2674_v44, 920167782  ;;  %v2608_v16 = vsub.s32 0, %v10661_v61  ;;  %v2690_v35 = vsel %vm2678_vm4, %v2668_v45, %v2671_v0 }
 0x15e   :  { %v2688_v23 = vsel %vm2680_vm5, %v2671_v0, %v2687_v25  ;;  %v2691_v48 = vsel %vm2681_vm13, %v2677_v11, 1326507024  ;;  %v2682_v54 = vsel %vm2678_vm4, %v2662_v21, %v2665_v55  ;;  %v2684_v10 = vsel %vm2680_vm5, %v2668_v45, %v2683_v5 }
 0x15f   :  { %v2689_v59 = vsel %vm2679_vm12, %v2686_v19, %v2688_v23  ;;  %v8557_v15 = vmin.u32 %v2608_v16, %v10661_v61  ;;  %v2692_v20 = vsel %vm2680_vm5, %v2674_v44, %v2691_v48  ;;  %v2760_v57 = vadd.s32 1, %v8564_v12 }
 0x160   :  { %v2693_v4 = vsel %vm2679_vm12, %v2690_v35, %v2692_v20  ;;  %v10692_v26 = vmul.u32.u64.low %v10658_v14, %v2689_v59  ;;  %v10693_v53 = vmul.u32.u64.high %v10658_v14, %v2689_v59, %v10692_v26  ;;  %vm2111_vm15 = vcmp.eq.s32.totalorder %v10628_v18, 2 }
 0x161   :  { %v2598_v6 = vadd.s32 %v10617_v27, %v10613_v7  ;;  %v2610_v39 = vclz %v8557_v15  ;;  %v2758_v9 = vor.u32 8388608, %v10675_v33  ;;  %vm2761_vm7 = vcmp.gt.s32.totalorder %v2760_v57, 0 }
 0x162   :  { %v9047_v51 = vpop.eup %9046  ;;  %v10701_v37 = vmul.u32.u64.low %v10658_v14, %v2693_v4  ;;  %v10702_v41 = vmul.u32.u64.high %v10658_v14, %v2693_v4, %v10701_v37  ;;  %vm2544_vm8 = vcmp.lt.s32.totalorder %v10354_v17, 0  ;;  %v2685_v22 = vsel %vm2679_vm12, %v2682_v54, %v2684_v10 }
 0x163   :  { %v9049_v49 = vpop.eup %9048  ;;  %v2112_v29 = vxor.u32 2147483648, %v9047_v51  ;;  %v8558_v63 = vadd.s32 4294967294, %v2610_v39  ;;  %v2762_v56 = vsel %vm2761_vm7, %v2760_v57, 0  ;;  %v2628_v27 = vsub.s32 4, %v10647_v8 }
 0x164   :  { %v2109_v31 = vxor.u32 2147483648, %v9049_v49  ;;  %v2704_v3 = vadd.s32 1, %v10693_v53  ;;  %v2764_v62 = vand.u32 31, %v2762_v56  ;;  %v2701_v58 = vmul.u32 %v10658_v14, %v2685_v22 }
 0x165   :  { %v2113_v46 = vsel %vm2111_vm15, %v2112_v29, %v9049_v49  ;;  %v2530_v7 = vsel %vm2528_vm0, %v2112_v29, %v9049_v49  ;;  %vm8559_vm3 = vcmp.lt.s32.totalorder %v8558_v63, 0  ;;  %vm2703_vm1 = vc.u32 %v10702_v41, %v10692_v26 }
 0x166   :  { %v2110_v52 = vsel %vm2108_vm11, %v9047_v51, %v2109_v31  ;;  %v2527_v13 = vsel %vm2525_vm14, %v9047_v51, %v2109_v31  ;;  %v2613_v45 = vsel %vm8559_vm3, 0, %v8558_v63  ;;  %v10733_v38 = vshrl.u32 %v2762_v56, 5 }
 0x167   :  { %v2114_v42 = vsel %vm2107_vm9, %v2110_v52, %v2113_v46  ;;  %v2531_v55 = vsel %vm2524_vm6, %v2527_v13, %v2530_v7  ;;  %v2614_v44 = vsub.s32 32, %v2613_v45  ;;  %v2615_v11 = vshll.u32 %v10661_v61, %v2613_v45 }
 0x168   :  { %v2115_v2 = vsel %vm2104_vm2, nan, %v2114_v42  ;;  %v2532_v0 = vsel %vm2104_vm2, nan, %v2531_v55  ;;  %v2618_v18 = vsub.s32 4294967266, %v2613_v45  ;;  %v2765_v14 = vsub.s32 32, %v2764_v62 }
 0x169   :  { %8535 = vst [vmem:[%s13757_s1 + $0xb8] sm:$0xff] %v2115_v2  ;;  %8555 = vst [vmem:[%s13757_s1 + $0xd8] sm:$0xff] %v2532_v0  ;;  %v2616_v40 = vshrl.u32 %v2598_v6, %v2614_v44  ;;  %v2705_v21 = vsel %vm2703_vm1, %v2704_v3, %v10693_v53  ;;  %v2767_v61 = vshll.u32 %v9181_v28, %v2764_v62  ;;  %vm10740_vm10 = vcmp.le.f32.partialorder %v2542_v60, 0.7853982 }
 0x16a   :  { %v2770_v5 = vshll.u32 %v9182_v30, %v2764_v62  ;;  %v2619_v25 = vadd.s32 127, %v2618_v18  ;;  %v2706_v12 = vadd.s32 %v2705_v21, %v2701_v58  ;;  %v2768_v16 = vshrl.u32 %v9182_v30, %v2765_v14  ;;  %v10794_v21 = vld [vmem:[%s13757_s1 + $0x18] sm:$0xff] }
 0x16b   :  { %v2773_v23 = vshll.u32 %v9183_v32, %v2764_v62  ;;  %v2617_v59 = vor.u32 %v2616_v40, %v2615_v11  ;;  %v2771_v35 = vshrl.u32 %v9183_v32, %v2765_v14  ;;  %v2774_v48 = vshrl.u32 %v9184_v34, %v2765_v14 }
 0x16c   :  { %v2776_v15 = vshll.u32 %v9184_v34, %v2764_v62  ;;  %v2620_v54 = vshll.u32 %v2619_v25, 23  ;;  %v2629_v60 = vsel %vm2544_vm8, %v2628_v27, %v10647_v8  ;;  %v2707_v10 = vadd.s32 536870912, %v2706_v12 }
 0x16d   :  { %v2777_v20 = vshrl.u32 %v9185_v36, %v2765_v14  ;;  %v2624_v4 = vcvt.s32.f32 %v2617_v59  ;;  %v2769_v53 = vor.u32 %v2768_v16, %v2767_v61  ;;  %v2772_v57 = vor.u32 %v2771_v35, %v2770_v5 }
 0x16e   :  { %v2779_v51 = vshll.u32 %v9185_v36, %v2764_v62  ;;  %v2621_v6 = vor.u32 4788187, %v2620_v54  ;;  %v2708_v39 = vshrl.u32 %v2707_v10, 30  ;;  %v2780_v29 = vshrl.u32 %v9186_v43, %v2765_v14 }
 0x16f   :  { %v2778_v49 = vor.u32 %v2777_v20, %v2776_v15  ;;  %v2766_v37 = vshrl.u32 %v9181_v28, %v2765_v14  ;;  %v2775_v31 = vor.u32 %v2774_v48, %v2773_v23  ;;  %vm2782_vm0 = vcmp.lt.s32.totalorder %v10733_v38, 1 }
 0x170   :  { %vm2785_vm14 = vcmp.lt.s32.totalorder %v10733_v38, 4  ;;  %v2622_v8 = vand.u32 2147483647, %v2621_v6  ;;  %v2709_v63 = vshll.u32 %v2708_v39, 30  ;;  %vm2784_vm4 = vcmp.lt.s32.totalorder %v10733_v38, 3 }
 0x171   :  { %v2798_v22 = vshll.u32 %v2758_v9, 8  ;;  %v2781_v56 = vor.u32 %v2780_v29, %v2779_v51  ;;  %vm2783_vm5 = vcmp.lt.s32.totalorder %v10733_v38, 2  ;;  %v2790_v46 = vsel %vm2782_vm0, %v2769_v53, %v2772_v57 }
 0x172   :  { %v2791_v7 = vsel %vm2785_vm14, %v2778_v49, 920167782  ;;  %v2625_v27 = vmul.f32 %v2624_v4, %v2622_v8  ;;  %vm2648_vm6 = vcmp.lt.s32.totalorder %v10545_v1, 0  ;;  %v2710_v3 = vsub.s32 %v2706_v12, %v2709_v63 }
 0x173   :  { %v2787_v52 = vsel %vm2785_vm14, %v2775_v31, 2102212464  ;;  %v2631_v33 = vsel %vm10740_vm10, 0, %v2629_v60  ;;  %v2732_v9 = vsub.s32 4, %v2708_v39  ;;  %v2786_v13 = vsel %vm2782_vm0, %v2766_v37, %v2769_v53 }
 0x174   :  { %v2792_v62 = vsel %vm2784_vm4, %v2775_v31, %v2791_v7  ;;  %v2626_v42 = vxor.u32 2147483648, %v2625_v27  ;;  %v2712_v55 = vsub.s32 0, %v2710_v3  ;;  %v2794_v58 = vsel %vm2782_vm0, %v2772_v57, %v2775_v31 }
 0x175   :  { %v2793_v45 = vsel %vm2783_vm5, %v2790_v46, %v2792_v62  ;;  %v2788_v2 = vsel %vm2784_vm4, %v2772_v57, %v2787_v52  ;;  %v2795_v0 = vsel %vm2785_vm14, %v2781_v56, 1326507024  ;;  %v10797_v61 = vmul.f32 171.33333, %v10794_v21 }
 0x176   :  { %v10783_v44 = vmul.u32.u64.low %v2798_v22, %v2793_v45  ;;  %v10784_v11 = vmul.u32.u64.high %v2798_v22, %v2793_v45, %v10783_v44  ;;  %v2627_v18 = vsel %vm2544_vm8, %v2626_v42, %v2625_v27  ;;  %v8561_v14 = vmin.u32 %v2712_v55, %v2710_v3 }
 0x177   :  { %v2796_v40 = vsel %vm2784_vm4, %v2778_v49, %v2795_v0  ;;  %v2630_v5 = vsel %vm10740_vm10, %v10354_v17, %v2627_v18  ;;  %v2733_v25 = vsel %vm2648_vm6, %v2732_v9, %v2708_v39  ;;  %v2635_v16 = vadd.s32 3, %v2631_v33 }
 0x178   :  { %v2797_v12 = vsel %vm2783_vm5, %v2794_v58, %v2796_v40  ;;  %9050 = vcosq.f32 %v2630_v5  ;;  %v2714_v23 = vclz %v8561_v14  ;;  %v2789_v59 = vsel %vm2783_vm5, %v2786_v13, %v2788_v2 }
 0x179   :  { %9052 = vsinq.f32 %v2630_v5  ;;  %vm10810_vm12 = vcmp.le.f32.partialorder %v2646_v47, 0.7853982  ;;  %v10814_v19 = vmul.u32.u64.low %v2798_v22, %v2797_v12  ;;  %v10815_v48 = vmul.u32.u64.high %v2798_v22, %v2797_v12, %v10814_v19 }
 0x17a   :  { %v8562_v15 = vadd.s32 4294967294, %v2714_v23  ;;  %v2735_v54 = vsel %vm10810_vm12, 0, %v2733_v25  ;;  %v2808_v60 = vadd.s32 1, %v10784_v11  ;;  %v2857_v10 = vand.u32 2139095040, %v10797_v61  ;;  %v9168_v25 = vld [vmem:[%s13757_s1 + $0x8] sm:$0xff] }
 0x17b   :  { %v2805_v38 = vmul.u32 %v2798_v22, %v2789_v59  ;;  %v2854_v20 = vand.u32 2147483647, %v10797_v61  ;;  %v2636_v4 = vand.u32 3, %v2635_v16  ;;  %v2702_v47 = vadd.s32 %v10692_v26, %v10702_v41 }
 0x17c   :  { %vm8563_vm13 = vcmp.lt.s32.totalorder %v8562_v15, 0  ;;  %v2858_v53 = vshrl.u32 %v2857_v10, 23  ;;  %v2739_v51 = vadd.s32 3, %v2735_v54  ;;  %vm2807_vm2 = vc.u32 %v10815_v48, %v10783_v44 }
 0x17d   :  { %v2717_v57 = vsel %vm8563_vm13, 0, %v8562_v15  ;;  %v2809_v29 = vsel %vm2807_vm2, %v2808_v60, %v10784_v11  ;;  %v2861_v8 = vand.u32 8388607, %v2854_v20  ;;  %vm2634_vm9 = vweird.f32 %v10354_v17  ;;  %v10852_v11 = vld [vmem:[%s13757_s1] sm:$0xff] }
 0x17e   :  { %v2718_v6 = vsub.s32 32, %v2717_v57  ;;  %v2719_v39 = vshll.u32 %v2710_v3, %v2717_v57  ;;  %v2722_v49 = vsub.s32 4294967266, %v2717_v57  ;;  %v2810_v37 = vadd.s32 %v2809_v29, %v2805_v38 }
 0x17f   :  { %v8568_v31 = vadd.s32 4294967169, %v2858_v53  ;;  %vm2637_vm11 = vcmp.lt.s32.totalorder %v2636_v4, 2  ;;  %vm2638_vm15 = vcmp.eq.s32.totalorder %v2636_v4, 0  ;;  %vm2641_vm7 = vcmp.eq.s32.totalorder %v2636_v4, 2 }
 0x180   :  { %v2720_v26 = vshrl.u32 %v2702_v47, %v2718_v6  ;;  %v2723_v41 = vadd.s32 127, %v2722_v49  ;;  %v2811_v63 = vadd.s32 536870912, %v2810_v37  ;;  %v10832_v27 = vand.u32 3, %v2739_v51 }
 0x181   :  { %v2864_v22 = vadd.s32 1, %v8568_v31  ;;  %v10834_v3 = vand.u32 3, %v2631_v33  ;;  %v2862_v62 = vor.u32 8388608, %v2861_v8  ;;  %v10847_v0 = vand.u32 3, %v2735_v54 }
 0x182   :  { %v10830_v56 = vpop.eup %9050  ;;  %v2721_v46 = vor.u32 %v2720_v26, %v2719_v39  ;;  %v2724_v7 = vshll.u32 %v2723_v41, 23  ;;  %v10839_v13 = vshrl.u32 %v2811_v63, 30  ;;  %v10855_v18 = vmul.f32 228.11111, %v10852_v11 }
 0x183   :  { %v10836_v52 = vpop.eup %9052  ;;  %v2642_v9 = vxor.u32 2147483648, %v10830_v56  ;;  %vm2865_vm8 = vcmp.gt.s32.totalorder %v2864_v22, 0  ;;  %v10862_v12 = vmul.f32 228.11111, %v9168_v25  ;;  %v10867_v23 = vadd.s32 %v10783_v44, %v10815_v48 }
 0x184   :  { %v2639_v42 = vxor.u32 2147483648, %v10836_v52  ;;  %v2725_v55 = vor.u32 4788187, %v2724_v7  ;;  %v2728_v45 = vcvt.s32.f32 %v2721_v46  ;;  %v2866_v58 = vsel %vm2865_vm8, %v2864_v22, 0 }
 0x185   :  { %v2643_v2 = vsel %vm2641_vm7, %v2642_v9, %v10836_v52  ;;  %v2813_v33 = vshll.u32 %v10839_v13, 30  ;;  %v2868_v5 = vand.u32 31, %v2866_v58  ;;  %v10871_v19 = vshll.u32 %v2862_v62, 8 }
 0x186   :  { %v2640_v14 = vsel %vm2638_vm15, %v10830_v56, %v2639_v42  ;;  %v2726_v40 = vand.u32 2147483647, %v2725_v55  ;;  %v10875_v60 = vshrl.u32 %v2866_v58, 5  ;;  %vm3058_vm3 = vcmp.eq.s32.totalorder %v10834_v3, 0 }
 0x187   :  { %v2644_v16 = vsel %vm2637_vm11, %v2640_v14, %v2643_v2  ;;  %v10869_v59 = vsub.s32 %v2810_v37, %v2813_v33  ;;  %v2869_v10 = vsub.s32 32, %v2868_v5  ;;  %v2871_v44 = vshll.u32 %v9181_v28, %v2868_v5 }
 0x188   :  { %v2645_v15 = vsel %vm2634_vm9, nan, %v2644_v16  ;;  %v2729_v54 = vmul.f32 %v2728_v45, %v2726_v40  ;;  %v3387_v48 = vand.u32 2139095040, %v10855_v18  ;;  %vm2752_vm1 = vcmp.lt.s32.totalorder %v10548_v50, 0 }
 0x189   :  { %8572 = vst [vmem:[%s13757_s1 + $0xe0] sm:$0xff] %v2645_v15  ;;  %v2816_v38 = vsub.s32 0, %v10869_v59  ;;  %v2872_v47 = vshrl.u32 %v9182_v30, %v2869_v10  ;;  %v2874_v53 = vshll.u32 %v9182_v30, %v2868_v5  ;;  %v2875_v57 = vshrl.u32 %v9183_v32, %v2869_v10 }
 0x18a   :  { %v2730_v4 = vxor.u32 2147483648, %v2729_v54  ;;  %v2836_v6 = vsub.s32 4, %v10839_v13  ;;  %v2877_v39 = vshll.u32 %v9183_v32, %v2868_v5  ;;  %v2878_v49 = vshrl.u32 %v9184_v34, %v2869_v10 }
 0x18b   :  { %v8565_v51 = vmin.u32 %v2816_v38, %v10869_v59  ;;  %vm3061_vm10 = vcmp.eq.s32.totalorder %v10834_v3, 2  ;;  %v2880_v37 = vshll.u32 %v9184_v34, %v2868_v5  ;;  %vm2886_vm0 = vcmp.lt.s32.totalorder %v10875_v60, 1 }
 0x18c   :  { %v2731_v29 = vsel %vm2648_vm6, %v2730_v4, %v2729_v54  ;;  %v3060_v31 = vsel %vm3058_vm3, %v10830_v56, %v2639_v42  ;;  %v2870_v41 = vshrl.u32 %v9181_v28, %v2869_v10  ;;  %v2873_v63 = vor.u32 %v2872_v47, %v2871_v44 }
 0x18d   :  { %v2734_v8 = vsel %vm10810_vm12, %v10545_v1, %v2731_v29  ;;  %v2818_v26 = vclz %v8565_v51  ;;  %vm3057_vm14 = vcmp.lt.s32.totalorder %v10834_v3, 2  ;;  %v2876_v22 = vor.u32 %v2875_v57, %v2874_v53 }
 0x18e   :  { %9054 = vcosq.f32 %v2734_v8  ;;  %v2879_v46 = vor.u32 %v2878_v49, %v2877_v39  ;;  %v2881_v7 = vshrl.u32 %v9185_v36, %v2869_v10  ;;  %vm10906_vm4 = vcmp.le.f32.partialorder %v2750_v24, 0.7853982 }
 0x18f   :  { %9056 = vsinq.f32 %v2734_v8  ;;  %v8566_v35 = vadd.s32 4294967294, %v2818_v26  ;;  %v2883_v42 = vshll.u32 %v9185_v36, %v2868_v5  ;;  %v2884_v55 = vshrl.u32 %v9186_v43, %v2869_v10 }
 0x190   :  { %vm2745_vm5 = vcmp.eq.s32.totalorder %v10832_v27, 2  ;;  %v2882_v45 = vor.u32 %v2881_v7, %v2880_v37  ;;  %vm2887_vm6 = vcmp.lt.s32.totalorder %v10875_v60, 2  ;;  %vm2888_vm12 = vcmp.lt.s32.totalorder %v10875_v60, 3 }
 0x191   :  { %vm2889_vm13 = vcmp.lt.s32.totalorder %v10875_v60, 4  ;;  %vm2742_vm2 = vcmp.eq.s32.totalorder %v10832_v27, 0  ;;  %vm8567_vm11 = vcmp.lt.s32.totalorder %v8566_v35, 0  ;;  %v2885_v24 = vor.u32 %v2884_v55, %v2883_v42 }
 0x192   :  { %v2890_v58 = vsel %vm2886_vm0, %v2870_v41, %v2873_v63  ;;  %v2891_v2 = vsel %vm2889_vm13, %v2879_v46, 2102212464  ;;  %vm3161_vm15 = vcmp.eq.s32.totalorder %v10847_v0, 0  ;;  %vm2741_vm7 = vcmp.lt.s32.totalorder %v10832_v27, 2 }
 0x193   :  { %v2821_v33 = vsel %vm8567_vm11, 0, %v8566_v35  ;;  %v2892_v14 = vsel %vm2888_vm12, %v2876_v22, %v2891_v2  ;;  %v2894_v40 = vsel %vm2886_vm0, %v2873_v63, %v2876_v22  ;;  %v2895_v5 = vsel %vm2889_vm13, %v2882_v45, 920167782 }
 0x194   :  { %vm2738_vm8 = vweird.f32 %v10545_v1  ;;  %v2822_v25 = vsub.s32 32, %v2821_v33  ;;  %v2823_v16 = vshll.u32 %v10869_v59, %v2821_v33  ;;  %v2826_v15 = vsub.s32 4294967266, %v2821_v33 }
 0x195   :  { %v2837_v54 = vsel %vm2752_vm1, %v2836_v6, %v10839_v13  ;;  %v2893_v10 = vsel %vm2887_vm6, %v2890_v58, %v2892_v14  ;;  %v2896_v38 = vsel %vm2888_vm12, %v2879_v46, %v2895_v5  ;;  %v2898_v44 = vsel %vm2886_vm0, %v2876_v22, %v2879_v46 }
 0x196   :  { %v2899_v4 = vsel %vm2889_vm13, %v2885_v24, 1326507024  ;;  %v2824_v47 = vshrl.u32 %v10867_v23, %v2822_v25  ;;  %v2827_v59 = vadd.s32 127, %v2826_v15  ;;  %v2897_v53 = vsel %vm2887_vm6, %v2894_v40, %v2896_v38 }
 0x197   :  { %v2900_v13 = vsel %vm2888_vm12, %v2882_v45, %v2899_v4  ;;  %v10950_v51 = vmul.u32.u64.low %v10871_v19, %v2897_v53  ;;  %v10951_v6 = vmul.u32.u64.high %v10871_v19, %v2897_v53, %v10950_v51  ;;  %v3063_v23 = vsel %vm3061_vm10, %v2642_v9, %v10836_v52 }
 0x198   :  { %v2901_v57 = vsel %vm2887_vm6, %v2898_v44, %v2900_v13  ;;  %v2825_v39 = vor.u32 %v2824_v47, %v2823_v16  ;;  %v2828_v49 = vshll.u32 %v2827_v59, 23  ;;  %v9055_v8 = vpop.eup %9054  ;;  %v2839_v60 = vsel %vm10906_vm4, 0, %v2837_v54 }
 0x199   :  { %v10960_v29 = vmul.u32.u64.low %v10871_v19, %v2901_v57  ;;  %v10961_v37 = vmul.u32.u64.high %v10871_v19, %v2901_v57, %v10960_v29  ;;  %v2909_v26 = vmul.u32 %v10871_v19, %v2893_v10  ;;  %v3064_v41 = vsel %vm3057_vm14, %v3060_v31, %v3063_v23  ;;  %v9057_v56 = vpop.eup %9056 }
 0x19a   :  { %vm3164_vm3 = vcmp.eq.s32.totalorder %v10847_v0, 2  ;;  %v2746_v63 = vxor.u32 2147483648, %v9055_v8  ;;  %v2829_v52 = vor.u32 4788187, %v2828_v49  ;;  %v2832_v9 = vcvt.s32.f32 %v2825_v39 }
 0x19b   :  { %v3065_v22 = vsel %vm2634_vm9, nan, %v3064_v41  ;;  %v2743_v46 = vxor.u32 2147483648, %v9057_v56  ;;  %v2912_v7 = vadd.s32 1, %v10951_v6  ;;  %vm3160_vm10 = vcmp.lt.s32.totalorder %v10847_v0, 2 }
 0x19c   :  { %8592 = vst [vmem:[%s13757_s1 + $0x100] sm:$0xff] %v3065_v22  ;;  %v3388_v3 = vshrl.u32 %v3387_v48, 23  ;;  %v2747_v19 = vsel %vm2745_vm5, %v2746_v63, %v9057_v56  ;;  %v2830_v31 = vand.u32 2147483647, %v2829_v52  ;;  %v2843_v35 = vadd.s32 3, %v2839_v60 }
 0x19d   :  { %vm2911_vm9 = vc.u32 %v10961_v37, %v10950_v51  ;;  %v2744_v17 = vsel %vm2742_vm2, %v9055_v8, %v2743_v46  ;;  %v3163_v55 = vsel %vm3161_vm15, %v9055_v8, %v2743_v46  ;;  %v3166_v45 = vsel %vm3164_vm3, %v2746_v63, %v9057_v56 }
 0x19e   :  { %v2913_v42 = vsel %vm2911_vm9, %v2912_v7, %v10951_v6  ;;  %v2748_v48 = vsel %vm2741_vm7, %v2744_v17, %v2747_v19  ;;  %v2833_v24 = vmul.f32 %v2832_v9, %v2830_v31  ;;  %v3167_v2 = vsel %vm3160_vm10, %v3163_v55, %v3166_v45 }
 0x19f   :  { %v2914_v58 = vadd.s32 %v2913_v42, %v2909_v26  ;;  %v2749_v33 = vsel %vm2738_vm8, nan, %v2748_v48  ;;  %v3168_v14 = vsel %vm2738_vm8, nan, %v3167_v2  ;;  %v3384_v40 = vand.u32 2147483647, %v10855_v18 }
 0x1a0   :  { %v8596_v5 = vadd.s32 4294967169, %v3388_v3  ;;  %8573 = vst [vmem:[%s13757_s1 + $0xe8] sm:$0xff] %v2749_v33  ;;  %v2834_v0 = vxor.u32 2147483648, %v2833_v24  ;;  %8593 = vst [vmem:[%s13757_s1 + $0x108] sm:$0xff] %v3168_v14  ;;  %v11004_v15 = vand.u32 3, %v2843_v35  ;;  %v3491_v38 = vand.u32 2139095040, %v10862_v12 }
 0x1a1   :  { %v2915_v25 = vadd.s32 536870912, %v2914_v58  ;;  %v3391_v10 = vand.u32 8388607, %v3384_v40  ;;  %v11012_v4 = vand.u32 3, %v2839_v60  ;;  %vm2856_vm14 = vcmp.lt.s32.totalorder %v10797_v61, 0 }
 0x1a2   :  { %v3394_v27 = vadd.s32 1, %v8596_v5  ;;  %v2835_v16 = vsel %vm2752_vm1, %v2834_v0, %v2833_v24  ;;  %vm2849_vm1 = vcmp.eq.s32.totalorder %v11004_v15, 2  ;;  %v3492_v6 = vshrl.u32 %v3491_v38, 23 }
 0x1a3   :  { %v2916_v1 = vshrl.u32 %v2915_v25, 30  ;;  %v2838_v54 = vsel %vm10906_vm4, %v10548_v50, %v2835_v16  ;;  %vm2846_vm4 = vcmp.eq.s32.totalorder %v11004_v15, 0  ;;  %v3392_v13 = vor.u32 8388608, %v3391_v10 }
 0x1a4   :  { %vm3395_vm0 = vcmp.gt.s32.totalorder %v3394_v27, 0  ;;  %9058 = vcosq.f32 %v2838_v54  ;;  %vm2845_vm5 = vcmp.lt.s32.totalorder %v11004_v15, 2  ;;  %vm3264_vm6 = vcmp.eq.s32.totalorder %v11012_v4, 0 }
 0x1a5   :  { %v2917_v44 = vshll.u32 %v2916_v1, 30  ;;  %v3396_v47 = vsel %vm3395_vm0, %v3394_v27, 0  ;;  %9060 = vsinq.f32 %v2838_v54  ;;  %v2940_v62 = vsub.s32 4, %v2916_v1 }
 0x1a6   :  { %v3398_v59 = vand.u32 31, %v3396_v47  ;;  %vm2842_vm12 = vweird.f32 %v10548_v50  ;;  %v2910_v29 = vadd.s32 %v10950_v51, %v10961_v37  ;;  %vm3263_vm13 = vcmp.lt.s32.totalorder %v11012_v4, 2 }
 0x1a7   :  { %v11016_v53 = vsub.s32 %v2914_v58, %v2917_v44  ;;  %vm3267_vm2 = vcmp.eq.s32.totalorder %v11012_v4, 2  ;;  %v11032_v41 = vshrl.u32 %v3396_v47, 5  ;;  %v2941_v52 = vsel %vm2856_vm14, %v2940_v62, %v2916_v1 }
 0x1a8   :  { %v3399_v57 = vsub.s32 32, %v3398_v59  ;;  %v3401_v39 = vshll.u32 %v9181_v28, %v3398_v59  ;;  %v3404_v49 = vshll.u32 %v9182_v30, %v3398_v59  ;;  %v3407_v56 = vshll.u32 %v9183_v32, %v3398_v59 }
 0x1a9   :  { %v2920_v23 = vsub.s32 0, %v11016_v53  ;;  %v11038_v51 = vshll.u32 %v3392_v13, 8  ;;  %v3488_v37 = vand.u32 2147483647, %v10862_v12  ;;  %v8600_v9 = vadd.s32 4294967169, %v3492_v6 }
 0x1aa   :  { %v3402_v8 = vshrl.u32 %v9182_v30, %v3399_v57  ;;  %v3405_v60 = vshrl.u32 %v9183_v32, %v3399_v57  ;;  %v3408_v63 = vshrl.u32 %v9184_v34, %v3399_v57  ;;  %v3400_v46 = vshrl.u32 %v9181_v28, %v3399_v57 }
 0x1ab   :  { %v8569_v26 = vmin.u32 %v2920_v23, %v11016_v53  ;;  %v3410_v19 = vshll.u32 %v9184_v34, %v3398_v59  ;;  %v3411_v31 = vshrl.u32 %v9185_v36, %v3399_v57  ;;  %v3413_v35 = vshll.u32 %v9185_v36, %v3398_v59 }
 0x1ac   :  { %v3403_v7 = vor.u32 %v3402_v8, %v3401_v39  ;;  %v3406_v3 = vor.u32 %v3405_v60, %v3404_v49  ;;  %v3414_v17 = vshrl.u32 %v9186_v43, %v3399_v57  ;;  %vm11048_vm11 = vcmp.le.f32.partialorder %v2854_v20, 0.7853982 }
 0x1ad   :  { %v2922_v22 = vclz %v8569_v26  ;;  %v3409_v48 = vor.u32 %v3408_v63, %v3407_v56  ;;  %vm3416_vm15 = vcmp.lt.s32.totalorder %v11032_v41, 1  ;;  %vm3417_vm7 = vcmp.lt.s32.totalorder %v11032_v41, 2 }
 0x1ae   :  { %v9059_v42 = vpop.eup %9058  ;;  %v3412_v2 = vor.u32 %v3411_v31, %v3410_v19  ;;  %vm3418_vm8 = vcmp.lt.s32.totalorder %v11032_v41, 3  ;;  %vm3419_vm3 = vcmp.lt.s32.totalorder %v11032_v41, 4  ;;  %v3415_v14 = vor.u32 %v3414_v17, %v3413_v35 }
 0x1af   :  { %v8570_v45 = vadd.s32 4294967294, %v2922_v22  ;;  %v9061_v24 = vpop.eup %9060  ;;  %v2850_v58 = vxor.u32 2147483648, %v9059_v42  ;;  %v3421_v20 = vsel %vm3419_vm3, %v3409_v48, 2102212464  ;;  %v3420_v27 = vsel %vm3416_vm15, %v3400_v46, %v3403_v7 }
 0x1b0   :  { %v2847_v33 = vxor.u32 2147483648, %v9061_v24  ;;  %v3422_v47 = vsel %vm3418_vm8, %v3406_v3, %v3421_v20  ;;  %v3424_v59 = vsel %vm3416_vm15, %v3403_v7, %v3406_v3  ;;  %v3425_v6 = vsel %vm3419_vm3, %v3412_v2, 920167782 }
 0x1b1   :  { %vm8571_vm10 = vcmp.lt.s32.totalorder %v8570_v45, 0  ;;  %v2851_v5 = vsel %vm2849_vm1, %v2850_v58, %v9061_v24  ;;  %v3269_v25 = vsel %vm3267_vm2, %v2850_v58, %v9061_v24  ;;  %v3428_v23 = vsel %vm3416_vm15, %v3406_v3, %v3409_v48 }
 0x1b2   :  { %v2925_v0 = vsel %vm8571_vm10, 0, %v8570_v45  ;;  %v2848_v16 = vsel %vm2846_vm4, %v9059_v42, %v2847_v33  ;;  %v3266_v44 = vsel %vm3264_vm6, %v9059_v42, %v2847_v33  ;;  %v3429_v39 = vsel %vm3419_vm3, %v3415_v14, 1326507024  ;;  %v11127_v14 = vld [vmem:[%s13757_s1 + $0x10] sm:$0xff] }
 0x1b3   :  { %v2926_v1 = vsub.s32 32, %v2925_v0  ;;  %v2927_v54 = vshll.u32 %v11016_v53, %v2925_v0  ;;  %v2930_v10 = vsub.s32 4294967266, %v2925_v0  ;;  %v2852_v38 = vsel %vm2845_vm5, %v2848_v16, %v2851_v5 }
 0x1b4   :  { %v2853_v62 = vsel %vm2842_vm12, nan, %v2852_v38  ;;  %v3270_v53 = vsel %vm3263_vm13, %v3266_v44, %v3269_v25  ;;  %v3426_v4 = vsel %vm3418_vm8, %v3409_v48, %v3425_v6  ;;  %v3430_v50 = vsel %vm3418_vm8, %v3412_v2, %v3429_v39 }
 0x1b5   :  { %v2928_v13 = vshrl.u32 %v2910_v29, %v2926_v1  ;;  %v2931_v57 = vadd.s32 127, %v2930_v10  ;;  %8574 = vst [vmem:[%s13757_s1 + $0xf0] sm:$0xff] %v2853_v62  ;;  %v3271_v15 = vsel %vm2842_vm12, nan, %v3270_v53  ;;  %v2943_v8 = vsel %vm11048_vm11, 0, %v2941_v52 }
 0x1b6   :  { %8594 = vst [vmem:[%s13757_s1 + $0x110] sm:$0xff] %v3271_v15  ;;  %v3427_v60 = vsel %vm3417_vm7, %v3424_v59, %v3426_v4  ;;  %v3431_v26 = vsel %vm3417_vm7, %v3428_v23, %v3430_v50  ;;  %v3423_v7 = vsel %vm3417_vm7, %v3420_v27, %v3422_v47  ;;  %v3498_v52 = vadd.s32 1, %v8600_v9 }
 0x1b7   :  { %v2929_v49 = vor.u32 %v2928_v13, %v2927_v54  ;;  %v2932_v29 = vshll.u32 %v2931_v57, 23  ;;  %v11104_v22 = vmul.u32.u64.low %v11038_v51, %v3431_v26  ;;  %v11105_v46 = vmul.u32.u64.high %v11038_v51, %v3431_v26, %v11104_v22 }
 0x1b8   :  { %v11110_v3 = vmul.u32.u64.low %v11038_v51, %v3427_v60  ;;  %v11111_v19 = vmul.u32.u64.high %v11038_v51, %v3427_v60, %v11110_v3  ;;  %v2947_v35 = vadd.s32 3, %v2943_v8  ;;  %v3495_v17 = vand.u32 8388607, %v3488_v37 }
 0x1b9   :  { %v2933_v56 = vor.u32 4788187, %v2932_v29  ;;  %v2936_v63 = vcvt.s32.f32 %v2929_v49  ;;  %vm3499_vm9 = vcmp.gt.s32.totalorder %v3498_v52, 0  ;;  %v3439_v45 = vmul.u32 %v11038_v51, %v3423_v7 }
 0x1ba   :  { %vm3441_vm0 = vc.u32 %v11105_v46, %v11110_v3  ;;  %v3500_v41 = vsel %vm3499_vm9, %v3498_v52, 0  ;;  %v11119_v48 = vand.u32 3, %v2943_v8  ;;  %v3442_v24 = vadd.s32 1, %v11111_v19 }
 0x1bb   :  { %v2934_v31 = vand.u32 2147483647, %v2933_v56  ;;  %v3502_v58 = vand.u32 31, %v3500_v41  ;;  %v11122_v9 = vand.u32 3, %v2947_v35  ;;  %v3496_v33 = vor.u32 8388608, %v3495_v17 }
 0x1bc   :  { %v11130_v51 = vmul.f32 228.11111, %v11127_v14  ;;  %v3443_v20 = vsel %vm3441_vm0, %v3442_v24, %v11111_v19  ;;  %v3501_v38 = vshrl.u32 %v3500_v41, 5  ;;  %vm3386_vm1 = vcmp.lt.s32.totalorder %v10855_v18, 0 }
 0x1bd   :  { %v2937_v42 = vmul.f32 %v2936_v63, %v2934_v31  ;;  %v3503_v5 = vsub.s32 32, %v3502_v58  ;;  %v3505_v0 = vshll.u32 %v9181_v28, %v3502_v58  ;;  %v3508_v25 = vshll.u32 %v9182_v30, %v3502_v58 }
 0x1be   :  { %v3444_v16 = vadd.s32 %v3443_v20, %v3439_v45  ;;  %v3511_v1 = vshll.u32 %v9183_v32, %v3502_v58  ;;  %v3514_v54 = vshll.u32 %v9184_v34, %v3502_v58  ;;  %v3517_v15 = vshll.u32 %v9185_v36, %v3502_v58 }
 0x1bf   :  { %v2938_v2 = vxor.u32 2147483648, %v2937_v42  ;;  %v3506_v44 = vshrl.u32 %v9182_v30, %v3503_v5  ;;  %v3509_v47 = vshrl.u32 %v9183_v32, %v3503_v5  ;;  %v3512_v62 = vshrl.u32 %v9184_v34, %v3503_v5 }
 0x1c0   :  { %v3445_v59 = vadd.s32 536870912, %v3444_v16  ;;  %v3515_v13 = vshrl.u32 %v9185_v36, %v3503_v5  ;;  %v3518_v39 = vshrl.u32 %v9186_v43, %v3503_v5  ;;  %v3504_v49 = vshrl.u32 %v9181_v28, %v3503_v5 }
 0x1c1   :  { %v2939_v27 = vsel %vm2856_vm14, %v2938_v2, %v2937_v42  ;;  %v3507_v57 = vor.u32 %v3506_v44, %v3505_v0  ;;  %v3510_v53 = vor.u32 %v3509_v47, %v3508_v25  ;;  %v3513_v6 = vor.u32 %v3512_v62, %v3511_v1 }
 0x1c2   :  { %v2942_v10 = vsel %vm11048_vm11, %v10797_v61, %v2939_v27  ;;  %v3446_v55 = vshrl.u32 %v3445_v59, 30  ;;  %v3516_v23 = vor.u32 %v3515_v13, %v3514_v54  ;;  %vm3367_vm14 = vcmp.eq.s32.totalorder %v11119_v48, 0 }
 0x1c3   :  { %9062 = vcosq.f32 %v2942_v10  ;;  %vm3520_vm4 = vcmp.lt.s32.totalorder %v3501_v38, 1  ;;  %vm3522_vm5 = vcmp.lt.s32.totalorder %v3501_v38, 3  ;;  %vm3523_vm6 = vcmp.lt.s32.totalorder %v3501_v38, 4 }
 0x1c4   :  { %9064 = vsinq.f32 %v2942_v10  ;;  %vm3366_vm12 = vcmp.lt.s32.totalorder %v11119_v48, 2  ;;  %v3447_v29 = vshll.u32 %v3446_v55, 30  ;;  %v3519_v4 = vor.u32 %v3518_v39, %v3517_v15 }
 0x1c5   :  { %vm3521_vm13 = vcmp.lt.s32.totalorder %v3501_v38, 2  ;;  %v3536_v50 = vshll.u32 %v3496_v33, 8  ;;  %vm2946_vm2 = vweird.f32 %v10797_v61  ;;  %vm11155_vm11 = vcmp.le.f32.partialorder %v3384_v40, 0.7853982 }
 0x1c6   :  { %v3525_v60 = vsel %vm3523_vm6, %v3513_v6, 2102212464  ;;  %v3528_v26 = vsel %vm3520_vm4, %v3507_v57, %v3510_v53  ;;  %v3529_v56 = vsel %vm3523_vm6, %v3516_v23, 920167782  ;;  %v3595_v63 = vand.u32 2139095040, %v11130_v51 }
 0x1c7   :  { %v11163_v22 = vsub.s32 %v3444_v16, %v3447_v29  ;;  %v3470_v7 = vsub.s32 4, %v3446_v55  ;;  %v3530_v19 = vsel %vm3522_vm5, %v3513_v6, %v3529_v56  ;;  %v3532_v52 = vsel %vm3520_vm4, %v3510_v53, %v3513_v6 }
 0x1c8   :  { %v3524_v40 = vsel %vm3520_vm4, %v3504_v49, %v3507_v57  ;;  %v3526_v31 = vsel %vm3522_vm5, %v3510_v53, %v3525_v60  ;;  %v3531_v35 = vsel %vm3521_vm13, %v3528_v26, %v3530_v19  ;;  %v3533_v17 = vsel %vm3523_vm6, %v3519_v4, 1326507024 }
 0x1c9   :  { %vm2949_vm15 = vcmp.lt.s32.totalorder %v11122_v9, 2  ;;  %vm3370_vm7 = vcmp.eq.s32.totalorder %v11119_v48, 2  ;;  %v3450_v42 = vsub.s32 0, %v11163_v22  ;;  %v3534_v45 = vsel %vm3522_vm5, %v3516_v23, %v3533_v17 }
 0x1ca   :  { %vm2953_vm8 = vcmp.eq.s32.totalorder %v11122_v9, 2  ;;  %v3535_v41 = vsel %vm3521_vm13, %v3532_v52, %v3534_v45  ;;  %v11177_v24 = vmul.u32.u64.low %v3536_v50, %v3531_v35  ;;  %v11178_v58 = vmul.u32.u64.high %v3536_v50, %v3531_v35, %v11177_v24 }
 0x1cb   :  { %v8597_v33 = vmin.u32 %v3450_v42, %v11163_v22  ;;  %v3527_v20 = vsel %vm3521_vm13, %v3524_v40, %v3526_v31  ;;  %v11182_v5 = vmul.u32.u64.low %v3536_v50, %v3535_v41  ;;  %v11183_v0 = vmul.u32.u64.high %v3536_v50, %v3535_v41, %v11182_v5 }
 0x1cc   :  { %vm2950_vm3 = vcmp.eq.s32.totalorder %v11122_v9, 0  ;;  %v3471_v16 = vsel %vm3386_vm1, %v3470_v7, %v3446_v55  ;;  %v3596_v1 = vshrl.u32 %v3595_v63, 23  ;;  %v3440_v10 = vadd.s32 %v11110_v3, %v11105_v46 }
 0x1cd   :  { %v9063_v2 = vpop.eup %9062  ;;  %v3452_v44 = vclz %v8597_v33  ;;  %v3592_v47 = vand.u32 2147483647, %v11130_v51  ;;  %v3543_v62 = vmul.u32 %v3536_v50, %v3527_v20  ;;  %v3546_v13 = vadd.s32 1, %v11178_v58 }
 0x1ce   :  { %v9065_v25 = vpop.eup %9064  ;;  %v2954_v27 = vxor.u32 2147483648, %v9063_v2  ;;  %v11200_v46 = vsel %vm11155_vm11, 0, %v3471_v16  ;;  %vm3545_vm10 = vc.u32 %v11183_v0, %v11177_v24  ;;  %v8604_v6 = vadd.s32 4294967169, %v3596_v1 }
 0x1cf   :  { %v2951_v54 = vxor.u32 2147483648, %v9065_v25  ;;  %v8598_v15 = vadd.s32 4294967294, %v3452_v44  ;;  %v3547_v49 = vsel %vm3545_vm10, %v3546_v13, %v11178_v58  ;;  %v3599_v29 = vand.u32 8388607, %v3592_v47 }
 0x1d0   :  { %v2955_v38 = vsel %vm2953_vm8, %v2954_v27, %v9065_v25  ;;  %v3372_v59 = vsel %vm3370_vm7, %v2954_v27, %v9065_v25  ;;  %v3548_v9 = vadd.s32 %v3547_v49, %v3543_v62  ;;  %v3602_v4 = vadd.s32 1, %v8604_v6 }
 0x1d1   :  { %v2952_v57 = vsel %vm2950_vm3, %v9063_v2, %v2951_v54  ;;  %v3369_v53 = vsel %vm3367_vm14, %v9063_v2, %v2951_v54  ;;  %vm8599_vm9 = vcmp.lt.s32.totalorder %v8598_v15, 0  ;;  %v3477_v26 = vadd.s32 3, %v11200_v46 }
 0x1d2   :  { %v2956_v3 = vsel %vm2949_vm15, %v2952_v57, %v2955_v38  ;;  %v3373_v55 = vsel %vm3366_vm12, %v3369_v53, %v3372_v59  ;;  %v3455_v48 = vsel %vm8599_vm9, 0, %v8598_v15  ;;  %v3549_v56 = vadd.s32 536870912, %v3548_v9 }
 0x1d3   :  { %v2957_v23 = vsel %vm2946_vm2, nan, %v2956_v3  ;;  %v3374_v39 = vsel %vm2946_vm2, nan, %v3373_v55  ;;  %v3456_v50 = vsub.s32 32, %v3455_v48  ;;  %v3457_v61 = vshll.u32 %v11163_v22, %v3455_v48 }
 0x1d4   :  { %8575 = vst [vmem:[%s13757_s1 + $0xf8] sm:$0xff] %v2957_v23  ;;  %8595 = vst [vmem:[%s13757_s1 + $0x118] sm:$0xff] %v3374_v39  ;;  %v3460_v60 = vsub.s32 4294967266, %v3455_v48  ;;  %vm3603_vm0 = vcmp.gt.s32.totalorder %v3602_v4, 0  ;;  %v11223_v52 = vmul.f32 228.11111, %v10794_v21  ;;  %v11235_v41 = vadd.s32 %v11177_v24, %v11183_v0 }
 0x1d5   :  { %v3458_v63 = vshrl.u32 %v3440_v10, %v3456_v50  ;;  %v3604_v19 = vsel %vm3603_vm0, %v3602_v4, 0  ;;  %vm3490_vm14 = vcmp.lt.s32.totalorder %v10862_v12, 0  ;;  %v3550_v40 = vshrl.u32 %v3549_v56, 30 }
 0x1d6   :  { %v3461_v7 = vadd.s32 127, %v3460_v60  ;;  %v3600_v31 = vor.u32 8388608, %v3599_v29  ;;  %v3606_v35 = vand.u32 31, %v3604_v19  ;;  %v11226_v45 = vand.u32 3, %v3477_v26 }
 0x1d7   :  { %v3459_v17 = vor.u32 %v3458_v63, %v3457_v61  ;;  %vm11230_vm4 = vcmp.le.f32.partialorder %v3488_v37, 0.7853982  ;;  %v3551_v21 = vshll.u32 %v3550_v40, 30  ;;  %v3696_v2 = vand.u32 2147483647, %v11223_v52 }
 0x1d8   :  { %v3462_v42 = vshll.u32 %v3461_v7, 23  ;;  %v3607_v58 = vsub.s32 32, %v3606_v35  ;;  %v3574_v5 = vsub.s32 4, %v3550_v40  ;;  %v3699_v25 = vand.u32 2139095040, %v11223_v52 }
 0x1d9   :  { %v3466_v20 = vcvt.s32.f32 %v3459_v17  ;;  %v3552_v27 = vsub.s32 %v3548_v9, %v3551_v21  ;;  %v3605_v16 = vshrl.u32 %v3604_v19, 5  ;;  %v3609_v1 = vshll.u32 %v9181_v28, %v3606_v35 }
 0x1da   :  { %v3463_v33 = vor.u32 4788187, %v3462_v42  ;;  %v11240_v37 = vshll.u32 %v3600_v31, 8  ;;  %v3610_v10 = vshrl.u32 %v9182_v30, %v3607_v58  ;;  %v3612_v24 = vshll.u32 %v9182_v30, %v3606_v35 }
 0x1db   :  { %v3613_v0 = vshrl.u32 %v9183_v32, %v3607_v58  ;;  %v3554_v44 = vsub.s32 0, %v3552_v27  ;;  %v3615_v38 = vshll.u32 %v9183_v32, %v3606_v35  ;;  %v3616_v59 = vshrl.u32 %v9184_v34, %v3607_v58 }
 0x1dc   :  { %v3464_v54 = vand.u32 2147483647, %v3463_v33  ;;  %v3618_v62 = vshll.u32 %v9184_v34, %v3606_v35  ;;  %v3575_v57 = vsel %vm3490_vm14, %v3574_v5, %v3550_v40  ;;  %v3619_v53 = vshrl.u32 %v9185_v36, %v3607_v58 }
 0x1dd   :  { %v3700_v15 = vshrl.u32 %v3699_v25, 23  ;;  %v8601_v3 = vmin.u32 %v3554_v44, %v3552_v27  ;;  %v3608_v55 = vshrl.u32 %v9181_v28, %v3607_v58  ;;  %v3621_v6 = vshll.u32 %v9185_v36, %v3606_v35 }
 0x1de   :  { %v3467_v13 = vmul.f32 %v3466_v20, %v3464_v54  ;;  %v3622_v23 = vshrl.u32 %v9186_v43, %v3607_v58  ;;  %v3611_v49 = vor.u32 %v3610_v10, %v3609_v1  ;;  %v3614_v48 = vor.u32 %v3613_v0, %v3612_v24 }
 0x1df   :  { %v3620_v9 = vor.u32 %v3619_v53, %v3618_v62  ;;  %v3556_v29 = vclz %v8601_v3  ;;  %v11256_v4 = vsel %vm11230_vm4, 0, %v3575_v57  ;;  %v3617_v50 = vor.u32 %v3616_v59, %v3615_v38 }
 0x1e0   :  { %v3468_v39 = vxor.u32 2147483648, %v3467_v13  ;;  %vm3624_vm5 = vcmp.lt.s32.totalorder %v3605_v16, 1  ;;  %v3623_v60 = vor.u32 %v3622_v23, %v3621_v6  ;;  %vm3626_vm6 = vcmp.lt.s32.totalorder %v3605_v16, 3 }
 0x1e1   :  { %vm3627_vm12 = vcmp.lt.s32.totalorder %v3605_v16, 4  ;;  %v8602_v56 = vadd.s32 4294967294, %v3556_v29  ;;  %vm3625_vm13 = vcmp.lt.s32.totalorder %v3605_v16, 2  ;;  %v3628_v7 = vsel %vm3624_vm5, %v3608_v55, %v3611_v49 }
 0x1e2   :  { %v3469_v61 = vsel %vm3386_vm1, %v3468_v39, %v3467_v13  ;;  %v3629_v63 = vsel %vm3627_vm12, %v3617_v50, 2102212464  ;;  %v3632_v19 = vsel %vm3624_vm5, %v3611_v49, %v3614_v48  ;;  %v3633_v40 = vsel %vm3627_vm12, %v3620_v9, 920167782 }
 0x1e3   :  { %v3472_v26 = vsel %vm11155_vm11, %v10855_v18, %v3469_v61  ;;  %vm8603_vm1 = vcmp.lt.s32.totalorder %v8602_v56, 0  ;;  %v3630_v31 = vsel %vm3626_vm6, %v3614_v48, %v3629_v63  ;;  %v3634_v35 = vsel %vm3626_vm6, %v3617_v50, %v3633_v40 }
 0x1e4   :  { %9066 = vcosq.f32 %v3472_v26  ;;  %v3559_v17 = vsel %vm8603_vm1, 0, %v8602_v56  ;;  %v3635_v8 = vsel %vm3625_vm13, %v3632_v19, %v3634_v35  ;;  %v3636_v42 = vsel %vm3624_vm5, %v3614_v48, %v3617_v50 }
 0x1e5   :  { %9068 = vsinq.f32 %v3472_v26  ;;  %v3637_v21 = vsel %vm3627_vm12, %v3623_v60, 1326507024  ;;  %v3560_v58 = vsub.s32 32, %v3559_v17  ;;  %v3561_v33 = vshll.u32 %v3552_v27, %v3559_v17 }
 0x1e6   :  { %v3564_v20 = vsub.s32 4294967266, %v3559_v17  ;;  %v3638_v5 = vsel %vm3626_vm6, %v3620_v9, %v3637_v21  ;;  %v3631_v25 = vsel %vm3625_vm13, %v3628_v7, %v3630_v31  ;;  %vm3476_vm2 = vweird.f32 %v10855_v18 }
 0x1e7   :  { %v3639_v1 = vsel %vm3625_vm13, %v3636_v42, %v3638_v5  ;;  %v11276_v54 = vmul.u32.u64.low %v11240_v37, %v3635_v8  ;;  %v11277_v10 = vmul.u32.u64.high %v11240_v37, %v3635_v8, %v11276_v54  ;;  %v3562_v24 = vshrl.u32 %v11235_v41, %v3560_v58 }
 0x1e8   :  { %v3565_v0 = vadd.s32 127, %v3564_v20  ;;  %v11282_v44 = vmul.u32.u64.low %v11240_v37, %v3639_v1  ;;  %v11283_v38 = vmul.u32.u64.high %v11240_v37, %v3639_v1, %v11282_v44  ;;  %v8608_v27 = vadd.s32 4294967169, %v3700_v15 }
 0x1e9   :  { %v3563_v59 = vor.u32 %v3562_v24, %v3561_v33  ;;  %v3647_v16 = vmul.u32 %v11240_v37, %v3631_v25  ;;  %v11288_v13 = vmul.f32 284.8889, %v10852_v11  ;;  %v3581_v57 = vadd.s32 3, %v11256_v4 }
 0x1ea   :  { %v3566_v62 = vshll.u32 %v3565_v0, 23  ;;  %v3650_v53 = vadd.s32 1, %v11277_v10  ;;  %v3703_v41 = vand.u32 8388607, %v3696_v2  ;;  %v3706_v3 = vadd.s32 1, %v8608_v27 }
 0x1eb   :  { %vm3479_vm11 = vcmp.lt.s32.totalorder %v11226_v45, 2  ;;  %v3570_v6 = vcvt.s32.f32 %v3563_v59  ;;  %vm3649_vm15 = vc.u32 %v11283_v38, %v11276_v54  ;;  %vm3480_vm7 = vcmp.eq.s32.totalorder %v11226_v45, 0 }
 0x1ec   :  { %v3567_v55 = vor.u32 4788187, %v3566_v62  ;;  %vm3483_vm8 = vcmp.eq.s32.totalorder %v11226_v45, 2  ;;  %v3651_v11 = vsel %vm3649_vm15, %v3650_v53, %v11277_v10  ;;  %vm3707_vm3 = vcmp.gt.s32.totalorder %v3706_v3, 0 }
 0x1ed   :  { %v3652_v49 = vadd.s32 %v3651_v11, %v3647_v16  ;;  %v3708_v48 = vsel %vm3707_vm3, %v3706_v3, 0  ;;  %v11306_v29 = vand.u32 3, %v3581_v57  ;;  %v3704_v50 = vor.u32 8388608, %v3703_v41 }
 0x1ee   :  { %v11297_v15 = vpop.eup %9066  ;;  %v3568_v39 = vand.u32 2147483647, %v3567_v55  ;;  %v3710_v61 = vand.u32 31, %v3708_v48  ;;  %v11312_v63 = vand.u32 3, %v11200_v46  ;;  %v11319_v19 = vshrl.u32 %v3708_v48, 5 }
 0x1ef   :  { %v11302_v37 = vpop.eup %9068  ;;  %v3484_v23 = vxor.u32 2147483648, %v11297_v15  ;;  %v3653_v56 = vadd.s32 536870912, %v3652_v49  ;;  %v11322_v31 = vand.u32 3, %v11256_v4  ;;  %v11346_v10 = vshll.u32 %v3704_v50, 8 }
 0x1f0   :  { %v3481_v9 = vxor.u32 2147483648, %v11302_v37  ;;  %v3571_v26 = vmul.f32 %v3570_v6, %v3568_v39  ;;  %v3711_v40 = vsub.s32 32, %v3710_v61  ;;  %v3713_v46 = vshll.u32 %v9181_v28, %v3710_v61 }
 0x1f1   :  { %v3485_v60 = vsel %vm3483_vm8, %v3484_v23, %v11302_v37  ;;  %v11326_v8 = vshrl.u32 %v3653_v56, 30  ;;  %v3716_v58 = vshll.u32 %v9182_v30, %v3710_v61  ;;  %v3719_v20 = vshll.u32 %v9183_v32, %v3710_v61 }
 0x1f2   :  { %v3482_v7 = vsel %vm3480_vm7, %v11297_v15, %v3481_v9  ;;  %v3572_v17 = vxor.u32 2147483648, %v3571_v26  ;;  %v3714_v21 = vshrl.u32 %v9182_v30, %v3711_v40  ;;  %v3717_v33 = vshrl.u32 %v9183_v32, %v3711_v40 }
 0x1f3   :  { %v3486_v35 = vsel %vm3479_vm11, %v3482_v7, %v3485_v60  ;;  %v3655_v4 = vshll.u32 %v11326_v8, 30  ;;  %v3720_v5 = vshrl.u32 %v9184_v34, %v3711_v40  ;;  %v3722_v1 = vshll.u32 %v9184_v34, %v3710_v61 }
 0x1f4   :  { %v3487_v42 = vsel %vm3476_vm2, nan, %v3486_v35  ;;  %v3573_v45 = vsel %vm3490_vm14, %v3572_v17, %v3571_v26  ;;  %vm3899_vm10 = vcmp.lt.s32.totalorder %v11312_v63, 2  ;;  %v3712_v0 = vshrl.u32 %v9181_v28, %v3711_v40 }
 0x1f5   :  { %8612 = vst [vmem:[%s13757_s1 + $0x120] sm:$0xff] %v3487_v42  ;;  %v3576_v25 = vsel %vm11230_vm4, %v10862_v12, %v3573_v45  ;;  %v11349_v24 = vsub.s32 %v3652_v49, %v3655_v4  ;;  %v3715_v44 = vor.u32 %v3714_v21, %v3713_v46  ;;  %v3718_v27 = vor.u32 %v3717_v33, %v3716_v58 }
 0x1f6   :  { %9070 = vcosq.f32 %v3576_v25  ;;  %v3723_v59 = vshrl.u32 %v9185_v36, %v3711_v40  ;;  %v3725_v62 = vshll.u32 %v9185_v36, %v3710_v61  ;;  %vm3587_vm9 = vcmp.eq.s32.totalorder %v11306_v29, 2 }
 0x1f7   :  { %9072 = vsinq.f32 %v3576_v25  ;;  %v3658_v22 = vsub.s32 0, %v11349_v24  ;;  %v3721_v16 = vor.u32 %v3720_v5, %v3719_v20  ;;  %v3726_v57 = vshrl.u32 %v9186_v43, %v3711_v40 }
 0x1f8   :  { %vm3728_vm0 = vcmp.lt.s32.totalorder %v11319_v19, 1  ;;  %vm3584_vm14 = vcmp.eq.s32.totalorder %v11306_v29, 0  ;;  %v3648_v53 = vadd.s32 %v11276_v54, %v11283_v38  ;;  %v3724_v41 = vor.u32 %v3723_v59, %v3722_v1 }
 0x1f9   :  { %vm3731_vm4 = vcmp.lt.s32.totalorder %v11319_v19, 4  ;;  %vm3903_vm5 = vcmp.eq.s32.totalorder %v11312_v63, 2  ;;  %vm3583_vm6 = vcmp.lt.s32.totalorder %v11306_v29, 2  ;;  %v8605_v3 = vmin.u32 %v3658_v22, %v11349_v24 }
 0x1fa   :  { %v3727_v55 = vor.u32 %v3726_v57, %v3725_v62  ;;  %vm3730_vm12 = vcmp.lt.s32.totalorder %v11319_v19, 3  ;;  %vm3900_vm13 = vcmp.eq.s32.totalorder %v11312_v63, 0  ;;  %vm3580_vm1 = vweird.f32 %v10862_v12 }
 0x1fb   :  { %vm3594_vm11 = vcmp.lt.s32.totalorder %v11130_v51, 0  ;;  %vm3729_vm15 = vcmp.lt.s32.totalorder %v11319_v19, 2  ;;  %v3733_v54 = vsel %vm3731_vm4, %v3721_v16, 2102212464  ;;  %v3736_v38 = vsel %vm3728_vm0, %v3715_v44, %v3718_v27 }
 0x1fc   :  { %v3737_v6 = vsel %vm3731_vm4, %v3724_v41, 920167782  ;;  %v3660_v11 = vclz %v8605_v3  ;;  %v3732_v39 = vsel %vm3728_vm0, %v3712_v0, %v3715_v44  ;;  %v3740_v49 = vsel %vm3728_vm0, %v3718_v27, %v3721_v16 }
 0x1fd   :  { %v3905_v48 = vsel %vm3903_vm5, %v3484_v23, %v11302_v37  ;;  %vm4002_vm7 = vcmp.lt.s32.totalorder %v11322_v31, 2  ;;  %v3734_v50 = vsel %vm3730_vm12, %v3718_v27, %v3733_v54  ;;  %v3738_v61 = vsel %vm3730_vm12, %v3721_v16, %v3737_v6 }
 0x1fe   :  { %v3741_v60 = vsel %vm3731_vm4, %v3727_v55, 1326507024  ;;  %v3902_v26 = vsel %vm3900_vm13, %v11297_v15, %v3481_v9  ;;  %v8606_v56 = vadd.s32 4294967294, %v3660_v11  ;;  %v3678_v7 = vsub.s32 4, %v11326_v8 }
 0x1ff   :  { %v3739_v23 = vsel %vm3729_vm15, %v3736_v38, %v3738_v61  ;;  %v3742_v40 = vsel %vm3730_vm12, %v3724_v41, %v3741_v60  ;;  %v3735_v35 = vsel %vm3729_vm15, %v3732_v39, %v3734_v50  ;;  %v3906_v21 = vsel %vm3899_vm10, %v3902_v26, %v3905_v48  ;;  %v11447_v41 = vld [vmem:[%s13757_s1 + $0x8] sm:$0xff] }
 0x200   :  { %v3743_v17 = vsel %vm3729_vm15, %v3740_v49, %v3742_v40  ;;  %v11403_v46 = vmul.u32.u64.low %v11346_v10, %v3739_v23  ;;  %v11404_v37 = vmul.u32.u64.high %v11346_v10, %v3739_v23, %v11403_v46  ;;  %v9071_v15 = vpop.eup %9070  ;;  %vm8607_vm8 = vcmp.lt.s32.totalorder %v8606_v56, 0 }
 0x201   :  { %v11408_v9 = vmul.u32.u64.low %v11346_v10, %v3743_v17  ;;  %v11409_v42 = vmul.u32.u64.high %v11346_v10, %v3743_v17, %v11408_v9  ;;  %v9073_v58 = vpop.eup %9072  ;;  %v3588_v33 = vxor.u32 2147483648, %v9071_v15  ;;  %v3663_v45 = vsel %vm8607_vm8, 0, %v8606_v56 }
 0x202   :  { %v3907_v19 = vsel %vm3476_vm2, nan, %v3906_v21  ;;  %vm4003_vm3 = vcmp.eq.s32.totalorder %v11322_v31, 0  ;;  %v3585_v4 = vxor.u32 2147483648, %v9073_v58  ;;  %v3664_v20 = vsub.s32 32, %v3663_v45 }
 0x203   :  { %v3665_v5 = vshll.u32 %v11349_v24, %v3663_v45  ;;  %v3668_v25 = vsub.s32 4294967266, %v3663_v45  ;;  %8632 = vst [vmem:[%s13757_s1 + $0x140] sm:$0xff] %v3907_v19  ;;  %v3589_v63 = vsel %vm3587_vm9, %v3588_v33, %v9073_v58  ;;  %v3751_v1 = vmul.u32 %v11346_v10, %v3735_v35 }
 0x204   :  { %v3754_v0 = vadd.s32 1, %v11404_v37  ;;  %vm4006_vm2 = vcmp.eq.s32.totalorder %v11322_v31, 2  ;;  %v3586_v18 = vsel %vm3584_vm14, %v9071_v15, %v3585_v4  ;;  %v3666_v44 = vshrl.u32 %v3648_v53, %v3664_v20 }
 0x205   :  { %v3669_v27 = vadd.s32 127, %v3668_v25  ;;  %v3679_v24 = vsel %vm3594_vm11, %v3678_v7, %v11326_v8  ;;  %v3590_v59 = vsel %vm3583_vm6, %v3586_v18, %v3589_v63  ;;  %vm3753_vm10 = vc.u32 %v11409_v42, %v11403_v46 }
 0x206   :  { %v4005_v10 = vsel %vm4003_vm3, %v9071_v15, %v3585_v4  ;;  %v4008_v62 = vsel %vm4006_vm2, %v3588_v33, %v9073_v58  ;;  %v3591_v22 = vsel %vm3580_vm1, nan, %v3590_v59  ;;  %v3667_v16 = vor.u32 %v3666_v44, %v3665_v5 }
 0x207   :  { %v3670_v57 = vshll.u32 %v3669_v27, 23  ;;  %v3755_v53 = vsel %vm3753_vm10, %v3754_v0, %v11404_v37  ;;  %8613 = vst [vmem:[%s13757_s1 + $0x128] sm:$0xff] %v3591_v22  ;;  %v4009_v8 = vsel %vm4002_vm7, %v4005_v10, %v4008_v62  ;;  %v11450_v3 = vmul.f32 284.8889, %v11447_v41 }
 0x208   :  { %v3756_v29 = vadd.s32 %v3755_v53, %v3751_v1  ;;  %vm11454_vm9 = vcmp.le.f32.partialorder %v3592_v47, 0.7853982  ;;  %v3674_v38 = vcvt.s32.f32 %v3667_v16  ;;  %v4010_v31 = vsel %vm3580_vm1, nan, %v4009_v8 }
 0x209   :  { %v3671_v54 = vor.u32 4788187, %v3670_v57  ;;  %v3681_v6 = vsel %vm11454_vm9, 0, %v3679_v24  ;;  %8633 = vst [vmem:[%s13757_s1 + $0x148] sm:$0xff] %v4010_v31  ;;  %v4226_v39 = vand.u32 2147483647, %v11288_v13  ;;  %v3752_v18 = vadd.s32 %v11403_v46, %v11409_v42 }
 0x20a   :  { %v3757_v11 = vadd.s32 536870912, %v3756_v29  ;;  %v4229_v47 = vand.u32 2139095040, %v11288_v13  ;;  %v4330_v61 = vand.u32 2147483647, %v11450_v3  ;;  %v4333_v12 = vand.u32 2139095040, %v11450_v3 }
 0x20b   :  { %v3672_v49 = vand.u32 2147483647, %v3671_v54  ;;  %v3685_v26 = vadd.s32 3, %v3681_v6  ;;  %v4233_v40 = vand.u32 8388607, %v4226_v39  ;;  %vm3698_vm0 = vcmp.lt.s32.totalorder %v11223_v52, 0 }
 0x20c   :  { %v3758_v48 = vshrl.u32 %v3757_v11, 30  ;;  %v4230_v50 = vshrl.u32 %v4229_v47, 23  ;;  %v4334_v17 = vshrl.u32 %v4333_v12, 23  ;;  %v4337_v9 = vand.u32 8388607, %v4330_v61 }
 0x20d   :  { %v3675_v60 = vmul.f32 %v3674_v38, %v3672_v49  ;;  %v11478_v58 = vand.u32 3, %v3685_v26  ;;  %v11480_v33 = vand.u32 3, %v3681_v6  ;;  %v4234_v5 = vor.u32 8388608, %v4233_v40 }
 0x20e   :  { %v3759_v56 = vshll.u32 %v3758_v48, 30  ;;  %v3782_v7 = vsub.s32 4, %v3758_v48  ;;  %v8636_v23 = vadd.s32 4294967169, %v4230_v50  ;;  %v8640_v45 = vadd.s32 4294967169, %v4334_v17 }
 0x20f   :  { %v3676_v35 = vxor.u32 2147483648, %v3675_v60  ;;  %vm11490_vm4 = vcmp.le.f32.partialorder %v3696_v2, 0.7853982  ;;  %v4338_v0 = vor.u32 8388608, %v4337_v9  ;;  %vm3691_vm5 = vcmp.eq.s32.totalorder %v11478_v58, 2 }
 0x210   :  { %v11472_v37 = vsub.s32 %v3756_v29, %v3759_v56  ;;  %v4236_v15 = vadd.s32 1, %v8636_v23  ;;  %v3783_v20 = vsel %vm3698_vm0, %v3782_v7, %v3758_v48  ;;  %v4340_v25 = vadd.s32 1, %v8640_v45 }
 0x211   :  { %v3677_v21 = vsel %vm3594_vm11, %v3676_v35, %v3675_v60  ;;  %v11500_v44 = vsel %vm11490_vm4, 0, %v3783_v20  ;;  %vm3688_vm12 = vcmp.eq.s32.totalorder %v11478_v58, 0  ;;  %vm4106_vm13 = vcmp.eq.s32.totalorder %v11480_v33, 0 }
 0x212   :  { %v3680_v19 = vsel %vm11454_vm9, %v11130_v51, %v3677_v21  ;;  %v3762_v4 = vsub.s32 0, %v11472_v37  ;;  %vm4237_vm14 = vcmp.gt.s32.totalorder %v4236_v15, 0  ;;  %vm4341_vm6 = vcmp.gt.s32.totalorder %v4340_v25, 0 }
 0x213   :  { %9074 = vcosq.f32 %v3680_v19  ;;  %v4238_v27 = vsel %vm4237_vm14, %v4236_v15, 0  ;;  %vm4109_vm1 = vcmp.eq.s32.totalorder %v11480_v33, 2  ;;  %v11505_v24 = vshll.u32 %v4234_v5, 8 }
 0x214   :  { %9076 = vsinq.f32 %v3680_v19  ;;  %v8609_v1 = vmin.u32 %v3762_v4, %v11472_v37  ;;  %vm3687_vm11 = vcmp.lt.s32.totalorder %v11478_v58, 2  ;;  %vm4105_vm15 = vcmp.lt.s32.totalorder %v11480_v33, 2 }
 0x215   :  { %v11509_v46 = vshrl.u32 %v4238_v27, 5  ;;  %v4240_v42 = vand.u32 31, %v4238_v27  ;;  %v11511_v59 = vsel %vm4341_vm6, %v4340_v25, 0  ;;  %v11514_v10 = vmul.f32 284.8889, %v11127_v14 }
 0x216   :  { %v3764_v2 = vclz %v8609_v1  ;;  %vm3684_vm7 = vweird.f32 %v11130_v51  ;;  %v11518_v22 = vadd.s32 3, %v11500_v44  ;;  %v11521_v16 = vand.u32 31, %v11511_v59 }
 0x217   :  { %v11523_v57 = vshll.u32 %v4338_v0, 8  ;;  %v4241_v53 = vsub.s32 32, %v4240_v42  ;;  %v4243_v29 = vshll.u32 %v9181_v28, %v4240_v42  ;;  %v4246_v8 = vshll.u32 %v9182_v30, %v4240_v42 }
 0x218   :  { %v8610_v62 = vadd.s32 4294967294, %v3764_v2  ;;  %v4249_v55 = vshll.u32 %v9183_v32, %v4240_v42  ;;  %v4252_v14 = vshll.u32 %v9184_v34, %v4240_v42  ;;  %v4255_v54 = vshll.u32 %v9185_v36, %v4240_v42 }
 0x219   :  { %vm4258_vm3 = vcmp.lt.s32.totalorder %v11509_v46, 1  ;;  %v4242_v31 = vshrl.u32 %v9181_v28, %v4241_v53  ;;  %v4244_v6 = vshrl.u32 %v9182_v30, %v4241_v53  ;;  %v4247_v11 = vshrl.u32 %v9183_v32, %v4241_v53 }
 0x21a   :  { %vm8611_vm8 = vcmp.lt.s32.totalorder %v8610_v62, 0  ;;  %v4250_v50 = vshrl.u32 %v9184_v34, %v4241_v53  ;;  %v4253_v56 = vshrl.u32 %v9185_v36, %v4241_v53  ;;  %v4256_v7 = vshrl.u32 %v9186_v43, %v4241_v53 }
 0x21b   :  { %v3767_v38 = vsel %vm8611_vm8, 0, %v8610_v62  ;;  %v4245_v60 = vor.u32 %v4244_v6, %v4243_v29  ;;  %v4248_v26 = vor.u32 %v4247_v11, %v4246_v8  ;;  %vm4259_vm2 = vcmp.lt.s32.totalorder %v11509_v46, 2 }
 0x21c   :  { %v3768_v47 = vsub.s32 32, %v3767_v38  ;;  %v3769_v49 = vshll.u32 %v11472_v37, %v3767_v38  ;;  %v3772_v48 = vsub.s32 4294967266, %v3767_v38  ;;  %v4251_v15 = vor.u32 %v4250_v50, %v4249_v55 }
 0x21d   :  { %v9075_v12 = vpop.eup %9074  ;;  %v4254_v21 = vor.u32 %v4253_v56, %v4252_v14  ;;  %v4257_v45 = vor.u32 %v4256_v7, %v4255_v54  ;;  %vm4260_vm10 = vcmp.lt.s32.totalorder %v11509_v46, 3  ;;  %vm4261_vm9 = vcmp.lt.s32.totalorder %v11509_v46, 4 }
 0x21e   :  { %v9077_v23 = vpop.eup %9076  ;;  %v3692_v40 = vxor.u32 2147483648, %v9075_v12  ;;  %v3770_v35 = vshrl.u32 %v3752_v18, %v3768_v47  ;;  %v3773_v17 = vadd.s32 127, %v3772_v48  ;;  %v4262_v62 = vsel %vm4258_vm3, %v4242_v31, %v4245_v60 }
 0x21f   :  { %v3689_v9 = vxor.u32 2147483648, %v9077_v23  ;;  %v4263_v53 = vsel %vm4261_vm9, %v4251_v15, 2102212464  ;;  %v4266_v51 = vsel %vm4258_vm3, %v4245_v60, %v4248_v26  ;;  %v4267_v29 = vsel %vm4261_vm9, %v4254_v21, 920167782 }
 0x220   :  { %v3693_v37 = vsel %vm3691_vm5, %v3692_v40, %v9077_v23  ;;  %v3771_v19 = vor.u32 %v3770_v35, %v3769_v49  ;;  %v3774_v4 = vshll.u32 %v3773_v17, 23  ;;  %v4111_v20 = vsel %vm4109_vm1, %v3692_v40, %v9077_v23 }
 0x221   :  { %v3690_v5 = vsel %vm3688_vm12, %v9075_v12, %v3689_v9  ;;  %v4108_v25 = vsel %vm4106_vm13, %v9075_v12, %v3689_v9  ;;  %v4264_v33 = vsel %vm4260_vm10, %v4248_v26, %v4263_v53  ;;  %v11574_v8 = vand.u32 3, %v11500_v44 }
 0x222   :  { %v3694_v1 = vsel %vm3687_vm11, %v3690_v5, %v3693_v37  ;;  %v3775_v0 = vor.u32 4788187, %v3774_v4  ;;  %v3778_v18 = vcvt.s32.f32 %v3771_v19  ;;  %v4112_v27 = vsel %vm4105_vm15, %v4108_v25, %v4111_v20 }
 0x223   :  { %v3695_v2 = vsel %vm3684_vm7, nan, %v3694_v1  ;;  %v4113_v42 = vsel %vm3684_vm7, nan, %v4112_v27  ;;  %v4268_v55 = vsel %vm4260_vm10, %v4251_v15, %v4267_v29  ;;  %v4270_v14 = vsel %vm4258_vm3, %v4248_v26, %v4251_v15 }
 0x224   :  { %8614 = vst [vmem:[%s13757_s1 + $0x130] sm:$0xff] %v3695_v2  ;;  %v3776_v58 = vand.u32 2147483647, %v3775_v0  ;;  %8634 = vst [vmem:[%s13757_s1 + $0x150] sm:$0xff] %v4113_v42  ;;  %v4271_v54 = vsel %vm4261_vm9, %v4257_v45, 1326507024  ;;  %v4265_v31 = vsel %vm4259_vm2, %v4262_v62, %v4264_v33  ;;  %v4269_v6 = vsel %vm4259_vm2, %v4266_v51, %v4268_v55 }
 0x225   :  { %v4272_v44 = vsel %vm4260_vm10, %v4254_v21, %v4271_v54  ;;  %v11591_v47 = vmul.u32.u64.low %v11505_v24, %v4269_v6  ;;  %v11592_v49 = vmul.u32.u64.high %v11505_v24, %v4269_v6, %v11591_v47  ;;  %v4345_v48 = vsub.s32 32, %v11521_v16 }
 0x226   :  { %v3779_v38 = vmul.f32 %v3778_v18, %v3776_v58  ;;  %v4273_v11 = vsel %vm4259_vm2, %v4270_v14, %v4272_v44  ;;  %v4347_v26 = vshll.u32 %v9181_v28, %v11521_v16  ;;  %v4343_v56 = vshrl.u32 %v11511_v59, 5 }
 0x227   :  { %v11597_v12 = vmul.u32.u64.low %v11505_v24, %v4273_v11  ;;  %v11598_v60 = vmul.u32.u64.high %v11505_v24, %v4273_v11, %v11597_v12  ;;  %v4348_v46 = vshrl.u32 %v9182_v30, %v4345_v48  ;;  %v4350_v7 = vshll.u32 %v9182_v30, %v11521_v16 }
 0x228   :  { %v3780_v50 = vxor.u32 2147483648, %v3779_v38  ;;  %v4351_v23 = vshrl.u32 %v9183_v32, %v4345_v48  ;;  %v4281_v35 = vmul.u32 %v11505_v24, %v4265_v31  ;;  %v4353_v17 = vshll.u32 %v9183_v32, %v11521_v16 }
 0x229   :  { %v4354_v15 = vshrl.u32 %v9184_v34, %v4345_v48  ;;  %v4284_v9 = vadd.s32 1, %v11592_v49  ;;  %v4349_v21 = vor.u32 %v4348_v46, %v4347_v26  ;;  %v4356_v45 = vshll.u32 %v9184_v34, %v11521_v16 }
 0x22a   :  { %v3781_v40 = vsel %vm3698_vm0, %v3780_v50, %v3779_v38  ;;  %vm4283_vm0 = vc.u32 %v11598_v60, %v11591_v47  ;;  %v4352_v24 = vor.u32 %v4351_v23, %v4350_v7  ;;  %v4357_v4 = vshrl.u32 %v9185_v36, %v4345_v48 }
 0x22b   :  { %v3784_v59 = vsel %vm11490_vm4, %v11223_v52, %v3781_v40  ;;  %v4355_v37 = vor.u32 %v4354_v15, %v4353_v17  ;;  %v4285_v19 = vsel %vm4283_vm0, %v4284_v9, %v11592_v49  ;;  %v4359_v63 = vshll.u32 %v9185_v36, %v11521_v16 }
 0x22c   :  { %9078 = vcosq.f32 %v3784_v59  ;;  %v4286_v20 = vadd.s32 %v4285_v19, %v4281_v35  ;;  %v4346_v5 = vshrl.u32 %v9181_v28, %v4345_v48  ;;  %v4360_v25 = vshrl.u32 %v9186_v43, %v4345_v48 }
 0x22d   :  { %9080 = vsinq.f32 %v3784_v59  ;;  %vm4362_vm14 = vcmp.lt.s32.totalorder %v4343_v56, 1  ;;  %v4358_v1 = vor.u32 %v4357_v4, %v4356_v45  ;;  %vm4363_vm4 = vcmp.lt.s32.totalorder %v4343_v56, 2 }
 0x22e   :  { %vm4364_vm5 = vcmp.lt.s32.totalorder %v4343_v56, 3  ;;  %vm4365_vm6 = vcmp.lt.s32.totalorder %v4343_v56, 4  ;;  %v4287_v0 = vadd.s32 536870912, %v4286_v20  ;;  %v4361_v18 = vor.u32 %v4360_v25, %v4359_v63 }
 0x22f   :  { %v4367_v27 = vsel %vm4365_vm6, %v4355_v37, 2102212464  ;;  %v4370_v2 = vsel %vm4362_vm14, %v4349_v21, %v4352_v24  ;;  %vm3788_vm12 = vweird.f32 %v11223_v52  ;;  %v3790_v42 = vand.u32 3, %v11518_v22 }
 0x230   :  { %v4371_v62 = vsel %vm4365_vm6, %v4358_v1, 920167782  ;;  %v4374_v16 = vsel %vm4362_vm14, %v4352_v24, %v4355_v37  ;;  %v4437_v53 = vand.u32 2139095040, %v11514_v10  ;;  %v4288_v58 = vshrl.u32 %v4287_v0, 30 }
 0x231   :  { %v4366_v33 = vsel %vm4362_vm14, %v4346_v5, %v4349_v21  ;;  %v4372_v51 = vsel %vm4364_vm5, %v4355_v37, %v4371_v62  ;;  %v4375_v29 = vsel %vm4365_vm6, %v4361_v18, 1326507024  ;;  %v4368_v55 = vsel %vm4364_vm5, %v4352_v24, %v4367_v27 }
 0x232   :  { %v4373_v14 = vsel %vm4363_vm4, %v4370_v2, %v4372_v51  ;;  %v4376_v54 = vsel %vm4364_vm5, %v4358_v1, %v4375_v29  ;;  %v4438_v38 = vshrl.u32 %v4437_v53, 23  ;;  %vm4212_vm13 = vcmp.eq.s32.totalorder %v11574_v8, 2 }
 0x233   :  { %v4289_v31 = vshll.u32 %v4288_v58, 30  ;;  %v4377_v22 = vsel %vm4363_vm4, %v4374_v16, %v4376_v54  ;;  %v4434_v6 = vand.u32 2147483647, %v11514_v10  ;;  %vm3795_vm1 = vcmp.eq.s32.totalorder %v3790_v42, 2 }
 0x234   :  { %v11638_v44 = vmul.u32.u64.low %v11523_v57, %v4377_v22  ;;  %v11639_v11 = vmul.u32.u64.high %v11523_v57, %v4377_v22, %v11638_v44  ;;  %v11642_v49 = vmul.u32.u64.low %v11523_v57, %v4373_v14  ;;  %v11643_v48 = vmul.u32.u64.high %v11523_v57, %v4373_v14, %v11642_v49 }
 0x235   :  { %v11646_v12 = vsub.s32 %v4286_v20, %v4289_v31  ;;  %v4369_v26 = vsel %vm4363_vm4, %v4366_v33, %v4368_v55  ;;  %v8644_v46 = vadd.s32 4294967169, %v4438_v38  ;;  %vm3792_vm11 = vcmp.eq.s32.totalorder %v3790_v42, 0 }
 0x236   :  { %v9079_v50 = vpop.eup %9078  ;;  %vm4208_vm15 = vcmp.lt.s32.totalorder %v11574_v8, 2  ;;  %vm4209_vm7 = vcmp.eq.s32.totalorder %v11574_v8, 0  ;;  %vm3791_vm8 = vcmp.lt.s32.totalorder %v3790_v42, 2  ;;  %v4312_v9 = vsub.s32 4, %v4288_v58  ;;  %v11688_v42 = vld [vmem:[%s13757_s1 + $0x18] sm:$0xff] }
 0x237   :  { %v9081_v7 = vpop.eup %9080  ;;  %v3796_v23 = vxor.u32 2147483648, %v9079_v50  ;;  %v4292_v35 = vsub.s32 0, %v11646_v12  ;;  %v4444_v17 = vadd.s32 1, %v8644_v46  ;;  %v4385_v56 = vmul.u32 %v11523_v57, %v4369_v26 }
 0x238   :  { %v3793_v40 = vxor.u32 2147483648, %v9081_v7  ;;  %vm4387_vm3 = vc.u32 %v11639_v11, %v11642_v49  ;;  %v4388_v4 = vadd.s32 1, %v11643_v48  ;;  %v4441_v5 = vand.u32 8388607, %v4434_v6 }
 0x239   :  { %v3797_v15 = vsel %vm3795_vm1, %v3796_v23, %v9081_v7  ;;  %v4214_v59 = vsel %vm4212_vm13, %v3796_v23, %v9081_v7  ;;  %v8637_v24 = vmin.u32 %v4292_v35, %v11646_v12  ;;  %vm4445_vm2 = vcmp.gt.s32.totalorder %v4444_v17, 0 }
 0x23a   :  { %v3794_v21 = vsel %vm3792_vm11, %v9079_v50, %v3793_v40  ;;  %v4211_v45 = vsel %vm4209_vm7, %v9079_v50, %v3793_v40  ;;  %vm4228_vm10 = vcmp.lt.s32.totalorder %v11288_v13, 0  ;;  %v4389_v8 = vsel %vm4387_vm3, %v4388_v4, %v11643_v48 }
 0x23b   :  { %v3798_v37 = vsel %vm3791_vm8, %v3794_v21, %v3797_v15  ;;  %v4215_v19 = vsel %vm4208_vm15, %v4211_v45, %v4214_v59  ;;  %v4294_v20 = vclz %v8637_v24  ;;  %v4446_v25 = vsel %vm4445_vm2, %v4444_v17, 0 }
 0x23c   :  { %v3799_v63 = vsel %vm3788_vm12, nan, %v3798_v37  ;;  %v4216_v57 = vsel %vm3788_vm12, nan, %v4215_v19  ;;  %v4313_v52 = vsel %vm4228_vm10, %v4312_v9, %v4288_v58  ;;  %v4390_v0 = vadd.s32 %v4389_v8, %v4385_v56 }
 0x23d   :  { %8615 = vst [vmem:[%s13757_s1 + $0x138] sm:$0xff] %v3799_v63  ;;  %8635 = vst [vmem:[%s13757_s1 + $0x158] sm:$0xff] %v4216_v57  ;;  %v8638_v1 = vadd.s32 4294967294, %v4294_v20  ;;  %v4448_v18 = vand.u32 31, %v4446_v25  ;;  %vm11679_vm9 = vcmp.le.f32.partialorder %v4226_v39, 0.7853982  ;;  %v4282_v2 = vadd.s32 %v11591_v47, %v11598_v60 }
 0x23e   :  { %v11691_v62 = vmul.f32 284.8889, %v11688_v42  ;;  %v4391_v16 = vadd.s32 536870912, %v4390_v0  ;;  %v4442_v53 = vor.u32 8388608, %v4441_v5  ;;  %v11695_v39 = vsel %vm11679_vm9, 0, %v4313_v52 }
 0x23f   :  { %vm8639_vm0 = vcmp.lt.s32.totalorder %v8638_v1, 0  ;;  %v4449_v58 = vsub.s32 32, %v4448_v18  ;;  %v4451_v51 = vshll.u32 %v9181_v28, %v4448_v18  ;;  %v4454_v38 = vshll.u32 %v9182_v30, %v4448_v18 }
 0x240   :  { %v4297_v33 = vsel %vm8639_vm0, 0, %v8638_v1  ;;  %v4538_v47 = vand.u32 2147483647, %v11691_v62  ;;  %v4392_v14 = vshrl.u32 %v4391_v16, 30  ;;  %v4460_v22 = vshll.u32 %v9184_v34, %v4448_v18 }
 0x241   :  { %v4298_v60 = vsub.s32 32, %v4297_v33  ;;  %v4299_v29 = vshll.u32 %v11646_v12, %v4297_v33  ;;  %v4302_v55 = vsub.s32 4294967266, %v4297_v33  ;;  %v4452_v54 = vshrl.u32 %v9182_v30, %v4449_v58 }
 0x242   :  { %v4455_v31 = vshrl.u32 %v9183_v32, %v4449_v58  ;;  %v4393_v50 = vshll.u32 %v4392_v14, 30  ;;  %v4447_v26 = vshrl.u32 %v4446_v25, 5  ;;  %v4457_v46 = vshll.u32 %v9183_v32, %v4448_v18 }
 0x243   :  { %v4300_v44 = vshrl.u32 %v4282_v2, %v4298_v60  ;;  %v4303_v48 = vadd.s32 127, %v4302_v55  ;;  %v4458_v7 = vshrl.u32 %v9184_v34, %v4449_v58  ;;  %v4461_v12 = vshrl.u32 %v9185_v36, %v4449_v58 }
 0x244   :  { %v11707_v23 = vshll.u32 %v4442_v53, 8  ;;  %vm4332_vm14 = vcmp.lt.s32.totalorder %v11450_v3, 0  ;;  %v11710_v17 = vsub.s32 %v4390_v0, %v4393_v50  ;;  %v4453_v15 = vor.u32 %v4452_v54, %v4451_v51 }
 0x245   :  { %v4301_v40 = vor.u32 %v4300_v44, %v4299_v29  ;;  %v4304_v35 = vshll.u32 %v4303_v48, 23  ;;  %v4456_v59 = vor.u32 %v4455_v31, %v4454_v38  ;;  %v4462_v9 = vor.u32 %v4461_v12, %v4460_v22 }
 0x246   :  { %v4463_v56 = vshll.u32 %v9185_v36, %v4448_v18  ;;  %v4464_v21 = vshrl.u32 %v9186_v43, %v4449_v58  ;;  %v4396_v37 = vsub.s32 0, %v11710_v17  ;;  %v4450_v19 = vshrl.u32 %v9181_v28, %v4449_v58 }
 0x247   :  { %v4305_v45 = vor.u32 4788187, %v4304_v35  ;;  %v4308_v24 = vcvt.s32.f32 %v4301_v40  ;;  %v4416_v4 = vsub.s32 4, %v4392_v14  ;;  %v4459_v63 = vor.u32 %v4458_v7, %v4457_v46 }
 0x248   :  { %v4465_v57 = vor.u32 %v4464_v21, %v4463_v56  ;;  %vm4466_vm4 = vcmp.lt.s32.totalorder %v4447_v26, 1  ;;  %vm11718_vm5 = vcmp.le.f32.partialorder %v4330_v61, 0.7853982  ;;  %v8641_v8 = vmin.u32 %v4396_v37, %v11710_v17 }
 0x249   :  { %v4306_v20 = vand.u32 2147483647, %v4305_v45  ;;  %vm4468_vm6 = vcmp.lt.s32.totalorder %v4447_v26, 3  ;;  %vm4469_vm12 = vcmp.lt.s32.totalorder %v4447_v26, 4  ;;  %vm4467_vm13 = vcmp.lt.s32.totalorder %v4447_v26, 2 }
 0x24a   :  { %v4471_v25 = vsel %vm4469_vm12, %v4459_v63, 2102212464  ;;  %v4474_v1 = vsel %vm4466_vm4, %v4453_v15, %v4456_v59  ;;  %v4475_v52 = vsel %vm4469_vm12, %v4462_v9, 920167782  ;;  %v4319_v18 = vadd.s32 3, %v11695_v39 }
 0x24b   :  { %v4309_v0 = vmul.f32 %v4308_v24, %v4306_v20  ;;  %v4398_v2 = vclz %v8641_v8  ;;  %v4541_v61 = vand.u32 2139095040, %v11691_v62  ;;  %v4386_v16 = vadd.s32 %v11642_v49, %v11639_v11 }
 0x24c   :  { %v4470_v53 = vsel %vm4466_vm4, %v4450_v19, %v4453_v15  ;;  %v4472_v58 = vsel %vm4468_vm6, %v4456_v59, %v4471_v25  ;;  %v4476_v33 = vsel %vm4468_vm6, %v4459_v63, %v4475_v52  ;;  %v4478_v55 = vsel %vm4466_vm4, %v4456_v59, %v4459_v63 }
 0x24d   :  { %v4310_v51 = vxor.u32 2147483648, %v4309_v0  ;;  %v8642_v60 = vadd.s32 4294967294, %v4398_v2  ;;  %v4477_v29 = vsel %vm4467_vm13, %v4474_v1, %v4476_v33  ;;  %v4417_v54 = vsel %vm4332_vm14, %v4416_v4, %v4392_v14  ;;  %v11776_v33 = vld [vmem:[%s13757_s1] sm:$0xff] }
 0x24e   :  { %v4479_v38 = vsel %vm4469_vm12, %v4465_v57, 1326507024  ;;  %v11739_v31 = vmul.u32.u64.low %v11707_v23, %v4477_v29  ;;  %v11740_v11 = vmul.u32.u64.high %v11707_v23, %v4477_v29, %v11739_v31  ;;  %v4542_v44 = vshrl.u32 %v4541_v61, 23 }
 0x24f   :  { %v4311_v49 = vsel %vm4228_vm10, %v4310_v51, %v4309_v0  ;;  %vm8643_vm1 = vcmp.lt.s32.totalorder %v8642_v60, 0  ;;  %v4480_v22 = vsel %vm4468_vm6, %v4462_v9, %v4479_v38  ;;  %v4473_v14 = vsel %vm4467_vm13, %v4470_v53, %v4472_v58 }
 0x250   :  { %v4314_v48 = vsel %vm11679_vm9, %v11288_v13, %v4311_v49  ;;  %v4401_v50 = vsel %vm8643_vm1, 0, %v8642_v60  ;;  %v4481_v46 = vsel %vm4467_vm13, %v4478_v55, %v4480_v22  ;;  %v4419_v35 = vsel %vm11718_vm5, 0, %v4417_v54 }
 0x251   :  { %9082 = vcosq.f32 %v4314_v48  ;;  %v4402_v7 = vsub.s32 32, %v4401_v50  ;;  %v4403_v12 = vshll.u32 %v11710_v17, %v4401_v50  ;;  %v4406_v40 = vsub.s32 4294967266, %v4401_v50 }
 0x252   :  { %9084 = vsinq.f32 %v4314_v48  ;;  %v11754_v15 = vmul.u32.u64.low %v11707_v23, %v4481_v46  ;;  %v11755_v59 = vmul.u32.u64.high %v11707_v23, %v4481_v46, %v11754_v15  ;;  %v4492_v56 = vadd.s32 1, %v11740_v11 }
 0x253   :  { %v4404_v27 = vshrl.u32 %v4386_v16, %v4402_v7  ;;  %v4407_v9 = vadd.s32 127, %v4406_v40  ;;  %v8648_v21 = vadd.s32 4294967169, %v4542_v44  ;;  %v4489_v26 = vmul.u32 %v11707_v23, %v4473_v14 }
 0x254   :  { %v4545_v45 = vand.u32 8388607, %v4538_v47  ;;  %v4320_v17 = vand.u32 3, %v4319_v18  ;;  %v4423_v4 = vadd.s32 3, %v4419_v35  ;;  %vm4491_vm11 = vc.u32 %v11755_v59, %v11739_v31 }
 0x255   :  { %v4405_v24 = vor.u32 %v4404_v27, %v4403_v12  ;;  %v4408_v37 = vshll.u32 %v4407_v9, 23  ;;  %v4548_v19 = vadd.s32 1, %v8648_v21  ;;  %v4493_v20 = vsel %vm4491_vm11, %v4492_v56, %v11740_v11 }
 0x256   :  { %vm4318_vm7 = vweird.f32 %v11288_v13  ;;  %v4494_v8 = vadd.s32 %v4493_v20, %v4489_v26  ;;  %v4546_v25 = vor.u32 8388608, %v4545_v45  ;;  %vm4321_vm8 = vcmp.lt.s32.totalorder %v4320_v17, 2 }
 0x257   :  { %v4409_v63 = vor.u32 4788187, %v4408_v37  ;;  %v4412_v57 = vcvt.s32.f32 %v4405_v24  ;;  %vm4549_vm15 = vcmp.gt.s32.totalorder %v4548_v19, 0  ;;  %vm4322_vm3 = vcmp.eq.s32.totalorder %v4320_v17, 0 }
 0x258   :  { %v4550_v23 = vsel %vm4549_vm15, %v4548_v19, 0  ;;  %vm4325_vm2 = vcmp.eq.s32.totalorder %v4320_v17, 2  ;;  %v11764_v0 = vand.u32 3, %v4423_v4  ;;  %v4495_v18 = vadd.s32 536870912, %v4494_v8 }
 0x259   :  { %v4410_v1 = vand.u32 2147483647, %v4409_v63  ;;  %v4552_v52 = vand.u32 31, %v4550_v23  ;;  %v11767_v2 = vand.u32 3, %v11695_v39  ;;  %v11771_v58 = vand.u32 3, %v4419_v35 }
 0x25a   :  { %v11779_v51 = vmul.f32 341.66666, %v11776_v33  ;;  %v11785_v39 = vadd.s32 %v11739_v31, %v11755_v59  ;;  %v11787_v55 = vshrl.u32 %v4495_v18, 30  ;;  %v11789_v54 = vshll.u32 %v4546_v25, 8 }
 0x25b   :  { %v11769_v61 = vpop.eup %9082  ;;  %v4413_v16 = vmul.f32 %v4412_v57, %v4410_v1  ;;  %v4553_v53 = vsub.s32 32, %v4552_v52  ;;  %v4555_v49 = vshll.u32 %v9181_v28, %v4552_v52  ;;  %v4558_v22 = vshll.u32 %v9182_v30, %v4552_v52 }
 0x25c   :  { %v11781_v60 = vpop.eup %9084  ;;  %v4326_v29 = vxor.u32 2147483648, %v11769_v61  ;;  %v4497_v48 = vshll.u32 %v11787_v55, 30  ;;  %v4561_v7 = vshll.u32 %v9183_v32, %v4552_v52  ;;  %v4551_v59 = vshrl.u32 %v4550_v23, 5 }
 0x25d   :  { %v4323_v38 = vxor.u32 2147483648, %v11781_v60  ;;  %v4414_v11 = vxor.u32 2147483648, %v4413_v16  ;;  %v4556_v31 = vshrl.u32 %v9182_v30, %v4553_v53  ;;  %v4559_v50 = vshrl.u32 %v9183_v32, %v4553_v53 }
 0x25e   :  { %v4327_v44 = vsel %vm4325_vm2, %v4326_v29, %v11781_v60  ;;  %v4562_v12 = vshrl.u32 %v9184_v34, %v4553_v53  ;;  %v11813_v15 = vsub.s32 %v4494_v8, %v4497_v48  ;;  %v4554_v9 = vshrl.u32 %v9181_v28, %v4553_v53 }
 0x25f   :  { %v4324_v14 = vsel %vm4322_vm3, %v11769_v61, %v4323_v38  ;;  %v4415_v46 = vsel %vm4332_vm14, %v4414_v11, %v4413_v16  ;;  %v4564_v56 = vshll.u32 %v9184_v34, %v4552_v52  ;;  %v4557_v5 = vor.u32 %v4556_v31, %v4555_v49 }
 0x260   :  { %v4328_v40 = vsel %vm4321_vm8, %v4324_v14, %v4327_v44  ;;  %v4418_v35 = vsel %vm11718_vm5, %v11450_v3, %v4415_v46  ;;  %v4500_v21 = vsub.s32 0, %v11813_v15  ;;  %v4560_v26 = vor.u32 %v4559_v50, %v4558_v22 }
 0x261   :  { %v4329_v27 = vsel %vm4318_vm7, nan, %v4328_v40  ;;  %9086 = vcosq.f32 %v4418_v35  ;;  %vm4429_vm10 = vcmp.eq.s32.totalorder %v11764_v0, 2  ;;  %v4563_v45 = vor.u32 %v4562_v12, %v4561_v7 }
 0x262   :  { %8652 = vst [vmem:[%s13757_s1 + $0x160] sm:$0xff] %v4329_v27  ;;  %9088 = vsinq.f32 %v4418_v35  ;;  %v4565_v17 = vshrl.u32 %v9185_v36, %v4553_v53  ;;  %v4567_v24 = vshll.u32 %v9185_v36, %v4552_v52  ;;  %v4568_v37 = vshrl.u32 %v9186_v43, %v4553_v53 }
 0x263   :  { %vm4426_vm9 = vcmp.eq.s32.totalorder %v11764_v0, 0  ;;  %v8645_v19 = vmin.u32 %v4500_v21, %v11813_v15  ;;  %vm4570_vm0 = vcmp.lt.s32.totalorder %v4551_v59, 1  ;;  %vm4741_vm14 = vcmp.lt.s32.totalorder %v11767_v2, 2 }
 0x264   :  { %vm4742_vm4 = vcmp.eq.s32.totalorder %v11767_v2, 0  ;;  %vm4745_vm5 = vcmp.eq.s32.totalorder %v11767_v2, 2  ;;  %vm4425_vm6 = vcmp.lt.s32.totalorder %v11764_v0, 2  ;;  %v4566_v4 = vor.u32 %v4565_v17, %v4564_v56 }
 0x265   :  { %v4569_v63 = vor.u32 %v4568_v37, %v4567_v24  ;;  %vm4572_vm12 = vcmp.lt.s32.totalorder %v4551_v59, 3  ;;  %vm4573_vm13 = vcmp.lt.s32.totalorder %v4551_v59, 4  ;;  %vm4422_vm1 = vweird.f32 %v11450_v3 }
 0x266   :  { %vm4436_vm11 = vcmp.lt.s32.totalorder %v11514_v10, 0  ;;  %v4502_v57 = vclz %v8645_v19  ;;  %vm4571_vm15 = vcmp.lt.s32.totalorder %v4551_v59, 2  ;;  %v4574_v20 = vsel %vm4570_vm0, %v4554_v9, %v4557_v5 }
 0x267   :  { %vm4845_vm8 = vcmp.eq.s32.totalorder %v11771_v58, 0  ;;  %v4575_v8 = vsel %vm4573_vm13, %v4563_v45, 2102212464  ;;  %v4578_v25 = vsel %vm4570_vm0, %v4557_v5, %v4560_v26  ;;  %v4579_v23 = vsel %vm4573_vm13, %v4566_v4, 920167782 }
 0x268   :  { %v4582_v1 = vsel %vm4570_vm0, %v4560_v26, %v4563_v45  ;;  %v8646_v52 = vadd.s32 4294967294, %v4502_v57  ;;  %v4576_v18 = vsel %vm4572_vm12, %v4560_v26, %v4575_v8  ;;  %v4580_v16 = vsel %vm4572_vm12, %v4563_v45, %v4579_v23 }
 0x269   :  { %v4583_v53 = vsel %vm4573_vm13, %v4569_v63, 1326507024  ;;  %vm4844_vm3 = vcmp.lt.s32.totalorder %v11771_v58, 2  ;;  %v4520_v11 = vsub.s32 4, %v11787_v55  ;;  %v4577_v49 = vsel %vm4571_vm15, %v4574_v20, %v4576_v18 }
 0x26a   :  { %v4581_v22 = vsel %vm4571_vm15, %v4578_v25, %v4580_v16  ;;  %v4584_v44 = vsel %vm4572_vm12, %v4566_v4, %v4583_v53  ;;  %vm8647_vm2 = vcmp.lt.s32.totalorder %v8646_v52, 0  ;;  %v4744_v40 = vsel %vm4742_vm4, %v11769_v61, %v4323_v38 }
 0x26b   :  { %v4585_v48 = vsel %vm4571_vm15, %v4582_v1, %v4584_v44  ;;  %v11848_v31 = vmul.u32.u64.low %v11789_v54, %v4581_v22  ;;  %v11849_v50 = vmul.u32.u64.high %v11789_v54, %v4581_v22, %v11848_v31  ;;  %v9087_v14 = vpop.eup %9086  ;;  %v4505_v46 = vsel %vm8647_vm2, 0, %v8646_v52 }
 0x26c   :  { %v11853_v7 = vmul.u32.u64.low %v11789_v54, %v4585_v48  ;;  %v11854_v12 = vmul.u32.u64.high %v11789_v54, %v4585_v48, %v11853_v7  ;;  %v9089_v35 = vpop.eup %9088  ;;  %v4430_v59 = vxor.u32 2147483648, %v9087_v14  ;;  %v4506_v27 = vsub.s32 32, %v4505_v46 }
 0x26d   :  { %v4507_v9 = vshll.u32 %v11813_v15, %v4505_v46  ;;  %v4510_v56 = vsub.s32 4294967266, %v4505_v46  ;;  %v4427_v21 = vxor.u32 2147483648, %v9089_v35  ;;  %v4593_v5 = vmul.u32 %v11789_v54, %v4577_v49 }
 0x26e   :  { %v4747_v26 = vsel %vm4745_vm5, %v4326_v29, %v11781_v60  ;;  %vm4848_vm0 = vcmp.eq.s32.totalorder %v11771_v58, 2  ;;  %v4431_v38 = vsel %vm4429_vm10, %v4430_v59, %v9089_v35  ;;  %v4508_v45 = vshrl.u32 %v11785_v39, %v4506_v27 }
 0x26f   :  { %v4511_v17 = vadd.s32 127, %v4510_v56  ;;  %v4596_v15 = vadd.s32 1, %v11849_v50  ;;  %v4428_v24 = vsel %vm4426_vm9, %v9087_v14, %v4427_v21  ;;  %v4521_v61 = vsel %vm4436_vm11, %v4520_v11, %v11787_v55 }
 0x270   :  { %vm4595_vm4 = vc.u32 %v11854_v12, %v11848_v31  ;;  %v4748_v60 = vsel %vm4741_vm14, %v4744_v40, %v4747_v26  ;;  %v4432_v29 = vsel %vm4425_vm6, %v4428_v24, %v4431_v38  ;;  %v4509_v39 = vor.u32 %v4508_v45, %v4507_v9 }
 0x271   :  { %v4512_v54 = vshll.u32 %v4511_v17, 23  ;;  %v4597_v37 = vsel %vm4595_vm4, %v4596_v15, %v11849_v50  ;;  %v4433_v19 = vsel %vm4422_vm1, nan, %v4432_v29  ;;  %v4749_v55 = vsel %vm4318_vm7, nan, %v4748_v60  ;;  %v9173_v29 = vld [vmem:[%s13757_s1 + $0x10] sm:$0xff] }
 0x272   :  { %v4598_v4 = vadd.s32 %v4597_v37, %v4593_v5  ;;  %v4847_v63 = vsel %vm4845_vm8, %v9087_v14, %v4427_v21  ;;  %8653 = vst [vmem:[%s13757_s1 + $0x168] sm:$0xff] %v4433_v19  ;;  %vm11896_vm10 = vcmp.le.f32.partialorder %v4434_v6, 0.7853982  ;;  %v4516_v57 = vcvt.s32.f32 %v4509_v39  ;;  %8672 = vst [vmem:[%s13757_s1 + $0x180] sm:$0xff] %v4749_v55 }
 0x273   :  { %v4513_v2 = vor.u32 4788187, %v4512_v54  ;;  %v4850_v13 = vsel %vm4848_vm0, %v4430_v59, %v9089_v35  ;;  %v4523_v20 = vsel %vm11896_vm10, 0, %v4521_v61  ;;  %v5068_v1 = vand.u32 2147483647, %v11779_v51 }
 0x274   :  { %v4599_v8 = vadd.s32 536870912, %v4598_v4  ;;  %v4851_v25 = vsel %vm4844_vm3, %v4847_v63, %v4850_v13  ;;  %v5071_v52 = vand.u32 2139095040, %v11779_v51  ;;  %v11917_v16 = vmul.f32 341.66666, %v11447_v41 }
 0x275   :  { %v4514_v6 = vand.u32 2147483647, %v4513_v2  ;;  %v4852_v23 = vsel %vm4422_vm1, nan, %v4851_v25  ;;  %v4527_v11 = vadd.s32 3, %v4523_v20  ;;  %v5075_v48 = vand.u32 8388607, %v5068_v1 }
 0x276   :  { %v4600_v18 = vshrl.u32 %v4599_v8, 30  ;;  %8673 = vst [vmem:[%s13757_s1 + $0x188] sm:$0xff] %v4852_v23  ;;  %v5072_v58 = vshrl.u32 %v5071_v52, 23  ;;  %v5175_v50 = vand.u32 2139095040, %v11917_v16  ;;  %vm4540_vm7 = vcmp.lt.s32.totalorder %v11691_v62, 0 }
 0x277   :  { %v4517_v53 = vmul.f32 %v4516_v57, %v4514_v6  ;;  %v5172_v46 = vand.u32 2147483647, %v11917_v16  ;;  %v11928_v7 = vand.u32 3, %v4527_v11  ;;  %v11936_v56 = vand.u32 3, %v4523_v20 }
 0x278   :  { %v4601_v49 = vshll.u32 %v4600_v18, 30  ;;  %v4624_v22 = vsub.s32 4, %v4600_v18  ;;  %v8676_v3 = vadd.s32 4294967169, %v5072_v58  ;;  %v5176_v35 = vshrl.u32 %v5175_v50, 23 }
 0x279   :  { %v4518_v44 = vxor.u32 2147483648, %v4517_v53  ;;  %v5076_v21 = vor.u32 8388608, %v5075_v48  ;;  %vm11940_vm14 = vcmp.le.f32.partialorder %v4538_v47, 0.7853982  ;;  %v11947_v45 = vand.u32 8388607, %v5172_v46 }
 0x27a   :  { %v11923_v14 = vsub.s32 %v4598_v4, %v4601_v49  ;;  %v5078_v40 = vadd.s32 1, %v8676_v3  ;;  %v4625_v9 = vsel %vm4540_vm7, %v4624_v22, %v4600_v18  ;;  %v8680_v5 = vadd.s32 4294967169, %v5176_v35 }
 0x27b   :  { %v4519_v41 = vsel %vm4436_vm11, %v4518_v44, %v4517_v53  ;;  %vm4533_vm5 = vcmp.eq.s32.totalorder %v11928_v7, 2  ;;  %v4594_v17 = vadd.s32 %v11848_v31, %v11854_v12  ;;  %v4627_v15 = vsel %vm11940_vm14, 0, %v4625_v9 }
 0x27c   :  { %v4522_v59 = vsel %vm11896_vm10, %v11514_v10, %v4519_v41  ;;  %v4604_v27 = vsub.s32 0, %v11923_v14  ;;  %vm5079_vm9 = vcmp.gt.s32.totalorder %v5078_v40, 0  ;;  %vm4530_vm6 = vcmp.eq.s32.totalorder %v11928_v7, 0 }
 0x27d   :  { %9090 = vcosq.f32 %v4522_v59  ;;  %v5080_v24 = vsel %vm5079_vm9, %v5078_v40, 0  ;;  %vm4948_vm12 = vcmp.eq.s32.totalorder %v11936_v56, 0  ;;  %vm4951_vm13 = vcmp.eq.s32.totalorder %v11936_v56, 2 }
 0x27e   :  { %9092 = vsinq.f32 %v4522_v59  ;;  %v8649_v38 = vmin.u32 %v4604_v27, %v11923_v14  ;;  %v11957_v61 = vadd.s32 1, %v8680_v5  ;;  %vm4529_vm1 = vcmp.lt.s32.totalorder %v11928_v7, 2 }
 0x27f   :  { %vm4947_vm11 = vcmp.lt.s32.totalorder %v11936_v56, 2  ;;  %v11961_v60 = vshrl.u32 %v5080_v24, 5  ;;  %v5082_v31 = vand.u32 31, %v5080_v24  ;;  %v11963_v12 = vshll.u32 %v5076_v21, 8 }
 0x280   :  { %v4606_v47 = vclz %v8649_v38  ;;  %v11968_v39 = vmul.f32 341.66666, %v9173_v29  ;;  %vm4526_vm15 = vweird.f32 %v11514_v10  ;;  %v11971_v37 = vadd.s32 3, %v4627_v15 }
 0x281   :  { %v11973_v19 = vand.u32 3, %v4627_v15  ;;  %v5180_v4 = vor.u32 8388608, %v11947_v45  ;;  %v5083_v55 = vsub.s32 32, %v5082_v31  ;;  %v5085_v63 = vshll.u32 %v9181_v28, %v5082_v31 }
 0x282   :  { %v8650_v54 = vadd.s32 4294967294, %v4606_v47  ;;  %v5088_v0 = vshll.u32 %v9182_v30, %v5082_v31  ;;  %v5091_v2 = vshll.u32 %v9183_v32, %v5082_v31  ;;  %v5094_v57 = vshll.u32 %v9184_v34, %v5082_v31 }
 0x283   :  { %v5097_v13 = vshll.u32 %v9185_v36, %v5082_v31  ;;  %vm5100_vm3 = vcmp.lt.s32.totalorder %v11961_v60, 1  ;;  %vm5183_vm2 = vcmp.gt.s32.totalorder %v11957_v61, 0  ;;  %v5084_v8 = vshrl.u32 %v9181_v28, %v5083_v55 }
 0x284   :  { %vm8651_vm8 = vcmp.lt.s32.totalorder %v8650_v54, 0  ;;  %v5086_v25 = vshrl.u32 %v9182_v30, %v5083_v55  ;;  %v5089_v6 = vshrl.u32 %v9183_v32, %v5083_v55  ;;  %v5092_v53 = vshrl.u32 %v9184_v34, %v5083_v55 }
 0x285   :  { %v4609_v20 = vsel %vm8651_vm8, 0, %v8650_v54  ;;  %v5095_v22 = vshrl.u32 %v9185_v36, %v5083_v55  ;;  %v5098_v44 = vshrl.u32 %v9186_v43, %v5083_v55  ;;  %vm5101_vm0 = vcmp.lt.s32.totalorder %v11961_v60, 2 }
 0x286   :  { %v4610_v23 = vsub.s32 32, %v4609_v20  ;;  %v4611_v52 = vshll.u32 %v11923_v14, %v4609_v20  ;;  %v4614_v18 = vsub.s32 4294967266, %v4609_v20  ;;  %v5087_v58 = vor.u32 %v5086_v25, %v5085_v63 }
 0x287   :  { %v9091_v11 = vpop.eup %9090  ;;  %v5090_v49 = vor.u32 %v5089_v6, %v5088_v0  ;;  %v5093_v40 = vor.u32 %v5092_v53, %v5091_v2  ;;  %v5096_v59 = vor.u32 %v5095_v22, %v5094_v57  ;;  %v5099_v27 = vor.u32 %v5098_v44, %v5097_v13 }
 0x288   :  { %v9093_v3 = vpop.eup %9092  ;;  %v4534_v48 = vxor.u32 2147483648, %v9091_v11  ;;  %v4612_v50 = vshrl.u32 %v4594_v17, %v4610_v23  ;;  %v4615_v41 = vadd.s32 127, %v4614_v18  ;;  %vm5102_vm4 = vcmp.lt.s32.totalorder %v11961_v60, 3 }
 0x289   :  { %v4531_v35 = vxor.u32 2147483648, %v9093_v3  ;;  %vm5103_vm10 = vcmp.lt.s32.totalorder %v11961_v60, 4  ;;  %v5104_v55 = vsel %vm5100_vm3, %v5084_v8, %v5087_v58  ;;  %v5108_v10 = vsel %vm5100_vm3, %v5087_v58, %v5090_v49 }
 0x28a   :  { %v4535_v14 = vsel %vm4533_vm5, %v4534_v48, %v9093_v3  ;;  %v4613_v9 = vor.u32 %v4612_v50, %v4611_v52  ;;  %v4616_v21 = vshll.u32 %v4615_v41, 23  ;;  %v4953_v5 = vsel %vm4951_vm13, %v4534_v48, %v9093_v3 }
 0x28b   :  { %v4532_v38 = vsel %vm4530_vm6, %v9091_v11, %v4531_v35  ;;  %v4950_v17 = vsel %vm4948_vm12, %v9091_v11, %v4531_v35  ;;  %v5105_v63 = vsel %vm5103_vm10, %v5093_v40, 2102212464  ;;  %v5109_v0 = vsel %vm5103_vm10, %v5096_v59, 920167782 }
 0x28c   :  { %v4536_v15 = vsel %vm4529_vm1, %v4532_v38, %v4535_v14  ;;  %v4617_v24 = vor.u32 4788187, %v4616_v21  ;;  %v4620_v47 = vcvt.s32.f32 %v4613_v9  ;;  %v4954_v31 = vsel %vm4947_vm11, %v4950_v17, %v4953_v5 }
 0x28d   :  { %v4537_v29 = vsel %vm4526_vm15, nan, %v4536_v15  ;;  %v4955_v54 = vsel %vm4526_vm15, nan, %v4954_v31  ;;  %v5106_v56 = vsel %vm5102_vm4, %v5090_v49, %v5105_v63  ;;  %v5110_v2 = vsel %vm5102_vm4, %v5093_v40, %v5109_v0 }
 0x28e   :  { %8654 = vst [vmem:[%s13757_s1 + $0x170] sm:$0xff] %v4537_v29  ;;  %v4618_v7 = vand.u32 2147483647, %v4617_v24  ;;  %8674 = vst [vmem:[%s13757_s1 + $0x190] sm:$0xff] %v4955_v54  ;;  %v5112_v57 = vsel %vm5100_vm3, %v5090_v49, %v5093_v40  ;;  %v5113_v13 = vsel %vm5103_vm10, %v5099_v27, 1326507024  ;;  %v5107_v25 = vsel %vm5101_vm0, %v5104_v55, %v5106_v56 }
 0x28f   :  { %v5184_v20 = vsel %vm5183_vm2, %v11957_v61, 0  ;;  %v5111_v6 = vsel %vm5101_vm0, %v5108_v10, %v5110_v2  ;;  %v5114_v23 = vsel %vm5102_vm4, %v5096_v59, %v5113_v13  ;;  %v12054_v44 = vand.u32 3, %v11971_v37 }
 0x290   :  { %v4621_v8 = vmul.f32 %v4620_v47, %v4618_v7  ;;  %v5115_v52 = vsel %vm5101_vm0, %v5112_v57, %v5114_v23  ;;  %v12043_v18 = vmul.u32.u64.low %v11963_v12, %v5111_v6  ;;  %v12044_v53 = vmul.u32.u64.high %v11963_v12, %v5111_v6, %v12043_v18 }
 0x291   :  { %v12047_v11 = vshrl.u32 %v5184_v20, 5  ;;  %v12050_v58 = vmul.u32.u64.low %v11963_v12, %v5115_v52  ;;  %v12051_v49 = vmul.u32.u64.high %v11963_v12, %v5115_v52, %v12050_v58  ;;  %v5186_v22 = vand.u32 31, %v5184_v20 }
 0x292   :  { %v4622_v61 = vxor.u32 2147483648, %v4621_v8  ;;  %v5123_v3 = vmul.u32 %v11963_v12, %v5107_v25  ;;  %v12060_v60 = vshll.u32 %v5180_v4, 8  ;;  %v5126_v12 = vadd.s32 1, %v12044_v53 }
 0x293   :  { %vm5204_vm9 = vcmp.lt.s32.totalorder %v12047_v11, 1  ;;  %v5187_v50 = vsub.s32 32, %v5186_v22  ;;  %v5189_v41 = vshll.u32 %v9181_v28, %v5186_v22  ;;  %vm5205_vm5 = vcmp.lt.s32.totalorder %v12047_v11, 2 }
 0x294   :  { %v4623_v48 = vsel %vm4540_vm7, %v4622_v61, %v4621_v8  ;;  %v5192_v40 = vshll.u32 %v9182_v30, %v5186_v22  ;;  %v5195_v45 = vshll.u32 %v9183_v32, %v5186_v22  ;;  %vm5125_vm6 = vc.u32 %v12051_v49, %v12043_v18 }
 0x295   :  { %v4626_v37 = vsel %vm11940_vm14, %v11691_v62, %v4623_v48  ;;  %v5188_v4 = vshrl.u32 %v9181_v28, %v5187_v50  ;;  %v5198_v35 = vshll.u32 %v9184_v34, %v5186_v22  ;;  %v5127_v59 = vsel %vm5125_vm6, %v5126_v12, %v12044_v53 }
 0x296   :  { %9094 = vcosq.f32 %v4626_v37  ;;  %v5190_v26 = vshrl.u32 %v9182_v30, %v5187_v50  ;;  %v5193_v27 = vshrl.u32 %v9183_v32, %v5187_v50  ;;  %v5128_v14 = vadd.s32 %v5127_v59, %v5123_v3 }
 0x297   :  { %9096 = vsinq.f32 %v4626_v37  ;;  %v5196_v9 = vshrl.u32 %v9184_v34, %v5187_v50  ;;  %v5199_v21 = vshrl.u32 %v9185_v36, %v5187_v50  ;;  %v5201_v5 = vshll.u32 %v9185_v36, %v5186_v22 }
 0x298   :  { %vm5051_vm7 = vcmp.eq.s32.totalorder %v11973_v19, 0  ;;  %v5191_v38 = vor.u32 %v5190_v26, %v5189_v41  ;;  %v5194_v17 = vor.u32 %v5193_v27, %v5192_v40  ;;  %v5202_v15 = vshrl.u32 %v9186_v43, %v5187_v50 }
 0x299   :  { %vm5207_vm14 = vcmp.lt.s32.totalorder %v12047_v11, 4  ;;  %vm5050_vm12 = vcmp.lt.s32.totalorder %v11973_v19, 2  ;;  %v5129_v24 = vadd.s32 536870912, %v5128_v14  ;;  %v5197_v47 = vor.u32 %v5196_v9, %v5195_v45 }
 0x29a   :  { %v5200_v31 = vor.u32 %v5199_v21, %v5198_v35  ;;  %vm5206_vm13 = vcmp.lt.s32.totalorder %v12047_v11, 3  ;;  %vm4630_vm1 = vweird.f32 %v11691_v62  ;;  %v5203_v29 = vor.u32 %v5202_v15, %v5201_v5 }
 0x29b   :  { %v5208_v54 = vsel %vm5204_vm9, %v5188_v4, %v5191_v38  ;;  %v5212_v55 = vsel %vm5204_vm9, %v5191_v38, %v5194_v17  ;;  %v5279_v63 = vand.u32 2139095040, %v11968_v39  ;;  %v5130_v7 = vshrl.u32 %v5129_v24, 30 }
 0x29c   :  { %v5209_v56 = vsel %vm5207_vm14, %v5197_v47, 2102212464  ;;  %v5213_v10 = vsel %vm5207_vm14, %v5200_v31, 920167782  ;;  %v5216_v0 = vsel %vm5204_vm9, %v5194_v17, %v5197_v47  ;;  %v5217_v13 = vsel %vm5207_vm14, %v5203_v29, 1326507024 }
 0x29d   :  { %v5210_v2 = vsel %vm5206_vm13, %v5194_v17, %v5209_v56  ;;  %v5214_v57 = vsel %vm5206_vm13, %v5197_v47, %v5213_v10  ;;  %v5280_v20 = vshrl.u32 %v5279_v63, 23  ;;  %vm4633_vm11 = vcmp.lt.s32.totalorder %v12054_v44, 2 }
 0x29e   :  { %vm5054_vm15 = vcmp.eq.s32.totalorder %v11973_v19, 2  ;;  %v5131_v8 = vshll.u32 %v5130_v7, 30  ;;  %v5215_v25 = vsel %vm5205_vm5, %v5212_v55, %v5214_v57  ;;  %vm4637_vm8 = vcmp.eq.s32.totalorder %v12054_v44, 2 }
 0x29f   :  { %v5218_v6 = vsel %vm5206_vm13, %v5200_v31, %v5217_v13  ;;  %v12113_v23 = vmul.u32.u64.low %v12060_v60, %v5215_v25  ;;  %v12114_v52 = vmul.u32.u64.high %v12060_v60, %v5215_v25, %v12113_v23  ;;  %v5211_v58 = vsel %vm5205_vm5, %v5208_v54, %v5210_v2 }
 0x2a0   :  { %v9095_v53 = vpop.eup %9094  ;;  %v12116_v61 = vsub.s32 %v5128_v14, %v5131_v8  ;;  %v5219_v22 = vsel %vm5205_vm5, %v5216_v0, %v5218_v6  ;;  %v8684_v3 = vadd.s32 4294967169, %v5280_v20  ;;  %vm4634_vm3 = vcmp.eq.s32.totalorder %v12054_v44, 0 }
 0x2a1   :  { %v9097_v48 = vpop.eup %9096  ;;  %v4638_v50 = vxor.u32 2147483648, %v9095_v53  ;;  %v12124_v41 = vmul.u32.u64.low %v12060_v60, %v5219_v22  ;;  %v12125_v37 = vmul.u32.u64.high %v12060_v60, %v5219_v22, %v12124_v41  ;;  %v5154_v45 = vsub.s32 4, %v5130_v7 }
 0x2a2   :  { %v4635_v12 = vxor.u32 2147483648, %v9097_v48  ;;  %v5134_v40 = vsub.s32 0, %v12116_v61  ;;  %v5276_v4 = vand.u32 2147483647, %v11968_v39  ;;  %v5227_v59 = vmul.u32 %v12060_v60, %v5211_v58 }
 0x2a3   :  { %v4639_v35 = vsel %vm4637_vm8, %v4638_v50, %v9097_v48  ;;  %v5056_v11 = vsel %vm5054_vm15, %v4638_v50, %v9097_v48  ;;  %v5230_v26 = vadd.s32 1, %v12114_v52  ;;  %v5286_v21 = vadd.s32 1, %v8684_v3 }
 0x2a4   :  { %v4636_v27 = vsel %vm4634_vm3, %v9095_v53, %v4635_v12  ;;  %v5053_v14 = vsel %vm5051_vm7, %v9095_v53, %v4635_v12  ;;  %v8677_v9 = vmin.u32 %v5134_v40, %v12116_v61  ;;  %vm5229_vm2 = vc.u32 %v12125_v37, %v12113_v23 }
 0x2a5   :  { %v4640_v5 = vsel %vm4633_vm11, %v4636_v27, %v4639_v35  ;;  %v5057_v38 = vsel %vm5050_vm12, %v5053_v14, %v5056_v11  ;;  %vm5070_vm0 = vcmp.lt.s32.totalorder %v11779_v51, 0  ;;  %v5231_v44 = vsel %vm5229_vm2, %v5230_v26, %v12114_v52 }
 0x2a6   :  { %v4641_v60 = vsel %vm4630_vm1, nan, %v4640_v5  ;;  %v5058_v17 = vsel %vm4630_vm1, nan, %v5057_v38  ;;  %v5136_v15 = vclz %v8677_v9  ;;  %v5155_v19 = vsel %vm5070_vm0, %v5154_v45, %v5130_v7 }
 0x2a7   :  { %8655 = vst [vmem:[%s13757_s1 + $0x178] sm:$0xff] %v4641_v60  ;;  %8675 = vst [vmem:[%s13757_s1 + $0x198] sm:$0xff] %v5058_v17  ;;  %v5283_v62 = vand.u32 8388607, %v5276_v4  ;;  %v5232_v47 = vadd.s32 %v5231_v44, %v5227_v59  ;;  %vm5287_vm4 = vcmp.gt.s32.totalorder %v5286_v21, 0  ;;  %v5124_v29 = vadd.s32 %v12043_v18, %v12051_v49 }
 0x2a8   :  { %v8678_v24 = vadd.s32 4294967294, %v5136_v15  ;;  %vm12161_vm10 = vcmp.le.f32.partialorder %v5068_v1, 0.7853982  ;;  %v5288_v54 = vsel %vm5287_vm4, %v5286_v21, 0  ;;  %v12177_v49 = vmul.f32 341.66666, %v11688_v42 }
 0x2a9   :  { %v12169_v55 = vsel %vm12161_vm10, 0, %v5155_v19  ;;  %v5233_v63 = vadd.s32 536870912, %v5232_v47  ;;  %v5290_v7 = vand.u32 31, %v5288_v54  ;;  %v5284_v10 = vor.u32 8388608, %v5283_v62 }
 0x2aa   :  { %vm8679_vm9 = vcmp.lt.s32.totalorder %v8678_v24, 0  ;;  %v12173_v13 = vadd.s32 3, %v12169_v55  ;;  %v5228_v53 = vadd.s32 %v12113_v23, %v12125_v37  ;;  %vm5174_vm5 = vcmp.lt.s32.totalorder %v11917_v16, 0 }
 0x2ab   :  { %v5139_v56 = vsel %vm8679_vm9, 0, %v8678_v24  ;;  %v5234_v57 = vshrl.u32 %v5233_v63, 30  ;;  %v5291_v20 = vsub.s32 32, %v5290_v7  ;;  %v5293_v18 = vshll.u32 %v9181_v28, %v5290_v7 }
 0x2ac   :  { %v5140_v0 = vsub.s32 32, %v5139_v56  ;;  %v5141_v2 = vshll.u32 %v12116_v61, %v5139_v56  ;;  %v5144_v1 = vsub.s32 4294967266, %v5139_v56  ;;  %v5296_v52 = vshll.u32 %v9182_v30, %v5290_v7 }
 0x2ad   :  { %v5235_v6 = vshll.u32 %v5234_v57, 30  ;;  %v5294_v61 = vshrl.u32 %v9182_v30, %v5291_v20  ;;  %v5297_v58 = vshrl.u32 %v9183_v32, %v5291_v20  ;;  %v12183_v22 = vshll.u32 %v5284_v10, 8 }
 0x2ae   :  { %v5142_v8 = vshrl.u32 %v5124_v29, %v5140_v0  ;;  %v5145_v25 = vadd.s32 127, %v5144_v1  ;;  %v5289_v42 = vshrl.u32 %v5288_v54, 5  ;;  %v5292_v41 = vshrl.u32 %v9181_v28, %v5291_v20 }
 0x2af   :  { %v5236_v50 = vsub.s32 %v5232_v47, %v5235_v6  ;;  %v5295_v12 = vor.u32 %v5294_v61, %v5293_v18  ;;  %v5299_v40 = vshll.u32 %v9183_v32, %v5290_v7  ;;  %v5300_v45 = vshrl.u32 %v9184_v34, %v5291_v20 }
 0x2b0   :  { %v5143_v3 = vor.u32 %v5142_v8, %v5141_v2  ;;  %v5146_v48 = vshll.u32 %v5145_v25, 23  ;;  %v5298_v11 = vor.u32 %v5297_v58, %v5296_v52  ;;  %v5302_v59 = vshll.u32 %v9184_v34, %v5290_v7 }
 0x2b1   :  { %v5238_v35 = vsub.s32 0, %v5236_v50  ;;  %v5303_v26 = vshrl.u32 %v9185_v36, %v5291_v20  ;;  %v5305_v27 = vshll.u32 %v9185_v36, %v5290_v7  ;;  %v5306_v14 = vshrl.u32 %v9186_v43, %v5291_v20 }
 0x2b2   :  { %v5147_v23 = vor.u32 4788187, %v5146_v48  ;;  %v5150_v37 = vcvt.s32.f32 %v5143_v3  ;;  %vm5308_vm6 = vcmp.lt.s32.totalorder %v5289_v42, 1  ;;  %v5380_v5 = vand.u32 2147483647, %v12177_v49 }
 0x2b3   :  { %v8681_v21 = vmin.u32 %v5238_v35, %v5236_v50  ;;  %v5258_v38 = vsub.s32 4, %v5234_v57  ;;  %v5301_v60 = vor.u32 %v5300_v45, %v5299_v40  ;;  %v5304_v17 = vor.u32 %v5303_v26, %v5302_v59 }
 0x2b4   :  { %v5148_v9 = vand.u32 2147483647, %v5147_v23  ;;  %v5307_v15 = vor.u32 %v5306_v14, %v5305_v27  ;;  %vm12196_vm7 = vcmp.le.f32.partialorder %v5172_v46, 0.7853982  ;;  %vm5310_vm14 = vcmp.lt.s32.totalorder %v5289_v42, 3 }
 0x2b5   :  { %v5240_v62 = vclz %v8681_v21  ;;  %v5383_v24 = vand.u32 2139095040, %v12177_v49  ;;  %vm5309_vm12 = vcmp.lt.s32.totalorder %v5289_v42, 2  ;;  %vm5311_vm13 = vcmp.lt.s32.totalorder %v5289_v42, 4 }
 0x2b6   :  { %v5151_v19 = vmul.f32 %v5150_v37, %v5148_v9  ;;  %v5312_v47 = vsel %vm5308_vm6, %v5292_v41, %v5295_v12  ;;  %v5316_v29 = vsel %vm5308_vm6, %v5295_v12, %v5298_v11  ;;  %v5313_v7 = vsel %vm5311_vm13, %v5301_v60, 2102212464 }
 0x2b7   :  { %v8682_v63 = vadd.s32 4294967294, %v5240_v62  ;;  %v5317_v56 = vsel %vm5311_vm13, %v5304_v17, 920167782  ;;  %v5259_v46 = vsel %vm5174_vm5, %v5258_v38, %v5234_v57  ;;  %v5314_v10 = vsel %vm5310_vm14, %v5298_v11, %v5313_v7 }
 0x2b8   :  { %v5152_v54 = vxor.u32 2147483648, %v5151_v19  ;;  %v5318_v0 = vsel %vm5310_vm14, %v5301_v60, %v5317_v56  ;;  %v5321_v2 = vsel %vm5311_vm13, %v5307_v15, 1326507024  ;;  %v5320_v18 = vsel %vm5308_vm6, %v5298_v11, %v5301_v60 }
 0x2b9   :  { %vm8683_vm1 = vcmp.lt.s32.totalorder %v8682_v63, 0  ;;  %v5319_v20 = vsel %vm5309_vm12, %v5316_v29, %v5318_v0  ;;  %v5315_v57 = vsel %vm5309_vm12, %v5312_v47, %v5314_v10  ;;  %v5322_v6 = vsel %vm5310_vm14, %v5304_v17, %v5321_v2 }
 0x2ba   :  { %v5153_v1 = vsel %vm5070_vm0, %v5152_v54, %v5151_v19  ;;  %v5243_v25 = vsel %vm8683_vm1, 0, %v8682_v63  ;;  %v5323_v3 = vsel %vm5309_vm12, %v5320_v18, %v5322_v6  ;;  %v5261_v23 = vsel %vm12196_vm7, 0, %v5259_v46 }
 0x2bb   :  { %v5156_v8 = vsel %vm12161_vm10, %v11779_v51, %v5153_v1  ;;  %v5244_v52 = vsub.s32 32, %v5243_v25  ;;  %v5245_v61 = vshll.u32 %v5236_v50, %v5243_v25  ;;  %v5248_v58 = vsub.s32 4294967266, %v5243_v25 }
 0x2bc   :  { %9098 = vcosq.f32 %v5156_v8  ;;  %v12218_v48 = vmul.u32.u64.low %v12183_v22, %v5319_v20  ;;  %v12219_v41 = vmul.u32.u64.high %v12183_v22, %v5319_v20, %v12218_v48  ;;  %v5384_v37 = vshrl.u32 %v5383_v24, 23 }
 0x2bd   :  { %9100 = vsinq.f32 %v5156_v8  ;;  %v5246_v12 = vshrl.u32 %v5228_v53, %v5244_v52  ;;  %v5249_v40 = vadd.s32 127, %v5248_v58  ;;  %v5162_v50 = vand.u32 3, %v12173_v13 }
 0x2be   :  { %v12222_v31 = vmul.u32.u64.low %v12183_v22, %v5323_v3  ;;  %v12223_v45 = vmul.u32.u64.high %v12183_v22, %v5323_v3, %v12222_v31  ;;  %v5331_v42 = vmul.u32 %v12183_v22, %v5315_v57  ;;  %v5334_v59 = vadd.s32 1, %v12219_v41 }
 0x2bf   :  { %v5247_v35 = vor.u32 %v5246_v12, %v5245_v61  ;;  %v5250_v11 = vshll.u32 %v5249_v40, 23  ;;  %v8688_v26 = vadd.s32 4294967169, %v5384_v37  ;;  %v5387_v53 = vand.u32 8388607, %v5380_v5 }
 0x2c0   :  { %v5265_v9 = vadd.s32 3, %v5261_v23  ;;  %vm5333_vm11 = vc.u32 %v12223_v45, %v12218_v48  ;;  %vm5160_vm15 = vweird.f32 %v11779_v51  ;;  %vm5163_vm8 = vcmp.lt.s32.totalorder %v5162_v50, 2 }
 0x2c1   :  { %v5251_v27 = vor.u32 4788187, %v5250_v11  ;;  %v5254_v14 = vcvt.s32.f32 %v5247_v35  ;;  %v5335_v21 = vsel %vm5333_vm11, %v5334_v59, %v12219_v41  ;;  %v5390_v38 = vadd.s32 1, %v8688_v26 }
 0x2c2   :  { %v5336_v60 = vadd.s32 %v5335_v21, %v5331_v42  ;;  %vm5164_vm3 = vcmp.eq.s32.totalorder %v5162_v50, 0  ;;  %vm5167_vm2 = vcmp.eq.s32.totalorder %v5162_v50, 2  ;;  %v5388_v22 = vor.u32 8388608, %v5387_v53 }
 0x2c3   :  { %v5252_v13 = vand.u32 2147483647, %v5251_v27  ;;  %vm5391_vm0 = vcmp.gt.s32.totalorder %v5390_v38, 0  ;;  %v12237_v19 = vand.u32 3, %v5265_v9  ;;  %v12243_v63 = vand.u32 3, %v12169_v55 }
 0x2c4   :  { %v5337_v62 = vadd.s32 536870912, %v5336_v60  ;;  %v5392_v24 = vsel %vm5391_vm0, %v5390_v38, 0  ;;  %v12245_v7 = vand.u32 3, %v5261_v23  ;;  %v12249_v0 = vmul.f32 398.44446, %v11776_v33 }
 0x2c5   :  { %v5255_v15 = vmul.f32 %v5254_v14, %v5252_v13  ;;  %v5394_v54 = vand.u32 31, %v5392_v24  ;;  %v12256_v1 = vadd.s32 %v12218_v48, %v12223_v45  ;;  %v12258_v55 = vshll.u32 %v5388_v22, 8 }
 0x2c6   :  { %v12235_v17 = vpop.eup %9098  ;;  %v5338_v10 = vshrl.u32 %v5337_v62, 30  ;;  %vm5584_vm4 = vcmp.eq.s32.totalorder %v12243_v63, 0  ;;  %vm5278_vm10 = vcmp.lt.s32.totalorder %v11968_v39, 0  ;;  %v5913_v48 = vand.u32 2139095040, %v12249_v0 }
 0x2c7   :  { %v12239_v47 = vpop.eup %9100  ;;  %v5168_v29 = vxor.u32 2147483648, %v12235_v17  ;;  %v5256_v46 = vxor.u32 2147483648, %v5255_v15  ;;  %v5395_v20 = vsub.s32 32, %v5394_v54  ;;  %v5397_v25 = vshll.u32 %v9181_v28, %v5394_v54 }
 0x2c8   :  { %v5165_v56 = vxor.u32 2147483648, %v12239_v47  ;;  %v5339_v8 = vshll.u32 %v5338_v10, 30  ;;  %v5400_v61 = vshll.u32 %v9182_v30, %v5394_v54  ;;  %v5393_v44 = vshrl.u32 %v5392_v24, 5 }
 0x2c9   :  { %v5169_v2 = vsel %vm5167_vm2, %v5168_v29, %v12239_v47  ;;  %v5257_v33 = vsel %vm5174_vm5, %v5256_v46, %v5255_v15  ;;  %v5398_v52 = vshrl.u32 %v9182_v30, %v5395_v20  ;;  %v5396_v41 = vshrl.u32 %v9181_v28, %v5395_v20 }
 0x2ca   :  { %v5166_v18 = vsel %vm5164_vm3, %v12235_v17, %v5165_v56  ;;  %v5260_v6 = vsel %vm12196_vm7, %v11917_v16, %v5257_v33  ;;  %v12277_v3 = vsub.s32 %v5336_v60, %v5339_v8  ;;  %v5401_v12 = vshrl.u32 %v9183_v32, %v5395_v20 }
 0x2cb   :  { %v5170_v57 = vsel %vm5163_vm8, %v5166_v18, %v5169_v2  ;;  %9102 = vcosq.f32 %v5260_v6  ;;  %vm5271_vm9 = vcmp.eq.s32.totalorder %v12237_v19, 2  ;;  %v5399_v31 = vor.u32 %v5398_v52, %v5397_v25 }
 0x2cc   :  { %v5171_v58 = vsel %vm5160_vm15, nan, %v5170_v57  ;;  %9104 = vsinq.f32 %v5260_v6  ;;  %v5342_v40 = vsub.s32 0, %v12277_v3  ;;  %v5403_v45 = vshll.u32 %v9183_v32, %v5394_v54 }
 0x2cd   :  { %8692 = vst [vmem:[%s13757_s1 + $0x1a0] sm:$0xff] %v5171_v58  ;;  %v5404_v23 = vshrl.u32 %v9184_v34, %v5395_v20  ;;  %vm5268_vm5 = vcmp.eq.s32.totalorder %v12237_v19, 0  ;;  %v5402_v37 = vor.u32 %v5401_v12, %v5400_v61  ;;  %v5406_v50 = vshll.u32 %v9184_v34, %v5394_v54 }
 0x2ce   :  { %v5407_v35 = vshrl.u32 %v9185_v36, %v5395_v20  ;;  %v5409_v11 = vshll.u32 %v9185_v36, %v5394_v54  ;;  %vm5583_vm6 = vcmp.lt.s32.totalorder %v12243_v63, 2  ;;  %vm5267_vm7 = vcmp.lt.s32.totalorder %v12237_v19, 2 }
 0x2cf   :  { %v8685_v42 = vmin.u32 %v5342_v40, %v12277_v3  ;;  %v5405_v59 = vor.u32 %v5404_v23, %v5403_v45  ;;  %v5410_v26 = vshrl.u32 %v9186_v43, %v5395_v20  ;;  %vm5587_vm14 = vcmp.eq.s32.totalorder %v12243_v63, 2 }
 0x2d0   :  { %v5362_v53 = vsub.s32 4, %v5338_v10  ;;  %v5408_v27 = vor.u32 %v5407_v35, %v5406_v50  ;;  %vm5412_vm13 = vcmp.lt.s32.totalorder %v5393_v44, 1  ;;  %vm5687_vm1 = vcmp.eq.s32.totalorder %v12245_v7, 0 }
 0x2d1   :  { %v5344_v14 = vclz %v8685_v42  ;;  %vm5413_vm11 = vcmp.lt.s32.totalorder %v5393_v44, 2  ;;  %vm5414_vm8 = vcmp.lt.s32.totalorder %v5393_v44, 3  ;;  %vm5690_vm3 = vcmp.eq.s32.totalorder %v12245_v7, 2 }
 0x2d2   :  { %v5914_v9 = vshrl.u32 %v5913_v48, 23  ;;  %v5411_v21 = vor.u32 %v5410_v26, %v5409_v11  ;;  %vm5415_vm2 = vcmp.lt.s32.totalorder %v5393_v44, 4  ;;  %v5416_v38 = vsel %vm5412_vm13, %v5396_v41, %v5399_v31 }
 0x2d3   :  { %v5420_v13 = vsel %vm5412_vm13, %v5399_v31, %v5402_v37  ;;  %vm12306_vm12 = vcmp.le.f32.partialorder %v5276_v4, 0.7853982  ;;  %v8686_v22 = vadd.s32 4294967294, %v5344_v14  ;;  %v5417_v15 = vsel %vm5415_vm2, %v5405_v59, 2102212464 }
 0x2d4   :  { %v5421_v62 = vsel %vm5415_vm2, %v5408_v27, 920167782  ;;  %v5424_v24 = vsel %vm5412_vm13, %v5402_v37, %v5405_v59  ;;  %v5363_v54 = vsel %vm5278_vm10, %v5362_v53, %v5338_v10  ;;  %v5418_v46 = vsel %vm5414_vm8, %v5402_v37, %v5417_v15 }
 0x2d5   :  { %v5422_v2 = vsel %vm5414_vm8, %v5405_v59, %v5421_v62  ;;  %v5425_v20 = vsel %vm5415_vm2, %v5411_v21, 1326507024  ;;  %v9103_v18 = vpop.eup %9102  ;;  %vm8687_vm0 = vcmp.lt.s32.totalorder %v8686_v22, 0  ;;  %v5419_v4 = vsel %vm5413_vm11, %v5416_v38, %v5418_v46 }
 0x2d6   :  { %v5426_v33 = vsel %vm5414_vm8, %v5408_v27, %v5425_v20  ;;  %v5586_v8 = vsel %vm5584_vm4, %v12235_v17, %v5165_v56  ;;  %v9105_v25 = vpop.eup %9104  ;;  %v5272_v57 = vxor.u32 2147483648, %v9103_v18  ;;  %v5347_v10 = vsel %vm8687_vm0, 0, %v8686_v22 }
 0x2d7   :  { %v5423_v6 = vsel %vm5413_vm11, %v5420_v13, %v5422_v2  ;;  %v5427_v52 = vsel %vm5413_vm11, %v5424_v24, %v5426_v33  ;;  %v5269_v61 = vxor.u32 2147483648, %v9105_v25  ;;  %v5348_v58 = vsub.s32 32, %v5347_v10 }
 0x2d8   :  { %v5349_v48 = vshll.u32 %v12277_v3, %v5347_v10  ;;  %v5352_v41 = vsub.s32 4294967266, %v5347_v10  ;;  %v5273_v12 = vsel %vm5271_vm9, %v5272_v57, %v9105_v25  ;;  %v5589_v56 = vsel %vm5587_vm14, %v5168_v29, %v12239_v47 }
 0x2d9   :  { %v12328_v40 = vmul.u32.u64.low %v12258_v55, %v5427_v52  ;;  %v12329_v31 = vmul.u32.u64.high %v12258_v55, %v5427_v52, %v12328_v40  ;;  %v5270_v44 = vsel %vm5268_vm5, %v9103_v18, %v5269_v61  ;;  %v5350_v45 = vshrl.u32 %v12256_v1, %v5348_v58 }
 0x2da   :  { %v5353_v3 = vadd.s32 127, %v5352_v41  ;;  %v5590_v23 = vsel %vm5583_vm6, %v5586_v8, %v5589_v56  ;;  %v5274_v37 = vsel %vm5267_vm7, %v5270_v44, %v5273_v12  ;;  %vm13816_vm4 = vweird.f32 %v11917_v16 }
 0x2db   :  { %v12344_v50 = vmul.u32.u64.low %v12258_v55, %v5423_v6  ;;  %v12345_v35 = vmul.u32.u64.high %v12258_v55, %v5423_v6, %v12344_v50  ;;  %v5591_v17 = vsel %vm5160_vm15, nan, %v5590_v23  ;;  %v5275_v47 = vsel %vm13816_vm4, nan, %v5274_v37  ;;  %vm13818_vm5 = vmmov %vm13816_vm4 }
 0x2dc   :  { %v5351_v29 = vor.u32 %v5350_v45, %v5349_v48  ;;  %v5354_v11 = vshll.u32 %v5353_v3, 23  ;;  %8712 = vst [vmem:[%s13757_s1 + $0x1c0] sm:$0xff] %v5591_v17  ;;  %v5689_v19 = vsel %vm5687_vm1, %v9103_v18, %v5269_v61  ;;  %8693 = vst [vmem:[%s13757_s1 + $0x1a8] sm:$0xff] %v5275_v47  ;;  %v5365_v51 = vsel %vm12306_vm12, 0, %v5363_v54 }
 0x2dd   :  { %v5435_v63 = vmul.u32 %v12258_v55, %v5419_v4  ;;  %vm5437_vm15 = vc.u32 %v12329_v31, %v12344_v50  ;;  %v5692_v1 = vsel %vm5690_vm3, %v5272_v57, %v9105_v25  ;;  %vm13817_vm9 = vcmp.lt.s32.totalorder %v12245_v7, 2  ;;  %v12391_v57 = vld [vmem:[%s13757_s1 + $0x8] sm:$0xff] }
 0x2de   :  { %v5355_v42 = vor.u32 4788187, %v5354_v11  ;;  %v5358_v59 = vcvt.s32.f32 %v5351_v29  ;;  %v5693_v26 = vsel %vm13817_vm9, %v5689_v19, %v5692_v1  ;;  %v8716_v53 = vadd.s32 4294967169, %v5914_v9 }
 0x2df   :  { %v5438_v27 = vadd.s32 1, %v12345_v35  ;;  %v5694_v14 = vsel %vm13818_vm5, nan, %v5693_v26  ;;  %v5369_v38 = vadd.s32 3, %v5365_v51  ;;  %v5910_v7 = vand.u32 2147483647, %v12249_v0 }
 0x2e0   :  { %v5356_v21 = vand.u32 2147483647, %v5355_v42  ;;  %8713 = vst [vmem:[%s13757_s1 + $0x1c8] sm:$0xff] %v5694_v14  ;;  %v5920_v55 = vadd.s32 1, %v8716_v53  ;;  %v12377_v46 = vand.u32 3, %v5365_v51  ;;  %v5436_v44 = vadd.s32 %v12344_v50, %v12329_v31 }
 0x2e1   :  { %v5439_v13 = vsel %vm5437_vm15, %v5438_v27, %v12345_v35  ;;  %v12375_v16 = vand.u32 3, %v5369_v38  ;;  %v5917_v18 = vand.u32 8388607, %v5910_v7  ;;  %v12394_v10 = vmul.f32 398.44446, %v12391_v57 }
 0x2e2   :  { %v5359_v22 = vmul.f32 %v5358_v59, %v5356_v21  ;;  %v5440_v15 = vadd.s32 %v5439_v13, %v5435_v63  ;;  %vm5921_vm6 = vcmp.gt.s32.totalorder %v5920_v55, 0  ;;  %vm5790_vm1 = vcmp.eq.s32.totalorder %v12377_v46, 0 }
 0x2e3   :  { %v5922_v9 = vsel %vm5921_vm6, %v5920_v55, 0  ;;  %v5918_v12 = vor.u32 8388608, %v5917_v18  ;;  %vm5372_vm7 = vcmp.eq.s32.totalorder %v12375_v16, 0  ;;  %vm5375_vm14 = vcmp.eq.s32.totalorder %v12375_v16, 2 }
 0x2e4   :  { %v5360_v62 = vxor.u32 2147483648, %v5359_v22  ;;  %v5441_v24 = vadd.s32 536870912, %v5440_v15  ;;  %v5924_v54 = vand.u32 31, %v5922_v9  ;;  %v5923_v40 = vshrl.u32 %v5922_v9, 5 }
 0x2e5   :  { %vm5371_vm13 = vcmp.lt.s32.totalorder %v12375_v16, 2  ;;  %v6017_v35 = vand.u32 2139095040, %v12394_v10  ;;  %vm5368_vm11 = vweird.f32 %v11968_v39  ;;  %vm5789_vm8 = vcmp.lt.s32.totalorder %v12377_v46, 2 }
 0x2e6   :  { %v5361_v2 = vsel %vm5278_vm10, %v5360_v62, %v5359_v22  ;;  %v5442_v20 = vshrl.u32 %v5441_v24, 30  ;;  %v5925_v4 = vsub.s32 32, %v5924_v54  ;;  %v5927_v8 = vshll.u32 %v9181_v28, %v5924_v54 }
 0x2e7   :  { %v5364_v33 = vsel %vm12306_vm12, %v11968_v39, %v5361_v2  ;;  %v5930_v25 = vshll.u32 %v9182_v30, %v5924_v54  ;;  %v5933_v52 = vshll.u32 %v9183_v32, %v5924_v54  ;;  %v5936_v61 = vshll.u32 %v9184_v34, %v5924_v54 }
 0x2e8   :  { %9106 = vcosq.f32 %v5364_v33  ;;  %v5443_v6 = vshll.u32 %v5442_v20, 30  ;;  %v5928_v60 = vshrl.u32 %v9182_v30, %v5925_v4  ;;  %v5931_v58 = vshrl.u32 %v9183_v32, %v5925_v4 }
 0x2e9   :  { %9108 = vsinq.f32 %v5364_v33  ;;  %v5934_v48 = vshrl.u32 %v9184_v34, %v5925_v4  ;;  %vm5382_vm10 = vcmp.lt.s32.totalorder %v12177_v49, 0  ;;  %v5937_v56 = vshrl.u32 %v9185_v36, %v5925_v4 }
 0x2ea   :  { %v12402_v41 = vsub.s32 %v5440_v15, %v5443_v6  ;;  %vm5793_vm12 = vcmp.eq.s32.totalorder %v12377_v46, 2  ;;  %v5939_v45 = vshll.u32 %v9185_v36, %v5924_v54  ;;  %v5926_v23 = vshrl.u32 %v9181_v28, %v5925_v4 }
 0x2eb   :  { %v5929_v37 = vor.u32 %v5928_v60, %v5927_v8  ;;  %v5932_v31 = vor.u32 %v5931_v58, %v5930_v25  ;;  %v5935_v50 = vor.u32 %v5934_v48, %v5933_v52  ;;  %v5938_v17 = vor.u32 %v5937_v56, %v5936_v61 }
 0x2ec   :  { %v5446_v3 = vsub.s32 0, %v12402_v41  ;;  %v5940_v47 = vshrl.u32 %v9186_v43, %v5925_v4  ;;  %vm5942_vm3 = vcmp.lt.s32.totalorder %v5923_v40, 1  ;;  %v12419_v11 = vshll.u32 %v5918_v12, 8 }
 0x2ed   :  { %v6014_v19 = vand.u32 2147483647, %v12394_v10  ;;  %v5466_v51 = vsub.s32 4, %v5442_v20  ;;  %vm5944_vm2 = vcmp.lt.s32.totalorder %v5923_v40, 3  ;;  %vm5945_vm0 = vcmp.lt.s32.totalorder %v5923_v40, 4 }
 0x2ee   :  { %v8689_v29 = vmin.u32 %v5446_v3, %v12402_v41  ;;  %v5941_v63 = vor.u32 %v5940_v47, %v5939_v45  ;;  %vm5943_vm4 = vcmp.lt.s32.totalorder %v5923_v40, 2  ;;  %v5946_v42 = vsel %vm5942_vm3, %v5926_v23, %v5929_v37 }
 0x2ef   :  { %v6018_v59 = vshrl.u32 %v6017_v35, 23  ;;  %v5947_v26 = vsel %vm5945_vm0, %v5935_v50, 2102212464  ;;  %v5950_v53 = vsel %vm5942_vm3, %v5929_v37, %v5932_v31  ;;  %v5951_v27 = vsel %vm5945_vm0, %v5938_v17, 920167782 }
 0x2f0   :  { %v5448_v1 = vclz %v8689_v29  ;;  %v5954_v14 = vsel %vm5942_vm3, %v5932_v31, %v5935_v50  ;;  %v5948_v38 = vsel %vm5944_vm2, %v5932_v31, %v5947_v26  ;;  %v5952_v13 = vsel %vm5944_vm2, %v5935_v50, %v5951_v27 }
 0x2f1   :  { %v5955_v22 = vsel %vm5945_vm0, %v5941_v63, 1326507024  ;;  %v5467_v62 = vsel %vm5382_vm10, %v5466_v51, %v5442_v20  ;;  %v5949_v24 = vsel %vm5943_vm4, %v5946_v42, %v5948_v38  ;;  %v5953_v18 = vsel %vm5943_vm4, %v5950_v53, %v5952_v13  ;;  %v12479_v42 = vld [vmem:[%s13757_s1 + $0x10] sm:$0xff] }
 0x2f2   :  { %v9107_v21 = vpop.eup %9106  ;;  %v8690_v55 = vadd.s32 4294967294, %v5448_v1  ;;  %v5956_v54 = vsel %vm5944_vm2, %v5938_v17, %v5955_v22  ;;  %v8720_v6 = vadd.s32 4294967169, %v6018_v59  ;;  %vm12461_vm9 = vcmp.le.f32.partialorder %v5380_v5, 0.7853982 }
 0x2f3   :  { %v9109_v15 = vpop.eup %9108  ;;  %v5376_v9 = vxor.u32 2147483648, %v9107_v21  ;;  %v5957_v4 = vsel %vm5943_vm4, %v5954_v14, %v5956_v54  ;;  %v5469_v39 = vsel %vm12461_vm9, 0, %v5467_v62  ;;  %v5965_v50 = vmul.u32 %v12419_v11, %v5949_v24 }
 0x2f4   :  { %v5373_v2 = vxor.u32 2147483648, %v9109_v15  ;;  %vm8691_vm15 = vcmp.lt.s32.totalorder %v8690_v55, 0  ;;  %v12442_v12 = vmul.u32.u64.low %v12419_v11, %v5957_v4  ;;  %v12443_v40 = vmul.u32.u64.high %v12419_v11, %v5957_v4, %v12442_v12 }
 0x2f5   :  { %v5377_v33 = vsel %vm5375_vm14, %v5376_v9, %v9109_v15  ;;  %v5451_v8 = vsel %vm8691_vm15, 0, %v8690_v55  ;;  %v5795_v25 = vsel %vm5793_vm12, %v5376_v9, %v9109_v15  ;;  %v6024_v31 = vadd.s32 1, %v8720_v6 }
 0x2f6   :  { %v5374_v20 = vsel %vm5372_vm7, %v9107_v21, %v5373_v2  ;;  %v5452_v52 = vsub.s32 32, %v5451_v8  ;;  %v5453_v61 = vshll.u32 %v12402_v41, %v5451_v8  ;;  %v5456_v60 = vsub.s32 4294967266, %v5451_v8 }
 0x2f7   :  { %v5378_v58 = vsel %vm5371_vm13, %v5374_v20, %v5377_v33  ;;  %v5792_v48 = vsel %vm5790_vm1, %v9107_v21, %v5373_v2  ;;  %v12455_v41 = vmul.u32.u64.low %v12419_v11, %v5953_v18  ;;  %v12456_v37 = vmul.u32.u64.high %v12419_v11, %v5953_v18, %v12455_v41 }
 0x2f8   :  { %v5379_v56 = vsel %vm5368_vm11, nan, %v5378_v58  ;;  %v5454_v45 = vshrl.u32 %v5436_v44, %v5452_v52  ;;  %v5457_v3 = vadd.s32 127, %v5456_v60  ;;  %v5796_v23 = vsel %vm5789_vm8, %v5792_v48, %v5795_v25 }
 0x2f9   :  { %8694 = vst [vmem:[%s13757_s1 + $0x1b0] sm:$0xff] %v5379_v56  ;;  %v5797_v16 = vsel %vm5368_vm11, nan, %v5796_v23  ;;  %v6021_v17 = vand.u32 8388607, %v6014_v19  ;;  %vm5967_vm5 = vc.u32 %v12443_v40, %v12455_v41  ;;  %vm6025_vm6 = vcmp.gt.s32.totalorder %v6024_v31, 0 }
 0x2fa   :  { %v5455_v46 = vor.u32 %v5454_v45, %v5453_v61  ;;  %v5458_v35 = vshll.u32 %v5457_v3, 23  ;;  %8714 = vst [vmem:[%s13757_s1 + $0x1d0] sm:$0xff] %v5797_v16  ;;  %v5968_v29 = vadd.s32 1, %v12456_v37  ;;  %v6026_v51 = vsel %vm6025_vm6, %v6024_v31, 0 }
 0x2fb   :  { %v6028_v1 = vand.u32 31, %v6026_v51  ;;  %v12482_v11 = vmul.f32 398.44446, %v12479_v42  ;;  %v5473_v59 = vadd.s32 3, %v5469_v39  ;;  %v12484_v26 = vand.u32 3, %v5469_v39 }
 0x2fc   :  { %v5459_v47 = vor.u32 4788187, %v5458_v35  ;;  %v5462_v5 = vcvt.s32.f32 %v5455_v46  ;;  %v5969_v53 = vsel %vm5967_vm5, %v5968_v29, %v12456_v37  ;;  %v6022_v27 = vor.u32 8388608, %v6021_v17 }
 0x2fd   :  { %v5970_v21 = vadd.s32 %v5969_v53, %v5965_v50  ;;  %v6027_v55 = vshrl.u32 %v6026_v51, 5  ;;  %v6029_v38 = vsub.s32 32, %v6028_v1  ;;  %v6031_v13 = vshll.u32 %v9181_v28, %v6028_v1 }
 0x2fe   :  { %v5460_v63 = vand.u32 2147483647, %v5459_v47  ;;  %v6034_v22 = vshll.u32 %v9182_v30, %v6028_v1  ;;  %v6037_v15 = vshll.u32 %v9183_v32, %v6028_v1  ;;  %v6040_v9 = vshll.u32 %v9184_v34, %v6028_v1 }
 0x2ff   :  { %v5971_v24 = vadd.s32 536870912, %v5970_v21  ;;  %v6032_v54 = vshrl.u32 %v9182_v30, %v6029_v38  ;;  %v6043_v2 = vshll.u32 %v9185_v36, %v6028_v1  ;;  %v6035_v18 = vshrl.u32 %v9183_v32, %v6029_v38 }
 0x300   :  { %v5463_v14 = vmul.f32 %v5462_v5, %v5460_v63  ;;  %v6038_v4 = vshrl.u32 %v9184_v34, %v6029_v38  ;;  %v6041_v33 = vshrl.u32 %v9185_v36, %v6029_v38  ;;  %v6044_v8 = vshrl.u32 %v9186_v43, %v6029_v38 }
 0x301   :  { %v12499_v6 = vshrl.u32 %v5971_v24, 30  ;;  %v6030_v20 = vshrl.u32 %v9181_v28, %v6029_v38  ;;  %v6121_v52 = vand.u32 2139095040, %v12482_v11  ;;  %v6033_v60 = vor.u32 %v6032_v54, %v6031_v13 }
 0x302   :  { %v5464_v62 = vxor.u32 2147483648, %v5463_v14  ;;  %v6036_v58 = vor.u32 %v6035_v18, %v6034_v22  ;;  %v6042_v48 = vor.u32 %v6041_v33, %v6040_v9  ;;  %v6039_v56 = vor.u32 %v6038_v4, %v6037_v15 }
 0x303   :  { %v5973_v12 = vshll.u32 %v12499_v6, 30  ;;  %vm6046_vm7 = vcmp.lt.s32.totalorder %v6027_v55, 1  ;;  %v6045_v45 = vor.u32 %v6044_v8, %v6043_v2  ;;  %vm6049_vm14 = vcmp.lt.s32.totalorder %v6027_v55, 4 }
 0x304   :  { %v5465_v25 = vsel %vm5382_vm10, %v5464_v62, %v5463_v14  ;;  %vm6048_vm10 = vcmp.lt.s32.totalorder %v6027_v55, 3  ;;  %vm6047_vm12 = vcmp.lt.s32.totalorder %v6027_v55, 2  ;;  %v6122_v23 = vshrl.u32 %v6121_v52, 23 }
 0x305   :  { %v5468_v61 = vsel %vm12461_vm9, %v12177_v49, %v5465_v25  ;;  %v12507_v3 = vsub.s32 %v5970_v21, %v5973_v12  ;;  %v6051_v16 = vsel %vm6049_vm14, %v6039_v56, 2102212464  ;;  %v6054_v37 = vsel %vm6046_vm7, %v6033_v60, %v6036_v58 }
 0x306   :  { %9110 = vcosq.f32 %v5468_v61  ;;  %v6055_v44 = vsel %vm6049_vm14, %v6042_v48, 920167782  ;;  %v6062_v46 = vshll.u32 %v6022_v27, 8  ;;  %v5474_v35 = vand.u32 3, %v5473_v59 }
 0x307   :  { %9112 = vsinq.f32 %v5468_v61  ;;  %vm5892_vm13 = vcmp.lt.s32.totalorder %v12484_v26, 2  ;;  %v5976_v31 = vsub.s32 0, %v12507_v3  ;;  %v6056_v39 = vsel %vm6048_vm10, %v6039_v56, %v6055_v44 }
 0x308   :  { %vm5472_vm1 = vweird.f32 %v12177_v49  ;;  %v6050_v50 = vsel %vm6046_vm7, %v6030_v20, %v6033_v60  ;;  %v6057_v17 = vsel %vm6047_vm12, %v6054_v37, %v6056_v39  ;;  %v6058_v47 = vsel %vm6046_vm7, %v6036_v58, %v6039_v56  ;;  %v12576_v39 = vld [vmem:[%s13757_s1 + $0x18] sm:$0xff] }
 0x309   :  { %v6059_v5 = vsel %vm6049_vm14, %v6045_v45, 1326507024  ;;  %v8717_v29 = vmin.u32 %v5976_v31, %v12507_v3  ;;  %v6052_v51 = vsel %vm6048_vm10, %v6036_v58, %v6051_v16  ;;  %v8724_v1 = vadd.s32 4294967169, %v6122_v23 }
 0x30a   :  { %v6060_v63 = vsel %vm6048_vm10, %v6042_v48, %v6059_v5  ;;  %v12524_v53 = vmul.u32.u64.low %v6062_v46, %v6057_v17  ;;  %v12525_v27 = vmul.u32.u64.high %v6062_v46, %v6057_v17, %v12524_v53  ;;  %v6118_v14 = vand.u32 2147483647, %v12482_v11 }
 0x30b   :  { %v6061_v59 = vsel %vm6047_vm12, %v6058_v47, %v6060_v63  ;;  %vm5475_vm11 = vcmp.lt.s32.totalorder %v5474_v35, 2  ;;  %vm5893_vm8 = vcmp.eq.s32.totalorder %v12484_v26, 0  ;;  %vm5896_vm3 = vcmp.eq.s32.totalorder %v12484_v26, 2 }
 0x30c   :  { %v5978_v21 = vclz %v8717_v29  ;;  %vm5912_vm2 = vcmp.lt.s32.totalorder %v12249_v0, 0  ;;  %v6053_v38 = vsel %vm6047_vm12, %v6050_v50, %v6052_v51  ;;  %v6128_v15 = vadd.s32 1, %v8724_v1 }
 0x30d   :  { %v12533_v13 = vmul.u32.u64.low %v6062_v46, %v6061_v59  ;;  %v12534_v22 = vmul.u32.u64.high %v6062_v46, %v6061_v59, %v12533_v13  ;;  %vm5476_vm0 = vcmp.eq.s32.totalorder %v5474_v35, 0  ;;  %vm5479_vm4 = vcmp.eq.s32.totalorder %v5474_v35, 2 }
 0x30e   :  { %v5966_v62 = vadd.s32 %v12455_v41, %v12443_v40  ;;  %v8718_v24 = vadd.s32 4294967294, %v5978_v21  ;;  %v5996_v18 = vsub.s32 4, %v12499_v6  ;;  %v6125_v4 = vand.u32 8388607, %v6118_v14 }
 0x30f   :  { %vm6129_vm15 = vcmp.gt.s32.totalorder %v6128_v15, 0  ;;  %v6069_v33 = vmul.u32 %v6062_v46, %v6053_v38  ;;  %v6072_v8 = vadd.s32 1, %v12525_v27  ;;  %vm6071_vm5 = vc.u32 %v12534_v22, %v12524_v53 }
 0x310   :  { %v9111_v9 = vpop.eup %9110  ;;  %vm8719_vm9 = vcmp.lt.s32.totalorder %v8718_v24, 0  ;;  %v6130_v40 = vsel %vm6129_vm15, %v6128_v15, 0  ;;  %vm12566_vm6 = vcmp.le.f32.partialorder %v5910_v7, 0.7853982  ;;  %v5997_v35 = vsel %vm5912_vm2, %v5996_v18, %v12499_v6 }
 0x311   :  { %v9113_v54 = vpop.eup %9112  ;;  %v5480_v2 = vxor.u32 2147483648, %v9111_v9  ;;  %v5981_v52 = vsel %vm8719_vm9, 0, %v8718_v24  ;;  %v6073_v37 = vsel %vm6071_vm5, %v6072_v8, %v12525_v27  ;;  %v6132_v44 = vand.u32 31, %v6130_v40 }
 0x312   :  { %v5477_v55 = vxor.u32 2147483648, %v9113_v54  ;;  %v5982_v60 = vsub.s32 32, %v5981_v52  ;;  %v5983_v58 = vshll.u32 %v12507_v3, %v5981_v52  ;;  %v5986_v56 = vsub.s32 4294967266, %v5981_v52 }
 0x313   :  { %v5481_v25 = vsel %vm5479_vm4, %v5480_v2, %v9113_v54  ;;  %v5898_v20 = vsel %vm5896_vm3, %v5480_v2, %v9113_v54  ;;  %v6074_v49 = vadd.s32 %v6073_v37, %v6069_v33  ;;  %v6126_v31 = vor.u32 8388608, %v6125_v4 }
 0x314   :  { %v5478_v41 = vsel %vm5476_vm0, %v9111_v9, %v5477_v55  ;;  %v5895_v61 = vsel %vm5893_vm8, %v9111_v9, %v5477_v55  ;;  %v5984_v16 = vshrl.u32 %v5966_v62, %v5982_v60  ;;  %v5987_v3 = vadd.s32 127, %v5986_v56 }
 0x315   :  { %v5482_v48 = vsel %vm5475_vm11, %v5478_v41, %v5481_v25  ;;  %v5899_v12 = vsel %vm5892_vm13, %v5895_v61, %v5898_v20  ;;  %v12579_v50 = vmul.f32 398.44446, %v12576_v39  ;;  %v6075_v17 = vadd.s32 536870912, %v6074_v49 }
 0x316   :  { %v5483_v45 = vsel %vm5472_vm1, nan, %v5482_v48  ;;  %v5900_v23 = vsel %vm5472_vm1, nan, %v5899_v12  ;;  %v5985_v46 = vor.u32 %v5984_v16, %v5983_v58  ;;  %v5988_v7 = vshll.u32 %v5987_v3, 23 }
 0x317   :  { %8695 = vst [vmem:[%s13757_s1 + $0x1b8] sm:$0xff] %v5483_v45  ;;  %8715 = vst [vmem:[%s13757_s1 + $0x1d8] sm:$0xff] %v5900_v23  ;;  %v6131_v47 = vshrl.u32 %v6130_v40, 5  ;;  %v6133_v5 = vsub.s32 32, %v6132_v44  ;;  %v6135_v51 = vshll.u32 %v9181_v28, %v6132_v44  ;;  %v6138_v63 = vshll.u32 %v9182_v30, %v6132_v44 }
 0x318   :  { %v5992_v29 = vcvt.s32.f32 %v5985_v46  ;;  %v6144_v6 = vshll.u32 %v9184_v34, %v6132_v44  ;;  %v5989_v1 = vor.u32 4788187, %v5988_v7  ;;  %v6076_v59 = vshrl.u32 %v6075_v17, 30 }
 0x319   :  { %v6136_v27 = vshrl.u32 %v9182_v30, %v6133_v5  ;;  %v6141_v21 = vshll.u32 %v9183_v32, %v6132_v44  ;;  %vm6016_vm7 = vcmp.lt.s32.totalorder %v12394_v10, 0  ;;  %v6139_v38 = vshrl.u32 %v9183_v32, %v6133_v5 }
 0x31a   :  { %v6142_v13 = vshrl.u32 %v9184_v34, %v6133_v5  ;;  %v6145_v15 = vshrl.u32 %v9185_v36, %v6133_v5  ;;  %v6147_v9 = vshll.u32 %v9185_v36, %v6132_v44  ;;  %v5990_v62 = vand.u32 2147483647, %v5989_v1 }
 0x31b   :  { %v12593_v24 = vsel %vm12566_vm6, 0, %v5997_v35  ;;  %v6077_v54 = vshll.u32 %v6076_v59, 30  ;;  %v12595_v2 = vshll.u32 %v6126_v31, 8  ;;  %v6134_v18 = vshrl.u32 %v9181_v28, %v6133_v5 }
 0x31c   :  { %v6146_v4 = vor.u32 %v6145_v15, %v6144_v6  ;;  %v6148_v55 = vshrl.u32 %v9186_v43, %v6133_v5  ;;  %v6225_v33 = vand.u32 2139095040, %v12579_v50  ;;  %v5993_v8 = vmul.f32 %v5992_v29, %v5990_v62 }
 0x31d   :  { %v12600_v25 = vsub.s32 %v6074_v49, %v6077_v54  ;;  %v6137_v20 = vor.u32 %v6136_v27, %v6135_v51  ;;  %v6140_v52 = vor.u32 %v6139_v38, %v6138_v63  ;;  %v6100_v40 = vsub.s32 4, %v6076_v59 }
 0x31e   :  { %v6143_v41 = vor.u32 %v6142_v13, %v6141_v21  ;;  %v6149_v61 = vor.u32 %v6148_v55, %v6147_v9  ;;  %vm6150_vm10 = vcmp.lt.s32.totalorder %v6131_v47, 1  ;;  %v5994_v60 = vxor.u32 2147483648, %v5993_v8 }
 0x31f   :  { %vm12604_vm14 = vcmp.le.f32.partialorder %v6014_v19, 0.7853982  ;;  %v6080_v48 = vsub.s32 0, %v12600_v25  ;;  %vm6152_vm12 = vcmp.lt.s32.totalorder %v6131_v47, 3  ;;  %vm6153_vm13 = vcmp.lt.s32.totalorder %v6131_v47, 4 }
 0x320   :  { %vm6151_vm1 = vcmp.lt.s32.totalorder %v6131_v47, 2  ;;  %v6154_v12 = vsel %vm6150_vm10, %v6134_v18, %v6137_v20  ;;  %v6155_v56 = vsel %vm6153_vm13, %v6143_v41, 2102212464  ;;  %v6159_v45 = vsel %vm6153_vm13, %v6146_v4, 920167782 }
 0x321   :  { %v5995_v23 = vsel %vm5912_vm2, %v5994_v60, %v5993_v8  ;;  %v8721_v16 = vmin.u32 %v6080_v48, %v12600_v25  ;;  %v6156_v19 = vsel %vm6152_vm12, %v6140_v52, %v6155_v56  ;;  %v6158_v37 = vsel %vm6150_vm10, %v6137_v20, %v6140_v52 }
 0x322   :  { %v5998_v3 = vsel %vm12566_vm6, %v12249_v0, %v5995_v23  ;;  %v6003_v49 = vadd.s32 3, %v12593_v24  ;;  %v6160_v44 = vsel %vm6152_vm12, %v6143_v41, %v6159_v45  ;;  %v6226_v46 = vshrl.u32 %v6225_v33, 23 }
 0x323   :  { %9114 = vcosq.f32 %v5998_v3  ;;  %v6082_v35 = vclz %v8721_v16  ;;  %v6101_v31 = vsel %vm6016_vm7, %v6100_v40, %v6076_v59  ;;  %v6162_v7 = vsel %vm6150_vm10, %v6140_v52, %v6143_v41 }
 0x324   :  { %9116 = vsinq.f32 %v5998_v3  ;;  %v6157_v17 = vsel %vm6151_vm1, %v6154_v12, %v6156_v19  ;;  %v6161_v5 = vsel %vm6151_vm1, %v6158_v37, %v6160_v44  ;;  %v6163_v26 = vsel %vm6153_vm13, %v6149_v61, 1326507024 }
 0x325   :  { %v8722_v29 = vadd.s32 4294967294, %v6082_v35  ;;  %v6164_v51 = vsel %vm6152_vm12, %v6146_v4, %v6163_v26  ;;  %v12630_v63 = vmul.u32.u64.low %v12595_v2, %v6161_v5  ;;  %v12631_v6 = vmul.u32.u64.high %v12595_v2, %v6161_v5, %v12630_v63 }
 0x326   :  { %v6004_v1 = vand.u32 3, %v6003_v49  ;;  %v6165_v59 = vsel %vm6151_vm1, %v6162_v7, %v6164_v51  ;;  %v6222_v27 = vand.u32 2147483647, %v12579_v50  ;;  %v8728_v21 = vadd.s32 4294967169, %v6226_v46 }
 0x327   :  { %v6070_v38 = vadd.s32 %v12524_v53, %v12534_v22  ;;  %vm8723_vm11 = vcmp.lt.s32.totalorder %v8722_v29, 0  ;;  %v12639_v13 = vmul.u32.u64.low %v12595_v2, %v6165_v59  ;;  %v12640_v15 = vmul.u32.u64.high %v12595_v2, %v6165_v59, %v12639_v13 }
 0x328   :  { %v6085_v9 = vsel %vm8723_vm11, 0, %v8722_v29  ;;  %v12644_v62 = vsel %vm12604_vm14, 0, %v6101_v31  ;;  %v6173_v54 = vmul.u32 %v12595_v2, %v6157_v17  ;;  %v6232_v47 = vadd.s32 1, %v8728_v21 }
 0x329   :  { %v6086_v18 = vsub.s32 32, %v6085_v9  ;;  %v6087_v4 = vshll.u32 %v12600_v25, %v6085_v9  ;;  %v6090_v55 = vsub.s32 4294967266, %v6085_v9  ;;  %v6176_v33 = vadd.s32 1, %v12631_v6 }
 0x32a   :  { %vm6002_vm8 = vweird.f32 %v12249_v0  ;;  %vm6233_vm3 = vcmp.gt.s32.totalorder %v6232_v47, 0  ;;  %vm6005_vm2 = vcmp.lt.s32.totalorder %v6004_v1, 2  ;;  %vm6175_vm0 = vc.u32 %v12640_v15, %v12630_v63 }
 0x32b   :  { %v6088_v53 = vshrl.u32 %v6070_v38, %v6086_v18  ;;  %v6091_v22 = vadd.s32 127, %v6090_v55  ;;  %v6107_v8 = vadd.s32 3, %v12644_v62  ;;  %v6177_v2 = vsel %vm6175_vm0, %v6176_v33, %v12631_v6 }
 0x32c   :  { %v6229_v20 = vand.u32 8388607, %v6222_v27  ;;  %v6234_v25 = vsel %vm6233_vm3, %v6232_v47, 0  ;;  %vm6009_vm4 = vcmp.eq.s32.totalorder %v6004_v1, 2  ;;  %v6178_v61 = vadd.s32 %v6177_v2, %v6173_v54 }
 0x32d   :  { %v12656_v52 = vpop.eup %9114  ;;  %v6089_v40 = vor.u32 %v6088_v53, %v6087_v4  ;;  %v6092_v41 = vshll.u32 %v6091_v22, 23  ;;  %vm6006_vm15 = vcmp.eq.s32.totalorder %v6004_v1, 0  ;;  %v6236_v12 = vand.u32 31, %v6234_v25 }
 0x32e   :  { %v12658_v60 = vpop.eup %9116  ;;  %v6010_v48 = vxor.u32 2147483648, %v12656_v52  ;;  %v12662_v56 = vand.u32 3, %v12593_v24  ;;  %v6179_v19 = vadd.s32 536870912, %v6178_v61  ;;  %v12668_v3 = vand.u32 3, %v6107_v8 }
 0x32f   :  { %v6007_v45 = vxor.u32 2147483648, %v12658_v60  ;;  %v6093_v23 = vor.u32 4788187, %v6092_v41  ;;  %v6096_v16 = vcvt.s32.f32 %v6089_v40  ;;  %v6230_v49 = vor.u32 8388608, %v6229_v20 }
 0x330   :  { %v6011_v37 = vsel %vm6009_vm4, %v6010_v48, %v12658_v60  ;;  %v6237_v44 = vsub.s32 32, %v6236_v12  ;;  %v12673_v24 = vshrl.u32 %v6179_v19, 30  ;;  %v6239_v31 = vshll.u32 %v9181_v28, %v6236_v12 }
 0x331   :  { %v6008_v46 = vsel %vm6006_vm15, %v12656_v52, %v6007_v45  ;;  %v6094_v35 = vand.u32 2147483647, %v6093_v23  ;;  %v6242_v5 = vshll.u32 %v9182_v30, %v6236_v12  ;;  %v6245_v26 = vshll.u32 %v9183_v32, %v6236_v12 }
 0x332   :  { %v6012_v7 = vsel %vm6005_vm2, %v6008_v46, %v6011_v37  ;;  %v6240_v17 = vshrl.u32 %v9182_v30, %v6237_v44  ;;  %v6181_v6 = vshll.u32 %v12673_v24, 30  ;;  %v6243_v59 = vshrl.u32 %v9183_v32, %v6237_v44 }
 0x333   :  { %v6013_v29 = vsel %vm6002_vm8, nan, %v6012_v7  ;;  %v6097_v51 = vmul.f32 %v6096_v16, %v6094_v35  ;;  %v6235_v1 = vshrl.u32 %v6234_v25, 5  ;;  %v6246_v21 = vshrl.u32 %v9184_v34, %v6237_v44 }
 0x334   :  { %8732 = vst [vmem:[%s13757_s1 + $0x1e0] sm:$0xff] %v6013_v29  ;;  %v6248_v38 = vshll.u32 %v9184_v34, %v6236_v12  ;;  %v12689_v13 = vshll.u32 %v6230_v49, 8  ;;  %v12691_v54 = vsub.s32 %v6178_v61, %v6181_v6  ;;  %v6249_v47 = vshrl.u32 %v9185_v36, %v6237_v44 }
 0x335   :  { %v6098_v9 = vxor.u32 2147483648, %v6097_v51  ;;  %vm6426_vm9 = vcmp.eq.s32.totalorder %v12662_v56, 0  ;;  %v6238_v18 = vshrl.u32 %v9181_v28, %v6237_v44  ;;  %v6241_v4 = vor.u32 %v6240_v17, %v6239_v31 }
 0x336   :  { %v6251_v55 = vshll.u32 %v9185_v36, %v6236_v12  ;;  %v6252_v33 = vshrl.u32 %v9186_v43, %v6237_v44  ;;  %vm6425_vm5 = vcmp.lt.s32.totalorder %v12662_v56, 2  ;;  %v6184_v22 = vsub.s32 0, %v12691_v54 }
 0x337   :  { %v6099_v53 = vsel %vm6016_vm7, %v6098_v9, %v6097_v51  ;;  %v6244_v8 = vor.u32 %v6243_v59, %v6242_v5  ;;  %v6247_v2 = vor.u32 %v6246_v21, %v6245_v26  ;;  %v6250_v25 = vor.u32 %v6249_v47, %v6248_v38 }
 0x338   :  { %v6102_v20 = vsel %vm12604_vm14, %v12394_v10, %v6099_v53  ;;  %v6253_v40 = vor.u32 %v6252_v33, %v6251_v55  ;;  %vm6254_vm6 = vcmp.lt.s32.totalorder %v6235_v1, 1  ;;  %vm6120_vm10 = vcmp.lt.s32.totalorder %v12482_v11, 0 }
 0x339   :  { %9118 = vcosq.f32 %v6102_v20  ;;  %v8725_v41 = vmin.u32 %v6184_v22, %v12691_v54  ;;  %vm6429_vm12 = vcmp.eq.s32.totalorder %v12662_v56, 2  ;;  %v12709_v61 = vand.u32 3, %v12644_v62 }
 0x33a   :  { %9120 = vsinq.f32 %v6102_v20  ;;  %v6174_v12 = vadd.s32 %v12630_v63, %v12640_v15  ;;  %vm6256_vm7 = vcmp.lt.s32.totalorder %v6235_v1, 3  ;;  %vm6257_vm13 = vcmp.lt.s32.totalorder %v6235_v1, 4 }
 0x33b   :  { %vm6113_vm14 = vcmp.eq.s32.totalorder %v12668_v3, 2  ;;  %v6186_v58 = vclz %v8725_v41  ;;  %vm6255_vm1 = vcmp.lt.s32.totalorder %v6235_v1, 2  ;;  %v6258_v23 = vsel %vm6254_vm6, %v6238_v18, %v6241_v4 }
 0x33c   :  { %v6262_v16 = vsel %vm6254_vm6, %v6241_v4, %v6244_v8  ;;  %vm6110_vm11 = vcmp.eq.s32.totalorder %v12668_v3, 0  ;;  %vm12719_vm3 = vcmp.le.f32.partialorder %v6118_v14, 0.7853982  ;;  %v6259_v19 = vsel %vm6257_vm13, %v6247_v2, 2102212464 }
 0x33d   :  { %v6263_v63 = vsel %vm6257_vm13, %v6250_v25, 920167782  ;;  %v6266_v15 = vsel %vm6254_vm6, %v6244_v8, %v6247_v2  ;;  %v6267_v37 = vsel %vm6257_vm13, %v6253_v40, 1326507024  ;;  %vm6109_vm2 = vcmp.lt.s32.totalorder %v12668_v3, 2 }
 0x33e   :  { %v8726_v49 = vadd.s32 4294967294, %v6186_v58  ;;  %v6260_v44 = vsel %vm6256_vm7, %v6244_v8, %v6259_v19  ;;  %v6264_v46 = vsel %vm6256_vm7, %v6247_v2, %v6263_v63  ;;  %v6268_v35 = vsel %vm6256_vm7, %v6250_v25, %v6267_v37 }
 0x33f   :  { %vm6106_vm0 = vweird.f32 %v12394_v10  ;;  %v6204_v14 = vsub.s32 4, %v12673_v24  ;;  %v6265_v31 = vsel %vm6255_vm1, %v6262_v16, %v6264_v46  ;;  %v6269_v7 = vsel %vm6255_vm1, %v6266_v15, %v6268_v35 }
 0x340   :  { %v6428_v17 = vsel %vm6426_vm9, %v12656_v52, %v6007_v45  ;;  %vm8727_vm4 = vcmp.lt.s32.totalorder %v8726_v49, 0  ;;  %v6261_v5 = vsel %vm6255_vm1, %v6258_v23, %v6260_v44  ;;  %v6431_v21 = vsel %vm6429_vm12, %v6010_v48, %v12658_v60  ;;  %v12764_v52 = vld [vmem:[%s13757_s1] sm:$0xff] }
 0x341   :  { %v12739_v26 = vmul.u32.u64.low %v12689_v13, %v6269_v7  ;;  %v12740_v29 = vmul.u32.u64.high %v12689_v13, %v6269_v7, %v12739_v26  ;;  %v6189_v51 = vsel %vm8727_vm4, 0, %v8726_v49  ;;  %v6432_v9 = vsel %vm6425_vm5, %v6428_v17, %v6431_v21 }
 0x342   :  { %v12743_v6 = vmul.u32.u64.low %v12689_v13, %v6265_v31  ;;  %v12744_v59 = vmul.u32.u64.high %v12689_v13, %v6265_v31, %v12743_v6  ;;  %v6190_v45 = vsub.s32 32, %v6189_v51  ;;  %v6191_v1 = vshll.u32 %v12691_v54, %v6189_v51 }
 0x343   :  { %v6194_v38 = vsub.s32 4294967266, %v6189_v51  ;;  %v6205_v47 = vsel %vm6120_vm10, %v6204_v14, %v12673_v24  ;;  %v6433_v18 = vsel %vm6002_vm8, nan, %v6432_v9  ;;  %vm6532_vm15 = vcmp.eq.s32.totalorder %v12709_v61, 2  ;;  %v9119_v48 = vpop.eup %9118 }
 0x344   :  { %v12767_v60 = vmul.f32 455.22223, %v12764_v52  ;;  %v6192_v56 = vshrl.u32 %v6174_v12, %v6190_v45  ;;  %v6277_v4 = vmul.u32 %v12689_v13, %v6261_v5  ;;  %vm6279_vm9 = vc.u32 %v12740_v29, %v12743_v6  ;;  %8752 = vst [vmem:[%s13757_s1 + $0x200] sm:$0xff] %v6433_v18  ;;  %v9121_v0 = vpop.eup %9120 }
 0x345   :  { %v6195_v54 = vadd.s32 127, %v6194_v38  ;;  %v6114_v24 = vxor.u32 2147483648, %v9119_v48  ;;  %v6280_v55 = vadd.s32 1, %v12744_v59  ;;  %vm6528_vm8 = vcmp.lt.s32.totalorder %v12709_v61, 2 }
 0x346   :  { %vm6529_vm5 = vcmp.eq.s32.totalorder %v12709_v61, 0  ;;  %v6111_v33 = vxor.u32 2147483648, %v9121_v0  ;;  %v6193_v53 = vor.u32 %v6192_v56, %v6191_v1  ;;  %v6207_v13 = vsel %vm12719_vm3, 0, %v6205_v47 }
 0x347   :  { %v6196_v22 = vshll.u32 %v6195_v54, 23  ;;  %v6115_v8 = vsel %vm6113_vm14, %v6114_v24, %v9121_v0  ;;  %v6281_v2 = vsel %vm6279_vm9, %v6280_v55, %v12744_v59  ;;  %v6534_v20 = vsel %vm6532_vm15, %v6114_v24, %v9121_v0 }
 0x348   :  { %v6755_v25 = vand.u32 2139095040, %v12767_v60  ;;  %v6112_v40 = vsel %vm6110_vm11, %v9119_v48, %v6111_v33  ;;  %v6200_v12 = vcvt.s32.f32 %v6193_v53  ;;  %v6282_v58 = vadd.s32 %v6281_v2, %v6277_v4 }
 0x349   :  { %v6197_v41 = vor.u32 4788187, %v6196_v22  ;;  %v6116_v23 = vsel %vm6109_vm2, %v6112_v40, %v6115_v8  ;;  %v6531_v16 = vsel %vm6529_vm5, %v9119_v48, %v6111_v33  ;;  %v6752_v19 = vand.u32 2147483647, %v12767_v60 }
 0x34a   :  { %v6756_v63 = vshrl.u32 %v6755_v25, 23  ;;  %v6117_v15 = vsel %vm6106_vm0, nan, %v6116_v23  ;;  %v6283_v49 = vadd.s32 536870912, %v6282_v58  ;;  %v6535_v44 = vsel %vm6528_vm8, %v6531_v16, %v6534_v20 }
 0x34b   :  { %v6198_v37 = vand.u32 2147483647, %v6197_v41  ;;  %8733 = vst [vmem:[%s13757_s1 + $0x1e8] sm:$0xff] %v6117_v15  ;;  %v6211_v46 = vadd.s32 3, %v6207_v13  ;;  %v6536_v3 = vsel %vm6106_vm0, nan, %v6535_v44  ;;  %v12811_v59 = vand.u32 3, %v6207_v13 }
 0x34c   :  { %v8756_v35 = vadd.s32 4294967169, %v6756_v63  ;;  %v6284_v31 = vshrl.u32 %v6283_v49, 30  ;;  %8753 = vst [vmem:[%s13757_s1 + $0x208] sm:$0xff] %v6536_v3  ;;  %v6759_v61 = vand.u32 8388607, %v6752_v19  ;;  %v6278_v56 = vadd.s32 %v12743_v6, %v12740_v29 }
 0x34d   :  { %v6201_v14 = vmul.f32 %v6200_v12, %v6198_v37  ;;  %v12805_v26 = vand.u32 3, %v6211_v46  ;;  %v12818_v47 = vmul.f32 455.22223, %v12391_v57  ;;  %vm6635_vm7 = vcmp.eq.s32.totalorder %v12811_v59, 2 }
 0x34e   :  { %v6762_v7 = vadd.s32 1, %v8756_v35  ;;  %v6285_v5 = vshll.u32 %v6284_v31, 30  ;;  %v6760_v9 = vor.u32 8388608, %v6759_v61  ;;  %v6308_v18 = vsub.s32 4, %v6284_v31 }
 0x34f   :  { %v6202_v17 = vxor.u32 2147483648, %v6201_v14  ;;  %vm6217_vm12 = vcmp.eq.s32.totalorder %v12805_v26, 2  ;;  %v12827_v54 = vmul.f32 455.22223, %v12479_v42  ;;  %vm6214_vm13 = vcmp.eq.s32.totalorder %v12805_v26, 0 }
 0x350   :  { %vm6763_vm6 = vcmp.gt.s32.totalorder %v6762_v7, 0  ;;  %v12809_v51 = vsub.s32 %v6282_v58, %v6285_v5  ;;  %vm6632_vm14 = vcmp.eq.s32.totalorder %v12811_v59, 0  ;;  %vm6213_vm1 = vcmp.lt.s32.totalorder %v12805_v26, 2 }
 0x351   :  { %v6203_v10 = vsel %vm6120_vm10, %v6202_v17, %v6201_v14  ;;  %v6764_v21 = vsel %vm6763_vm6, %v6762_v7, 0  ;;  %vm6224_vm10 = vcmp.lt.s32.totalorder %v12579_v50, 0  ;;  %vm6631_vm11 = vcmp.lt.s32.totalorder %v12811_v59, 2 }
 0x352   :  { %v6206_v45 = vsel %vm12719_vm3, %v12482_v11, %v6203_v10  ;;  %v6766_v1 = vand.u32 31, %v6764_v21  ;;  %v6288_v38 = vsub.s32 0, %v12809_v51  ;;  %v12837_v6 = vshrl.u32 %v6764_v21, 5 }
 0x353   :  { %9122 = vcosq.f32 %v6206_v45  ;;  %v12839_v42 = vshll.u32 %v6760_v9, 8  ;;  %v6859_v55 = vand.u32 2139095040, %v12818_v47  ;;  %vm6210_vm3 = vweird.f32 %v12482_v11 }
 0x354   :  { %9124 = vsinq.f32 %v6206_v45  ;;  %v6767_v48 = vsub.s32 32, %v6766_v1  ;;  %v8729_v62 = vmin.u32 %v6288_v38, %v12809_v51  ;;  %v6769_v57 = vshll.u32 %v9181_v28, %v6766_v1 }
 0x355   :  { %v6772_v0 = vshll.u32 %v9182_v30, %v6766_v1  ;;  %v6309_v33 = vsel %vm6224_vm10, %v6308_v18, %v6284_v31  ;;  %v6775_v22 = vshll.u32 %v9183_v32, %v6766_v1  ;;  %v6778_v2 = vshll.u32 %v9184_v34, %v6766_v1 }
 0x356   :  { %v6770_v4 = vshrl.u32 %v9182_v30, %v6767_v48  ;;  %v6773_v24 = vshrl.u32 %v9183_v32, %v6767_v48  ;;  %v6290_v29 = vclz %v8729_v62  ;;  %v6768_v53 = vshrl.u32 %v9181_v28, %v6767_v48 }
 0x357   :  { %v6776_v13 = vshrl.u32 %v9184_v34, %v6767_v48  ;;  %v6779_v20 = vshrl.u32 %v9185_v36, %v6767_v48  ;;  %v6781_v25 = vshll.u32 %v9185_v36, %v6766_v1  ;;  %v6782_v58 = vshrl.u32 %v9186_v43, %v6767_v48 }
 0x358   :  { %v8730_v8 = vadd.s32 4294967294, %v6290_v29  ;;  %v6771_v40 = vor.u32 %v6770_v4, %v6769_v57  ;;  %v6774_v41 = vor.u32 %v6773_v24, %v6772_v0  ;;  %vm12854_vm2 = vcmp.le.f32.partialorder %v6222_v27, 0.7853982 }
 0x359   :  { %v6777_v12 = vor.u32 %v6776_v13, %v6775_v22  ;;  %v6780_v16 = vor.u32 %v6779_v20, %v6778_v2  ;;  %vm6784_vm4 = vcmp.lt.s32.totalorder %v12837_v6, 1  ;;  %vm6787_vm15 = vcmp.lt.s32.totalorder %v12837_v6, 4 }
 0x35a   :  { %vm8731_vm0 = vcmp.lt.s32.totalorder %v8730_v8, 0  ;;  %v6783_v15 = vor.u32 %v6782_v58, %v6781_v25  ;;  %vm6785_vm9 = vcmp.lt.s32.totalorder %v12837_v6, 2  ;;  %vm6786_vm8 = vcmp.lt.s32.totalorder %v12837_v6, 3 }
 0x35b   :  { %v6293_v63 = vsel %vm8731_vm0, 0, %v8730_v8  ;;  %v6789_v46 = vsel %vm6787_vm15, %v6777_v12, 2102212464  ;;  %v6788_v14 = vsel %vm6784_vm4, %v6768_v53, %v6771_v40  ;;  %v6792_v31 = vsel %vm6784_vm4, %v6771_v40, %v6774_v41 }
 0x35c   :  { %v6294_v49 = vsub.s32 32, %v6293_v63  ;;  %v6295_v44 = vshll.u32 %v12809_v51, %v6293_v63  ;;  %v6298_v27 = vsub.s32 4294967266, %v6293_v63  ;;  %v6793_v7 = vsel %vm6787_vm15, %v6780_v16, 920167782 }
 0x35d   :  { %v9123_v37 = vpop.eup %9122  ;;  %v6794_v10 = vsel %vm6786_vm8, %v6777_v12, %v6793_v7  ;;  %v6790_v45 = vsel %vm6786_vm8, %v6774_v41, %v6789_v46  ;;  %v6796_v57 = vsel %vm6784_vm4, %v6774_v41, %v6777_v12  ;;  %v6797_v4 = vsel %vm6787_vm15, %v6783_v15, 1326507024 }
 0x35e   :  { %v9125_v3 = vpop.eup %9124  ;;  %v6218_v35 = vxor.u32 2147483648, %v9123_v37  ;;  %v6296_v5 = vshrl.u32 %v6278_v56, %v6294_v49  ;;  %v6299_v61 = vadd.s32 127, %v6298_v27  ;;  %v6795_v1 = vsel %vm6785_vm9, %v6792_v31, %v6794_v10 }
 0x35f   :  { %v6215_v17 = vxor.u32 2147483648, %v9125_v3  ;;  %v6311_v26 = vsel %vm12854_vm2, 0, %v6309_v33  ;;  %v6798_v59 = vsel %vm6786_vm8, %v6780_v16, %v6797_v4  ;;  %v6791_v8 = vsel %vm6785_vm9, %v6788_v14, %v6790_v45 }
 0x360   :  { %v6219_v51 = vsel %vm6217_vm12, %v6218_v35, %v9125_v3  ;;  %v6637_v21 = vsel %vm6635_vm7, %v6218_v35, %v9125_v3  ;;  %v6297_v9 = vor.u32 %v6296_v5, %v6295_v44  ;;  %v6300_v18 = vshll.u32 %v6299_v61, 23 }
 0x361   :  { %v6216_v38 = vsel %vm6214_vm13, %v9123_v37, %v6215_v17  ;;  %v6634_v48 = vsel %vm6632_vm14, %v9123_v37, %v6215_v17  ;;  %v12908_v22 = vmul.u32.u64.low %v12839_v42, %v6795_v1  ;;  %v12909_v13 = vmul.u32.u64.high %v12839_v42, %v6795_v1, %v12908_v22 }
 0x362   :  { %v6220_v56 = vsel %vm6213_vm1, %v6216_v38, %v6219_v51  ;;  %v6638_v62 = vsel %vm6631_vm11, %v6634_v48, %v6637_v21  ;;  %v6301_v24 = vor.u32 4788187, %v6300_v18  ;;  %v6304_v29 = vcvt.s32.f32 %v6297_v9 }
 0x363   :  { %v6221_v0 = vsel %vm6210_vm3, nan, %v6220_v56  ;;  %v6639_v53 = vsel %vm6210_vm3, nan, %v6638_v62  ;;  %v6799_v2 = vsel %vm6785_vm9, %v6796_v57, %v6798_v59  ;;  %v6860_v20 = vshrl.u32 %v6859_v55, 23 }
 0x364   :  { %8734 = vst [vmem:[%s13757_s1 + $0x1f0] sm:$0xff] %v6221_v0  ;;  %8754 = vst [vmem:[%s13757_s1 + $0x210] sm:$0xff] %v6639_v53  ;;  %v6302_v11 = vand.u32 2147483647, %v6301_v24  ;;  %v12916_v33 = vmul.u32.u64.low %v12839_v42, %v6799_v2  ;;  %v12917_v25 = vmul.u32.u64.high %v12839_v42, %v6799_v2, %v12916_v33  ;;  %v6856_v40 = vand.u32 2147483647, %v12818_v47 }
 0x365   :  { %v8760_v12 = vadd.s32 4294967169, %v6860_v20  ;;  %v6963_v58 = vand.u32 2139095040, %v12827_v54  ;;  %v6315_v16 = vadd.s32 3, %v6311_v26  ;;  %v6807_v63 = vmul.u32 %v12839_v42, %v6791_v8 }
 0x366   :  { %v6305_v41 = vmul.f32 %v6304_v29, %v6302_v11  ;;  %v6810_v15 = vadd.s32 1, %v12909_v13  ;;  %v12923_v6 = vand.u32 3, %v6311_v26  ;;  %vm6809_vm5 = vc.u32 %v12917_v25, %v12908_v22 }
 0x367   :  { %v6866_v49 = vadd.s32 1, %v8760_v12  ;;  %v6863_v55 = vand.u32 8388607, %v6856_v40  ;;  %v6960_v44 = vand.u32 2147483647, %v12827_v54  ;;  %v6964_v42 = vshrl.u32 %v6963_v58, 23 }
 0x368   :  { %v6306_v37 = vxor.u32 2147483648, %v6305_v41  ;;  %v6811_v46 = vsel %vm6809_vm5, %v6810_v15, %v12909_v13  ;;  %v12935_v35 = vand.u32 3, %v6315_v16  ;;  %vm6735_vm7 = vcmp.eq.s32.totalorder %v12923_v6, 0 }
 0x369   :  { %vm6867_vm6 = vcmp.gt.s32.totalorder %v6866_v49, 0  ;;  %v6812_v14 = vadd.s32 %v6811_v46, %v6807_v63  ;;  %v6864_v5 = vor.u32 8388608, %v6863_v55  ;;  %v12939_v61 = vand.u32 8388607, %v6960_v44 }
 0x36a   :  { %v6307_v27 = vsel %vm6224_vm10, %v6306_v37, %v6305_v41  ;;  %v6868_v31 = vsel %vm6867_vm6, %v6866_v49, 0  ;;  %vm6738_vm10 = vcmp.eq.s32.totalorder %v12923_v6, 2  ;;  %v8764_v21 = vadd.s32 4294967169, %v6964_v42 }
 0x36b   :  { %v6310_v3 = vsel %vm12854_vm2, %v12579_v50, %v6307_v27  ;;  %v6870_v7 = vand.u32 31, %v6868_v31  ;;  %v6813_v17 = vadd.s32 536870912, %v6812_v14  ;;  %v12942_v10 = vshrl.u32 %v6868_v31, 5 }
 0x36c   :  { %9126 = vcosq.f32 %v6310_v3  ;;  %vm6318_vm12 = vcmp.eq.s32.totalorder %v12935_v35, 0  ;;  %vm6317_vm13 = vcmp.lt.s32.totalorder %v12935_v35, 2  ;;  %vm6734_vm14 = vcmp.lt.s32.totalorder %v12923_v6, 2 }
 0x36d   :  { %9128 = vsinq.f32 %v6310_v3  ;;  %v6871_v51 = vsub.s32 32, %v6870_v7  ;;  %v6873_v23 = vshll.u32 %v9181_v28, %v6870_v7  ;;  %v6814_v45 = vshrl.u32 %v6813_v17, 30 }
 0x36e   :  { %v6879_v1 = vshll.u32 %v9183_v32, %v6870_v7  ;;  %v6882_v38 = vshll.u32 %v9184_v34, %v6870_v7  ;;  %v6885_v9 = vshll.u32 %v9185_v36, %v6870_v7  ;;  %v6876_v48 = vshll.u32 %v9182_v30, %v6870_v7 }
 0x36f   :  { %v6874_v18 = vshrl.u32 %v9182_v30, %v6871_v51  ;;  %v6877_v56 = vshrl.u32 %v9183_v32, %v6871_v51  ;;  %v6880_v62 = vshrl.u32 %v9184_v34, %v6871_v51  ;;  %vm6314_vm1 = vweird.f32 %v12579_v50 }
 0x370   :  { %vm6321_vm11 = vcmp.eq.s32.totalorder %v12935_v35, 2  ;;  %vm6754_vm3 = vcmp.lt.s32.totalorder %v12767_v60, 0  ;;  %v6815_v57 = vshll.u32 %v6814_v45, 30  ;;  %v6883_v4 = vshrl.u32 %v9185_v36, %v6871_v51 }
 0x371   :  { %v6886_v0 = vshrl.u32 %v9186_v43, %v6871_v51  ;;  %v12962_v24 = vadd.s32 %v12908_v22, %v12917_v25  ;;  %v6872_v29 = vshrl.u32 %v9181_v28, %v6871_v51  ;;  %v12965_v53 = vshll.u32 %v6864_v5, 8 }
 0x372   :  { %v6968_v26 = vor.u32 8388608, %v12939_v61  ;;  %v12968_v59 = vsub.s32 %v6812_v14, %v6815_v57  ;;  %v6881_v13 = vor.u32 %v6880_v62, %v6879_v1  ;;  %v6884_v11 = vor.u32 %v6883_v4, %v6882_v38 }
 0x373   :  { %v6887_v8 = vor.u32 %v6886_v0, %v6885_v9  ;;  %v6875_v2 = vor.u32 %v6874_v18, %v6873_v23  ;;  %v6878_v20 = vor.u32 %v6877_v56, %v6876_v48  ;;  %vm6891_vm2 = vcmp.lt.s32.totalorder %v12942_v10, 4 }
 0x374   :  { %v6970_v33 = vadd.s32 1, %v8764_v21  ;;  %v6818_v41 = vsub.s32 0, %v12968_v59  ;;  %vm6888_vm0 = vcmp.lt.s32.totalorder %v12942_v10, 1  ;;  %vm6890_vm4 = vcmp.lt.s32.totalorder %v12942_v10, 3 }
 0x375   :  { %v6893_v22 = vsel %vm6891_vm2, %v6881_v13, 2102212464  ;;  %v6838_v12 = vsub.s32 4, %v6814_v45  ;;  %vm6889_vm15 = vcmp.lt.s32.totalorder %v12942_v10, 2  ;;  %v6897_v58 = vsel %vm6891_vm2, %v6884_v11, 920167782 }
 0x376   :  { %v9127_v25 = vpop.eup %9126  ;;  %v6901_v16 = vsel %vm6891_vm2, %v6887_v8, 1326507024  ;;  %vm12977_vm9 = vcmp.le.f32.partialorder %v6752_v19, 0.7853982  ;;  %v8757_v49 = vmin.u32 %v6818_v41, %v12968_v59  ;;  %v6892_v55 = vsel %vm6888_vm0, %v6872_v29, %v6875_v2 }
 0x377   :  { %v9129_v63 = vpop.eup %9128  ;;  %v6322_v15 = vxor.u32 2147483648, %v9127_v25  ;;  %v6894_v27 = vsel %vm6890_vm4, %v6878_v20, %v6893_v22  ;;  %v6896_v42 = vsel %vm6888_vm0, %v6875_v2, %v6878_v20  ;;  %v6898_v3 = vsel %vm6890_vm4, %v6881_v13, %v6897_v58 }
 0x378   :  { %v6319_v46 = vxor.u32 2147483648, %v9129_v63  ;;  %v6900_v19 = vsel %vm6888_vm0, %v6878_v20, %v6881_v13  ;;  %v6820_v7 = vclz %v8757_v49  ;;  %v6902_v17 = vsel %vm6890_vm4, %v6884_v11, %v6901_v16 }
 0x379   :  { %v6323_v14 = vsel %vm6321_vm11, %v6322_v15, %v9129_v63  ;;  %v6740_v31 = vsel %vm6738_vm10, %v6322_v15, %v9129_v63  ;;  %v6839_v51 = vsel %vm6754_vm3, %v6838_v12, %v6814_v45  ;;  %v6895_v23 = vsel %vm6889_vm15, %v6892_v55, %v6894_v27 }
 0x37a   :  { %v6320_v5 = vsel %vm6318_vm12, %v9127_v25, %v6319_v46  ;;  %v6737_v61 = vsel %vm6735_vm7, %v9127_v25, %v6319_v46  ;;  %v8758_v38 = vadd.s32 4294967294, %v6820_v7  ;;  %v6899_v9 = vsel %vm6889_vm15, %v6896_v42, %v6898_v3 }
 0x37b   :  { %v6324_v21 = vsel %vm6317_vm13, %v6320_v5, %v6323_v14  ;;  %v6741_v1 = vsel %vm6734_vm14, %v6737_v61, %v6740_v31  ;;  %v6903_v45 = vsel %vm6889_vm15, %v6900_v19, %v6902_v17  ;;  %vm6971_vm8 = vcmp.gt.s32.totalorder %v6970_v33, 0 }
 0x37c   :  { %v6325_v18 = vsel %vm6314_vm1, nan, %v6324_v21  ;;  %v6742_v48 = vsel %vm6314_vm1, nan, %v6741_v1  ;;  %vm8759_vm5 = vcmp.lt.s32.totalorder %v8758_v38, 0  ;;  %v6972_v56 = vsel %vm6971_vm8, %v6970_v33, 0 }
 0x37d   :  { %8735 = vst [vmem:[%s13757_s1 + $0x1f8] sm:$0xff] %v6325_v18  ;;  %8755 = vst [vmem:[%s13757_s1 + $0x218] sm:$0xff] %v6742_v48  ;;  %v13025_v6 = vmul.u32.u64.low %v12965_v53, %v6903_v45  ;;  %v13026_v35 = vmul.u32.u64.high %v12965_v53, %v6903_v45, %v13025_v6  ;;  %v6823_v50 = vsel %vm8759_vm5, 0, %v8758_v38  ;;  %v13033_v57 = vshrl.u32 %v6972_v56, 5 }
 0x37e   :  { %v13029_v62 = vmul.u32.u64.low %v12965_v53, %v6899_v9  ;;  %v13030_v10 = vmul.u32.u64.high %v12965_v53, %v6899_v9, %v13029_v62  ;;  %v6824_v4 = vsub.s32 32, %v6823_v50  ;;  %v6825_v0 = vshll.u32 %v12968_v59, %v6823_v50 }
 0x37f   :  { %v6828_v29 = vsub.s32 4294967266, %v6823_v50  ;;  %v6974_v13 = vand.u32 31, %v6972_v56  ;;  %v13038_v11 = vsel %vm12977_vm9, 0, %v6839_v51  ;;  %v6911_v8 = vmul.u32 %v12965_v53, %v6895_v23 }
 0x380   :  { %v13041_v2 = vshll.u32 %v6968_v26, 8  ;;  %v13044_v20 = vmul.f32 455.22223, %v12576_v39  ;;  %v6826_v33 = vshrl.u32 %v12962_v24, %v6824_v4  ;;  %vm6913_vm6 = vc.u32 %v13026_v35, %v13029_v62 }
 0x381   :  { %v6829_v41 = vadd.s32 127, %v6828_v29  ;;  %vm6995_vm10 = vcmp.lt.s32.totalorder %v13033_v57, 4  ;;  %v6914_v59 = vadd.s32 1, %v13030_v10  ;;  %v6975_v22 = vsub.s32 32, %v6974_v13 }
 0x382   :  { %v6977_v25 = vshll.u32 %v9181_v28, %v6974_v13  ;;  %v6980_v53 = vshll.u32 %v9182_v30, %v6974_v13  ;;  %v6827_v26 = vor.u32 %v6826_v33, %v6825_v0  ;;  %v6983_v39 = vshll.u32 %v9183_v32, %v6974_v13 }
 0x383   :  { %v6830_v12 = vshll.u32 %v6829_v41, 23  ;;  %v6986_v58 = vshll.u32 %v9184_v34, %v6974_v13  ;;  %v6915_v24 = vsel %vm6913_vm6, %v6914_v59, %v13030_v10  ;;  %v6976_v16 = vshrl.u32 %v9181_v28, %v6975_v22 }
 0x384   :  { %v6978_v63 = vshrl.u32 %v9182_v30, %v6975_v22  ;;  %v6981_v15 = vshrl.u32 %v9183_v32, %v6975_v22  ;;  %v6834_v55 = vcvt.s32.f32 %v6827_v26  ;;  %v6916_v27 = vadd.s32 %v6915_v24, %v6911_v8 }
 0x385   :  { %v6831_v49 = vor.u32 4788187, %v6830_v12  ;;  %v6984_v46 = vshrl.u32 %v9184_v34, %v6975_v22  ;;  %v6987_v19 = vshrl.u32 %v9185_v36, %v6975_v22  ;;  %v6989_v14 = vshll.u32 %v9185_v36, %v6974_v13 }
 0x386   :  { %v6979_v42 = vor.u32 %v6978_v63, %v6977_v25  ;;  %v6982_v3 = vor.u32 %v6981_v15, %v6980_v53  ;;  %vm6858_vm12 = vcmp.lt.s32.totalorder %v12818_v47, 0  ;;  %v6917_v7 = vadd.s32 536870912, %v6916_v27 }
 0x387   :  { %v6832_v31 = vand.u32 2147483647, %v6831_v49  ;;  %v6985_v17 = vor.u32 %v6984_v46, %v6983_v39  ;;  %v6990_v5 = vshrl.u32 %v9186_v43, %v6975_v22  ;;  %v6988_v61 = vor.u32 %v6987_v19, %v6986_v58 }
 0x388   :  { %vm6992_vm7 = vcmp.lt.s32.totalorder %v13033_v57, 1  ;;  %vm6994_vm13 = vcmp.lt.s32.totalorder %v13033_v57, 3  ;;  %v7067_v51 = vand.u32 2139095040, %v13044_v20  ;;  %v6918_v21 = vshrl.u32 %v6917_v7, 30 }
 0x389   :  { %v6835_v23 = vmul.f32 %v6834_v55, %v6832_v31  ;;  %v6991_v1 = vor.u32 %v6990_v5, %v6989_v14  ;;  %v6997_v38 = vsel %vm6995_vm10, %v6985_v17, 2102212464  ;;  %vm6993_vm14 = vcmp.lt.s32.totalorder %v13033_v57, 2 }
 0x38a   :  { %v6996_v9 = vsel %vm6992_vm7, %v6976_v16, %v6979_v42  ;;  %v7001_v18 = vsel %vm6995_vm10, %v6988_v61, 920167782  ;;  %v7068_v48 = vshrl.u32 %v7067_v51, 23  ;;  %v6919_v6 = vshll.u32 %v6918_v21, 30 }
 0x38b   :  { %v6836_v45 = vxor.u32 2147483648, %v6835_v23  ;;  %v6998_v56 = vsel %vm6994_vm13, %v6982_v3, %v6997_v38  ;;  %v7000_v50 = vsel %vm6992_vm7, %v6979_v42, %v6982_v3  ;;  %v6942_v10 = vsub.s32 4, %v6918_v21 }
 0x38c   :  { %v7002_v4 = vsel %vm6994_vm13, %v6985_v17, %v7001_v18  ;;  %v7004_v0 = vsel %vm6992_vm7, %v6982_v3, %v6985_v17  ;;  %v7005_v29 = vsel %vm6995_vm10, %v6991_v1, 1326507024  ;;  %v6845_v8 = vadd.s32 3, %v13038_v11 }
 0x38d   :  { %v6837_v13 = vsel %vm6754_vm3, %v6836_v45, %v6835_v23  ;;  %v13087_v33 = vsub.s32 %v6916_v27, %v6919_v6  ;;  %v7064_v41 = vand.u32 2147483647, %v13044_v20  ;;  %v7003_v22 = vsel %vm6993_vm14, %v7000_v50, %v7002_v4 }
 0x38e   :  { %v6840_v59 = vsel %vm12977_vm9, %v12767_v60, %v6837_v13  ;;  %v7006_v25 = vsel %vm6994_vm13, %v6988_v61, %v7005_v29  ;;  %v8768_v53 = vadd.s32 4294967169, %v7068_v48  ;;  %v6999_v12 = vsel %vm6993_vm14, %v6996_v9, %v6998_v56 }
 0x38f   :  { %9130 = vcosq.f32 %v6840_v59  ;;  %v6922_v26 = vsub.s32 0, %v13087_v33  ;;  %v7007_v39 = vsel %vm6993_vm14, %v7004_v0, %v7006_v25  ;;  %v6943_v37 = vsel %vm6858_vm12, %v6942_v10, %v6918_v21 }
 0x390   :  { %9132 = vsinq.f32 %v6840_v59  ;;  %v13105_v58 = vmul.u32.u64.low %v13041_v2, %v7007_v39  ;;  %v13106_v24 = vmul.u32.u64.high %v13041_v2, %v7007_v39, %v13105_v58  ;;  %v7071_v49 = vand.u32 8388607, %v7064_v41 }
 0x391   :  { %v8761_v16 = vmin.u32 %v6922_v26, %v13087_v33  ;;  %v13110_v63 = vmul.u32.u64.low %v13041_v2, %v7003_v22  ;;  %v13111_v15 = vmul.u32.u64.high %v13041_v2, %v7003_v22, %v13110_v63  ;;  %v6846_v55 = vand.u32 3, %v6845_v8 }
 0x392   :  { %v7074_v57 = vadd.s32 1, %v8768_v53  ;;  %vm13117_vm1 = vcmp.le.f32.partialorder %v6856_v40, 0.7853982  ;;  %vm6844_vm11 = vweird.f32 %v12767_v60  ;;  %v7015_v3 = vmul.u32 %v13041_v2, %v6999_v12 }
 0x393   :  { %v6924_v46 = vclz %v8761_v16  ;;  %v13124_v42 = vsel %vm13117_vm1, 0, %v6943_v37  ;;  %vm7017_vm3 = vc.u32 %v13106_v24, %v13110_v63  ;;  %v7018_v14 = vadd.s32 1, %v13111_v15 }
 0x394   :  { %vm7075_vm2 = vcmp.gt.s32.totalorder %v7074_v57, 0  ;;  %v7072_v31 = vor.u32 8388608, %v7071_v49  ;;  %vm6847_vm0 = vcmp.lt.s32.totalorder %v6846_v55, 2  ;;  %vm6848_vm4 = vcmp.eq.s32.totalorder %v6846_v55, 0 }
 0x395   :  { %v8762_v19 = vadd.s32 4294967294, %v6924_v46  ;;  %v7076_v40 = vsel %vm7075_vm2, %v7074_v57, 0  ;;  %v13130_v17 = vmul.f32 512.0, %v12764_v52  ;;  %vm6851_vm15 = vcmp.eq.s32.totalorder %v6846_v55, 2 }
 0x396   :  { %v7078_v7 = vand.u32 31, %v7076_v40  ;;  %v6912_v5 = vadd.s32 %v13029_v62, %v13026_v35  ;;  %v7019_v2 = vsel %vm7017_vm3, %v7018_v14, %v13111_v15  ;;  %v13136_v51 = vadd.s32 3, %v13124_v42 }
 0x397   :  { %vm8763_vm9 = vcmp.lt.s32.totalorder %v8762_v19, 0  ;;  %v7020_v23 = vadd.s32 %v7019_v2, %v7015_v3  ;;  %v13141_v18 = vshll.u32 %v7072_v31, 8  ;;  %v13146_v45 = vshrl.u32 %v7076_v40, 5 }
 0x398   :  { %v6927_v61 = vsel %vm8763_vm9, 0, %v8762_v19  ;;  %v7079_v21 = vsub.s32 32, %v7078_v7  ;;  %v13149_v6 = vand.u32 3, %v13038_v11  ;;  %v7081_v4 = vshll.u32 %v9181_v28, %v7078_v7 }
 0x399   :  { %v13138_v1 = vpop.eup %9130  ;;  %v6928_v38 = vsub.s32 32, %v6927_v61  ;;  %v6929_v9 = vshll.u32 %v13087_v33, %v6927_v61  ;;  %v6932_v52 = vsub.s32 4294967266, %v6927_v61  ;;  %v7021_v62 = vadd.s32 536870912, %v7020_v23 }
 0x39a   :  { %v13143_v48 = vpop.eup %9132  ;;  %v6852_v35 = vxor.u32 2147483648, %v13138_v1  ;;  %v7082_v13 = vshrl.u32 %v9182_v30, %v7079_v21  ;;  %v7084_v8 = vshll.u32 %v9182_v30, %v7078_v7  ;;  %v7085_v22 = vshrl.u32 %v9183_v32, %v7079_v21 }
 0x39b   :  { %v6849_v56 = vxor.u32 2147483648, %v13143_v48  ;;  %v6930_v50 = vshrl.u32 %v6912_v5, %v6928_v38  ;;  %v6933_v10 = vadd.s32 127, %v6932_v52  ;;  %v13157_v29 = vshrl.u32 %v7021_v62, 30 }
 0x39c   :  { %v6853_v0 = vsel %vm6851_vm15, %v6852_v35, %v13143_v48  ;;  %v7087_v26 = vshll.u32 %v9183_v32, %v7078_v7  ;;  %v7088_v12 = vshrl.u32 %v9184_v34, %v7079_v21  ;;  %v7090_v16 = vshll.u32 %v9184_v34, %v7078_v7 }
 0x39d   :  { %v6850_v11 = vsel %vm6848_vm4, %v13138_v1, %v6849_v56  ;;  %v6931_v33 = vor.u32 %v6930_v50, %v6929_v9  ;;  %v6934_v59 = vshll.u32 %v6933_v10, 23  ;;  %v7023_v53 = vshll.u32 %v13157_v29, 30 }
 0x39e   :  { %v6854_v25 = vsel %vm6847_vm0, %v6850_v11, %v6853_v0  ;;  %v7016_v15 = vadd.s32 %v13110_v63, %v13106_v24  ;;  %v7083_v55 = vor.u32 %v7082_v13, %v7081_v4  ;;  %v7091_v57 = vshrl.u32 %v9185_v36, %v7079_v21 }
 0x39f   :  { %v6855_v39 = vsel %vm6844_vm11, nan, %v6854_v25  ;;  %v6935_v37 = vor.u32 4788187, %v6934_v59  ;;  %v6938_v58 = vcvt.s32.f32 %v6931_v33  ;;  %v13177_v49 = vsub.s32 %v7020_v23, %v7023_v53 }
 0x3a0   :  { %8772 = vst [vmem:[%s13757_s1 + $0x220] sm:$0xff] %v6855_v39  ;;  %v7086_v3 = vor.u32 %v7085_v22, %v7084_v8  ;;  %v7093_v19 = vshll.u32 %v9185_v36, %v7078_v7  ;;  %v7094_v14 = vshrl.u32 %v9186_v43, %v7079_v21  ;;  %v7092_v40 = vor.u32 %v7091_v57, %v7090_v16 }
 0x3a1   :  { %v6936_v46 = vand.u32 2147483647, %v6935_v37  ;;  %v7026_v31 = vsub.s32 0, %v13177_v49  ;;  %vm7096_vm8 = vcmp.lt.s32.totalorder %v13146_v45, 1  ;;  %vm7267_vm5 = vcmp.lt.s32.totalorder %v13149_v6, 2 }
 0x3a2   :  { %v7080_v24 = vshrl.u32 %v9181_v28, %v7079_v21  ;;  %v7089_v63 = vor.u32 %v7088_v12, %v7087_v26  ;;  %v7095_v2 = vor.u32 %v7094_v14, %v7093_v19  ;;  %vm7097_vm6 = vcmp.lt.s32.totalorder %v13146_v45, 2 }
 0x3a3   :  { %v6939_v5 = vmul.f32 %v6938_v58, %v6936_v46  ;;  %v8765_v61 = vmin.u32 %v7026_v31, %v13177_v49  ;;  %vm7098_vm10 = vcmp.lt.s32.totalorder %v13146_v45, 3  ;;  %vm7099_vm7 = vcmp.lt.s32.totalorder %v13146_v45, 4 }
 0x3a4   :  { %v7101_v23 = vsel %vm7099_vm7, %v7089_v63, 2102212464  ;;  %v7104_v38 = vsel %vm7096_vm8, %v7083_v55, %v7086_v3  ;;  %v7105_v21 = vsel %vm7099_vm7, %v7092_v40, 920167782  ;;  %v7046_v52 = vsub.s32 4, %v13157_v29 }
 0x3a5   :  { %v6940_v7 = vxor.u32 2147483648, %v6939_v5  ;;  %v7028_v9 = vclz %v8765_v61  ;;  %vm7268_vm13 = vcmp.eq.s32.totalorder %v13149_v6, 0  ;;  %vm7271_vm14 = vcmp.eq.s32.totalorder %v13149_v6, 2 }
 0x3a6   :  { %v7100_v50 = vsel %vm7096_vm8, %v7080_v24, %v7083_v55  ;;  %v7102_v10 = vsel %vm7098_vm10, %v7086_v3, %v7101_v23  ;;  %v7106_v4 = vsel %vm7098_vm10, %v7089_v63, %v7105_v21  ;;  %v7108_v11 = vsel %vm7096_vm8, %v7086_v3, %v7089_v63 }
 0x3a7   :  { %v6941_v62 = vsel %vm6858_vm12, %v6940_v7, %v6939_v5  ;;  %v8766_v13 = vadd.s32 4294967294, %v7028_v9  ;;  %v7107_v8 = vsel %vm7097_vm6, %v7104_v38, %v7106_v4  ;;  %v7109_v33 = vsel %vm7099_vm7, %v7095_v2, 1326507024 }
 0x3a8   :  { %v6944_v0 = vsel %vm13117_vm1, %v12818_v47, %v6941_v62  ;;  %v13217_v59 = vmul.u32.u64.low %v13141_v18, %v7107_v8  ;;  %v13218_v22 = vmul.u32.u64.high %v13141_v18, %v7107_v8, %v13217_v59  ;;  %v7103_v27 = vsel %vm7097_vm6, %v7100_v50, %v7102_v10 }
 0x3a9   :  { %9134 = vcosq.f32 %v6944_v0  ;;  %vm8767_vm12 = vcmp.lt.s32.totalorder %v8766_v13, 0  ;;  %v7110_v25 = vsel %vm7098_vm10, %v7092_v40, %v7109_v33  ;;  %v7270_v12 = vsel %vm7268_vm13, %v13138_v1, %v6849_v56 }
 0x3aa   :  { %9136 = vsinq.f32 %v6944_v0  ;;  %v7031_v53 = vsel %vm8767_vm12, 0, %v8766_v13  ;;  %v7111_v26 = vsel %vm7097_vm6, %v7108_v11, %v7110_v25  ;;  %v7273_v39 = vsel %vm7271_vm14, %v6852_v35, %v13143_v48 }
 0x3ab   :  { %v7032_v37 = vsub.s32 32, %v7031_v53  ;;  %v7033_v58 = vshll.u32 %v13177_v49, %v7031_v53  ;;  %v7036_v16 = vsub.s32 4294967266, %v7031_v53  ;;  %v7274_v45 = vsel %vm7267_vm5, %v7270_v12, %v7273_v39 }
 0x3ac   :  { %v6950_v55 = vand.u32 3, %v13136_v51  ;;  %v13242_v57 = vmul.u32.u64.low %v13141_v18, %v7111_v26  ;;  %v13243_v46 = vmul.u32.u64.high %v13141_v18, %v7111_v26, %v13242_v57  ;;  %v7275_v56 = vsel %vm6844_vm11, nan, %v7274_v45 }
 0x3ad   :  { %v7034_v1 = vshrl.u32 %v7016_v15, %v7032_v37  ;;  %v7037_v3 = vadd.s32 127, %v7036_v16  ;;  %v7122_v48 = vadd.s32 1, %v13218_v22  ;;  %8792 = vst [vmem:[%s13757_s1 + $0x240] sm:$0xff] %v7275_v56  ;;  %vm6962_vm1 = vcmp.lt.s32.totalorder %v12827_v54, 0  ;;  %v9178_v57 = vld [vmem:[%s13757_s1 + $0x8] sm:$0xff] }
 0x3ae   :  { %v7119_v35 = vmul.u32 %v13141_v18, %v7103_v27  ;;  %v7369_v51 = vand.u32 3, %v13124_v42  ;;  %v7597_v6 = vand.u32 2139095040, %v13130_v17  ;;  %vm6948_vm3 = vweird.f32 %v12818_v47 }
 0x3af   :  { %v7035_v60 = vor.u32 %v7034_v1, %v7033_v58  ;;  %v7038_v49 = vshll.u32 %v7037_v3, 23  ;;  %v7047_v15 = vsel %vm6962_vm1, %v7046_v52, %v13157_v29  ;;  %vm6951_vm11 = vcmp.lt.s32.totalorder %v6950_v55, 2 }
 0x3b0   :  { %vm6952_vm2 = vcmp.eq.s32.totalorder %v6950_v55, 0  ;;  %vm13261_vm0 = vcmp.le.f32.partialorder %v6960_v44, 0.7853982  ;;  %vm7121_vm4 = vc.u32 %v13243_v46, %v13217_v59  ;;  %vm6955_vm15 = vcmp.eq.s32.totalorder %v6950_v55, 2 }
 0x3b1   :  { %v7039_v42 = vor.u32 4788187, %v7038_v49  ;;  %v7042_v18 = vcvt.s32.f32 %v7035_v60  ;;  %v7123_v14 = vsel %vm7121_vm4, %v7122_v48, %v13218_v22  ;;  %v7049_v29 = vsel %vm13261_vm0, 0, %v7047_v15 }
 0x3b2   :  { %v7124_v40 = vadd.s32 %v7123_v14, %v7119_v35  ;;  %vm7374_vm9 = vcmp.eq.s32.totalorder %v7369_v51, 2  ;;  %v7598_v5 = vshrl.u32 %v7597_v6, 23  ;;  %vm7371_vm8 = vcmp.eq.s32.totalorder %v7369_v51, 0 }
 0x3b3   :  { %v9135_v31 = vpop.eup %9134  ;;  %v7040_v63 = vand.u32 2147483647, %v7039_v42  ;;  %v7594_v2 = vand.u32 2147483647, %v13130_v17  ;;  %vm7370_vm5 = vcmp.lt.s32.totalorder %v7369_v51, 2  ;;  %v7053_v9 = vadd.s32 3, %v7049_v29 }
 0x3b4   :  { %v9137_v24 = vpop.eup %9136  ;;  %v6956_v44 = vxor.u32 2147483648, %v9135_v31  ;;  %v7125_v7 = vadd.s32 536870912, %v7124_v40  ;;  %v8796_v23 = vadd.s32 4294967169, %v7598_v5  ;;  %v13295_v39 = vand.u32 3, %v7049_v29 }
 0x3b5   :  { %v6953_v61 = vxor.u32 2147483648, %v9137_v24  ;;  %v7043_v21 = vmul.f32 %v7042_v18, %v7040_v63  ;;  %v7601_v27 = vand.u32 8388607, %v7594_v2  ;;  %v13285_v53 = vand.u32 3, %v7053_v9 }
 0x3b6   :  { %v6957_v38 = vsel %vm6955_vm15, %v6956_v44, %v9137_v24  ;;  %v7376_v52 = vsel %vm7374_vm9, %v6956_v44, %v9137_v24  ;;  %v7126_v50 = vshrl.u32 %v7125_v7, 30  ;;  %v7604_v4 = vadd.s32 1, %v8796_v23 }
 0x3b7   :  { %v6954_v62 = vsel %vm6952_vm2, %v9135_v31, %v6953_v61  ;;  %v7373_v10 = vsel %vm7371_vm8, %v9135_v31, %v6953_v61  ;;  %v7044_v13 = vxor.u32 2147483648, %v7043_v21  ;;  %vm13299_vm10 = vcmp.le.f32.partialorder %v7064_v41, 0.7853982 }
 0x3b8   :  { %v6958_v0 = vsel %vm6951_vm11, %v6954_v62, %v6957_v38  ;;  %v7377_v8 = vsel %vm7370_vm5, %v7373_v10, %v7376_v52  ;;  %v7127_v33 = vshll.u32 %v7126_v50, 30  ;;  %v7150_v26 = vsub.s32 4, %v7126_v50 }
 0x3b9   :  { %v6959_v11 = vsel %vm6948_vm3, nan, %v6958_v0  ;;  %v7378_v22 = vsel %vm6948_vm3, nan, %v7377_v8  ;;  %v7045_v25 = vsel %vm6962_vm1, %v7044_v13, %v7043_v21  ;;  %vm7605_vm6 = vcmp.gt.s32.totalorder %v7604_v4, 0 }
 0x3ba   :  { %8773 = vst [vmem:[%s13757_s1 + $0x228] sm:$0xff] %v6959_v11  ;;  %8793 = vst [vmem:[%s13757_s1 + $0x248] sm:$0xff] %v7378_v22  ;;  %v7048_v47 = vsel %vm13261_vm0, %v12827_v54, %v7045_v25  ;;  %v13293_v12 = vsub.s32 %v7124_v40, %v7127_v33  ;;  %v7606_v37 = vsel %vm7605_vm6, %v7604_v4, 0  ;;  %vm7066_vm7 = vcmp.lt.s32.totalorder %v13044_v20, 0 }
 0x3bb   :  { %9138 = vcosq.f32 %v7048_v47  ;;  %v7608_v16 = vand.u32 31, %v7606_v37  ;;  %v7602_v55 = vor.u32 8388608, %v7601_v27  ;;  %v13308_v56 = vmul.f32 512.0, %v9178_v57 }
 0x3bc   :  { %9140 = vsinq.f32 %v7048_v47  ;;  %v7130_v45 = vsub.s32 0, %v13293_v12  ;;  %vm7059_vm13 = vcmp.eq.s32.totalorder %v13285_v53, 2  ;;  %v7120_v41 = vadd.s32 %v13217_v59, %v13243_v46 }
 0x3bd   :  { %v7151_v1 = vsel %vm7066_vm7, %v7150_v26, %v7126_v50  ;;  %v7609_v3 = vsub.s32 32, %v7608_v16  ;;  %v7611_v48 = vshll.u32 %v9181_v28, %v7608_v16  ;;  %vm7056_vm14 = vcmp.eq.s32.totalorder %v13285_v53, 0 }
 0x3be   :  { %v8769_v35 = vmin.u32 %v7130_v45, %v13293_v12  ;;  %vm7474_vm12 = vcmp.eq.s32.totalorder %v13295_v39, 0  ;;  %vm7477_vm1 = vcmp.eq.s32.totalorder %v13295_v39, 2  ;;  %v13320_v51 = vshrl.u32 %v7606_v37, 5 }
 0x3bf   :  { %vm7055_vm3 = vcmp.lt.s32.totalorder %v13285_v53, 2  ;;  %vm7473_vm11 = vcmp.lt.s32.totalorder %v13295_v39, 2  ;;  %v7612_v59 = vshrl.u32 %v9182_v30, %v7609_v3  ;;  %v7614_v46 = vshll.u32 %v9182_v30, %v7608_v16 }
 0x3c0   :  { %v7615_v6 = vshrl.u32 %v9183_v32, %v7609_v3  ;;  %v7617_v60 = vshll.u32 %v9183_v32, %v7608_v16  ;;  %vm7052_vm2 = vweird.f32 %v12827_v54  ;;  %v7132_v49 = vclz %v8769_v35 }
 0x3c1   :  { %v13331_v15 = vsel %vm13299_vm10, 0, %v7151_v1  ;;  %v13333_v19 = vshll.u32 %v7602_v55, 8  ;;  %v7701_v42 = vand.u32 2139095040, %v13308_v56  ;;  %v7610_v18 = vshrl.u32 %v9181_v28, %v7609_v3 }
 0x3c2   :  { %v7613_v14 = vor.u32 %v7612_v59, %v7611_v48  ;;  %v7618_v31 = vshrl.u32 %v9184_v34, %v7609_v3  ;;  %v7620_v29 = vshll.u32 %v9184_v34, %v7608_v16  ;;  %v8770_v40 = vadd.s32 4294967294, %v7132_v49 }
 0x3c3   :  { %v7621_v5 = vshrl.u32 %v9185_v36, %v7609_v3  ;;  %v7623_v24 = vshll.u32 %v9185_v36, %v7608_v16  ;;  %v7624_v44 = vshrl.u32 %v9186_v43, %v7609_v3  ;;  %v7616_v63 = vor.u32 %v7615_v6, %v7614_v46 }
 0x3c4   :  { %v7619_v61 = vor.u32 %v7618_v31, %v7617_v60  ;;  %vm7626_vm0 = vcmp.lt.s32.totalorder %v13320_v51, 1  ;;  %vm7627_vm4 = vcmp.lt.s32.totalorder %v13320_v51, 2  ;;  %vm8771_vm15 = vcmp.lt.s32.totalorder %v8770_v40, 0 }
 0x3c5   :  { %v7622_v7 = vor.u32 %v7621_v5, %v7620_v29  ;;  %vm7628_vm9 = vcmp.lt.s32.totalorder %v13320_v51, 3  ;;  %vm7629_vm8 = vcmp.lt.s32.totalorder %v13320_v51, 4  ;;  %v9139_v23 = vpop.eup %9138  ;;  %v7135_v38 = vsel %vm8771_vm15, 0, %v8770_v40 }
 0x3c6   :  { %v7625_v21 = vor.u32 %v7624_v44, %v7623_v24  ;;  %v7630_v9 = vsel %vm7626_vm0, %v7610_v18, %v7613_v14  ;;  %v7631_v52 = vsel %vm7629_vm8, %v7619_v61, 2102212464  ;;  %v9141_v62 = vpop.eup %9140  ;;  %v7060_v50 = vxor.u32 2147483648, %v9139_v23 }
 0x3c7   :  { %v7136_v10 = vsub.s32 32, %v7135_v38  ;;  %v7137_v4 = vshll.u32 %v13293_v12, %v7135_v38  ;;  %v7140_v0 = vsub.s32 4294967266, %v7135_v38  ;;  %v7057_v13 = vxor.u32 2147483648, %v9141_v62 }
 0x3c8   :  { %v7632_v8 = vsel %vm7628_vm9, %v7616_v63, %v7631_v52  ;;  %v7634_v11 = vsel %vm7626_vm0, %v7613_v14, %v7616_v63  ;;  %v7635_v33 = vsel %vm7629_vm8, %v7622_v7, 920167782  ;;  %v7061_v22 = vsel %vm7059_vm13, %v7060_v50, %v9141_v62 }
 0x3c9   :  { %v7138_v27 = vshrl.u32 %v7120_v41, %v7136_v10  ;;  %v7141_v25 = vadd.s32 127, %v7140_v0  ;;  %v7479_v26 = vsel %vm7477_vm1, %v7060_v50, %v9141_v62  ;;  %v7058_v47 = vsel %vm7056_vm14, %v9139_v23, %v7057_v13 }
 0x3ca   :  { %v7476_v12 = vsel %vm7474_vm12, %v9139_v23, %v7057_v13  ;;  %v7636_v37 = vsel %vm7628_vm9, %v7619_v61, %v7635_v33  ;;  %v7638_v16 = vsel %vm7626_vm0, %v7616_v63, %v7619_v61  ;;  %v7062_v45 = vsel %vm7055_vm3, %v7058_v47, %v7061_v22  ;;  %v9179_v61 = vld [vmem:[%s13757_s1 + $0x10] sm:$0xff] }
 0x3cb   :  { %v7139_v55 = vor.u32 %v7138_v27, %v7137_v4  ;;  %v7142_v57 = vshll.u32 %v7141_v25, 23  ;;  %v7480_v41 = vsel %vm7473_vm11, %v7476_v12, %v7479_v26  ;;  %v7063_v1 = vsel %vm7052_vm2, nan, %v7062_v45 }
 0x3cc   :  { %v7481_v3 = vsel %vm7052_vm2, nan, %v7480_v41  ;;  %v7637_v48 = vsel %vm7627_vm4, %v7634_v11, %v7636_v37  ;;  %v7639_v35 = vsel %vm7629_vm8, %v7625_v21, 1326507024  ;;  %8774 = vst [vmem:[%s13757_s1 + $0x230] sm:$0xff] %v7063_v1  ;;  %v7633_v54 = vsel %vm7627_vm4, %v7630_v9, %v7632_v8 }
 0x3cd   :  { %v7143_v53 = vor.u32 4788187, %v7142_v57  ;;  %v7146_v59 = vcvt.s32.f32 %v7139_v55  ;;  %8794 = vst [vmem:[%s13757_s1 + $0x250] sm:$0xff] %v7481_v3  ;;  %v7640_v39 = vsel %vm7628_vm9, %v7622_v7, %v7639_v35  ;;  %v7702_v49 = vshrl.u32 %v7701_v42, 23 }
 0x3ce   :  { %v7641_v46 = vsel %vm7627_vm4, %v7638_v16, %v7640_v39  ;;  %v13394_v6 = vmul.u32.u64.low %v13333_v19, %v7637_v48  ;;  %v13395_v60 = vmul.u32.u64.high %v13333_v19, %v7637_v48, %v13394_v6  ;;  %v7157_v5 = vadd.s32 3, %v13331_v15 }
 0x3cf   :  { %v7144_v18 = vand.u32 2147483647, %v7143_v53  ;;  %v13399_v14 = vmul.u32.u64.low %v13333_v19, %v7641_v46  ;;  %v13400_v31 = vmul.u32.u64.high %v13333_v19, %v7641_v46, %v13399_v14  ;;  %v8800_v29 = vadd.s32 4294967169, %v7702_v49 }
 0x3d0   :  { %v7649_v24 = vmul.u32 %v13333_v19, %v7633_v54  ;;  %v7652_v51 = vadd.s32 1, %v13395_v60  ;;  %v7698_v42 = vand.u32 2147483647, %v13308_v56  ;;  %v13411_v7 = vmul.f32 512.0, %v9179_v61 }
 0x3d1   :  { %v7147_v40 = vmul.f32 %v7146_v59, %v7144_v18  ;;  %v7708_v44 = vadd.s32 1, %v8800_v29  ;;  %vm7651_vm5 = vc.u32 %v13400_v31, %v13394_v6  ;;  %v13414_v23 = vand.u32 3, %v13331_v15  ;;  %v9180_v15 = vld [vmem:[%s13757_s1 + $0x18] sm:$0xff] }
 0x3d2   :  { %v7653_v19 = vsel %vm7651_vm5, %v7652_v51, %v13395_v60  ;;  %v13419_v21 = vand.u32 3, %v7157_v5  ;;  %v13427_v10 = vmul.f32 512.0, %v9180_v15  ;;  %v7705_v0 = vand.u32 8388607, %v7698_v42 }
 0x3d3   :  { %v7148_v63 = vxor.u32 2147483648, %v7147_v40  ;;  %vm7709_vm6 = vcmp.gt.s32.totalorder %v7708_v44, 0  ;;  %v7654_v9 = vadd.s32 %v7653_v19, %v7649_v24  ;;  %v7805_v13 = vand.u32 2139095040, %v13411_v7 }
 0x3d4   :  { %v7710_v52 = vsel %vm7709_vm6, %v7708_v44, 0  ;;  %vm7160_vm13 = vcmp.eq.s32.totalorder %v13419_v21, 0  ;;  %vm7577_vm14 = vcmp.eq.s32.totalorder %v13414_v23, 0  ;;  %vm7159_vm12 = vcmp.lt.s32.totalorder %v13419_v21, 2 }
 0x3d5   :  { %v7149_v38 = vsel %vm7066_vm7, %v7148_v63, %v7147_v40  ;;  %v7712_v50 = vand.u32 31, %v7710_v52  ;;  %v7655_v4 = vadd.s32 536870912, %v7654_v9  ;;  %v13432_v8 = vshrl.u32 %v7710_v52, 5 }
 0x3d6   :  { %v7152_v62 = vsel %vm13299_vm10, %v13044_v20, %v7149_v38  ;;  %vm7163_vm10 = vcmp.eq.s32.totalorder %v13419_v21, 2  ;;  %vm7580_vm7 = vcmp.eq.s32.totalorder %v13414_v23, 2  ;;  %vm7576_vm1 = vcmp.lt.s32.totalorder %v13414_v23, 2 }
 0x3d7   :  { %9142 = vcosq.f32 %v7152_v62  ;;  %v7713_v11 = vsub.s32 32, %v7712_v50  ;;  %v7715_v58 = vshll.u32 %v9181_v28, %v7712_v50  ;;  %v13437_v33 = vshrl.u32 %v7655_v4, 30 }
 0x3d8   :  { %9144 = vsinq.f32 %v7152_v62  ;;  %v7718_v22 = vshll.u32 %v9182_v30, %v7712_v50  ;;  %v7721_v27 = vshll.u32 %v9183_v32, %v7712_v50  ;;  %v7724_v25 = vshll.u32 %v9184_v34, %v7712_v50 }
 0x3d9   :  { %v7716_v26 = vshrl.u32 %v9182_v30, %v7713_v11  ;;  %v7719_v47 = vshrl.u32 %v9183_v32, %v7713_v11  ;;  %v7722_v12 = vshrl.u32 %v9184_v34, %v7713_v11  ;;  %v7727_v37 = vshll.u32 %v9185_v36, %v7712_v50 }
 0x3da   :  { %v7657_v16 = vshll.u32 %v13437_v33, 30  ;;  %v7725_v45 = vshrl.u32 %v9185_v36, %v7713_v11  ;;  %v7728_v55 = vshrl.u32 %v9186_v43, %v7713_v11  ;;  %v7802_v57 = vand.u32 2147483647, %v13411_v7 }
 0x3db   :  { %vm7156_vm3 = vweird.f32 %v13044_v20  ;;  %v7706_v41 = vor.u32 8388608, %v7705_v0  ;;  %v7714_v1 = vshrl.u32 %v9181_v28, %v7713_v11  ;;  %v7717_v3 = vor.u32 %v7716_v26, %v7715_v58 }
 0x3dc   :  { %v7806_v48 = vshrl.u32 %v7805_v13, 23  ;;  %v13456_v35 = vsub.s32 %v7654_v9, %v7657_v16  ;;  %v7720_v53 = vor.u32 %v7719_v47, %v7718_v22  ;;  %v7723_v59 = vor.u32 %v7722_v12, %v7721_v27 }
 0x3dd   :  { %v7726_v54 = vor.u32 %v7725_v45, %v7724_v25  ;;  %v7729_v39 = vor.u32 %v7728_v55, %v7727_v37  ;;  %vm7730_vm11 = vcmp.lt.s32.totalorder %v13432_v8, 1  ;;  %vm7732_vm2 = vcmp.lt.s32.totalorder %v13432_v8, 3 }
 0x3de   :  { %vm7733_vm0 = vcmp.lt.s32.totalorder %v13432_v8, 4  ;;  %vm7596_vm4 = vcmp.lt.s32.totalorder %v13130_v17, 0  ;;  %v7650_v46 = vadd.s32 %v13394_v6, %v13400_v31  ;;  %v7660_v60 = vsub.s32 0, %v13456_v35 }
 0x3df   :  { %v7735_v49 = vsel %vm7733_vm0, %v7723_v59, 2102212464  ;;  %v13469_v18 = vand.u32 8388607, %v7802_v57  ;;  %v7734_v14 = vsel %vm7730_vm11, %v7714_v1, %v7717_v3  ;;  %v7739_v40 = vsel %vm7733_vm0, %v7726_v54, 920167782 }
 0x3e0   :  { %v7736_v29 = vsel %vm7732_vm2, %v7720_v53, %v7735_v49  ;;  %v13477_v5 = vshll.u32 %v7706_v41, 8  ;;  %v8797_v31 = vmin.u32 %v7660_v60, %v13456_v35  ;;  %vm7731_vm15 = vcmp.lt.s32.totalorder %v13432_v8, 2 }
 0x3e1   :  { %v9143_v6 = vpop.eup %9142  ;;  %v7738_v24 = vsel %vm7730_vm11, %v7717_v3, %v7720_v53  ;;  %v7740_v51 = vsel %vm7732_vm2, %v7723_v59, %v7739_v40  ;;  %v7742_v61 = vsel %vm7730_vm11, %v7720_v53, %v7723_v59  ;;  %v7743_v19 = vsel %vm7733_vm0, %v7729_v39, 1326507024 }
 0x3e2   :  { %v9145_v44 = vpop.eup %9144  ;;  %v7164_v63 = vxor.u32 2147483648, %v9143_v6  ;;  %v8804_v38 = vadd.s32 4294967169, %v7806_v48  ;;  %v7662_v52 = vclz %v8797_v31  ;;  %v7680_v62 = vsub.s32 4, %v13437_v33 }
 0x3e3   :  { %v7161_v9 = vxor.u32 2147483648, %v9145_v44  ;;  %v7737_v50 = vsel %vm7731_vm15, %v7734_v14, %v7736_v29  ;;  %v7741_v0 = vsel %vm7731_vm15, %v7738_v24, %v7740_v51  ;;  %v7744_v13 = vsel %vm7732_vm2, %v7726_v54, %v7743_v19 }
 0x3e4   :  { %v7165_v15 = vsel %vm7163_vm10, %v7164_v63, %v9145_v44  ;;  %v7582_v4 = vsel %vm7580_vm7, %v7164_v63, %v9145_v44  ;;  %v8798_v22 = vadd.s32 4294967294, %v7662_v52  ;;  %v7745_v27 = vsel %vm7731_vm15, %v7742_v61, %v7744_v13 }
 0x3e5   :  { %v7162_v11 = vsel %vm7160_vm13, %v9143_v6, %v7161_v9  ;;  %v7579_v58 = vsel %vm7577_vm14, %v9143_v6, %v7161_v9  ;;  %v13511_v47 = vmul.u32.u64.low %v13477_v5, %v7745_v27  ;;  %v13512_v12 = vmul.u32.u64.high %v13477_v5, %v7745_v27, %v13511_v47 }
 0x3e6   :  { %v7166_v25 = vsel %vm7159_vm12, %v7162_v11, %v7165_v15  ;;  %v7583_v26 = vsel %vm7576_vm1, %v7579_v58, %v7582_v4  ;;  %vm8799_vm9 = vcmp.lt.s32.totalorder %v8798_v22, 0  ;;  %v7812_v45 = vadd.s32 1, %v8804_v38 }
 0x3e7   :  { %v7167_v37 = vsel %vm7156_vm3, nan, %v7166_v25  ;;  %v7584_v16 = vsel %vm7156_vm3, nan, %v7583_v26  ;;  %v7665_v23 = vsel %vm8799_vm9, 0, %v8798_v22  ;;  %v7681_v21 = vsel %vm7596_vm4, %v7680_v62, %v13437_v33 }
 0x3e8   :  { %8775 = vst [vmem:[%s13757_s1 + $0x238] sm:$0xff] %v7167_v37  ;;  %8795 = vst [vmem:[%s13757_s1 + $0x258] sm:$0xff] %v7584_v16  ;;  %v13528_v8 = vmul.u32.u64.low %v13477_v5, %v7741_v0  ;;  %v13529_v55 = vmul.u32.u64.high %v13477_v5, %v7741_v0, %v13528_v8  ;;  %v7666_v20 = vsub.s32 32, %v7665_v23  ;;  %v7667_v41 = vshll.u32 %v13456_v35, %v7665_v23 }
 0x3e9   :  { %v7670_v1 = vsub.s32 4294967266, %v7665_v23  ;;  %vm7813_vm8 = vcmp.gt.s32.totalorder %v7812_v45, 0  ;;  %vm13535_vm5 = vcmp.le.f32.partialorder %v7594_v2, 0.7853982  ;;  %v7753_v48 = vmul.u32 %v13477_v5, %v7737_v50 }
 0x3ea   :  { %v7810_v33 = vor.u32 8388608, %v13469_v18  ;;  %v7814_v53 = vsel %vm7813_vm8, %v7812_v45, 0  ;;  %v7668_v59 = vshrl.u32 %v7650_v46, %v7666_v20  ;;  %vm7755_vm6 = vc.u32 %v13512_v12, %v13528_v8 }
 0x3eb   :  { %v7671_v54 = vadd.s32 127, %v7670_v1  ;;  %v7816_v39 = vand.u32 31, %v7814_v53  ;;  %v13545_v35 = vsel %vm13535_vm5, 0, %v7681_v21  ;;  %v7756_v2 = vadd.s32 1, %v13529_v55 }
 0x3ec   :  { %v7906_v60 = vand.u32 2147483647, %v13427_v10  ;;  %v7909_v49 = vand.u32 2139095040, %v13427_v10  ;;  %v7669_v14 = vor.u32 %v7668_v59, %v7667_v41  ;;  %v7815_v18 = vshrl.u32 %v7814_v53, 5 }
 0x3ed   :  { %v7672_v29 = vshll.u32 %v7671_v54, 23  ;;  %v7817_v40 = vsub.s32 32, %v7816_v39  ;;  %v7757_v46 = vsel %vm7755_vm6, %v7756_v2, %v13529_v55  ;;  %v7819_v5 = vshll.u32 %v9181_v28, %v7816_v39 }
 0x3ee   :  { %v7822_v6 = vshll.u32 %v9182_v30, %v7816_v39  ;;  %v7828_v31 = vshll.u32 %v9184_v34, %v7816_v39  ;;  %v7676_v51 = vcvt.s32.f32 %v7669_v14  ;;  %v7758_v44 = vadd.s32 %v7757_v46, %v7753_v48 }
 0x3ef   :  { %v7673_v24 = vor.u32 4788187, %v7672_v29  ;;  %v7825_v63 = vshll.u32 %v9183_v32, %v7816_v39  ;;  %v7820_v61 = vshrl.u32 %v9182_v30, %v7817_v40  ;;  %v7823_v19 = vshrl.u32 %v9183_v32, %v7817_v40 }
 0x3f0   :  { %v7826_v38 = vshrl.u32 %v9184_v34, %v7817_v40  ;;  %v7829_v9 = vshrl.u32 %v9185_v36, %v7817_v40  ;;  %v7759_v62 = vadd.s32 536870912, %v7758_v44  ;;  %v7831_v50 = vshll.u32 %v9185_v36, %v7816_v39 }
 0x3f1   :  { %v7674_v52 = vand.u32 2147483647, %v7673_v24  ;;  %v7832_v15 = vshrl.u32 %v9186_v43, %v7817_v40  ;;  %v7818_v4 = vshrl.u32 %v9181_v28, %v7817_v40  ;;  %v7821_v0 = vor.u32 %v7820_v61, %v7819_v5 }
 0x3f2   :  { %v7824_v13 = vor.u32 %v7823_v19, %v7822_v6  ;;  %v7830_v11 = vor.u32 %v7829_v9, %v7828_v31  ;;  %v7760_v22 = vshrl.u32 %v7759_v62, 30  ;;  %v7827_v27 = vor.u32 %v7826_v38, %v7825_v63 }
 0x3f3   :  { %v7677_v58 = vmul.f32 %v7676_v51, %v7674_v52  ;;  %vm7834_vm10 = vcmp.lt.s32.totalorder %v7815_v18, 1  ;;  %v7687_v25 = vadd.s32 3, %v13545_v35  ;;  %v7833_v26 = vor.u32 %v7832_v15, %v7831_v50 }
 0x3f4   :  { %vm7837_vm7 = vcmp.lt.s32.totalorder %v7815_v18, 4  ;;  %v7850_v47 = vshll.u32 %v7810_v33, 8  ;;  %v7761_v16 = vshll.u32 %v7760_v22, 30  ;;  %vm7836_vm13 = vcmp.lt.s32.totalorder %v7815_v18, 3 }
 0x3f5   :  { %v7678_v37 = vxor.u32 2147483648, %v7677_v58  ;;  %v7839_v45 = vsel %vm7837_vm7, %v7827_v27, 2102212464  ;;  %vm7835_vm14 = vcmp.lt.s32.totalorder %v7815_v18, 2  ;;  %v7842_v23 = vsel %vm7834_vm10, %v7821_v0, %v7824_v13 }
 0x3f6   :  { %v7843_v21 = vsel %vm7837_vm7, %v7830_v11, 920167782  ;;  %v7910_v55 = vshrl.u32 %v7909_v49, 23  ;;  %v13568_v41 = vsub.s32 %v7758_v44, %v7761_v16  ;;  %v7838_v1 = vsel %vm7834_vm10, %v7818_v4, %v7821_v0 }
 0x3f7   :  { %v7679_v20 = vsel %vm7596_vm4, %v7678_v37, %v7677_v58  ;;  %v7840_v48 = vsel %vm7836_vm13, %v7824_v13, %v7839_v45  ;;  %v7844_v53 = vsel %vm7836_vm13, %v7827_v27, %v7843_v21  ;;  %v7846_v59 = vsel %vm7834_vm10, %v7824_v13, %v7827_v27 }
 0x3f8   :  { %v7682_v33 = vsel %vm13535_vm5, %v13130_v17, %v7679_v20  ;;  %v7847_v54 = vsel %vm7837_vm7, %v7833_v26, 1326507024  ;;  %v7764_v39 = vsub.s32 0, %v13568_v41  ;;  %v7784_v2 = vsub.s32 4, %v7760_v22 }
 0x3f9   :  { %9146 = vcosq.f32 %v7682_v33  ;;  %v7845_v49 = vsel %vm7835_vm14, %v7842_v23, %v7844_v53  ;;  %v7848_v14 = vsel %vm7836_vm13, %v7830_v11, %v7847_v54  ;;  %v7841_v46 = vsel %vm7835_vm14, %v7838_v1, %v7840_v48 }
 0x3fa   :  { %9148 = vsinq.f32 %v7682_v33  ;;  %v13581_v29 = vmul.u32.u64.low %v7850_v47, %v7845_v49  ;;  %v13582_v40 = vmul.u32.u64.high %v7850_v47, %v7845_v49, %v13581_v29  ;;  %v8801_v3 = vmin.u32 %v7764_v39, %v13568_v41 }
 0x3fb   :  { %v7849_v5 = vsel %vm7835_vm14, %v7846_v59, %v7848_v14  ;;  %v7688_v6 = vand.u32 3, %v7687_v25  ;;  %v8808_v51 = vadd.s32 4294967169, %v7910_v55  ;;  %vm7700_vm12 = vcmp.lt.s32.totalorder %v13308_v56, 0 }
 0x3fc   :  { %v13588_v31 = vmul.u32.u64.low %v7850_v47, %v7849_v5  ;;  %v13589_v24 = vmul.u32.u64.high %v7850_v47, %v7849_v5, %v13588_v31  ;;  %v7766_v44 = vclz %v8801_v3  ;;  %v7913_v63 = vand.u32 8388607, %v7906_v60 }
 0x3fd   :  { %v7785_v61 = vsel %vm7700_vm12, %v7784_v2, %v7760_v22  ;;  %v7857_v19 = vmul.u32 %v7850_v47, %v7841_v46  ;;  %v7860_v38 = vadd.s32 1, %v13582_v40  ;;  %v7916_v9 = vadd.s32 1, %v8808_v51 }
 0x3fe   :  { %vm7686_vm1 = vweird.f32 %v13130_v17  ;;  %vm13600_vm3 = vcmp.le.f32.partialorder %v7698_v42, 0.7853982  ;;  %v8802_v52 = vadd.s32 4294967294, %v7766_v44  ;;  %vm7689_vm11 = vcmp.lt.s32.totalorder %v7688_v6, 2 }
 0x3ff   :  { %v7754_v62 = vadd.s32 %v13528_v8, %v13512_v12  ;;  %vm7859_vm2 = vc.u32 %v13589_v24, %v13581_v29  ;;  %vm7917_vm0 = vcmp.gt.s32.totalorder %v7916_v9, 0  ;;  %v13610_v50 = vsel %vm13600_vm3, 0, %v7785_v61 }
 0x400   :  { %vm8803_vm4 = vcmp.lt.s32.totalorder %v8802_v52, 0  ;;  %v7861_v15 = vsel %vm7859_vm2, %v7860_v38, %v13582_v40  ;;  %v7918_v42 = vsel %vm7917_vm0, %v7916_v9, 0  ;;  %v7914_v13 = vor.u32 8388608, %v7913_v63 }
 0x401   :  { %v7769_v4 = vsel %vm8803_vm4, 0, %v8802_v52  ;;  %v7862_v0 = vadd.s32 %v7861_v15, %v7857_v19  ;;  %v7920_v11 = vand.u32 31, %v7918_v42  ;;  %vm7693_vm15 = vcmp.eq.s32.totalorder %v7688_v6, 2 }
 0x402   :  { %v7770_v12 = vsub.s32 32, %v7769_v4  ;;  %v7771_v8 = vshll.u32 %v13568_v41, %v7769_v4  ;;  %v7774_v22 = vsub.s32 4294967266, %v7769_v4  ;;  %vm7690_vm9 = vcmp.eq.s32.totalorder %v7688_v6, 0 }
 0x403   :  { %v13613_v58 = vpop.eup %9146  ;;  %v7863_v26 = vadd.s32 536870912, %v7862_v0  ;;  %v7921_v47 = vsub.s32 32, %v7920_v11  ;;  %v13621_v23 = vadd.s32 3, %v13610_v50  ;;  %v13628_v20 = vshll.u32 %v7914_v13, 8 }
 0x404   :  { %v13616_v27 = vpop.eup %9148  ;;  %v7694_v25 = vxor.u32 2147483648, %v13613_v58  ;;  %v7772_v16 = vshrl.u32 %v7754_v62, %v7770_v12  ;;  %v7775_v45 = vadd.s32 127, %v7774_v22  ;;  %v13631_v41 = vand.u32 3, %v13545_v35 }
 0x405   :  { %v7691_v37 = vxor.u32 2147483648, %v13616_v27  ;;  %v13626_v55 = vshrl.u32 %v7863_v26, 30  ;;  %v7923_v53 = vshll.u32 %v9181_v28, %v7920_v11  ;;  %v7924_v39 = vshrl.u32 %v9182_v30, %v7921_v47 }
 0x406   :  { %v7695_v21 = vsel %vm7693_vm15, %v7694_v25, %v13616_v27  ;;  %v7773_v48 = vor.u32 %v7772_v16, %v7771_v8  ;;  %v7776_v33 = vshll.u32 %v7775_v45, 23  ;;  %v7926_v2 = vshll.u32 %v9182_v30, %v7920_v11 }
 0x407   :  { %v7692_v1 = vsel %vm7690_vm9, %v13613_v58, %v7691_v37  ;;  %v7865_v54 = vshll.u32 %v13626_v55, 30  ;;  %v7927_v40 = vshrl.u32 %v9183_v32, %v7921_v47  ;;  %v7919_v46 = vshrl.u32 %v7918_v42, 5 }
 0x408   :  { %v7696_v59 = vsel %vm7689_vm11, %v7692_v1, %v7695_v21  ;;  %v7777_v49 = vor.u32 4788187, %v7776_v33  ;;  %v7780_v14 = vcvt.s32.f32 %v7773_v48  ;;  %v7929_v5 = vshll.u32 %v9183_v32, %v7920_v11 }
 0x409   :  { %v7697_v35 = vsel %vm7686_vm1, nan, %v7696_v59  ;;  %v13647_v3 = vsub.s32 %v7862_v0, %v7865_v54  ;;  %v7930_v6 = vshrl.u32 %v9184_v34, %v7921_v47  ;;  %v7858_v30 = vadd.s32 %v13581_v29, %v13589_v24 }
 0x40a   :  { %8812 = vst [vmem:[%s13757_s1 + $0x260] sm:$0xff] %v7697_v35  ;;  %v7778_v31 = vand.u32 2147483647, %v7777_v49  ;;  %v7932_v51 = vshll.u32 %v9184_v34, %v7920_v11  ;;  %v7933_v44 = vshrl.u32 %v9185_v36, %v7921_v47  ;;  %v7922_v61 = vshrl.u32 %v9181_v28, %v7921_v47 }
 0x40b   :  { %v7868_v63 = vsub.s32 0, %v13647_v3  ;;  %v7925_v19 = vor.u32 %v7924_v39, %v7923_v53  ;;  %v7935_v38 = vshll.u32 %v9185_v36, %v7920_v11  ;;  %v7928_v52 = vor.u32 %v7927_v40, %v7926_v2 }
 0x40c   :  { %v7781_v9 = vmul.f32 %v7780_v14, %v7778_v31  ;;  %v7934_v32 = vor.u32 %v7933_v44, %v7932_v51  ;;  %v7936_v62 = vshrl.u32 %v9186_v43, %v7921_v47  ;;  %v7931_v42 = vor.u32 %v7930_v6, %v7929_v5 }
 0x40d   :  { %v8805_v15 = vmin.u32 %v7868_v63, %v13647_v3  ;;  %vm7938_vm8 = vcmp.lt.s32.totalorder %v7919_v46, 1  ;;  %vm8109_vm5 = vcmp.lt.s32.totalorder %v13631_v41, 2  ;;  %vm7940_vm6 = vcmp.lt.s32.totalorder %v7919_v46, 3 }
 0x40e   :  { %v7782_v34 = vxor.u32 2147483648, %v7781_v9  ;;  %vm7941_vm10 = vcmp.lt.s32.totalorder %v7919_v46, 4  ;;  %vm8110_vm7 = vcmp.eq.s32.totalorder %v13631_v41, 0  ;;  %v7937_v29 = vor.u32 %v7936_v62, %v7935_v38 }
 0x40f   :  { %v7870_v28 = vclz %v8805_v15  ;;  %vm7939_vm13 = vcmp.lt.s32.totalorder %v7919_v46, 2  ;;  %v7942_v36 = vsel %vm7938_vm8, %v7922_v61, %v7925_v19  ;;  %v7943_v43 = vsel %vm7941_vm10, %v7931_v42, 2102212464 }
 0x410   :  { %v7783_v24 = vsel %vm7700_vm12, %v7782_v34, %v7781_v9  ;;  %v7946_v4 = vsel %vm7938_vm8, %v7925_v19, %v7928_v52  ;;  %v7947_v0 = vsel %vm7941_vm10, %v7934_v32, 920167782  ;;  %v7944_v12 = vsel %vm7940_vm6, %v7928_v52, %v7943_v43 }
 0x411   :  { %v7786_v13 = vsel %vm13600_vm3, %v13308_v56, %v7783_v24  ;;  %v8806_v11 = vadd.s32 4294967294, %v7870_v28  ;;  %v7948_v8 = vsel %vm7940_vm6, %v7931_v42, %v7947_v0  ;;  %v7950_v26 = vsel %vm7938_vm8, %v7928_v52, %v7931_v42 }
 0x412   :  { %9150 = vcosq.f32 %v7786_v13  ;;  %v7949_v22 = vsel %vm7939_vm13, %v7946_v4, %v7948_v8  ;;  %vm8113_vm14 = vcmp.eq.s32.totalorder %v13631_v41, 2  ;;  %v7945_v47 = vsel %vm7939_vm13, %v7942_v36, %v7944_v12 }
 0x413   :  { %9152 = vsinq.f32 %v7786_v13  ;;  %vm8807_vm12 = vcmp.lt.s32.totalorder %v8806_v11, 0  ;;  %v7951_v16 = vsel %vm7941_vm10, %v7937_v29, 1326507024  ;;  %v8112_v2 = vsel %vm8110_vm7, %v13613_v58, %v7691_v37 }
 0x414   :  { %v7873_v18 = vsel %vm8807_vm12, 0, %v8806_v11  ;;  %v7952_v45 = vsel %vm7940_vm6, %v7934_v32, %v7951_v16  ;;  %v13680_v21 = vmul.u32.u64.low %v13628_v20, %v7949_v22  ;;  %v13681_v1 = vmul.u32.u64.high %v13628_v20, %v7949_v22, %v13680_v21 }
 0x415   :  { %v7874_v48 = vsub.s32 32, %v7873_v18  ;;  %v7875_v33 = vshll.u32 %v13647_v3, %v7873_v18  ;;  %v7878_v53 = vsub.s32 4294967266, %v7873_v18  ;;  %v7953_v59 = vsel %vm7939_vm13, %v7950_v26, %v7952_v45 }
 0x416   :  { %v13687_v54 = vmul.u32.u64.low %v13628_v20, %v7953_v59  ;;  %v13688_v39 = vmul.u32.u64.high %v13628_v20, %v7953_v59, %v13687_v54  ;;  %v8115_v35 = vsel %vm8113_vm14, %v7694_v25, %v13616_v27  ;;  %v7792_v49 = vand.u32 3, %v13621_v23 }
 0x417   :  { %v7876_v14 = vshrl.u32 %v7858_v30, %v7874_v48  ;;  %v7879_v40 = vadd.s32 127, %v7878_v53  ;;  %v8116_v3 = vsel %vm8109_vm5, %v8112_v2, %v8115_v35  ;;  %v7961_v46 = vmul.u32 %v13628_v20, %v7945_v47 }
 0x418   :  { %v7964_v5 = vadd.s32 1, %v13681_v1  ;;  %v8117_v6 = vsel %vm7686_vm1, nan, %v8116_v3  ;;  %v8211_v37 = vand.u32 3, %v13610_v50  ;;  %vm7963_vm3 = vc.u32 %v13688_v39, %v13680_v21 }
 0x419   :  { %v7877_v31 = vor.u32 %v7876_v14, %v7875_v33  ;;  %v7880_v51 = vshll.u32 %v7879_v40, 23  ;;  %8832 = vst [vmem:[%s13757_s1 + $0x280] sm:$0xff] %v8117_v6  ;;  %vm7790_vm11 = vweird.f32 %v13308_v56  ;;  %vm7797_vm2 = vcmp.eq.s32.totalorder %v7792_v49, 2 }
 0x41a   :  { %v7965_v25 = vsel %vm7963_vm3, %v7964_v5, %v13681_v1  ;;  %v7888_v17 = vsub.s32 4, %v13626_v55  ;;  %vm8216_vm1 = vcmp.eq.s32.totalorder %v8211_v37, 2  ;;  %vm7794_vm0 = vcmp.eq.s32.totalorder %v7792_v49, 0 }
 0x41b   :  { %v7881_v58 = vor.u32 4788187, %v7880_v51  ;;  %v7884_v27 = vcvt.s32.f32 %v7877_v31  ;;  %v7966_v50 = vadd.s32 %v7965_v25, %v7961_v46  ;;  %vm8213_vm4 = vcmp.eq.s32.totalorder %v8211_v37, 0 }
 0x41c   :  { %v9151_v23 = vpop.eup %9150  ;;  %vm7793_vm15 = vcmp.lt.s32.totalorder %v7792_v49, 2  ;;  %vm8212_vm9 = vcmp.lt.s32.totalorder %v8211_v37, 2  ;;  %vm7804_vm8 = vcmp.lt.s32.totalorder %v13411_v7, 0  ;;  %vm7803_vm5 = vcmp.le.f32.partialorder %v7802_v57, 0.7853982 }
 0x41d   :  { %v9153_v20 = vpop.eup %9152  ;;  %v7798_v41 = vxor.u32 2147483648, %v9151_v23  ;;  %v7882_v30 = vand.u32 2147483647, %v7881_v58  ;;  %v7967_v63 = vadd.s32 536870912, %v7966_v50  ;;  %v7889_v52 = vsel %vm7804_vm8, %v7888_v17, %v13626_v55 }
 0x41e   :  { %v7795_v44 = vxor.u32 2147483648, %v9153_v20  ;;  %v7891_v24 = vsel %vm7803_vm5, 0, %v7889_v52  ;;  %v7962_v22 = vadd.s32 %v13680_v21, %v13688_v39  ;;  %vm7894_vm12 = vweird.f32 %v13411_v7 }
 0x41f   :  { %v7799_v61 = vsel %vm7797_vm2, %v7798_v41, %v9153_v20  ;;  %v7885_v19 = vmul.f32 %v7884_v27, %v7882_v30  ;;  %v8218_v38 = vsel %vm8216_vm1, %v7798_v41, %v9153_v20  ;;  %v13716_v32 = vshrl.u32 %v7967_v63, 30 }
 0x420   :  { %v7796_v9 = vsel %vm7794_vm0, %v9151_v23, %v7795_v44  ;;  %v8215_v62 = vsel %vm8213_vm4, %v9151_v23, %v7795_v44  ;;  %v7895_v4 = vadd.s32 3, %v7891_v24  ;;  %v8314_v12 = vand.u32 3, %v7891_v24 }
 0x421   :  { %v7800_v15 = vsel %vm7793_vm15, %v7796_v9, %v7799_v61  ;;  %v7886_v42 = vxor.u32 2147483648, %v7885_v19  ;;  %v8219_v34 = vsel %vm8212_vm9, %v8215_v62, %v8218_v38  ;;  %v7969_v29 = vshll.u32 %v13716_v32, 30 }
 0x422   :  { %v7801_v28 = vsel %vm7790_vm11, nan, %v7800_v15  ;;  %v8220_v36 = vsel %vm7790_vm11, nan, %v8219_v34  ;;  %v7896_v56 = vand.u32 3, %v7895_v4  ;;  %vm8316_vm13 = vcmp.eq.s32.totalorder %v8314_v12, 0 }
 0x423   :  { %8813 = vst [vmem:[%s13757_s1 + $0x268] sm:$0xff] %v7801_v28  ;;  %v7887_v55 = vsel %vm7804_vm8, %v7886_v42, %v7885_v19  ;;  %8833 = vst [vmem:[%s13757_s1 + $0x288] sm:$0xff] %v8220_v36  ;;  %v7970_v43 = vsub.s32 %v7966_v50, %v7969_v29  ;;  %vm8319_vm14 = vcmp.eq.s32.totalorder %v8314_v12, 2  ;;  %vm8315_vm11 = vcmp.lt.s32.totalorder %v8314_v12, 2 }
 0x424   :  { %v7890_v57 = vsel %vm7803_vm5, %v13411_v7, %v7887_v55  ;;  %vm7898_vm6 = vcmp.eq.s32.totalorder %v7896_v56, 0  ;;  %vm7901_vm7 = vcmp.eq.s32.totalorder %v7896_v56, 2  ;;  %vm7897_vm3 = vcmp.lt.s32.totalorder %v7896_v56, 2 }
 0x425   :  { %9154 = vcosq.f32 %v7890_v57  ;;  %v7972_v0 = vsub.s32 0, %v7970_v43  ;;  %v7992_v37 = vsub.s32 4, %v13716_v32  ;;  %vm7908_vm2 = vcmp.lt.s32.totalorder %v13427_v10, 0 }
 0x426   :  { %9156 = vsinq.f32 %v7890_v57  ;;  %vm7907_vm1 = vcmp.le.f32.partialorder %v7906_v60, 0.7853982 }
 0x427   :  { %v8809_v13 = vmin.u32 %v7972_v0, %v7970_v43  ;;  %v7993_v58 = vsel %vm7908_vm2, %v7992_v37, %v13716_v32 }
 0x428   :  { %v7995_v23 = vsel %vm7907_vm1, 0, %v7993_v58 }
 0x429   :  { %v7974_v11 = vclz %v8809_v13  ;;  %v7999_v17 = vadd.s32 3, %v7995_v23  ;;  %v8417_v20 = vand.u32 3, %v7995_v23 }
 0x42b   :  { %v8810_v8 = vadd.s32 4294967294, %v7974_v11  ;;  %v8000_v50 = vand.u32 3, %v7999_v17  ;;  %vm8422_vm4 = vcmp.eq.s32.totalorder %v8417_v20, 2  ;;  %vm8419_vm9 = vcmp.eq.s32.totalorder %v8417_v20, 0 }
 0x42c   :  { %vm8418_vm5 = vcmp.lt.s32.totalorder %v8417_v20, 2 }
 0x42d   :  { %vm8811_vm10 = vcmp.lt.s32.totalorder %v8810_v8, 0  ;;  %vm8005_vm0 = vcmp.eq.s32.totalorder %v8000_v50, 2  ;;  %vm8002_vm15 = vcmp.eq.s32.totalorder %v8000_v50, 0  ;;  %vm8001_vm8 = vcmp.lt.s32.totalorder %v8000_v50, 2 }
 0x42e   :  { %v7977_v47 = vsel %vm8811_vm10, 0, %v8810_v8 }
 0x42f   :  { %v9155_v26 = vpop.eup %9154  ;;  %v7978_v45 = vsub.s32 32, %v7977_v47  ;;  %v7979_v1 = vshll.u32 %v7970_v43, %v7977_v47  ;;  %v7982_v48 = vsub.s32 4294967266, %v7977_v47 }
 0x430   :  { %v9157_v16 = vpop.eup %9156  ;;  %v7902_v18 = vxor.u32 2147483648, %v9155_v26 }
 0x431   :  { %v7899_v33 = vxor.u32 2147483648, %v9157_v16  ;;  %v7980_v59 = vshrl.u32 %v7962_v22, %v7978_v45  ;;  %v7983_v54 = vadd.s32 127, %v7982_v48 }
 0x432   :  { %v7903_v53 = vsel %vm7901_vm7, %v7902_v18, %v9157_v16  ;;  %v8321_v21 = vsel %vm8319_vm14, %v7902_v18, %v9157_v16 }
 0x433   :  { %v7900_v39 = vsel %vm7898_vm6, %v9155_v26, %v7899_v33  ;;  %v8318_v2 = vsel %vm8316_vm13, %v9155_v26, %v7899_v33  ;;  %v7981_v49 = vor.u32 %v7980_v59, %v7979_v1  ;;  %v7984_v14 = vshll.u32 %v7983_v54, 23 }
 0x434   :  { %v7904_v35 = vsel %vm7897_vm3, %v7900_v39, %v7903_v53  ;;  %v8322_v40 = vsel %vm8315_vm11, %v8318_v2, %v8321_v21  ;;  %vm7998_vm6 = vweird.f32 %v13427_v10 }
 0x435   :  { %v7905_v3 = vsel %vm7894_vm12, nan, %v7904_v35  ;;  %v8323_v46 = vsel %vm7894_vm12, nan, %v8322_v40  ;;  %v7985_v7 = vor.u32 4788187, %v7984_v14  ;;  %v7988_v5 = vcvt.s32.f32 %v7981_v49 }
 0x436   :  { %8814 = vst [vmem:[%s13757_s1 + $0x270] sm:$0xff] %v7905_v3  ;;  %8834 = vst [vmem:[%s13757_s1 + $0x290] sm:$0xff] %v8323_v46 }
 0x437   :  { %v7986_v6 = vand.u32 2147483647, %v7985_v7 }
 0x439   :  { %v7989_v31 = vmul.f32 %v7988_v5, %v7986_v6 }
 0x43b   :  { %v7990_v51 = vxor.u32 2147483648, %v7989_v31 }
 0x43d   :  { %v7991_v27 = vsel %vm7908_vm2, %v7990_v51, %v7989_v31 }
 0x43e   :  { %v7994_v25 = vsel %vm7907_vm1, %v13427_v10, %v7991_v27 }
 0x43f   :  { %9158 = vcosq.f32 %v7994_v25 }
 0x440   :  { %9160 = vsinq.f32 %v7994_v25 }
 0x449   :  { %v9159_v41 = vpop.eup %9158 }
 0x44a   :  { %v9161_v30 = vpop.eup %9160  ;;  %v8006_v44 = vxor.u32 2147483648, %v9159_v41 }
 0x44b   :  { %v8003_v60 = vxor.u32 2147483648, %v9161_v30 }
 0x44c   :  { %v8007_v63 = vsel %vm8005_vm0, %v8006_v44, %v9161_v30  ;;  %v8424_v61 = vsel %vm8422_vm4, %v8006_v44, %v9161_v30 }
 0x44d   :  { %v8004_v19 = vsel %vm8002_vm15, %v9159_v41, %v8003_v60  ;;  %v8421_v38 = vsel %vm8419_vm9, %v9159_v41, %v8003_v60 }
 0x44e   :  { %v8008_v9 = vsel %vm8001_vm8, %v8004_v19, %v8007_v63  ;;  %v8425_v52 = vsel %vm8418_vm5, %v8421_v38, %v8424_v61 }
 0x44f   :  { %v8009_v32 = vsel %vm7998_vm6, nan, %v8008_v9  ;;  %v8426_v62 = vsel %vm7998_vm6, nan, %v8425_v52 }
 0x450   :  { %8815 = vst [vmem:[%s13757_s1 + $0x278] sm:$0xff] %v8009_v32  ;;  %8835 = vst [vmem:[%s13757_s1 + $0x298] sm:$0xff] %v8426_v62 }

</bundles_post_ra>
